<compile_context>
chip_gen: v6e
topology: v6e:2x2x1
jax: 0.10.0
libtpu: 0.0.40
codegen_flags: <defaults>
</compile_context>

<pallas_src>
import functools

import jax
import jax.numpy as jnp
from jax import lax
from jax.experimental import pallas as pl
from jax.experimental.pallas import tpu as pltpu

_LN_EPS = 1e-5


def _vmem_limit_bytes():
    """Generation-aware VMEM limit (~75% of physical, clamped)."""
    try:
        cap = int(pltpu.get_tpu_info().vmem_capacity_bytes)
    except Exception:
        cap = 64 * 1024 * 1024
    return max(32 * 1024 * 1024, min(int(cap * 0.75), 100 * 1024 * 1024))


_VMEM_LIMIT = _vmem_limit_bytes()
_TILE_BUDGET = _VMEM_LIMIT // 3          # leave room for weights / double-buffering


# ------------------------------ small utilities ------------------------------

def _pick_tile(total, per_item_bytes, budget):
    """Largest divisor of `total` whose block fits the byte budget."""
    cap = int(max(1, min(total, budget // max(per_item_bytes, 1))))
    for t in range(cap, 0, -1):
        if total % t == 0:
            return t
    return 1


def _full_spec(a):
    n = a.ndim
    return pl.BlockSpec(a.shape, lambda *_, n=n: (0,) * n)


def _mosaic_params(semantics):
    return pltpu.CompilerParams(dimension_semantics=tuple(semantics),
                                vmem_limit_bytes=_VMEM_LIMIT)


# ------------------------------ in-kernel helpers -----------------------------

def _ln(x, g, b, eps):
    mu = jnp.mean(x, axis=-1, keepdims=True)
    xc = x - mu
    var = jnp.mean(xc * xc, axis=-1, keepdims=True)
    return xc * lax.rsqrt(var + eps) * g + b


def _erf(x):
    # Abramowitz & Stegun 7.1.26 polynomial, |err| < 1.5e-7 (~f32 eps).
    a1, a2, a3, a4, a5 = (0.254829592, -0.284496736, 1.421413741,
                          -1.453152027, 1.061405429)
    p = 0.3275911
    sgn = jnp.where(x >= 0.0, 1.0, -1.0)
    z = jnp.abs(x)
    t = 1.0 / (1.0 + p * z)
    poly = ((((a5 * t + a4) * t + a3) * t + a2) * t + a1) * t
    return sgn * (1.0 - poly * jnp.exp(-z * z))


def _gelu_exact(x):
    return 0.5 * x * (1.0 + _erf(x * 0.7071067811865476))


def _attend(q, k, v, *, heads, dh):
    """q:(G,Nq,inner), k/v:(G,Nk,inner); scale already folded into q projection.
    Returns (G,Nq,inner) f32 (per-head outputs concatenated, ready for one
    full-inner output projection)."""
    outs = []
    for h in range(heads):                       # small static head count
        sl = slice(h * dh, (h + 1) * dh)
        qh = q[:, :, sl].astype(jnp.bfloat16)
        kh = k[:, :, sl].astype(jnp.bfloat16)
        vh = v[:, :, sl].astype(jnp.bfloat16)
        s = jnp.einsum('gnd,gmd->gnm', qh, kh, preferred_element_type=jnp.float32)
        s = s - jnp.max(s, axis=-1, keepdims=True)
        p = jnp.exp(s)
        p = p * pl.reciprocal(jnp.sum(p, axis=-1, keepdims=True), approx=True)
        oh = jnp.einsum('gnm,gmd->gnd', p.astype(jnp.bfloat16), vh,
                        preferred_element_type=jnp.float32)
        outs.append(oh)
    return outs[0] if heads == 1 else jnp.concatenate(outs, axis=-1)


# --------------------------------- kernels -----------------------------------

def _self_attn_kernel(x_ref, *rest, heads, dh, eps, has_extra, add_residual):
    """PreNorm + self attention (one axial direction) + out-proj
    (+ residual) (+ extra, i.e. the other axial direction's output)."""
    if has_extra:
        extra_ref, g_ref, b_ref, wqkv_ref, wo_ref, bo_ref, o_ref = rest
    else:
        g_ref, b_ref, wqkv_ref, wo_ref, bo_ref, o_ref = rest
        extra_ref = None

    x = x_ref[...].astype(jnp.float32)                  # (G, N, D)
    G, N, D = x.shape
    inner = heads * dh
    xn = _ln(x, g_ref[...], b_ref[...], eps)
    xn2 = xn.reshape(G * N, D).astype(jnp.bfloat16)
    # fused QKV projection: one wide MXU matmul
    qkv = jnp.dot(xn2, wqkv_ref[...], preferred_element_type=jnp.float32)
    qkv = qkv.reshape(G, N, 3 * inner)
    q = qkv[:, :, :inner]
    k = qkv[:, :, inner:2 * inner]
    v = qkv[:, :, 2 * inner:]
    o = _attend(q, k, v, heads=heads, dh=dh)            # (G, N, inner) f32
    y = jnp.dot(o.reshape(G * N, inner).astype(jnp.bfloat16), wo_ref[...],
                preferred_element_type=jnp.float32).reshape(G, N, D)
    y = y + bo_ref[...]
    if add_residual:
        y = y + x
    if extra_ref is not None:
        y = y + extra_ref[...].astype(jnp.float32)
    o_ref[...] = y.astype(o_ref.dtype)


def _cross_attn_kernel(x_ref, c_ref, gx_ref, bx_ref, gc_ref, bc_ref,
                       wq_ref, wkv_ref, wo_ref, bo_ref, o_ref, kv_scr,
                       *, heads, dh, eps):
    """PreNormCross + cross attention + out-proj + residual.
    The context-side LayerNorm and k/v projection are cached in VMEM scratch
    and computed once per batch element (qi == 0)."""
    inner = heads * dh

    @pl.when(pl.program_id(1) == 0)
    def _():
        c = c_ref[0].astype(jnp.float32)                # (Nk, D)
        cn = _ln(c, gc_ref[...], bc_ref[...], eps).astype(jnp.bfloat16)
        kv = jnp.dot(cn, wkv_ref[...], preferred_element_type=jnp.float32)
        kv_scr[...] = kv.astype(jnp.bfloat16)           # (Nk, 2*inner)

    x = x_ref[0].astype(jnp.float32)                    # (TQ, D)
    xn = _ln(x, gx_ref[...], bx_ref[...], eps).astype(jnp.bfloat16)
    q = jnp.dot(xn, wq_ref[...], preferred_element_type=jnp.float32)  # (TQ, inner)
    kv = kv_scr[...]
    k = kv[:, :inner]
    v = kv[:, inner:]
    o = _attend(q[None], k[None], v[None], heads=heads, dh=dh)[0]     # (TQ, inner)
    y = jnp.dot(o.astype(jnp.bfloat16), wo_ref[...],
                preferred_element_type=jnp.float32) + bo_ref[...] + x
    o_ref[0] = y.astype(o_ref.dtype)


def _ff_kernel(x_ref, g_ref, b_ref, w1_ref, b1_ref, w2_ref, b2_ref, o_ref, *, eps):
    """PreNorm + Linear -> GEGLU -> Linear + residual, fully fused."""
    x = x_ref[...].astype(jnp.float32)                  # (TR, D)
    xn = _ln(x, g_ref[...], b_ref[...], eps).astype(jnp.bfloat16)
    h = jnp.dot(xn, w1_ref[...], preferred_element_type=jnp.float32) + b1_ref[...]
    dm = h.shape[-1] // 2
    a = h[:, :dm]
    gates = h[:, dm:]
    y = jnp.dot((a * _gelu_exact(gates)).astype(jnp.bfloat16), w2_ref[...],
                preferred_element_type=jnp.float32) + b2_ref[...]
    o_ref[...] = (y + x).astype(o_ref.dtype)


def _ln_linear_kernel(x_ref, g_ref, b_ref, w_ref, wb_ref, o_ref, *, eps):
    """LayerNorm + Linear (distogram head); output padded to 128 lanes."""
    x = x_ref[...].astype(jnp.float32)
    xn = _ln(x, g_ref[...], b_ref[...], eps).astype(jnp.bfloat16)
    o_ref[...] = jnp.dot(xn, w_ref[...], preferred_element_type=jnp.float32) + wb_ref[...]


# --------------------------------- wrappers -----------------------------------

def fused_self_attention(x, ln_g, ln_b, ap, *, heads, dim_head,
                         add_residual, extra=None):
    """x: (BB, N, D) bf16 -> PreNorm + Attention (+ x) (+ extra)."""
    BB, N, D = x.shape
    inner = heads * dim_head
    per_group = N * (24 * D + 24 * inner + 8 * N) + 1
    G = _pick_tile(BB, per_group, _TILE_BUDGET)
    has_extra = extra is not None
    kern = functools.partial(_self_attn_kernel, heads=heads, dh=dim_head,
                             eps=_LN_EPS, has_extra=has_extra,
                             add_residual=add_residual)
    xspec = pl.BlockSpec((G, N, D), lambda i: (i, 0, 0))
    in_specs = [xspec]
    args = [x]
    if has_extra:
        in_specs.append(xspec)
        args.append(extra)
    w_args = [ln_g, ln_b, ap["wqkv"], ap["wo"], ap["bo"]]
    in_specs += [_full_spec(a) for a in w_args]
    args += w_args
    return pl.pallas_call(
        kern,
        grid=(BB // G,),
        in_specs=in_specs,
        out_specs=xspec,
        out_shape=jax.ShapeDtypeStruct((BB, N, D), x.dtype),
        compiler_params=_mosaic_params(("parallel",)),
    )(*args)


def fused_cross_attention(x, context, p, *, heads, dim_head):
    """x:(B,Nq,D), context:(B,Nk,D) bf16 -> PreNormCross + Attention + residual."""
    B, Nq, D = x.shape
    Nk = context.shape[1]
    inner = heads * dim_head
    per_row = 24 * D + 24 * inner + 16 * Nk + 1
    resident = Nk * (2 * D + 4 * inner)           # context block + kv scratch
    budget = max(_TILE_BUDGET - resident, per_row)
    TQ = _pick_tile(Nq, per_row, budget)
    kern = functools.partial(_cross_attn_kernel, heads=heads, dh=dim_head,
                             eps=_LN_EPS)
    return pl.pallas_call(
        kern,
        grid=(B, Nq // TQ),
        in_specs=[pl.BlockSpec((1, TQ, D), lambda bi, qi: (bi, qi, 0)),
                  pl.BlockSpec((1, Nk, D), lambda bi, qi: (bi, 0, 0)),  # resident
                  _full_spec(p["ln_g"]), _full_spec(p["ln_b"]),
                  _full_spec(p["ln_cg"]), _full_spec(p["ln_cb"]),
                  _full_spec(p["wq"]), _full_spec(p["wkv"]),
                  _full_spec(p["wo"]), _full_spec(p["bo"])],
        out_specs=pl.BlockSpec((1, TQ, D), lambda bi, qi: (bi, qi, 0)),
        out_shape=jax.ShapeDtypeStruct((B, Nq, D), x.dtype),
        scratch_shapes=[pltpu.VMEM((Nk, 2 * inner), jnp.bfloat16)],
        compiler_params=_mosaic_params(("parallel", "arbitrary")),
    )(x, context, p["ln_g"], p["ln_b"], p["ln_cg"], p["ln_cb"],
      p["wq"], p["wkv"], p["wo"], p["bo"])


def fused_ff(x, p):
    """PreNorm + GEGLU feed-forward + residual over the last axis."""
    lead = x.shape[:-1]
    D = x.shape[-1]
    x2 = x.reshape(-1, D)
    R = x2.shape[0]
    hidden = p["w1"].shape[1]
    per_row = 8 * D + 8 * hidden + 1
    TR = _pick_tile(R, per_row, _TILE_BUDGET)
    w_args = [p["ln_g"], p["ln_b"], p["w1"], p["b1"], p["w2"], p["b2"]]
    out = pl.pallas_call(
        functools.partial(_ff_kernel, eps=_LN_EPS),
        grid=(R // TR,),
        in_specs=[pl.BlockSpec((TR, D), lambda i: (i, 0))]
                 + [_full_spec(a) for a in w_args],
        out_specs=pl.BlockSpec((TR, D), lambda i: (i, 0)),
        out_shape=jax.ShapeDtypeStruct((R, D), x.dtype),
        compiler_params=_mosaic_params(("parallel",)),
    )(x2, *w_args)
    return out.reshape(*lead, D)


def fused_ln_linear(x, p, *, buckets):
    """LayerNorm + Linear (distogram head); lane-dense padded output, sliced back."""
    lead = x.shape[:-1]
    D = x.shape[-1]
    Npad = p["w"].shape[1]
    x2 = x.reshape(-1, D)
    R = x2.shape[0]
    per_row = 8 * D + 8 * Npad + 1
    TR = _pick_tile(R, per_row, _TILE_BUDGET)
    w_args = [p["ln_g"], p["ln_b"], p["w"], p["b"]]
    out = pl.pallas_call(
        functools.partial(_ln_linear_kernel, eps=_LN_EPS),
        grid=(R // TR,),
        in_specs=[pl.BlockSpec((TR, D), lambda i: (i, 0))]
                 + [_full_spec(a) for a in w_args],
        out_specs=pl.BlockSpec((TR, Npad), lambda i: (i, 0)),
        out_shape=jax.ShapeDtypeStruct((R, Npad), jnp.float32),
        compiler_params=_mosaic_params(("parallel",)),
    )(x2, *w_args)
    return out[:, :buckets].reshape(*lead, buckets)


# -------------------------------- model modules -------------------------------

def prenorm_axial_attention(p, x, shape, *, heads, dim_head):
    """PreNorm(AxialAttention)(x) + x ; residual & combine fused into the height call."""
    b, H, W, d = shape
    x4 = x.reshape(b, H, W, d)
    # width attention: 'b h w d -> (b w) h d'
    w_in = x4.transpose(0, 2, 1, 3).reshape(b * W, H, d)
    w_out = fused_self_attention(w_in, p["ln_g"], p["ln_b"], p["width"],
                                 heads=heads, dim_head=dim_head,
                                 add_residual=False)
    w_out = w_out.reshape(b, W, H, d).transpose(0, 2, 1, 3).reshape(b * H, W, d)
    # height attention: 'b h w d -> (b h) w d' — carries residual + width output
    h_in = x4.reshape(b * H, W, d)
    out = fused_self_attention(h_in, p["ln_g"], p["ln_b"], p["height"],
                               heads=heads, dim_head=dim_head,
                               add_residual=True, extra=w_out)
    return out.reshape(b, H * W, d)


def alphafold2_forward(params, seq, msa, *, dim, heads, dim_head, buckets):
    b, n = seq.shape
    tok = params["token_emb"]

    x_tok = tok[seq]                                         # (b, n, dim)
    x = x_tok[:, :, None, :] + x_tok[:, None, :, :]          # (b, n, n, dim)
    seq_shape = x.shape
    pos = (params["pos_emb"][:n][None, :, None, :]
           + params["pos_emb_ax"][:n][None, None, :, :])
    x = (x + pos).reshape(b, n * n, dim).astype(jnp.bfloat16)

    _, num_msa, n_msa = msa.shape
    m = tok[msa]                                             # (b, num_msa, n_msa, dim)
    m = m + params["msa_pos_emb"][:n_msa][None, None, :, :]
    m = m + params["msa_num_pos_emb"][:num_msa][None, :, None, :]
    msa_shape = m.shape
    m = m.reshape(b, num_msa * n_msa, dim).astype(jnp.bfloat16)

    # trunk (SequentialSequence, reversible=False => each layer-pair keeps 3 modules)
    for lp in params["layers"]:
        x = prenorm_axial_attention(lp["seq_attn"], x, seq_shape,
                                    heads=heads, dim_head=dim_head)
        m = prenorm_axial_attention(lp["msa_attn"], m, msa_shape,
                                    heads=heads, dim_head=dim_head)
        x = fused_cross_attention(x, m, lp["cross"], heads=heads, dim_head=dim_head)
        m = fused_cross_attention(m, x, lp["msa_cross"], heads=heads, dim_head=dim_head)
        x = fused_ff(x, lp["ff"])
        m = fused_ff(m, lp["msa_ff"])

    x = x.reshape(b, n, n, dim)
    x = (x + jnp.transpose(x, (0, 2, 1, 3))) * 0.5
    return fused_ln_linear(x, params["dist"], buckets=buckets)   # (b, n, n, buckets)


# ------------------------- parameter init & pre-packing ------------------------

def init_params(key, *, dim, heads, dim_head, depth, num_tokens, max_seq_len,
                max_num_msa, buckets, ff_mult=4):
    inner = dim_head * heads
    keys = iter(jax.random.split(key, 1024))

    def nrm(shape, std=0.02):
        return jax.random.normal(next(keys), shape, jnp.float32) * std

    def attn():
        return dict(wq=nrm((dim, inner)), wkv=nrm((dim, 2 * inner)),
                    wo=nrm((inner, dim)), bo=jnp.zeros((dim,), jnp.float32))

    def ln():
        return jnp.ones((dim,), jnp.float32), jnp.zeros((dim,), jnp.float32)

    def axial():
        g, b_ = ln()
        return dict(ln_g=g, ln_b=b_, width=attn(), height=attn())

    def cross():
        g, b_ = ln()
        gc, bc = ln()
        return dict(ln_g=g, ln_b=b_, ln_cg=gc, ln_cb=bc, attn=attn())

    def ff():
        g, b_ = ln()
        return dict(ln_g=g, ln_b=b_,
                    w1=nrm((dim, dim * ff_mult * 2)),
                    b1=jnp.zeros((dim * ff_mult * 2,), jnp.float32),
                    w2=nrm((dim * ff_mult, dim)),
                    b2=jnp.zeros((dim,), jnp.float32))

    layers = [dict(seq_attn=axial(), ff=ff(), msa_attn=axial(),
                   cross=cross(), msa_ff=ff(), msa_cross=cross())
              for _ in range(depth)]

    gd, bd = ln()
    return dict(
        token_emb=nrm((num_tokens, dim)),
        pos_emb=nrm((max_seq_len, dim)),
        pos_emb_ax=nrm((max_seq_len, dim)),
        msa_pos_emb=nrm((max_seq_len, dim)),
        msa_num_pos_emb=nrm((max_num_msa, dim)),
        layers=layers,
        dist_ln_g=gd, dist_ln_b=bd,
        dist_w=nrm((dim, buckets)),
        dist_b=jnp.zeros((buckets,), jnp.float32),
    )


def _row(v):
    return v.reshape(1, -1).astype(jnp.float32)


def _prepack_attn(a, dim_head):
    scale = dim_head ** -0.5
    wqkv = jnp.concatenate([a["wq"] * scale, a["wkv"]], axis=1)  # scale folded into q
    return dict(wqkv=wqkv.astype(jnp.bfloat16),
                wo=a["wo"].astype(jnp.bfloat16),
                bo=_row(a["bo"]))


def _prepack_axial(p, dim_head):
    return dict(ln_g=_row(p["ln_g"]), ln_b=_row(p["ln_b"]),
                width=_prepack_attn(p["width"], dim_head),
                height=_prepack_attn(p["height"], dim_head))


def _prepack_cross(c, dim_head):
    a = c["attn"]
    scale = dim_head ** -0.5
    return dict(ln_g=_row(c["ln_g"]), ln_b=_row(c["ln_b"]),
                ln_cg=_row(c["ln_cg"]), ln_cb=_row(c["ln_cb"]),
                wq=(a["wq"] * scale).astype(jnp.bfloat16),
                wkv=a["wkv"].astype(jnp.bfloat16),
                wo=a["wo"].astype(jnp.bfloat16),
                bo=_row(a["bo"]))


def _prepack_ff(p):
    return dict(ln_g=_row(p["ln_g"]), ln_b=_row(p["ln_b"]),
                w1=p["w1"].astype(jnp.bfloat16), b1=_row(p["b1"]),
                w2=p["w2"].astype(jnp.bfloat16), b2=_row(p["b2"]))


def _prepack_dist(g, b_, w, wb):
    buckets = w.shape[1]
    npad = ((buckets + 127) // 128) * 128
    wpad = jnp.zeros((w.shape[0], npad), jnp.float32).at[:, :buckets].set(w)
    bpad = jnp.zeros((1, npad), jnp.float32).at[0, :buckets].set(wb)
    return dict(ln_g=_row(g), ln_b=_row(b_),
                w=wpad.astype(jnp.bfloat16), b=bpad)


def prepack_params(raw, *, dim_head):
    """One-time weight packing (outside jit): bf16 casts, qkv concat, scale fold,
    bias reshapes, lane-dense distogram padding."""
    layers = [dict(seq_attn=_prepack_axial(lp["seq_attn"], dim_head),
                   msa_attn=_prepack_axial(lp["msa_attn"], dim_head),
                   cross=_prepack_cross(lp["cross"], dim_head),
                   msa_cross=_prepack_cross(lp["msa_cross"], dim_head),
                   ff=_prepack_ff(lp["ff"]),
                   msa_ff=_prepack_ff(lp["msa_ff"]))
              for lp in raw["layers"]]
    return dict(
        token_emb=raw["token_emb"].astype(jnp.float32),
        pos_emb=raw["pos_emb"].astype(jnp.float32),
        pos_emb_ax=raw["pos_emb_ax"].astype(jnp.float32),
        msa_pos_emb=raw["msa_pos_emb"].astype(jnp.float32),
        msa_num_pos_emb=raw["msa_num_pos_emb"].astype(jnp.float32),
        layers=layers,
        dist=_prepack_dist(raw["dist_ln_g"], raw["dist_ln_b"],
                           raw["dist_w"], raw["dist_b"]),
    )


# ------------------------------------- main -----------------------------------

if __name__ == "__main__":
    DIM, HEADS, DIM_HEAD, DEPTH = 32, 2, 8, 1
    NUM_TOKENS, MAX_SEQ_LEN, MAX_NUM_MSA, BUCKETS = 21, 64, 8, 37
    B, N, NUM_MSA, N_MSA = 1, 8, 2, 8

    key = jax.random.PRNGKey(0)
    kp, ks, km = jax.random.split(key, 3)
    raw = init_params(kp, dim=DIM, heads=HEADS, dim_head=DIM_HEAD, depth=DEPTH,
                      num_tokens=NUM_TOKENS, max_seq_len=MAX_SEQ_LEN,
                      max_num_msa=MAX_NUM_MSA, buckets=BUCKETS)
    params = prepack_params(raw, dim_head=DIM_HEAD)

    seq = jax.random.randint(ks, (B, N), 0, NUM_TOKENS)
    msa = jax.random.randint(km, (B, NUM_MSA, N_MSA), 0, NUM_TOKENS)

    fwd = jax.jit(functools.partial(alphafold2_forward,
                                    dim=DIM, heads=HEADS, dim_head=DIM_HEAD,
                                    buckets=BUCKETS))
    out = fwd(params, seq, msa)
    jax.block_until_ready(out)
    assert out.shape == (B, N, N, BUCKETS), out.shape
    assert out.dtype == jnp.float32
    print("KERNEL_OK")
</pallas_src>

<mosaic_0001>
module attributes {stable_mosaic.version = 11 : i64} {
  func.func @_self_attn_kernel(%arg0: i32, %arg1: memref<8x2x32xbf16, #tpu.memory_space<vmem>>, %arg2: memref<1x32xf32, #tpu.memory_space<vmem>>, %arg3: memref<1x32xf32, #tpu.memory_space<vmem>>, %arg4: memref<32x48xbf16, #tpu.memory_space<vmem>>, %arg5: memref<16x32xbf16, #tpu.memory_space<vmem>>, %arg6: memref<1x32xf32, #tpu.memory_space<vmem>>, %arg7: memref<8x2x32xbf16, #tpu.memory_space<vmem>>) attributes {dimension_semantics = [#tpu.dimension_semantics<parallel>], iteration_bounds = array<i64: 1>, scalar_prefetch = 0 : i64, scratch_operands = 0 : i64, tpu.core_type = #tpu.core_type<tc>, window_params = [{transform_indices = @transform_0, window_bounds = array<i64: 8, 2, 32>}, {pipeline_mode = #tpu.pipeline_mode<synchronous>, transform_indices = @transform_1, window_bounds = array<i64: 1, 32>}, {pipeline_mode = #tpu.pipeline_mode<synchronous>, transform_indices = @transform_2, window_bounds = array<i64: 1, 32>}, {pipeline_mode = #tpu.pipeline_mode<synchronous>, transform_indices = @transform_3, window_bounds = array<i64: 32, 48>}, {pipeline_mode = #tpu.pipeline_mode<synchronous>, transform_indices = @transform_4, window_bounds = array<i64: 16, 32>}, {pipeline_mode = #tpu.pipeline_mode<synchronous>, transform_indices = @transform_5, window_bounds = array<i64: 1, 32>}, {transform_indices = @transform_6, window_bounds = array<i64: 8, 2, 32>}]} {
    %c0 = arith.constant 0 : index
    %c0_0 = arith.constant 0 : index
    %c0_1 = arith.constant 0 : index
    %0 = vector.load %arg1[%c0, %c0_0, %c0_1] : memref<8x2x32xbf16, #tpu.memory_space<vmem>>, vector<8x2x32xbf16>
    %1 = arith.extf %0 : vector<8x2x32xbf16> to vector<8x2x32xf32>
    %c0_2 = arith.constant 0 : index
    %c0_3 = arith.constant 0 : index
    %2 = vector.load %arg2[%c0_2, %c0_3] : memref<1x32xf32, #tpu.memory_space<vmem>>, vector<1x32xf32>
    %c0_4 = arith.constant 0 : index
    %c0_5 = arith.constant 0 : index
    %3 = vector.load %arg3[%c0_4, %c0_5] : memref<1x32xf32, #tpu.memory_space<vmem>>, vector<1x32xf32>
    %cst = arith.constant dense<0.000000e+00> : vector<8x2xf32>
    %4 = vector.multi_reduction <add>, %1, %cst [2] : vector<8x2x32xf32> to vector<8x2xf32>
    %5 = vector.shape_cast %4 : vector<8x2xf32> to vector<8x2x1xf32>
    %cst_6 = arith.constant 3.200000e+01 : f32
    %6 = vector.broadcast %cst_6 : f32 to vector<8x2x1xf32>
    %7 = arith.divf %5, %6 : vector<8x2x1xf32>
    %8 = vector.broadcast %7 : vector<8x2x1xf32> to vector<8x2x32xf32>
    %9 = arith.subf %1, %8 : vector<8x2x32xf32>
    %10 = arith.mulf %9, %9 : vector<8x2x32xf32>
    %cst_7 = arith.constant dense<0.000000e+00> : vector<8x2xf32>
    %11 = vector.multi_reduction <add>, %10, %cst_7 [2] : vector<8x2x32xf32> to vector<8x2xf32>
    %12 = vector.shape_cast %11 : vector<8x2xf32> to vector<8x2x1xf32>
    %cst_8 = arith.constant 3.200000e+01 : f32
    %13 = vector.broadcast %cst_8 : f32 to vector<8x2x1xf32>
    %14 = arith.divf %12, %13 : vector<8x2x1xf32>
    %cst_9 = arith.constant 9.99999974E-6 : f32
    %15 = vector.broadcast %cst_9 : f32 to vector<8x2x1xf32>
    %16 = arith.addf %14, %15 : vector<8x2x1xf32>
    %17 = math.rsqrt %16 : vector<8x2x1xf32>
    %18 = vector.broadcast %17 : vector<8x2x1xf32> to vector<8x2x32xf32>
    %19 = arith.mulf %9, %18 : vector<8x2x32xf32>
    %20 = vector.shape_cast %2 : vector<1x32xf32> to vector<1x1x32xf32>
    %21 = vector.broadcast %20 : vector<1x1x32xf32> to vector<8x2x32xf32>
    %22 = arith.mulf %19, %21 : vector<8x2x32xf32>
    %23 = vector.shape_cast %3 : vector<1x32xf32> to vector<1x1x32xf32>
    %24 = vector.broadcast %23 : vector<1x1x32xf32> to vector<8x2x32xf32>
    %25 = arith.addf %22, %24 : vector<8x2x32xf32>
    %26 = vector.shape_cast %25 : vector<8x2x32xf32> to vector<16x32xf32>
    %27 = arith.truncf %26 : vector<16x32xf32> to vector<16x32xbf16>
    %c0_10 = arith.constant 0 : index
    %c0_11 = arith.constant 0 : index
    %28 = vector.load %arg4[%c0_10, %c0_11] : memref<32x48xbf16, #tpu.memory_space<vmem>>, vector<32x48xbf16>
    %cst_12 = arith.constant dense<0.000000e+00> : vector<16x48xf32>
    %29 = tpu.matmul %27, %28, %cst_12 {dimension_numbers = #tpu.dot_dimension_numbers<[1], [0], [0], [1], [0, 0, 1, 1], [], []>} : vector<16x32xbf16>, vector<32x48xbf16>, vector<16x48xf32> -> vector<16x48xf32>
    %30 = vector.shape_cast %29 : vector<16x48xf32> to vector<8x2x48xf32>
    %31 = vector.extract_strided_slice %30 {offsets = [0, 0, 0], sizes = [8, 2, 16], strides = [1, 1, 1]} : vector<8x2x48xf32> to vector<8x2x16xf32>
    %32 = vector.extract_strided_slice %30 {offsets = [0, 0, 16], sizes = [8, 2, 16], strides = [1, 1, 1]} : vector<8x2x48xf32> to vector<8x2x16xf32>
    %33 = vector.extract_strided_slice %30 {offsets = [0, 0, 32], sizes = [8, 2, 16], strides = [1, 1, 1]} : vector<8x2x48xf32> to vector<8x2x16xf32>
    %34 = vector.extract_strided_slice %31 {offsets = [0, 0, 0], sizes = [8, 2, 8], strides = [1, 1, 1]} : vector<8x2x16xf32> to vector<8x2x8xf32>
    %35 = arith.truncf %34 : vector<8x2x8xf32> to vector<8x2x8xbf16>
    %36 = vector.extract_strided_slice %32 {offsets = [0, 0, 0], sizes = [8, 2, 8], strides = [1, 1, 1]} : vector<8x2x16xf32> to vector<8x2x8xf32>
    %37 = arith.truncf %36 : vector<8x2x8xf32> to vector<8x2x8xbf16>
    %38 = vector.extract_strided_slice %33 {offsets = [0, 0, 0], sizes = [8, 2, 8], strides = [1, 1, 1]} : vector<8x2x16xf32> to vector<8x2x8xf32>
    %39 = arith.truncf %38 : vector<8x2x8xf32> to vector<8x2x8xbf16>
    "tpu.trace_start"() <{level = 10 : i32, message = "gnd,gmd->gnm"}> : () -> ()
    %cst_13 = arith.constant dense<0.000000e+00> : vector<8x2x2xf32>
    %40 = tpu.matmul %35, %37, %cst_13 {dimension_numbers = #tpu.dot_dimension_numbers<[2], [2], [1], [1], [0, 0, 0, 1, 1, 1], [0], [0]>} : vector<8x2x8xbf16>, vector<8x2x8xbf16>, vector<8x2x2xf32> -> vector<8x2x2xf32>
    "tpu.trace_stop"() : () -> ()
    %cst_14 = arith.constant dense<0xFF800000> : vector<8x2xf32>
    %41 = vector.multi_reduction <maximumf>, %40, %cst_14 [2] : vector<8x2x2xf32> to vector<8x2xf32>
    %42 = vector.shape_cast %41 : vector<8x2xf32> to vector<8x2x1xf32>
    %43 = vector.broadcast %42 : vector<8x2x1xf32> to vector<8x2x2xf32>
    %44 = arith.subf %40, %43 : vector<8x2x2xf32>
    %45 = math.exp %44 : vector<8x2x2xf32>
    %cst_15 = arith.constant dense<0.000000e+00> : vector<8x2xf32>
    %46 = vector.multi_reduction <add>, %45, %cst_15 [2] : vector<8x2x2xf32> to vector<8x2xf32>
    %47 = vector.shape_cast %46 : vector<8x2xf32> to vector<8x2x1xf32>
    %48 = tpu.reciprocal %47 {approx = true} : vector<8x2x1xf32> -> vector<8x2x1xf32>
    %49 = vector.broadcast %48 : vector<8x2x1xf32> to vector<8x2x2xf32>
    %50 = arith.mulf %45, %49 : vector<8x2x2xf32>
    %51 = arith.truncf %50 : vector<8x2x2xf32> to vector<8x2x2xbf16>
    "tpu.trace_start"() <{level = 10 : i32, message = "gnm,gmd->gnd"}> : () -> ()
    %cst_16 = arith.constant dense<0.000000e+00> : vector<8x2x8xf32>
    %52 = tpu.matmul %51, %39, %cst_16 {dimension_numbers = #tpu.dot_dimension_numbers<[2], [1], [1], [2], [0, 0, 0, 1, 1, 2], [0], [0]>} : vector<8x2x2xbf16>, vector<8x2x8xbf16>, vector<8x2x8xf32> -> vector<8x2x8xf32>
    "tpu.trace_stop"() : () -> ()
    %53 = vector.extract_strided_slice %31 {offsets = [0, 0, 8], sizes = [8, 2, 8], strides = [1, 1, 1]} : vector<8x2x16xf32> to vector<8x2x8xf32>
    %54 = arith.truncf %53 : vector<8x2x8xf32> to vector<8x2x8xbf16>
    %55 = vector.extract_strided_slice %32 {offsets = [0, 0, 8], sizes = [8, 2, 8], strides = [1, 1, 1]} : vector<8x2x16xf32> to vector<8x2x8xf32>
    %56 = arith.truncf %55 : vector<8x2x8xf32> to vector<8x2x8xbf16>
    %57 = vector.extract_strided_slice %33 {offsets = [0, 0, 8], sizes = [8, 2, 8], strides = [1, 1, 1]} : vector<8x2x16xf32> to vector<8x2x8xf32>
    %58 = arith.truncf %57 : vector<8x2x8xf32> to vector<8x2x8xbf16>
    "tpu.trace_start"() <{level = 10 : i32, message = "gnd,gmd->gnm"}> : () -> ()
    %cst_17 = arith.constant dense<0.000000e+00> : vector<8x2x2xf32>
    %59 = tpu.matmul %54, %56, %cst_17 {dimension_numbers = #tpu.dot_dimension_numbers<[2], [2], [1], [1], [0, 0, 0, 1, 1, 1], [0], [0]>} : vector<8x2x8xbf16>, vector<8x2x8xbf16>, vector<8x2x2xf32> -> vector<8x2x2xf32>
    "tpu.trace_stop"() : () -> ()
    %cst_18 = arith.constant dense<0xFF800000> : vector<8x2xf32>
    %60 = vector.multi_reduction <maximumf>, %59, %cst_18 [2] : vector<8x2x2xf32> to vector<8x2xf32>
    %61 = vector.shape_cast %60 : vector<8x2xf32> to vector<8x2x1xf32>
    %62 = vector.broadcast %61 : vector<8x2x1xf32> to vector<8x2x2xf32>
    %63 = arith.subf %59, %62 : vector<8x2x2xf32>
    %64 = math.exp %63 : vector<8x2x2xf32>
    %cst_19 = arith.constant dense<0.000000e+00> : vector<8x2xf32>
    %65 = vector.multi_reduction <add>, %64, %cst_19 [2] : vector<8x2x2xf32> to vector<8x2xf32>
    %66 = vector.shape_cast %65 : vector<8x2xf32> to vector<8x2x1xf32>
    %67 = tpu.reciprocal %66 {approx = true} : vector<8x2x1xf32> -> vector<8x2x1xf32>
    %68 = vector.broadcast %67 : vector<8x2x1xf32> to vector<8x2x2xf32>
    %69 = arith.mulf %64, %68 : vector<8x2x2xf32>
    %70 = arith.truncf %69 : vector<8x2x2xf32> to vector<8x2x2xbf16>
    "tpu.trace_start"() <{level = 10 : i32, message = "gnm,gmd->gnd"}> : () -> ()
    %cst_20 = arith.constant dense<0.000000e+00> : vector<8x2x8xf32>
    %71 = tpu.matmul %70, %58, %cst_20 {dimension_numbers = #tpu.dot_dimension_numbers<[2], [1], [1], [2], [0, 0, 0, 1, 1, 2], [0], [0]>} : vector<8x2x2xbf16>, vector<8x2x8xbf16>, vector<8x2x8xf32> -> vector<8x2x8xf32>
    "tpu.trace_stop"() : () -> ()
    %72 = tpu.concatenate %52, %71 in 2 : vector<8x2x8xf32>, vector<8x2x8xf32> -> vector<8x2x16xf32>
    %73 = vector.shape_cast %72 : vector<8x2x16xf32> to vector<16x16xf32>
    %74 = arith.truncf %73 : vector<16x16xf32> to vector<16x16xbf16>
    %c0_21 = arith.constant 0 : index
    %c0_22 = arith.constant 0 : index
    %75 = vector.load %arg5[%c0_21, %c0_22] : memref<16x32xbf16, #tpu.memory_space<vmem>>, vector<16x32xbf16>
    %cst_23 = arith.constant dense<0.000000e+00> : vector<16x32xf32>
    %76 = tpu.matmul %74, %75, %cst_23 {dimension_numbers = #tpu.dot_dimension_numbers<[1], [0], [0], [1], [0, 0, 1, 1], [], []>} : vector<16x16xbf16>, vector<16x32xbf16>, vector<16x32xf32> -> vector<16x32xf32>
    %77 = vector.shape_cast %76 : vector<16x32xf32> to vector<8x2x32xf32>
    %c0_24 = arith.constant 0 : index
    %c0_25 = arith.constant 0 : index
    %78 = vector.load %arg6[%c0_24, %c0_25] : memref<1x32xf32, #tpu.memory_space<vmem>>, vector<1x32xf32>
    %79 = vector.shape_cast %78 : vector<1x32xf32> to vector<1x1x32xf32>
    %80 = vector.broadcast %79 : vector<1x1x32xf32> to vector<8x2x32xf32>
    %81 = arith.addf %77, %80 : vector<8x2x32xf32>
    %82 = arith.truncf %81 : vector<8x2x32xf32> to vector<8x2x32xbf16>
    %c0_26 = arith.constant 0 : index
    %c0_27 = arith.constant 0 : index
    %c0_28 = arith.constant 0 : index
    %83 = vector.load %arg7[%c0_26, %c0_27, %c0_28] : memref<8x2x32xbf16, #tpu.memory_space<vmem>>, vector<8x2x32xbf16>
    tpu.vector_store %arg7[%c0_26, %c0_27, %c0_28], %82 {strides = array<i32>} : memref<8x2x32xbf16, #tpu.memory_space<vmem>>, vector<8x2x32xbf16>,
    return
  }
  func.func @transform_0(%arg0: i32) -> (i32, i32, i32) {
    %c0_i32 = arith.constant 0 : i32
    %c0_i32_0 = arith.constant 0 : i32
    %c0_i32_1 = arith.constant 0 : i32
    return %arg0, %c0_i32, %c0_i32_0 : i32, i32, i32
  }
  func.func @transform_1(%arg0: i32) -> (i32, i32) {
    %c0_i32 = arith.constant 0 : i32
    %c0_i32_0 = arith.constant 0 : i32
    %c0_i32_1 = arith.constant 0 : i32
    return %c0_i32, %c0_i32_0 : i32, i32
  }
  func.func @transform_2(%arg0: i32) -> (i32, i32) {
    %c0_i32 = arith.constant 0 : i32
    %c0_i32_0 = arith.constant 0 : i32
    %c0_i32_1 = arith.constant 0 : i32
    return %c0_i32, %c0_i32_0 : i32, i32
  }
  func.func @transform_3(%arg0: i32) -> (i32, i32) {
    %c0_i32 = arith.constant 0 : i32
    %c0_i32_0 = arith.constant 0 : i32
    %c0_i32_1 = arith.constant 0 : i32
    return %c0_i32, %c0_i32_0 : i32, i32
  }
  func.func @transform_4(%arg0: i32) -> (i32, i32) {
    %c0_i32 = arith.constant 0 : i32
    %c0_i32_0 = arith.constant 0 : i32
    %c0_i32_1 = arith.constant 0 : i32
    return %c0_i32, %c0_i32_0 : i32, i32
  }
  func.func @transform_5(%arg0: i32) -> (i32, i32) {
    %c0_i32 = arith.constant 0 : i32
    %c0_i32_0 = arith.constant 0 : i32
    %c0_i32_1 = arith.constant 0 : i32
    return %c0_i32, %c0_i32_0 : i32, i32
  }
  func.func @transform_6(%arg0: i32) -> (i32, i32, i32) {
    %c0_i32 = arith.constant 0 : i32
    %c0_i32_0 = arith.constant 0 : i32
    %c0_i32_1 = arith.constant 0 : i32
    return %arg0, %c0_i32, %c0_i32_0 : i32, i32, i32
  }
}

module attributes {stable_mosaic.version = 11 : i64} {
  func.func @_self_attn_kernel(%arg0: i32, %arg1: memref<2x8x32xbf16, #tpu.memory_space<vmem>>, %arg2: memref<2x8x32xbf16, #tpu.memory_space<vmem>>, %arg3: memref<1x32xf32, #tpu.memory_space<vmem>>, %arg4: memref<1x32xf32, #tpu.memory_space<vmem>>, %arg5: memref<32x48xbf16, #tpu.memory_space<vmem>>, %arg6: memref<16x32xbf16, #tpu.memory_space<vmem>>, %arg7: memref<1x32xf32, #tpu.memory_space<vmem>>, %arg8: memref<2x8x32xbf16, #tpu.memory_space<vmem>>) attributes {dimension_semantics = [#tpu.dimension_semantics<parallel>], iteration_bounds = array<i64: 1>, scalar_prefetch = 0 : i64, scratch_operands = 0 : i64, tpu.core_type = #tpu.core_type<tc>, window_params = [{transform_indices = @transform_0, window_bounds = array<i64: 2, 8, 32>}, {transform_indices = @transform_1, window_bounds = array<i64: 2, 8, 32>}, {pipeline_mode = #tpu.pipeline_mode<synchronous>, transform_indices = @transform_2, window_bounds = array<i64: 1, 32>}, {pipeline_mode = #tpu.pipeline_mode<synchronous>, transform_indices = @transform_3, window_bounds = array<i64: 1, 32>}, {pipeline_mode = #tpu.pipeline_mode<synchronous>, transform_indices = @transform_4, window_bounds = array<i64: 32, 48>}, {pipeline_mode = #tpu.pipeline_mode<synchronous>, transform_indices = @transform_5, window_bounds = array<i64: 16, 32>}, {pipeline_mode = #tpu.pipeline_mode<synchronous>, transform_indices = @transform_6, window_bounds = array<i64: 1, 32>}, {transform_indices = @transform_7, window_bounds = array<i64: 2, 8, 32>}]} {
    %c0 = arith.constant 0 : index
    %c0_0 = arith.constant 0 : index
    %c0_1 = arith.constant 0 : index
    %0 = vector.load %arg1[%c0, %c0_0, %c0_1] : memref<2x8x32xbf16, #tpu.memory_space<vmem>>, vector<2x8x32xbf16>
    %1 = arith.extf %0 : vector<2x8x32xbf16> to vector<2x8x32xf32>
    %c0_2 = arith.constant 0 : index
    %c0_3 = arith.constant 0 : index
    %2 = vector.load %arg3[%c0_2, %c0_3] : memref<1x32xf32, #tpu.memory_space<vmem>>, vector<1x32xf32>
    %c0_4 = arith.constant 0 : index
    %c0_5 = arith.constant 0 : index
    %3 = vector.load %arg4[%c0_4, %c0_5] : memref<1x32xf32, #tpu.memory_space<vmem>>, vector<1x32xf32>
    %cst = arith.constant dense<0.000000e+00> : vector<2x8xf32>
    %4 = vector.multi_reduction <add>, %1, %cst [2] : vector<2x8x32xf32> to vector<2x8xf32>
    %5 = vector.shape_cast %4 : vector<2x8xf32> to vector<2x8x1xf32>
    %cst_6 = arith.constant 3.200000e+01 : f32
    %6 = vector.broadcast %cst_6 : f32 to vector<2x8x1xf32>
    %7 = arith.divf %5, %6 : vector<2x8x1xf32>
    %8 = vector.broadcast %7 : vector<2x8x1xf32> to vector<2x8x32xf32>
    %9 = arith.subf %1, %8 : vector<2x8x32xf32>
    %10 = arith.mulf %9, %9 : vector<2x8x32xf32>
    %cst_7 = arith.constant dense<0.000000e+00> : vector<2x8xf32>
    %11 = vector.multi_reduction <add>, %10, %cst_7 [2] : vector<2x8x32xf32> to vector<2x8xf32>
    %12 = vector.shape_cast %11 : vector<2x8xf32> to vector<2x8x1xf32>
    %cst_8 = arith.constant 3.200000e+01 : f32
    %13 = vector.broadcast %cst_8 : f32 to vector<2x8x1xf32>
    %14 = arith.divf %12, %13 : vector<2x8x1xf32>
    %cst_9 = arith.constant 9.99999974E-6 : f32
    %15 = vector.broadcast %cst_9 : f32 to vector<2x8x1xf32>
    %16 = arith.addf %14, %15 : vector<2x8x1xf32>
    %17 = math.rsqrt %16 : vector<2x8x1xf32>
    %18 = vector.broadcast %17 : vector<2x8x1xf32> to vector<2x8x32xf32>
    %19 = arith.mulf %9, %18 : vector<2x8x32xf32>
    %20 = vector.shape_cast %2 : vector<1x32xf32> to vector<1x1x32xf32>
    %21 = vector.broadcast %20 : vector<1x1x32xf32> to vector<2x8x32xf32>
    %22 = arith.mulf %19, %21 : vector<2x8x32xf32>
    %23 = vector.shape_cast %3 : vector<1x32xf32> to vector<1x1x32xf32>
    %24 = vector.broadcast %23 : vector<1x1x32xf32> to vector<2x8x32xf32>
    %25 = arith.addf %22, %24 : vector<2x8x32xf32>
    %26 = vector.shape_cast %25 : vector<2x8x32xf32> to vector<16x32xf32>
    %27 = arith.truncf %26 : vector<16x32xf32> to vector<16x32xbf16>
    %c0_10 = arith.constant 0 : index
    %c0_11 = arith.constant 0 : index
    %28 = vector.load %arg5[%c0_10, %c0_11] : memref<32x48xbf16, #tpu.memory_space<vmem>>, vector<32x48xbf16>
    %cst_12 = arith.constant dense<0.000000e+00> : vector<16x48xf32>
    %29 = tpu.matmul %27, %28, %cst_12 {dimension_numbers = #tpu.dot_dimension_numbers<[1], [0], [0], [1], [0, 0, 1, 1], [], []>} : vector<16x32xbf16>, vector<32x48xbf16>, vector<16x48xf32> -> vector<16x48xf32>
    %30 = vector.shape_cast %29 : vector<16x48xf32> to vector<2x8x48xf32>
    %31 = vector.extract_strided_slice %30 {offsets = [0, 0, 0], sizes = [2, 8, 16], strides = [1, 1, 1]} : vector<2x8x48xf32> to vector<2x8x16xf32>
    %32 = vector.extract_strided_slice %30 {offsets = [0, 0, 16], sizes = [2, 8, 16], strides = [1, 1, 1]} : vector<2x8x48xf32> to vector<2x8x16xf32>
    %33 = vector.extract_strided_slice %30 {offsets = [0, 0, 32], sizes = [2, 8, 16], strides = [1, 1, 1]} : vector<2x8x48xf32> to vector<2x8x16xf32>
    %34 = vector.extract_strided_slice %31 {offsets = [0, 0, 0], sizes = [2, 8, 8], strides = [1, 1, 1]} : vector<2x8x16xf32> to vector<2x8x8xf32>
    %35 = arith.truncf %34 : vector<2x8x8xf32> to vector<2x8x8xbf16>
    %36 = vector.extract_strided_slice %32 {offsets = [0, 0, 0], sizes = [2, 8, 8], strides = [1, 1, 1]} : vector<2x8x16xf32> to vector<2x8x8xf32>
    %37 = arith.truncf %36 : vector<2x8x8xf32> to vector<2x8x8xbf16>
    %38 = vector.extract_strided_slice %33 {offsets = [0, 0, 0], sizes = [2, 8, 8], strides = [1, 1, 1]} : vector<2x8x16xf32> to vector<2x8x8xf32>
    %39 = arith.truncf %38 : vector<2x8x8xf32> to vector<2x8x8xbf16>
    "tpu.trace_start"() <{level = 10 : i32, message = "gnd,gmd->gnm"}> : () -> ()
    %cst_13 = arith.constant dense<0.000000e+00> : vector<2x8x8xf32>
    %40 = tpu.matmul %35, %37, %cst_13 {dimension_numbers = #tpu.dot_dimension_numbers<[2], [2], [1], [1], [0, 0, 0, 1, 1, 1], [0], [0]>} : vector<2x8x8xbf16>, vector<2x8x8xbf16>, vector<2x8x8xf32> -> vector<2x8x8xf32>
    "tpu.trace_stop"() : () -> ()
    %cst_14 = arith.constant dense<0xFF800000> : vector<2x8xf32>
    %41 = vector.multi_reduction <maximumf>, %40, %cst_14 [2] : vector<2x8x8xf32> to vector<2x8xf32>
    %42 = vector.shape_cast %41 : vector<2x8xf32> to vector<2x8x1xf32>
    %43 = vector.broadcast %42 : vector<2x8x1xf32> to vector<2x8x8xf32>
    %44 = arith.subf %40, %43 : vector<2x8x8xf32>
    %45 = math.exp %44 : vector<2x8x8xf32>
    %cst_15 = arith.constant dense<0.000000e+00> : vector<2x8xf32>
    %46 = vector.multi_reduction <add>, %45, %cst_15 [2] : vector<2x8x8xf32> to vector<2x8xf32>
    %47 = vector.shape_cast %46 : vector<2x8xf32> to vector<2x8x1xf32>
    %48 = tpu.reciprocal %47 {approx = true} : vector<2x8x1xf32> -> vector<2x8x1xf32>
    %49 = vector.broadcast %48 : vector<2x8x1xf32> to vector<2x8x8xf32>
    %50 = arith.mulf %45, %49 : vector<2x8x8xf32>
    %51 = arith.truncf %50 : vector<2x8x8xf32> to vector<2x8x8xbf16>
    "tpu.trace_start"() <{level = 10 : i32, message = "gnm,gmd->gnd"}> : () -> ()
    %cst_16 = arith.constant dense<0.000000e+00> : vector<2x8x8xf32>
    %52 = tpu.matmul %51, %39, %cst_16 {dimension_numbers = #tpu.dot_dimension_numbers<[2], [1], [1], [2], [0, 0, 0, 1, 1, 2], [0], [0]>} : vector<2x8x8xbf16>, vector<2x8x8xbf16>, vector<2x8x8xf32> -> vector<2x8x8xf32>
    "tpu.trace_stop"() : () -> ()
    %53 = vector.extract_strided_slice %31 {offsets = [0, 0, 8], sizes = [2, 8, 8], strides = [1, 1, 1]} : vector<2x8x16xf32> to vector<2x8x8xf32>
    %54 = arith.truncf %53 : vector<2x8x8xf32> to vector<2x8x8xbf16>
    %55 = vector.extract_strided_slice %32 {offsets = [0, 0, 8], sizes = [2, 8, 8], strides = [1, 1, 1]} : vector<2x8x16xf32> to vector<2x8x8xf32>
    %56 = arith.truncf %55 : vector<2x8x8xf32> to vector<2x8x8xbf16>
    %57 = vector.extract_strided_slice %33 {offsets = [0, 0, 8], sizes = [2, 8, 8], strides = [1, 1, 1]} : vector<2x8x16xf32> to vector<2x8x8xf32>
    %58 = arith.truncf %57 : vector<2x8x8xf32> to vector<2x8x8xbf16>
    "tpu.trace_start"() <{level = 10 : i32, message = "gnd,gmd->gnm"}> : () -> ()
    %cst_17 = arith.constant dense<0.000000e+00> : vector<2x8x8xf32>
    %59 = tpu.matmul %54, %56, %cst_17 {dimension_numbers = #tpu.dot_dimension_numbers<[2], [2], [1], [1], [0, 0, 0, 1, 1, 1], [0], [0]>} : vector<2x8x8xbf16>, vector<2x8x8xbf16>, vector<2x8x8xf32> -> vector<2x8x8xf32>
    "tpu.trace_stop"() : () -> ()
    %cst_18 = arith.constant dense<0xFF800000> : vector<2x8xf32>
    %60 = vector.multi_reduction <maximumf>, %59, %cst_18 [2] : vector<2x8x8xf32> to vector<2x8xf32>
    %61 = vector.shape_cast %60 : vector<2x8xf32> to vector<2x8x1xf32>
    %62 = vector.broadcast %61 : vector<2x8x1xf32> to vector<2x8x8xf32>
    %63 = arith.subf %59, %62 : vector<2x8x8xf32>
    %64 = math.exp %63 : vector<2x8x8xf32>
    %cst_19 = arith.constant dense<0.000000e+00> : vector<2x8xf32>
    %65 = vector.multi_reduction <add>, %64, %cst_19 [2] : vector<2x8x8xf32> to vector<2x8xf32>
    %66 = vector.shape_cast %65 : vector<2x8xf32> to vector<2x8x1xf32>
    %67 = tpu.reciprocal %66 {approx = true} : vector<2x8x1xf32> -> vector<2x8x1xf32>
    %68 = vector.broadcast %67 : vector<2x8x1xf32> to vector<2x8x8xf32>
    %69 = arith.mulf %64, %68 : vector<2x8x8xf32>
    %70 = arith.truncf %69 : vector<2x8x8xf32> to vector<2x8x8xbf16>
    "tpu.trace_start"() <{level = 10 : i32, message = "gnm,gmd->gnd"}> : () -> ()
    %cst_20 = arith.constant dense<0.000000e+00> : vector<2x8x8xf32>
    %71 = tpu.matmul %70, %58, %cst_20 {dimension_numbers = #tpu.dot_dimension_numbers<[2], [1], [1], [2], [0, 0, 0, 1, 1, 2], [0], [0]>} : vector<2x8x8xbf16>, vector<2x8x8xbf16>, vector<2x8x8xf32> -> vector<2x8x8xf32>
    "tpu.trace_stop"() : () -> ()
    %72 = tpu.concatenate %52, %71 in 2 : vector<2x8x8xf32>, vector<2x8x8xf32> -> vector<2x8x16xf32>
    %73 = vector.shape_cast %72 : vector<2x8x16xf32> to vector<16x16xf32>
    %74 = arith.truncf %73 : vector<16x16xf32> to vector<16x16xbf16>
    %c0_21 = arith.constant 0 : index
    %c0_22 = arith.constant 0 : index
    %75 = vector.load %arg6[%c0_21, %c0_22] : memref<16x32xbf16, #tpu.memory_space<vmem>>, vector<16x32xbf16>
    %cst_23 = arith.constant dense<0.000000e+00> : vector<16x32xf32>
    %76 = tpu.matmul %74, %75, %cst_23 {dimension_numbers = #tpu.dot_dimension_numbers<[1], [0], [0], [1], [0, 0, 1, 1], [], []>} : vector<16x16xbf16>, vector<16x32xbf16>, vector<16x32xf32> -> vector<16x32xf32>
    %77 = vector.shape_cast %76 : vector<16x32xf32> to vector<2x8x32xf32>
    %c0_24 = arith.constant 0 : index
    %c0_25 = arith.constant 0 : index
    %78 = vector.load %arg7[%c0_24, %c0_25] : memref<1x32xf32, #tpu.memory_space<vmem>>, vector<1x32xf32>
    %79 = vector.shape_cast %78 : vector<1x32xf32> to vector<1x1x32xf32>
    %80 = vector.broadcast %79 : vector<1x1x32xf32> to vector<2x8x32xf32>
    %81 = arith.addf %77, %80 : vector<2x8x32xf32>
    %82 = arith.addf %81, %1 : vector<2x8x32xf32>
    %c0_26 = arith.constant 0 : index
    %c0_27 = arith.constant 0 : index
    %c0_28 = arith.constant 0 : index
    %83 = vector.load %arg2[%c0_26, %c0_27, %c0_28] : memref<2x8x32xbf16, #tpu.memory_space<vmem>>, vector<2x8x32xbf16>
    %84 = arith.extf %83 : vector<2x8x32xbf16> to vector<2x8x32xf32>
    %85 = arith.addf %82, %84 : vector<2x8x32xf32>
    %86 = arith.truncf %85 : vector<2x8x32xf32> to vector<2x8x32xbf16>
    %c0_29 = arith.constant 0 : index
    %c0_30 = arith.constant 0 : index
    %c0_31 = arith.constant 0 : index
    %87 = vector.load %arg8[%c0_29, %c0_30, %c0_31] : memref<2x8x32xbf16, #tpu.memory_space<vmem>>, vector<2x8x32xbf16>
    tpu.vector_store %arg8[%c0_29, %c0_30, %c0_31], %86 {strides = array<i32>} : memref<2x8x32xbf16, #tpu.memory_space<vmem>>, vector<2x8x32xbf16>,
    return
  }
  func.func @transform_0(%arg0: i32) -> (i32, i32, i32) {
    %c0_i32 = arith.constant 0 : i32
    %c0_i32_0 = arith.constant 0 : i32
    %c0_i32_1 = arith.constant 0 : i32
    return %arg0, %c0_i32, %c0_i32_0 : i32, i32, i32
  }
  func.func @transform_1(%arg0: i32) -> (i32, i32, i32) {
    %c0_i32 = arith.constant 0 : i32
    %c0_i32_0 = arith.constant 0 : i32
    %c0_i32_1 = arith.constant 0 : i32
    return %arg0, %c0_i32, %c0_i32_0 : i32, i32, i32
  }
  func.func @transform_2(%arg0: i32) -> (i32, i32) {
    %c0_i32 = arith.constant 0 : i32
    %c0_i32_0 = arith.constant 0 : i32
    %c0_i32_1 = arith.constant 0 : i32
    return %c0_i32, %c0_i32_0 : i32, i32
  }
  func.func @transform_3(%arg0: i32) -> (i32, i32) {
    %c0_i32 = arith.constant 0 : i32
    %c0_i32_0 = arith.constant 0 : i32
    %c0_i32_1 = arith.constant 0 : i32
    return %c0_i32, %c0_i32_0 : i32, i32
  }
  func.func @transform_4(%arg0: i32) -> (i32, i32) {
    %c0_i32 = arith.constant 0 : i32
    %c0_i32_0 = arith.constant 0 : i32
    %c0_i32_1 = arith.constant 0 : i32
    return %c0_i32, %c0_i32_0 : i32, i32
  }
  func.func @transform_5(%arg0: i32) -> (i32, i32) {
    %c0_i32 = arith.constant 0 : i32
    %c0_i32_0 = arith.constant 0 : i32
    %c0_i32_1 = arith.constant 0 : i32
    return %c0_i32, %c0_i32_0 : i32, i32
  }
  func.func @transform_6(%arg0: i32) -> (i32, i32) {
    %c0_i32 = arith.constant 0 : i32
    %c0_i32_0 = arith.constant 0 : i32
    %c0_i32_1 = arith.constant 0 : i32
    return %c0_i32, %c0_i32_0 : i32, i32
  }
  func.func @transform_7(%arg0: i32) -> (i32, i32, i32) {
    %c0_i32 = arith.constant 0 : i32
    %c0_i32_0 = arith.constant 0 : i32
    %c0_i32_1 = arith.constant 0 : i32
    return %arg0, %c0_i32, %c0_i32_0 : i32, i32, i32
  }
}

module attributes {stable_mosaic.version = 11 : i64} {
  func.func @_self_attn_kernel(%arg0: i32, %arg1: memref<8x8x32xbf16, #tpu.memory_space<vmem>>, %arg2: memref<1x32xf32, #tpu.memory_space<vmem>>, %arg3: memref<1x32xf32, #tpu.memory_space<vmem>>, %arg4: memref<32x48xbf16, #tpu.memory_space<vmem>>, %arg5: memref<16x32xbf16, #tpu.memory_space<vmem>>, %arg6: memref<1x32xf32, #tpu.memory_space<vmem>>, %arg7: memref<8x8x32xbf16, #tpu.memory_space<vmem>>) attributes {dimension_semantics = [#tpu.dimension_semantics<parallel>], iteration_bounds = array<i64: 1>, scalar_prefetch = 0 : i64, scratch_operands = 0 : i64, tpu.core_type = #tpu.core_type<tc>, window_params = [{transform_indices = @transform_0, window_bounds = array<i64: 8, 8, 32>}, {pipeline_mode = #tpu.pipeline_mode<synchronous>, transform_indices = @transform_1, window_bounds = array<i64: 1, 32>}, {pipeline_mode = #tpu.pipeline_mode<synchronous>, transform_indices = @transform_2, window_bounds = array<i64: 1, 32>}, {pipeline_mode = #tpu.pipeline_mode<synchronous>, transform_indices = @transform_3, window_bounds = array<i64: 32, 48>}, {pipeline_mode = #tpu.pipeline_mode<synchronous>, transform_indices = @transform_4, window_bounds = array<i64: 16, 32>}, {pipeline_mode = #tpu.pipeline_mode<synchronous>, transform_indices = @transform_5, window_bounds = array<i64: 1, 32>}, {transform_indices = @transform_6, window_bounds = array<i64: 8, 8, 32>}]} {
    %c0 = arith.constant 0 : index
    %c0_0 = arith.constant 0 : index
    %c0_1 = arith.constant 0 : index
    %0 = vector.load %arg1[%c0, %c0_0, %c0_1] : memref<8x8x32xbf16, #tpu.memory_space<vmem>>, vector<8x8x32xbf16>
    %1 = arith.extf %0 : vector<8x8x32xbf16> to vector<8x8x32xf32>
    %c0_2 = arith.constant 0 : index
    %c0_3 = arith.constant 0 : index
    %2 = vector.load %arg2[%c0_2, %c0_3] : memref<1x32xf32, #tpu.memory_space<vmem>>, vector<1x32xf32>
    %c0_4 = arith.constant 0 : index
    %c0_5 = arith.constant 0 : index
    %3 = vector.load %arg3[%c0_4, %c0_5] : memref<1x32xf32, #tpu.memory_space<vmem>>, vector<1x32xf32>
    %cst = arith.constant dense<0.000000e+00> : vector<8x8xf32>
    %4 = vector.multi_reduction <add>, %1, %cst [2] : vector<8x8x32xf32> to vector<8x8xf32>
    %5 = vector.shape_cast %4 : vector<8x8xf32> to vector<8x8x1xf32>
    %cst_6 = arith.constant 3.200000e+01 : f32
    %6 = vector.broadcast %cst_6 : f32 to vector<8x8x1xf32>
    %7 = arith.divf %5, %6 : vector<8x8x1xf32>
    %8 = vector.broadcast %7 : vector<8x8x1xf32> to vector<8x8x32xf32>
    %9 = arith.subf %1, %8 : vector<8x8x32xf32>
    %10 = arith.mulf %9, %9 : vector<8x8x32xf32>
    %cst_7 = arith.constant dense<0.000000e+00> : vector<8x8xf32>
    %11 = vector.multi_reduction <add>, %10, %cst_7 [2] : vector<8x8x32xf32> to vector<8x8xf32>
    %12 = vector.shape_cast %11 : vector<8x8xf32> to vector<8x8x1xf32>
    %cst_8 = arith.constant 3.200000e+01 : f32
    %13 = vector.broadcast %cst_8 : f32 to vector<8x8x1xf32>
    %14 = arith.divf %12, %13 : vector<8x8x1xf32>
    %cst_9 = arith.constant 9.99999974E-6 : f32
    %15 = vector.broadcast %cst_9 : f32 to vector<8x8x1xf32>
    %16 = arith.addf %14, %15 : vector<8x8x1xf32>
    %17 = math.rsqrt %16 : vector<8x8x1xf32>
    %18 = vector.broadcast %17 : vector<8x8x1xf32> to vector<8x8x32xf32>
    %19 = arith.mulf %9, %18 : vector<8x8x32xf32>
    %20 = vector.shape_cast %2 : vector<1x32xf32> to vector<1x1x32xf32>
    %21 = vector.broadcast %20 : vector<1x1x32xf32> to vector<8x8x32xf32>
    %22 = arith.mulf %19, %21 : vector<8x8x32xf32>
    %23 = vector.shape_cast %3 : vector<1x32xf32> to vector<1x1x32xf32>
    %24 = vector.broadcast %23 : vector<1x1x32xf32> to vector<8x8x32xf32>
    %25 = arith.addf %22, %24 : vector<8x8x32xf32>
    %26 = vector.shape_cast %25 : vector<8x8x32xf32> to vector<64x32xf32>
    %27 = arith.truncf %26 : vector<64x32xf32> to vector<64x32xbf16>
    %c0_10 = arith.constant 0 : index
    %c0_11 = arith.constant 0 : index
    %28 = vector.load %arg4[%c0_10, %c0_11] : memref<32x48xbf16, #tpu.memory_space<vmem>>, vector<32x48xbf16>
    %cst_12 = arith.constant dense<0.000000e+00> : vector<64x48xf32>
    %29 = tpu.matmul %27, %28, %cst_12 {dimension_numbers = #tpu.dot_dimension_numbers<[1], [0], [0], [1], [0, 0, 1, 1], [], []>} : vector<64x32xbf16>, vector<32x48xbf16>, vector<64x48xf32> -> vector<64x48xf32>
    %30 = vector.shape_cast %29 : vector<64x48xf32> to vector<8x8x48xf32>
    %31 = vector.extract_strided_slice %30 {offsets = [0, 0, 0], sizes = [8, 8, 16], strides = [1, 1, 1]} : vector<8x8x48xf32> to vector<8x8x16xf32>
    %32 = vector.extract_strided_slice %30 {offsets = [0, 0, 16], sizes = [8, 8, 16], strides = [1, 1, 1]} : vector<8x8x48xf32> to vector<8x8x16xf32>
    %33 = vector.extract_strided_slice %30 {offsets = [0, 0, 32], sizes = [8, 8, 16], strides = [1, 1, 1]} : vector<8x8x48xf32> to vector<8x8x16xf32>
    %34 = vector.extract_strided_slice %31 {offsets = [0, 0, 0], sizes = [8, 8, 8], strides = [1, 1, 1]} : vector<8x8x16xf32> to vector<8x8x8xf32>
    %35 = arith.truncf %34 : vector<8x8x8xf32> to vector<8x8x8xbf16>
    %36 = vector.extract_strided_slice %32 {offsets = [0, 0, 0], sizes = [8, 8, 8], strides = [1, 1, 1]} : vector<8x8x16xf32> to vector<8x8x8xf32>
    %37 = arith.truncf %36 : vector<8x8x8xf32> to vector<8x8x8xbf16>
    %38 = vector.extract_strided_slice %33 {offsets = [0, 0, 0], sizes = [8, 8, 8], strides = [1, 1, 1]} : vector<8x8x16xf32> to vector<8x8x8xf32>
    %39 = arith.truncf %38 : vector<8x8x8xf32> to vector<8x8x8xbf16>
    "tpu.trace_start"() <{level = 10 : i32, message = "gnd,gmd->gnm"}> : () -> ()
    %cst_13 = arith.constant dense<0.000000e+00> : vector<8x8x8xf32>
    %40 = tpu.matmul %35, %37, %cst_13 {dimension_numbers = #tpu.dot_dimension_numbers<[2], [2], [1], [1], [0, 0, 0, 1, 1, 1], [0], [0]>} : vector<8x8x8xbf16>, vector<8x8x8xbf16>, vector<8x8x8xf32> -> vector<8x8x8xf32>
    "tpu.trace_stop"() : () -> ()
    %cst_14 = arith.constant dense<0xFF800000> : vector<8x8xf32>
    %41 = vector.multi_reduction <maximumf>, %40, %cst_14 [2] : vector<8x8x8xf32> to vector<8x8xf32>
    %42 = vector.shape_cast %41 : vector<8x8xf32> to vector<8x8x1xf32>
    %43 = vector.broadcast %42 : vector<8x8x1xf32> to vector<8x8x8xf32>
    %44 = arith.subf %40, %43 : vector<8x8x8xf32>
    %45 = math.exp %44 : vector<8x8x8xf32>
    %cst_15 = arith.constant dense<0.000000e+00> : vector<8x8xf32>
    %46 = vector.multi_reduction <add>, %45, %cst_15 [2] : vector<8x8x8xf32> to vector<8x8xf32>
    %47 = vector.shape_cast %46 : vector<8x8xf32> to vector<8x8x1xf32>
    %48 = tpu.reciprocal %47 {approx = true} : vector<8x8x1xf32> -> vector<8x8x1xf32>
    %49 = vector.broadcast %48 : vector<8x8x1xf32> to vector<8x8x8xf32>
    %50 = arith.mulf %45, %49 : vector<8x8x8xf32>
    %51 = arith.truncf %50 : vector<8x8x8xf32> to vector<8x8x8xbf16>
    "tpu.trace_start"() <{level = 10 : i32, message = "gnm,gmd->gnd"}> : () -> ()
    %cst_16 = arith.constant dense<0.000000e+00> : vector<8x8x8xf32>
    %52 = tpu.matmul %51, %39, %cst_16 {dimension_numbers = #tpu.dot_dimension_numbers<[2], [1], [1], [2], [0, 0, 0, 1, 1, 2], [0], [0]>} : vector<8x8x8xbf16>, vector<8x8x8xbf16>, vector<8x8x8xf32> -> vector<8x8x8xf32>
    "tpu.trace_stop"() : () -> ()
    %53 = vector.extract_strided_slice %31 {offsets = [0, 0, 8], sizes = [8, 8, 8], strides = [1, 1, 1]} : vector<8x8x16xf32> to vector<8x8x8xf32>
    %54 = arith.truncf %53 : vector<8x8x8xf32> to vector<8x8x8xbf16>
    %55 = vector.extract_strided_slice %32 {offsets = [0, 0, 8], sizes = [8, 8, 8], strides = [1, 1, 1]} : vector<8x8x16xf32> to vector<8x8x8xf32>
    %56 = arith.truncf %55 : vector<8x8x8xf32> to vector<8x8x8xbf16>
    %57 = vector.extract_strided_slice %33 {offsets = [0, 0, 8], sizes = [8, 8, 8], strides = [1, 1, 1]} : vector<8x8x16xf32> to vector<8x8x8xf32>
    %58 = arith.truncf %57 : vector<8x8x8xf32> to vector<8x8x8xbf16>
    "tpu.trace_start"() <{level = 10 : i32, message = "gnd,gmd->gnm"}> : () -> ()
    %cst_17 = arith.constant dense<0.000000e+00> : vector<8x8x8xf32>
    %59 = tpu.matmul %54, %56, %cst_17 {dimension_numbers = #tpu.dot_dimension_numbers<[2], [2], [1], [1], [0, 0, 0, 1, 1, 1], [0], [0]>} : vector<8x8x8xbf16>, vector<8x8x8xbf16>, vector<8x8x8xf32> -> vector<8x8x8xf32>
    "tpu.trace_stop"() : () -> ()
    %cst_18 = arith.constant dense<0xFF800000> : vector<8x8xf32>
    %60 = vector.multi_reduction <maximumf>, %59, %cst_18 [2] : vector<8x8x8xf32> to vector<8x8xf32>
    %61 = vector.shape_cast %60 : vector<8x8xf32> to vector<8x8x1xf32>
    %62 = vector.broadcast %61 : vector<8x8x1xf32> to vector<8x8x8xf32>
    %63 = arith.subf %59, %62 : vector<8x8x8xf32>
    %64 = math.exp %63 : vector<8x8x8xf32>
    %cst_19 = arith.constant dense<0.000000e+00> : vector<8x8xf32>
    %65 = vector.multi_reduction <add>, %64, %cst_19 [2] : vector<8x8x8xf32> to vector<8x8xf32>
    %66 = vector.shape_cast %65 : vector<8x8xf32> to vector<8x8x1xf32>
    %67 = tpu.reciprocal %66 {approx = true} : vector<8x8x1xf32> -> vector<8x8x1xf32>
    %68 = vector.broadcast %67 : vector<8x8x1xf32> to vector<8x8x8xf32>
    %69 = arith.mulf %64, %68 : vector<8x8x8xf32>
    %70 = arith.truncf %69 : vector<8x8x8xf32> to vector<8x8x8xbf16>
    "tpu.trace_start"() <{level = 10 : i32, message = "gnm,gmd->gnd"}> : () -> ()
    %cst_20 = arith.constant dense<0.000000e+00> : vector<8x8x8xf32>
    %71 = tpu.matmul %70, %58, %cst_20 {dimension_numbers = #tpu.dot_dimension_numbers<[2], [1], [1], [2], [0, 0, 0, 1, 1, 2], [0], [0]>} : vector<8x8x8xbf16>, vector<8x8x8xbf16>, vector<8x8x8xf32> -> vector<8x8x8xf32>
    "tpu.trace_stop"() : () -> ()
    %72 = tpu.concatenate %52, %71 in 2 : vector<8x8x8xf32>, vector<8x8x8xf32> -> vector<8x8x16xf32>
    %73 = vector.shape_cast %72 : vector<8x8x16xf32> to vector<64x16xf32>
    %74 = arith.truncf %73 : vector<64x16xf32> to vector<64x16xbf16>
    %c0_21 = arith.constant 0 : index
    %c0_22 = arith.constant 0 : index
    %75 = vector.load %arg5[%c0_21, %c0_22] : memref<16x32xbf16, #tpu.memory_space<vmem>>, vector<16x32xbf16>
    %cst_23 = arith.constant dense<0.000000e+00> : vector<64x32xf32>
    %76 = tpu.matmul %74, %75, %cst_23 {dimension_numbers = #tpu.dot_dimension_numbers<[1], [0], [0], [1], [0, 0, 1, 1], [], []>} : vector<64x16xbf16>, vector<16x32xbf16>, vector<64x32xf32> -> vector<64x32xf32>
    %77 = vector.shape_cast %76 : vector<64x32xf32> to vector<8x8x32xf32>
    %c0_24 = arith.constant 0 : index
    %c0_25 = arith.constant 0 : index
    %78 = vector.load %arg6[%c0_24, %c0_25] : memref<1x32xf32, #tpu.memory_space<vmem>>, vector<1x32xf32>
    %79 = vector.shape_cast %78 : vector<1x32xf32> to vector<1x1x32xf32>
    %80 = vector.broadcast %79 : vector<1x1x32xf32> to vector<8x8x32xf32>
    %81 = arith.addf %77, %80 : vector<8x8x32xf32>
    %82 = arith.truncf %81 : vector<8x8x32xf32> to vector<8x8x32xbf16>
    %c0_26 = arith.constant 0 : index
    %c0_27 = arith.constant 0 : index
    %c0_28 = arith.constant 0 : index
    %83 = vector.load %arg7[%c0_26, %c0_27, %c0_28] : memref<8x8x32xbf16, #tpu.memory_space<vmem>>, vector<8x8x32xbf16>
    tpu.vector_store %arg7[%c0_26, %c0_27, %c0_28], %82 {strides = array<i32>} : memref<8x8x32xbf16, #tpu.memory_space<vmem>>, vector<8x8x32xbf16>,
    return
  }
  func.func @transform_0(%arg0: i32) -> (i32, i32, i32) {
    %c0_i32 = arith.constant 0 : i32
    %c0_i32_0 = arith.constant 0 : i32
    %c0_i32_1 = arith.constant 0 : i32
    return %arg0, %c0_i32, %c0_i32_0 : i32, i32, i32
  }
  func.func @transform_1(%arg0: i32) -> (i32, i32) {
    %c0_i32 = arith.constant 0 : i32
    %c0_i32_0 = arith.constant 0 : i32
    %c0_i32_1 = arith.constant 0 : i32
    return %c0_i32, %c0_i32_0 : i32, i32
  }
  func.func @transform_2(%arg0: i32) -> (i32, i32) {
    %c0_i32 = arith.constant 0 : i32
    %c0_i32_0 = arith.constant 0 : i32
    %c0_i32_1 = arith.constant 0 : i32
    return %c0_i32, %c0_i32_0 : i32, i32
  }
  func.func @transform_3(%arg0: i32) -> (i32, i32) {
    %c0_i32 = arith.constant 0 : i32
    %c0_i32_0 = arith.constant 0 : i32
    %c0_i32_1 = arith.constant 0 : i32
    return %c0_i32, %c0_i32_0 : i32, i32
  }
  func.func @transform_4(%arg0: i32) -> (i32, i32) {
    %c0_i32 = arith.constant 0 : i32
    %c0_i32_0 = arith.constant 0 : i32
    %c0_i32_1 = arith.constant 0 : i32
    return %c0_i32, %c0_i32_0 : i32, i32
  }
  func.func @transform_5(%arg0: i32) -> (i32, i32) {
    %c0_i32 = arith.constant 0 : i32
    %c0_i32_0 = arith.constant 0 : i32
    %c0_i32_1 = arith.constant 0 : i32
    return %c0_i32, %c0_i32_0 : i32, i32
  }
  func.func @transform_6(%arg0: i32) -> (i32, i32, i32) {
    %c0_i32 = arith.constant 0 : i32
    %c0_i32_0 = arith.constant 0 : i32
    %c0_i32_1 = arith.constant 0 : i32
    return %arg0, %c0_i32, %c0_i32_0 : i32, i32, i32
  }
}

module attributes {stable_mosaic.version = 11 : i64} {
  func.func @_self_attn_kernel(%arg0: i32, %arg1: memref<8x8x32xbf16, #tpu.memory_space<vmem>>, %arg2: memref<8x8x32xbf16, #tpu.memory_space<vmem>>, %arg3: memref<1x32xf32, #tpu.memory_space<vmem>>, %arg4: memref<1x32xf32, #tpu.memory_space<vmem>>, %arg5: memref<32x48xbf16, #tpu.memory_space<vmem>>, %arg6: memref<16x32xbf16, #tpu.memory_space<vmem>>, %arg7: memref<1x32xf32, #tpu.memory_space<vmem>>, %arg8: memref<8x8x32xbf16, #tpu.memory_space<vmem>>) attributes {dimension_semantics = [#tpu.dimension_semantics<parallel>], iteration_bounds = array<i64: 1>, scalar_prefetch = 0 : i64, scratch_operands = 0 : i64, tpu.core_type = #tpu.core_type<tc>, window_params = [{transform_indices = @transform_0, window_bounds = array<i64: 8, 8, 32>}, {transform_indices = @transform_1, window_bounds = array<i64: 8, 8, 32>}, {pipeline_mode = #tpu.pipeline_mode<synchronous>, transform_indices = @transform_2, window_bounds = array<i64: 1, 32>}, {pipeline_mode = #tpu.pipeline_mode<synchronous>, transform_indices = @transform_3, window_bounds = array<i64: 1, 32>}, {pipeline_mode = #tpu.pipeline_mode<synchronous>, transform_indices = @transform_4, window_bounds = array<i64: 32, 48>}, {pipeline_mode = #tpu.pipeline_mode<synchronous>, transform_indices = @transform_5, window_bounds = array<i64: 16, 32>}, {pipeline_mode = #tpu.pipeline_mode<synchronous>, transform_indices = @transform_6, window_bounds = array<i64: 1, 32>}, {transform_indices = @transform_7, window_bounds = array<i64: 8, 8, 32>}]} {
    %c0 = arith.constant 0 : index
    %c0_0 = arith.constant 0 : index
    %c0_1 = arith.constant 0 : index
    %0 = vector.load %arg1[%c0, %c0_0, %c0_1] : memref<8x8x32xbf16, #tpu.memory_space<vmem>>, vector<8x8x32xbf16>
    %1 = arith.extf %0 : vector<8x8x32xbf16> to vector<8x8x32xf32>
    %c0_2 = arith.constant 0 : index
    %c0_3 = arith.constant 0 : index
    %2 = vector.load %arg3[%c0_2, %c0_3] : memref<1x32xf32, #tpu.memory_space<vmem>>, vector<1x32xf32>
    %c0_4 = arith.constant 0 : index
    %c0_5 = arith.constant 0 : index
    %3 = vector.load %arg4[%c0_4, %c0_5] : memref<1x32xf32, #tpu.memory_space<vmem>>, vector<1x32xf32>
    %cst = arith.constant dense<0.000000e+00> : vector<8x8xf32>
    %4 = vector.multi_reduction <add>, %1, %cst [2] : vector<8x8x32xf32> to vector<8x8xf32>
    %5 = vector.shape_cast %4 : vector<8x8xf32> to vector<8x8x1xf32>
    %cst_6 = arith.constant 3.200000e+01 : f32
    %6 = vector.broadcast %cst_6 : f32 to vector<8x8x1xf32>
    %7 = arith.divf %5, %6 : vector<8x8x1xf32>
    %8 = vector.broadcast %7 : vector<8x8x1xf32> to vector<8x8x32xf32>
    %9 = arith.subf %1, %8 : vector<8x8x32xf32>
    %10 = arith.mulf %9, %9 : vector<8x8x32xf32>
    %cst_7 = arith.constant dense<0.000000e+00> : vector<8x8xf32>
    %11 = vector.multi_reduction <add>, %10, %cst_7 [2] : vector<8x8x32xf32> to vector<8x8xf32>
    %12 = vector.shape_cast %11 : vector<8x8xf32> to vector<8x8x1xf32>
    %cst_8 = arith.constant 3.200000e+01 : f32
    %13 = vector.broadcast %cst_8 : f32 to vector<8x8x1xf32>
    %14 = arith.divf %12, %13 : vector<8x8x1xf32>
    %cst_9 = arith.constant 9.99999974E-6 : f32
    %15 = vector.broadcast %cst_9 : f32 to vector<8x8x1xf32>
    %16 = arith.addf %14, %15 : vector<8x8x1xf32>
    %17 = math.rsqrt %16 : vector<8x8x1xf32>
    %18 = vector.broadcast %17 : vector<8x8x1xf32> to vector<8x8x32xf32>
    %19 = arith.mulf %9, %18 : vector<8x8x32xf32>
    %20 = vector.shape_cast %2 : vector<1x32xf32> to vector<1x1x32xf32>
    %21 = vector.broadcast %20 : vector<1x1x32xf32> to vector<8x8x32xf32>
    %22 = arith.mulf %19, %21 : vector<8x8x32xf32>
    %23 = vector.shape_cast %3 : vector<1x32xf32> to vector<1x1x32xf32>
    %24 = vector.broadcast %23 : vector<1x1x32xf32> to vector<8x8x32xf32>
    %25 = arith.addf %22, %24 : vector<8x8x32xf32>
    %26 = vector.shape_cast %25 : vector<8x8x32xf32> to vector<64x32xf32>
    %27 = arith.truncf %26 : vector<64x32xf32> to vector<64x32xbf16>
    %c0_10 = arith.constant 0 : index
    %c0_11 = arith.constant 0 : index
    %28 = vector.load %arg5[%c0_10, %c0_11] : memref<32x48xbf16, #tpu.memory_space<vmem>>, vector<32x48xbf16>
    %cst_12 = arith.constant dense<0.000000e+00> : vector<64x48xf32>
    %29 = tpu.matmul %27, %28, %cst_12 {dimension_numbers = #tpu.dot_dimension_numbers<[1], [0], [0], [1], [0, 0, 1, 1], [], []>} : vector<64x32xbf16>, vector<32x48xbf16>, vector<64x48xf32> -> vector<64x48xf32>
    %30 = vector.shape_cast %29 : vector<64x48xf32> to vector<8x8x48xf32>
    %31 = vector.extract_strided_slice %30 {offsets = [0, 0, 0], sizes = [8, 8, 16], strides = [1, 1, 1]} : vector<8x8x48xf32> to vector<8x8x16xf32>
    %32 = vector.extract_strided_slice %30 {offsets = [0, 0, 16], sizes = [8, 8, 16], strides = [1, 1, 1]} : vector<8x8x48xf32> to vector<8x8x16xf32>
    %33 = vector.extract_strided_slice %30 {offsets = [0, 0, 32], sizes = [8, 8, 16], strides = [1, 1, 1]} : vector<8x8x48xf32> to vector<8x8x16xf32>
    %34 = vector.extract_strided_slice %31 {offsets = [0, 0, 0], sizes = [8, 8, 8], strides = [1, 1, 1]} : vector<8x8x16xf32> to vector<8x8x8xf32>
    %35 = arith.truncf %34 : vector<8x8x8xf32> to vector<8x8x8xbf16>
    %36 = vector.extract_strided_slice %32 {offsets = [0, 0, 0], sizes = [8, 8, 8], strides = [1, 1, 1]} : vector<8x8x16xf32> to vector<8x8x8xf32>
    %37 = arith.truncf %36 : vector<8x8x8xf32> to vector<8x8x8xbf16>
    %38 = vector.extract_strided_slice %33 {offsets = [0, 0, 0], sizes = [8, 8, 8], strides = [1, 1, 1]} : vector<8x8x16xf32> to vector<8x8x8xf32>
    %39 = arith.truncf %38 : vector<8x8x8xf32> to vector<8x8x8xbf16>
    "tpu.trace_start"() <{level = 10 : i32, message = "gnd,gmd->gnm"}> : () -> ()
    %cst_13 = arith.constant dense<0.000000e+00> : vector<8x8x8xf32>
    %40 = tpu.matmul %35, %37, %cst_13 {dimension_numbers = #tpu.dot_dimension_numbers<[2], [2], [1], [1], [0, 0, 0, 1, 1, 1], [0], [0]>} : vector<8x8x8xbf16>, vector<8x8x8xbf16>, vector<8x8x8xf32> -> vector<8x8x8xf32>
    "tpu.trace_stop"() : () -> ()
    %cst_14 = arith.constant dense<0xFF800000> : vector<8x8xf32>
    %41 = vector.multi_reduction <maximumf>, %40, %cst_14 [2] : vector<8x8x8xf32> to vector<8x8xf32>
    %42 = vector.shape_cast %41 : vector<8x8xf32> to vector<8x8x1xf32>
    %43 = vector.broadcast %42 : vector<8x8x1xf32> to vector<8x8x8xf32>
    %44 = arith.subf %40, %43 : vector<8x8x8xf32>
    %45 = math.exp %44 : vector<8x8x8xf32>
    %cst_15 = arith.constant dense<0.000000e+00> : vector<8x8xf32>
    %46 = vector.multi_reduction <add>, %45, %cst_15 [2] : vector<8x8x8xf32> to vector<8x8xf32>
    %47 = vector.shape_cast %46 : vector<8x8xf32> to vector<8x8x1xf32>
    %48 = tpu.reciprocal %47 {approx = true} : vector<8x8x1xf32> -> vector<8x8x1xf32>
    %49 = vector.broadcast %48 : vector<8x8x1xf32> to vector<8x8x8xf32>
    %50 = arith.mulf %45, %49 : vector<8x8x8xf32>
    %51 = arith.truncf %50 : vector<8x8x8xf32> to vector<8x8x8xbf16>
    "tpu.trace_start"() <{level = 10 : i32, message = "gnm,gmd->gnd"}> : () -> ()
    %cst_16 = arith.constant dense<0.000000e+00> : vector<8x8x8xf32>
    %52 = tpu.matmul %51, %39, %cst_16 {dimension_numbers = #tpu.dot_dimension_numbers<[2], [1], [1], [2], [0, 0, 0, 1, 1, 2], [0], [0]>} : vector<8x8x8xbf16>, vector<8x8x8xbf16>, vector<8x8x8xf32> -> vector<8x8x8xf32>
    "tpu.trace_stop"() : () -> ()
    %53 = vector.extract_strided_slice %31 {offsets = [0, 0, 8], sizes = [8, 8, 8], strides = [1, 1, 1]} : vector<8x8x16xf32> to vector<8x8x8xf32>
    %54 = arith.truncf %53 : vector<8x8x8xf32> to vector<8x8x8xbf16>
    %55 = vector.extract_strided_slice %32 {offsets = [0, 0, 8], sizes = [8, 8, 8], strides = [1, 1, 1]} : vector<8x8x16xf32> to vector<8x8x8xf32>
    %56 = arith.truncf %55 : vector<8x8x8xf32> to vector<8x8x8xbf16>
    %57 = vector.extract_strided_slice %33 {offsets = [0, 0, 8], sizes = [8, 8, 8], strides = [1, 1, 1]} : vector<8x8x16xf32> to vector<8x8x8xf32>
    %58 = arith.truncf %57 : vector<8x8x8xf32> to vector<8x8x8xbf16>
    "tpu.trace_start"() <{level = 10 : i32, message = "gnd,gmd->gnm"}> : () -> ()
    %cst_17 = arith.constant dense<0.000000e+00> : vector<8x8x8xf32>
    %59 = tpu.matmul %54, %56, %cst_17 {dimension_numbers = #tpu.dot_dimension_numbers<[2], [2], [1], [1], [0, 0, 0, 1, 1, 1], [0], [0]>} : vector<8x8x8xbf16>, vector<8x8x8xbf16>, vector<8x8x8xf32> -> vector<8x8x8xf32>
    "tpu.trace_stop"() : () -> ()
    %cst_18 = arith.constant dense<0xFF800000> : vector<8x8xf32>
    %60 = vector.multi_reduction <maximumf>, %59, %cst_18 [2] : vector<8x8x8xf32> to vector<8x8xf32>
    %61 = vector.shape_cast %60 : vector<8x8xf32> to vector<8x8x1xf32>
    %62 = vector.broadcast %61 : vector<8x8x1xf32> to vector<8x8x8xf32>
    %63 = arith.subf %59, %62 : vector<8x8x8xf32>
    %64 = math.exp %63 : vector<8x8x8xf32>
    %cst_19 = arith.constant dense<0.000000e+00> : vector<8x8xf32>
    %65 = vector.multi_reduction <add>, %64, %cst_19 [2] : vector<8x8x8xf32> to vector<8x8xf32>
    %66 = vector.shape_cast %65 : vector<8x8xf32> to vector<8x8x1xf32>
    %67 = tpu.reciprocal %66 {approx = true} : vector<8x8x1xf32> -> vector<8x8x1xf32>
    %68 = vector.broadcast %67 : vector<8x8x1xf32> to vector<8x8x8xf32>
    %69 = arith.mulf %64, %68 : vector<8x8x8xf32>
    %70 = arith.truncf %69 : vector<8x8x8xf32> to vector<8x8x8xbf16>
    "tpu.trace_start"() <{level = 10 : i32, message = "gnm,gmd->gnd"}> : () -> ()
    %cst_20 = arith.constant dense<0.000000e+00> : vector<8x8x8xf32>
    %71 = tpu.matmul %70, %58, %cst_20 {dimension_numbers = #tpu.dot_dimension_numbers<[2], [1], [1], [2], [0, 0, 0, 1, 1, 2], [0], [0]>} : vector<8x8x8xbf16>, vector<8x8x8xbf16>, vector<8x8x8xf32> -> vector<8x8x8xf32>
    "tpu.trace_stop"() : () -> ()
    %72 = tpu.concatenate %52, %71 in 2 : vector<8x8x8xf32>, vector<8x8x8xf32> -> vector<8x8x16xf32>
    %73 = vector.shape_cast %72 : vector<8x8x16xf32> to vector<64x16xf32>
    %74 = arith.truncf %73 : vector<64x16xf32> to vector<64x16xbf16>
    %c0_21 = arith.constant 0 : index
    %c0_22 = arith.constant 0 : index
    %75 = vector.load %arg6[%c0_21, %c0_22] : memref<16x32xbf16, #tpu.memory_space<vmem>>, vector<16x32xbf16>
    %cst_23 = arith.constant dense<0.000000e+00> : vector<64x32xf32>
    %76 = tpu.matmul %74, %75, %cst_23 {dimension_numbers = #tpu.dot_dimension_numbers<[1], [0], [0], [1], [0, 0, 1, 1], [], []>} : vector<64x16xbf16>, vector<16x32xbf16>, vector<64x32xf32> -> vector<64x32xf32>
    %77 = vector.shape_cast %76 : vector<64x32xf32> to vector<8x8x32xf32>
    %c0_24 = arith.constant 0 : index
    %c0_25 = arith.constant 0 : index
    %78 = vector.load %arg7[%c0_24, %c0_25] : memref<1x32xf32, #tpu.memory_space<vmem>>, vector<1x32xf32>
    %79 = vector.shape_cast %78 : vector<1x32xf32> to vector<1x1x32xf32>
    %80 = vector.broadcast %79 : vector<1x1x32xf32> to vector<8x8x32xf32>
    %81 = arith.addf %77, %80 : vector<8x8x32xf32>
    %82 = arith.addf %81, %1 : vector<8x8x32xf32>
    %c0_26 = arith.constant 0 : index
    %c0_27 = arith.constant 0 : index
    %c0_28 = arith.constant 0 : index
    %83 = vector.load %arg2[%c0_26, %c0_27, %c0_28] : memref<8x8x32xbf16, #tpu.memory_space<vmem>>, vector<8x8x32xbf16>
    %84 = arith.extf %83 : vector<8x8x32xbf16> to vector<8x8x32xf32>
    %85 = arith.addf %82, %84 : vector<8x8x32xf32>
    %86 = arith.truncf %85 : vector<8x8x32xf32> to vector<8x8x32xbf16>
    %c0_29 = arith.constant 0 : index
    %c0_30 = arith.constant 0 : index
    %c0_31 = arith.constant 0 : index
    %87 = vector.load %arg8[%c0_29, %c0_30, %c0_31] : memref<8x8x32xbf16, #tpu.memory_space<vmem>>, vector<8x8x32xbf16>
    tpu.vector_store %arg8[%c0_29, %c0_30, %c0_31], %86 {strides = array<i32>} : memref<8x8x32xbf16, #tpu.memory_space<vmem>>, vector<8x8x32xbf16>,
    return
  }
  func.func @transform_0(%arg0: i32) -> (i32, i32, i32) {
    %c0_i32 = arith.constant 0 : i32
    %c0_i32_0 = arith.constant 0 : i32
    %c0_i32_1 = arith.constant 0 : i32
    return %arg0, %c0_i32, %c0_i32_0 : i32, i32, i32
  }
  func.func @transform_1(%arg0: i32) -> (i32, i32, i32) {
    %c0_i32 = arith.constant 0 : i32
    %c0_i32_0 = arith.constant 0 : i32
    %c0_i32_1 = arith.constant 0 : i32
    return %arg0, %c0_i32, %c0_i32_0 : i32, i32, i32
  }
  func.func @transform_2(%arg0: i32) -> (i32, i32) {
    %c0_i32 = arith.constant 0 : i32
    %c0_i32_0 = arith.constant 0 : i32
    %c0_i32_1 = arith.constant 0 : i32
    return %c0_i32, %c0_i32_0 : i32, i32
  }
  func.func @transform_3(%arg0: i32) -> (i32, i32) {
    %c0_i32 = arith.constant 0 : i32
    %c0_i32_0 = arith.constant 0 : i32
    %c0_i32_1 = arith.constant 0 : i32
    return %c0_i32, %c0_i32_0 : i32, i32
  }
  func.func @transform_4(%arg0: i32) -> (i32, i32) {
    %c0_i32 = arith.constant 0 : i32
    %c0_i32_0 = arith.constant 0 : i32
    %c0_i32_1 = arith.constant 0 : i32
    return %c0_i32, %c0_i32_0 : i32, i32
  }
  func.func @transform_5(%arg0: i32) -> (i32, i32) {
    %c0_i32 = arith.constant 0 : i32
    %c0_i32_0 = arith.constant 0 : i32
    %c0_i32_1 = arith.constant 0 : i32
    return %c0_i32, %c0_i32_0 : i32, i32
  }
  func.func @transform_6(%arg0: i32) -> (i32, i32) {
    %c0_i32 = arith.constant 0 : i32
    %c0_i32_0 = arith.constant 0 : i32
    %c0_i32_1 = arith.constant 0 : i32
    return %c0_i32, %c0_i32_0 : i32, i32
  }
  func.func @transform_7(%arg0: i32) -> (i32, i32, i32) {
    %c0_i32 = arith.constant 0 : i32
    %c0_i32_0 = arith.constant 0 : i32
    %c0_i32_1 = arith.constant 0 : i32
    return %arg0, %c0_i32, %c0_i32_0 : i32, i32, i32
  }
}

module attributes {stable_mosaic.version = 11 : i64} {
  func.func @_cross_attn_kernel(%arg0: i32, %arg1: i32, %arg2: memref<1x64x32xbf16, #tpu.memory_space<vmem>>, %arg3: memref<1x16x32xbf16, #tpu.memory_space<vmem>>, %arg4: memref<1x32xf32, #tpu.memory_space<vmem>>, %arg5: memref<1x32xf32, #tpu.memory_space<vmem>>, %arg6: memref<1x32xf32, #tpu.memory_space<vmem>>, %arg7: memref<1x32xf32, #tpu.memory_space<vmem>>, %arg8: memref<32x16xbf16, #tpu.memory_space<vmem>>, %arg9: memref<32x32xbf16, #tpu.memory_space<vmem>>, %arg10: memref<16x32xbf16, #tpu.memory_space<vmem>>, %arg11: memref<1x32xf32, #tpu.memory_space<vmem>>, %arg12: memref<1x64x32xbf16, #tpu.memory_space<vmem>>, %arg13: memref<16x32xbf16, #tpu.memory_space<vmem>>) attributes {dimension_semantics = [#tpu.dimension_semantics<parallel>, #tpu.dimension_semantics<arbitrary>], iteration_bounds = array<i64: 1, 1>, scalar_prefetch = 0 : i64, scratch_operands = 1 : i64, tpu.core_type = #tpu.core_type<tc>, window_params = [{transform_indices = @transform_0, window_bounds = array<i64: 1, 64, 32>}, {transform_indices = @transform_1, window_bounds = array<i64: 1, 16, 32>}, {pipeline_mode = #tpu.pipeline_mode<synchronous>, transform_indices = @transform_2, window_bounds = array<i64: 1, 32>}, {pipeline_mode = #tpu.pipeline_mode<synchronous>, transform_indices = @transform_3, window_bounds = array<i64: 1, 32>}, {pipeline_mode = #tpu.pipeline_mode<synchronous>, transform_indices = @transform_4, window_bounds = array<i64: 1, 32>}, {pipeline_mode = #tpu.pipeline_mode<synchronous>, transform_indices = @transform_5, window_bounds = array<i64: 1, 32>}, {pipeline_mode = #tpu.pipeline_mode<synchronous>, transform_indices = @transform_6, window_bounds = array<i64: 32, 16>}, {pipeline_mode = #tpu.pipeline_mode<synchronous>, transform_indices = @transform_7, window_bounds = array<i64: 32, 32>}, {pipeline_mode = #tpu.pipeline_mode<synchronous>, transform_indices = @transform_8, window_bounds = array<i64: 16, 32>}, {pipeline_mode = #tpu.pipeline_mode<synchronous>, transform_indices = @transform_9, window_bounds = array<i64: 1, 32>}, {transform_indices = @transform_10, window_bounds = array<i64: 1, 64, 32>}]} {
    %c0_i32 = arith.constant 0 : i32
    %0 = arith.cmpi eq, %arg1, %c0_i32 : i32
    %1 = arith.extui %0 : i1 to i32
    %c0_i32_0 = arith.constant 0 : i32
    %2 = arith.cmpi ne, %1, %c0_i32_0 : i32
    scf.if %2 {
      %c0_32 = arith.constant 0 : index
      %c0_33 = arith.constant 0 : index
      %c0_34 = arith.constant 0 : index
      %84 = vector.load %arg3[%c0_32, %c0_33, %c0_34] : memref<1x16x32xbf16, #tpu.memory_space<vmem>>, vector<1x16x32xbf16>
      %85 = vector.shape_cast %84 : vector<1x16x32xbf16> to vector<16x32xbf16>
      %86 = arith.extf %85 : vector<16x32xbf16> to vector<16x32xf32>
      %c0_35 = arith.constant 0 : index
      %c0_36 = arith.constant 0 : index
      %87 = vector.load %arg6[%c0_35, %c0_36] : memref<1x32xf32, #tpu.memory_space<vmem>>, vector<1x32xf32>
      %c0_37 = arith.constant 0 : index
      %c0_38 = arith.constant 0 : index
      %88 = vector.load %arg7[%c0_37, %c0_38] : memref<1x32xf32, #tpu.memory_space<vmem>>, vector<1x32xf32>
      %cst_39 = arith.constant dense<0.000000e+00> : vector<16xf32>
      %89 = vector.multi_reduction <add>, %86, %cst_39 [1] : vector<16x32xf32> to vector<16xf32>
      %90 = vector.shape_cast %89 : vector<16xf32> to vector<16x1xf32>
      %cst_40 = arith.constant 3.200000e+01 : f32
      %91 = vector.broadcast %cst_40 : f32 to vector<16x1xf32>
      %92 = arith.divf %90, %91 : vector<16x1xf32>
      %93 = vector.broadcast %92 : vector<16x1xf32> to vector<16x32xf32>
      %94 = arith.subf %86, %93 : vector<16x32xf32>
      %95 = arith.mulf %94, %94 : vector<16x32xf32>
      %cst_41 = arith.constant dense<0.000000e+00> : vector<16xf32>
      %96 = vector.multi_reduction <add>, %95, %cst_41 [1] : vector<16x32xf32> to vector<16xf32>
      %97 = vector.shape_cast %96 : vector<16xf32> to vector<16x1xf32>
      %cst_42 = arith.constant 3.200000e+01 : f32
      %98 = vector.broadcast %cst_42 : f32 to vector<16x1xf32>
      %99 = arith.divf %97, %98 : vector<16x1xf32>
      %cst_43 = arith.constant 9.99999974E-6 : f32
      %100 = vector.broadcast %cst_43 : f32 to vector<16x1xf32>
      %101 = arith.addf %99, %100 : vector<16x1xf32>
      %102 = math.rsqrt %101 : vector<16x1xf32>
      %103 = vector.broadcast %102 : vector<16x1xf32> to vector<16x32xf32>
      %104 = arith.mulf %94, %103 : vector<16x32xf32>
      %105 = vector.broadcast %87 : vector<1x32xf32> to vector<16x32xf32>
      %106 = arith.mulf %104, %105 : vector<16x32xf32>
      %107 = vector.broadcast %88 : vector<1x32xf32> to vector<16x32xf32>
      %108 = arith.addf %106, %107 : vector<16x32xf32>
      %109 = arith.truncf %108 : vector<16x32xf32> to vector<16x32xbf16>
      %c0_44 = arith.constant 0 : index
      %c0_45 = arith.constant 0 : index
      %110 = vector.load %arg9[%c0_44, %c0_45] : memref<32x32xbf16, #tpu.memory_space<vmem>>, vector<32x32xbf16>
      %cst_46 = arith.constant dense<0.000000e+00> : vector<16x32xf32>
      %111 = tpu.matmul %109, %110, %cst_46 {dimension_numbers = #tpu.dot_dimension_numbers<[1], [0], [0], [1], [0, 0, 1, 1], [], []>} : vector<16x32xbf16>, vector<32x32xbf16>, vector<16x32xf32> -> vector<16x32xf32>
      %112 = arith.truncf %111 : vector<16x32xf32> to vector<16x32xbf16>
      %c0_47 = arith.constant 0 : index
      %c0_48 = arith.constant 0 : index
      %113 = vector.load %arg13[%c0_47, %c0_48] : memref<16x32xbf16, #tpu.memory_space<vmem>>, vector<16x32xbf16>
      tpu.vector_store %arg13[%c0_47, %c0_48], %112 {strides = array<i32>} : memref<16x32xbf16, #tpu.memory_space<vmem>>, vector<16x32xbf16>,
    } else {
    }
    %c0 = arith.constant 0 : index
    %c0_1 = arith.constant 0 : index
    %c0_2 = arith.constant 0 : index
    %3 = vector.load %arg2[%c0, %c0_1, %c0_2] : memref<1x64x32xbf16, #tpu.memory_space<vmem>>, vector<1x64x32xbf16>
    %4 = vector.shape_cast %3 : vector<1x64x32xbf16> to vector<64x32xbf16>
    %5 = arith.extf %4 : vector<64x32xbf16> to vector<64x32xf32>
    %c0_3 = arith.constant 0 : index
    %c0_4 = arith.constant 0 : index
    %6 = vector.load %arg4[%c0_3, %c0_4] : memref<1x32xf32, #tpu.memory_space<vmem>>, vector<1x32xf32>
    %c0_5 = arith.constant 0 : index
    %c0_6 = arith.constant 0 : index
    %7 = vector.load %arg5[%c0_5, %c0_6] : memref<1x32xf32, #tpu.memory_space<vmem>>, vector<1x32xf32>
    %cst = arith.constant dense<0.000000e+00> : vector<64xf32>
    %8 = vector.multi_reduction <add>, %5, %cst [1] : vector<64x32xf32> to vector<64xf32>
    %9 = vector.shape_cast %8 : vector<64xf32> to vector<64x1xf32>
    %cst_7 = arith.constant 3.200000e+01 : f32
    %10 = vector.broadcast %cst_7 : f32 to vector<64x1xf32>
    %11 = arith.divf %9, %10 : vector<64x1xf32>
    %12 = vector.broadcast %11 : vector<64x1xf32> to vector<64x32xf32>
    %13 = arith.subf %5, %12 : vector<64x32xf32>
    %14 = arith.mulf %13, %13 : vector<64x32xf32>
    %cst_8 = arith.constant dense<0.000000e+00> : vector<64xf32>
    %15 = vector.multi_reduction <add>, %14, %cst_8 [1] : vector<64x32xf32> to vector<64xf32>
    %16 = vector.shape_cast %15 : vector<64xf32> to vector<64x1xf32>
    %cst_9 = arith.constant 3.200000e+01 : f32
    %17 = vector.broadcast %cst_9 : f32 to vector<64x1xf32>
    %18 = arith.divf %16, %17 : vector<64x1xf32>
    %cst_10 = arith.constant 9.99999974E-6 : f32
    %19 = vector.broadcast %cst_10 : f32 to vector<64x1xf32>
    %20 = arith.addf %18, %19 : vector<64x1xf32>
    %21 = math.rsqrt %20 : vector<64x1xf32>
    %22 = vector.broadcast %21 : vector<64x1xf32> to vector<64x32xf32>
    %23 = arith.mulf %13, %22 : vector<64x32xf32>
    %24 = vector.broadcast %6 : vector<1x32xf32> to vector<64x32xf32>
    %25 = arith.mulf %23, %24 : vector<64x32xf32>
    %26 = vector.broadcast %7 : vector<1x32xf32> to vector<64x32xf32>
    %27 = arith.addf %25, %26 : vector<64x32xf32>
    %28 = arith.truncf %27 : vector<64x32xf32> to vector<64x32xbf16>
    %c0_11 = arith.constant 0 : index
    %c0_12 = arith.constant 0 : index
    %29 = vector.load %arg8[%c0_11, %c0_12] : memref<32x16xbf16, #tpu.memory_space<vmem>>, vector<32x16xbf16>
    %cst_13 = arith.constant dense<0.000000e+00> : vector<64x16xf32>
    %30 = tpu.matmul %28, %29, %cst_13 {dimension_numbers = #tpu.dot_dimension_numbers<[1], [0], [0], [1], [0, 0, 1, 1], [], []>} : vector<64x32xbf16>, vector<32x16xbf16>, vector<64x16xf32> -> vector<64x16xf32>
    %c0_14 = arith.constant 0 : index
    %c0_15 = arith.constant 0 : index
    %31 = vector.load %arg13[%c0_14, %c0_15] : memref<16x32xbf16, #tpu.memory_space<vmem>>, vector<16x32xbf16>
    %32 = vector.extract_strided_slice %31 {offsets = [0, 0], sizes = [16, 16], strides = [1, 1]} : vector<16x32xbf16> to vector<16x16xbf16>
    %33 = vector.extract_strided_slice %31 {offsets = [0, 16], sizes = [16, 16], strides = [1, 1]} : vector<16x32xbf16> to vector<16x16xbf16>
    %34 = vector.shape_cast %30 : vector<64x16xf32> to vector<1x64x16xf32>
    %35 = vector.shape_cast %32 : vector<16x16xbf16> to vector<1x16x16xbf16>
    %36 = vector.shape_cast %33 : vector<16x16xbf16> to vector<1x16x16xbf16>
    %37 = vector.extract_strided_slice %34 {offsets = [0, 0, 0], sizes = [1, 64, 8], strides = [1, 1, 1]} : vector<1x64x16xf32> to vector<1x64x8xf32>
    %38 = arith.truncf %37 : vector<1x64x8xf32> to vector<1x64x8xbf16>
    %39 = vector.extract_strided_slice %35 {offsets = [0, 0, 0], sizes = [1, 16, 8], strides = [1, 1, 1]} : vector<1x16x16xbf16> to vector<1x16x8xbf16>
    %40 = vector.extract_strided_slice %36 {offsets = [0, 0, 0], sizes = [1, 16, 8], strides = [1, 1, 1]} : vector<1x16x16xbf16> to vector<1x16x8xbf16>
    "tpu.trace_start"() <{level = 10 : i32, message = "gnd,gmd->gnm"}> : () -> ()
    %cst_16 = arith.constant dense<0.000000e+00> : vector<1x64x16xf32>
    %41 = tpu.matmul %38, %39, %cst_16 {dimension_numbers = #tpu.dot_dimension_numbers<[2], [2], [1], [1], [0, 0, 0, 1, 1, 1], [0], [0]>} : vector<1x64x8xbf16>, vector<1x16x8xbf16>, vector<1x64x16xf32> -> vector<1x64x16xf32>
    "tpu.trace_stop"() : () -> ()
    %cst_17 = arith.constant dense<0xFF800000> : vector<1x64xf32>
    %42 = vector.multi_reduction <maximumf>, %41, %cst_17 [2] : vector<1x64x16xf32> to vector<1x64xf32>
    %43 = vector.shape_cast %42 : vector<1x64xf32> to vector<1x64x1xf32>
    %44 = vector.broadcast %43 : vector<1x64x1xf32> to vector<1x64x16xf32>
    %45 = arith.subf %41, %44 : vector<1x64x16xf32>
    %46 = math.exp %45 : vector<1x64x16xf32>
    %cst_18 = arith.constant dense<0.000000e+00> : vector<1x64xf32>
    %47 = vector.multi_reduction <add>, %46, %cst_18 [2] : vector<1x64x16xf32> to vector<1x64xf32>
    %48 = vector.shape_cast %47 : vector<1x64xf32> to vector<1x64x1xf32>
    %49 = tpu.reciprocal %48 {approx = true} : vector<1x64x1xf32> -> vector<1x64x1xf32>
    %50 = vector.broadcast %49 : vector<1x64x1xf32> to vector<1x64x16xf32>
    %51 = arith.mulf %46, %50 : vector<1x64x16xf32>
    %52 = arith.truncf %51 : vector<1x64x16xf32> to vector<1x64x16xbf16>
    "tpu.trace_start"() <{level = 10 : i32, message = "gnm,gmd->gnd"}> : () -> ()
    %cst_19 = arith.constant dense<0.000000e+00> : vector<1x64x8xf32>
    %53 = tpu.matmul %52, %40, %cst_19 {dimension_numbers = #tpu.dot_dimension_numbers<[2], [1], [1], [2], [0, 0, 0, 1, 1, 2], [0], [0]>} : vector<1x64x16xbf16>, vector<1x16x8xbf16>, vector<1x64x8xf32> -> vector<1x64x8xf32>
    "tpu.trace_stop"() : () -> ()
    %54 = vector.extract_strided_slice %34 {offsets = [0, 0, 8], sizes = [1, 64, 8], strides = [1, 1, 1]} : vector<1x64x16xf32> to vector<1x64x8xf32>
    %55 = arith.truncf %54 : vector<1x64x8xf32> to vector<1x64x8xbf16>
    %56 = vector.extract_strided_slice %35 {offsets = [0, 0, 8], sizes = [1, 16, 8], strides = [1, 1, 1]} : vector<1x16x16xbf16> to vector<1x16x8xbf16>
    %57 = vector.extract_strided_slice %36 {offsets = [0, 0, 8], sizes = [1, 16, 8], strides = [1, 1, 1]} : vector<1x16x16xbf16> to vector<1x16x8xbf16>
    "tpu.trace_start"() <{level = 10 : i32, message = "gnd,gmd->gnm"}> : () -> ()
    %cst_20 = arith.constant dense<0.000000e+00> : vector<1x64x16xf32>
    %58 = tpu.matmul %55, %56, %cst_20 {dimension_numbers = #tpu.dot_dimension_numbers<[2], [2], [1], [1], [0, 0, 0, 1, 1, 1], [0], [0]>} : vector<1x64x8xbf16>, vector<1x16x8xbf16>, vector<1x64x16xf32> -> vector<1x64x16xf32>
    "tpu.trace_stop"() : () -> ()
    %cst_21 = arith.constant dense<0xFF800000> : vector<1x64xf32>
    %59 = vector.multi_reduction <maximumf>, %58, %cst_21 [2] : vector<1x64x16xf32> to vector<1x64xf32>
    %60 = vector.shape_cast %59 : vector<1x64xf32> to vector<1x64x1xf32>
    %61 = vector.broadcast %60 : vector<1x64x1xf32> to vector<1x64x16xf32>
    %62 = arith.subf %58, %61 : vector<1x64x16xf32>
    %63 = math.exp %62 : vector<1x64x16xf32>
    %cst_22 = arith.constant dense<0.000000e+00> : vector<1x64xf32>
    %64 = vector.multi_reduction <add>, %63, %cst_22 [2] : vector<1x64x16xf32> to vector<1x64xf32>
    %65 = vector.shape_cast %64 : vector<1x64xf32> to vector<1x64x1xf32>
    %66 = tpu.reciprocal %65 {approx = true} : vector<1x64x1xf32> -> vector<1x64x1xf32>
    %67 = vector.broadcast %66 : vector<1x64x1xf32> to vector<1x64x16xf32>
    %68 = arith.mulf %63, %67 : vector<1x64x16xf32>
    %69 = arith.truncf %68 : vector<1x64x16xf32> to vector<1x64x16xbf16>
    "tpu.trace_start"() <{level = 10 : i32, message = "gnm,gmd->gnd"}> : () -> ()
    %cst_23 = arith.constant dense<0.000000e+00> : vector<1x64x8xf32>
    %70 = tpu.matmul %69, %57, %cst_23 {dimension_numbers = #tpu.dot_dimension_numbers<[2], [1], [1], [2], [0, 0, 0, 1, 1, 2], [0], [0]>} : vector<1x64x16xbf16>, vector<1x16x8xbf16>, vector<1x64x8xf32> -> vector<1x64x8xf32>
    "tpu.trace_stop"() : () -> ()
    %71 = tpu.concatenate %53, %70 in 2 : vector<1x64x8xf32>, vector<1x64x8xf32> -> vector<1x64x16xf32>
    %72 = vector.shape_cast %71 : vector<1x64x16xf32> to vector<64x16xf32>
    %73 = arith.truncf %72 : vector<64x16xf32> to vector<64x16xbf16>
    %c0_24 = arith.constant 0 : index
    %c0_25 = arith.constant 0 : index
    %74 = vector.load %arg10[%c0_24, %c0_25] : memref<16x32xbf16, #tpu.memory_space<vmem>>, vector<16x32xbf16>
    %cst_26 = arith.constant dense<0.000000e+00> : vector<64x32xf32>
    %75 = tpu.matmul %73, %74, %cst_26 {dimension_numbers = #tpu.dot_dimension_numbers<[1], [0], [0], [1], [0, 0, 1, 1], [], []>} : vector<64x16xbf16>, vector<16x32xbf16>, vector<64x32xf32> -> vector<64x32xf32>
    %c0_27 = arith.constant 0 : index
    %c0_28 = arith.constant 0 : index
    %76 = vector.load %arg11[%c0_27, %c0_28] : memref<1x32xf32, #tpu.memory_space<vmem>>, vector<1x32xf32>
    %77 = vector.broadcast %76 : vector<1x32xf32> to vector<64x32xf32>
    %78 = arith.addf %75, %77 : vector<64x32xf32>
    %79 = arith.addf %78, %5 : vector<64x32xf32>
    %80 = arith.truncf %79 : vector<64x32xf32> to vector<64x32xbf16>
    %c0_29 = arith.constant 0 : index
    %c0_30 = arith.constant 0 : index
    %c0_31 = arith.constant 0 : index
    %81 = vector.load %arg12[%c0_29, %c0_30, %c0_31] : memref<1x64x32xbf16, #tpu.memory_space<vmem>>, vector<1x64x32xbf16>
    %82 = vector.shape_cast %81 : vector<1x64x32xbf16> to vector<64x32xbf16>
    %83 = vector.shape_cast %80 : vector<64x32xbf16> to vector<1x64x32xbf16>
    tpu.vector_store %arg12[%c0_29, %c0_30, %c0_31], %83 {strides = array<i32>} : memref<1x64x32xbf16, #tpu.memory_space<vmem>>, vector<1x64x32xbf16>,
    return
  }
  func.func @transform_0(%arg0: i32, %arg1: i32) -> (i32, i32, i32) {
    %c0_i32 = arith.constant 0 : i32
    %c0_i32_0 = arith.constant 0 : i32
    return %arg0, %arg1, %c0_i32 : i32, i32, i32
  }
  func.func @transform_1(%arg0: i32, %arg1: i32) -> (i32, i32, i32) {
    %c0_i32 = arith.constant 0 : i32
    %c0_i32_0 = arith.constant 0 : i32
    %c0_i32_1 = arith.constant 0 : i32
    return %arg0, %c0_i32, %c0_i32_0 : i32, i32, i32
  }
  func.func @transform_2(%arg0: i32, %arg1: i32) -> (i32, i32) {
    %c0_i32 = arith.constant 0 : i32
    %c0_i32_0 = arith.constant 0 : i32
    %c0_i32_1 = arith.constant 0 : i32
    return %c0_i32, %c0_i32_0 : i32, i32
  }
  func.func @transform_3(%arg0: i32, %arg1: i32) -> (i32, i32) {
    %c0_i32 = arith.constant 0 : i32
    %c0_i32_0 = arith.constant 0 : i32
    %c0_i32_1 = arith.constant 0 : i32
    return %c0_i32, %c0_i32_0 : i32, i32
  }
  func.func @transform_4(%arg0: i32, %arg1: i32) -> (i32, i32) {
    %c0_i32 = arith.constant 0 : i32
    %c0_i32_0 = arith.constant 0 : i32
    %c0_i32_1 = arith.constant 0 : i32
    return %c0_i32, %c0_i32_0 : i32, i32
  }
  func.func @transform_5(%arg0: i32, %arg1: i32) -> (i32, i32) {
    %c0_i32 = arith.constant 0 : i32
    %c0_i32_0 = arith.constant 0 : i32
    %c0_i32_1 = arith.constant 0 : i32
    return %c0_i32, %c0_i32_0 : i32, i32
  }
  func.func @transform_6(%arg0: i32, %arg1: i32) -> (i32, i32) {
    %c0_i32 = arith.constant 0 : i32
    %c0_i32_0 = arith.constant 0 : i32
    %c0_i32_1 = arith.constant 0 : i32
    return %c0_i32, %c0_i32_0 : i32, i32
  }
  func.func @transform_7(%arg0: i32, %arg1: i32) -> (i32, i32) {
    %c0_i32 = arith.constant 0 : i32
    %c0_i32_0 = arith.constant 0 : i32
    %c0_i32_1 = arith.constant 0 : i32
    return %c0_i32, %c0_i32_0 : i32, i32
  }
  func.func @transform_8(%arg0: i32, %arg1: i32) -> (i32, i32) {
    %c0_i32 = arith.constant 0 : i32
    %c0_i32_0 = arith.constant 0 : i32
    %c0_i32_1 = arith.constant 0 : i32
    return %c0_i32, %c0_i32_0 : i32, i32
  }
  func.func @transform_9(%arg0: i32, %arg1: i32) -> (i32, i32) {
    %c0_i32 = arith.constant 0 : i32
    %c0_i32_0 = arith.constant 0 : i32
    %c0_i32_1 = arith.constant 0 : i32
    return %c0_i32, %c0_i32_0 : i32, i32
  }
  func.func @transform_10(%arg0: i32, %arg1: i32) -> (i32, i32, i32) {
    %c0_i32 = arith.constant 0 : i32
    %c0_i32_0 = arith.constant 0 : i32
    return %arg0, %arg1, %c0_i32 : i32, i32, i32
  }
}

module attributes {stable_mosaic.version = 11 : i64} {
  func.func @_ff_kernel(%arg0: i32, %arg1: memref<64x32xbf16, #tpu.memory_space<vmem>>, %arg2: memref<1x32xf32, #tpu.memory_space<vmem>>, %arg3: memref<1x32xf32, #tpu.memory_space<vmem>>, %arg4: memref<32x256xbf16, #tpu.memory_space<vmem>>, %arg5: memref<1x256xf32, #tpu.memory_space<vmem>>, %arg6: memref<128x32xbf16, #tpu.memory_space<vmem>>, %arg7: memref<1x32xf32, #tpu.memory_space<vmem>>, %arg8: memref<64x32xbf16, #tpu.memory_space<vmem>>) attributes {dimension_semantics = [#tpu.dimension_semantics<parallel>], iteration_bounds = array<i64: 1>, scalar_prefetch = 0 : i64, scratch_operands = 0 : i64, tpu.core_type = #tpu.core_type<tc>, window_params = [{transform_indices = @transform_0, window_bounds = array<i64: 64, 32>}, {pipeline_mode = #tpu.pipeline_mode<synchronous>, transform_indices = @transform_1, window_bounds = array<i64: 1, 32>}, {pipeline_mode = #tpu.pipeline_mode<synchronous>, transform_indices = @transform_2, window_bounds = array<i64: 1, 32>}, {pipeline_mode = #tpu.pipeline_mode<synchronous>, transform_indices = @transform_3, window_bounds = array<i64: 32, 256>}, {pipeline_mode = #tpu.pipeline_mode<synchronous>, transform_indices = @transform_4, window_bounds = array<i64: 1, 256>}, {pipeline_mode = #tpu.pipeline_mode<synchronous>, transform_indices = @transform_5, window_bounds = array<i64: 128, 32>}, {pipeline_mode = #tpu.pipeline_mode<synchronous>, transform_indices = @transform_6, window_bounds = array<i64: 1, 32>}, {transform_indices = @transform_7, window_bounds = array<i64: 64, 32>}]} {
    %c0 = arith.constant 0 : index
    %c0_0 = arith.constant 0 : index
    %0 = vector.load %arg1[%c0, %c0_0] : memref<64x32xbf16, #tpu.memory_space<vmem>>, vector<64x32xbf16>
    %1 = arith.extf %0 : vector<64x32xbf16> to vector<64x32xf32>
    %c0_1 = arith.constant 0 : index
    %c0_2 = arith.constant 0 : index
    %2 = vector.load %arg2[%c0_1, %c0_2] : memref<1x32xf32, #tpu.memory_space<vmem>>, vector<1x32xf32>
    %c0_3 = arith.constant 0 : index
    %c0_4 = arith.constant 0 : index
    %3 = vector.load %arg3[%c0_3, %c0_4] : memref<1x32xf32, #tpu.memory_space<vmem>>, vector<1x32xf32>
    %cst = arith.constant dense<0.000000e+00> : vector<64xf32>
    %4 = vector.multi_reduction <add>, %1, %cst [1] : vector<64x32xf32> to vector<64xf32>
    %5 = vector.shape_cast %4 : vector<64xf32> to vector<64x1xf32>
    %cst_5 = arith.constant 3.200000e+01 : f32
    %6 = vector.broadcast %cst_5 : f32 to vector<64x1xf32>
    %7 = arith.divf %5, %6 : vector<64x1xf32>
    %8 = vector.broadcast %7 : vector<64x1xf32> to vector<64x32xf32>
    %9 = arith.subf %1, %8 : vector<64x32xf32>
    %10 = arith.mulf %9, %9 : vector<64x32xf32>
    %cst_6 = arith.constant dense<0.000000e+00> : vector<64xf32>
    %11 = vector.multi_reduction <add>, %10, %cst_6 [1] : vector<64x32xf32> to vector<64xf32>
    %12 = vector.shape_cast %11 : vector<64xf32> to vector<64x1xf32>
    %cst_7 = arith.constant 3.200000e+01 : f32
    %13 = vector.broadcast %cst_7 : f32 to vector<64x1xf32>
    %14 = arith.divf %12, %13 : vector<64x1xf32>
    %cst_8 = arith.constant 9.99999974E-6 : f32
    %15 = vector.broadcast %cst_8 : f32 to vector<64x1xf32>
    %16 = arith.addf %14, %15 : vector<64x1xf32>
    %17 = math.rsqrt %16 : vector<64x1xf32>
    %18 = vector.broadcast %17 : vector<64x1xf32> to vector<64x32xf32>
    %19 = arith.mulf %9, %18 : vector<64x32xf32>
    %20 = vector.broadcast %2 : vector<1x32xf32> to vector<64x32xf32>
    %21 = arith.mulf %19, %20 : vector<64x32xf32>
    %22 = vector.broadcast %3 : vector<1x32xf32> to vector<64x32xf32>
    %23 = arith.addf %21, %22 : vector<64x32xf32>
    %24 = arith.truncf %23 : vector<64x32xf32> to vector<64x32xbf16>
    %c0_9 = arith.constant 0 : index
    %c0_10 = arith.constant 0 : index
    %25 = vector.load %arg4[%c0_9, %c0_10] : memref<32x256xbf16, #tpu.memory_space<vmem>>, vector<32x256xbf16>
    %cst_11 = arith.constant dense<0.000000e+00> : vector<64x256xf32>
    %26 = tpu.matmul %24, %25, %cst_11 {dimension_numbers = #tpu.dot_dimension_numbers<[1], [0], [0], [1], [0, 0, 1, 1], [], []>} : vector<64x32xbf16>, vector<32x256xbf16>, vector<64x256xf32> -> vector<64x256xf32>
    %c0_12 = arith.constant 0 : index
    %c0_13 = arith.constant 0 : index
    %27 = vector.load %arg5[%c0_12, %c0_13] : memref<1x256xf32, #tpu.memory_space<vmem>>, vector<1x256xf32>
    %28 = vector.broadcast %27 : vector<1x256xf32> to vector<64x256xf32>
    %29 = arith.addf %26, %28 : vector<64x256xf32>
    %30 = vector.extract_strided_slice %29 {offsets = [0, 0], sizes = [64, 128], strides = [1, 1]} : vector<64x256xf32> to vector<64x128xf32>
    %31 = vector.extract_strided_slice %29 {offsets = [0, 128], sizes = [64, 128], strides = [1, 1]} : vector<64x256xf32> to vector<64x128xf32>
    %cst_14 = arith.constant 5.000000e-01 : f32
    %32 = vector.broadcast %cst_14 : f32 to vector<64x128xf32>
    %33 = arith.mulf %32, %31 : vector<64x128xf32>
    %cst_15 = arith.constant 0.707106769 : f32
    %34 = vector.broadcast %cst_15 : f32 to vector<64x128xf32>
    %35 = arith.mulf %31, %34 : vector<64x128xf32>
    %cst_16 = arith.constant 0.000000e+00 : f32
    %36 = vector.broadcast %cst_16 : f32 to vector<64x128xf32>
    %37 = arith.cmpf oge, %35, %36 : vector<64x128xf32>
    %cst_17 = arith.constant 1.000000e+00 : f32
    %cst_18 = arith.constant -1.000000e+00 : f32
    %38 = vector.broadcast %cst_17 : f32 to vector<64x128xf32>
    %39 = vector.broadcast %cst_18 : f32 to vector<64x128xf32>
    %40 = arith.select %37, %38, %39 : vector<64x128xi1>, vector<64x128xf32>
    %41 = math.absf %35 : vector<64x128xf32>
    %cst_19 = arith.constant 0.327591091 : f32
    %42 = vector.broadcast %cst_19 : f32 to vector<64x128xf32>
    %43 = arith.mulf %42, %41 : vector<64x128xf32>
    %cst_20 = arith.constant 1.000000e+00 : f32
    %44 = vector.broadcast %cst_20 : f32 to vector<64x128xf32>
    %45 = arith.addf %44, %43 : vector<64x128xf32>
    %cst_21 = arith.constant 1.000000e+00 : f32
    %46 = vector.broadcast %cst_21 : f32 to vector<64x128xf32>
    %47 = arith.divf %46, %45 : vector<64x128xf32>
    %cst_22 = arith.constant 1.06140542 : f32
    %48 = vector.broadcast %cst_22 : f32 to vector<64x128xf32>
    %49 = arith.mulf %48, %47 : vector<64x128xf32>
    %cst_23 = arith.constant -1.45315206 : f32
    %50 = vector.broadcast %cst_23 : f32 to vector<64x128xf32>
    %51 = arith.addf %49, %50 : vector<64x128xf32>
    %52 = arith.mulf %51, %47 : vector<64x128xf32>
    %cst_24 = arith.constant 1.42141378 : f32
    %53 = vector.broadcast %cst_24 : f32 to vector<64x128xf32>
    %54 = arith.addf %52, %53 : vector<64x128xf32>
    %55 = arith.mulf %54, %47 : vector<64x128xf32>
    %cst_25 = arith.constant -0.284496725 : f32
    %56 = vector.broadcast %cst_25 : f32 to vector<64x128xf32>
    %57 = arith.addf %55, %56 : vector<64x128xf32>
    %58 = arith.mulf %57, %47 : vector<64x128xf32>
    %cst_26 = arith.constant 0.254829586 : f32
    %59 = vector.broadcast %cst_26 : f32 to vector<64x128xf32>
    %60 = arith.addf %58, %59 : vector<64x128xf32>
    %61 = arith.mulf %60, %47 : vector<64x128xf32>
    %cst_27 = arith.constant 0.000000e+00 : f32
    %62 = vector.broadcast %cst_27 : f32 to vector<64x128xf32>
    %63 = arith.subf %62, %41 : vector<64x128xf32>
    %64 = arith.mulf %63, %41 : vector<64x128xf32>
    %65 = math.exp %64 : vector<64x128xf32>
    %66 = arith.mulf %61, %65 : vector<64x128xf32>
    %cst_28 = arith.constant 1.000000e+00 : f32
    %67 = vector.broadcast %cst_28 : f32 to vector<64x128xf32>
    %68 = arith.subf %67, %66 : vector<64x128xf32>
    %69 = arith.mulf %40, %68 : vector<64x128xf32>
    %cst_29 = arith.constant 1.000000e+00 : f32
    %70 = vector.broadcast %cst_29 : f32 to vector<64x128xf32>
    %71 = arith.addf %70, %69 : vector<64x128xf32>
    %72 = arith.mulf %33, %71 : vector<64x128xf32>
    %73 = arith.mulf %30, %72 : vector<64x128xf32>
    %74 = arith.truncf %73 : vector<64x128xf32> to vector<64x128xbf16>
    %c0_30 = arith.constant 0 : index
    %c0_31 = arith.constant 0 : index
    %75 = vector.load %arg6[%c0_30, %c0_31] : memref<128x32xbf16, #tpu.memory_space<vmem>>, vector<128x32xbf16>
    %cst_32 = arith.constant dense<0.000000e+00> : vector<64x32xf32>
    %76 = tpu.matmul %74, %75, %cst_32 {dimension_numbers = #tpu.dot_dimension_numbers<[1], [0], [0], [1], [0, 0, 1, 1], [], []>} : vector<64x128xbf16>, vector<128x32xbf16>, vector<64x32xf32> -> vector<64x32xf32>
    %c0_33 = arith.constant 0 : index
    %c0_34 = arith.constant 0 : index
    %77 = vector.load %arg7[%c0_33, %c0_34] : memref<1x32xf32, #tpu.memory_space<vmem>>, vector<1x32xf32>
    %78 = vector.broadcast %77 : vector<1x32xf32> to vector<64x32xf32>
    %79 = arith.addf %76, %78 : vector<64x32xf32>
    %80 = arith.addf %79, %1 : vector<64x32xf32>
    %81 = arith.truncf %80 : vector<64x32xf32> to vector<64x32xbf16>
    %c0_35 = arith.constant 0 : index
    %c0_36 = arith.constant 0 : index
    %82 = vector.load %arg8[%c0_35, %c0_36] : memref<64x32xbf16, #tpu.memory_space<vmem>>, vector<64x32xbf16>
    tpu.vector_store %arg8[%c0_35, %c0_36], %81 {strides = array<i32>} : memref<64x32xbf16, #tpu.memory_space<vmem>>, vector<64x32xbf16>,
    return
  }
  func.func @transform_0(%arg0: i32) -> (i32, i32) {
    %c0_i32 = arith.constant 0 : i32
    %c0_i32_0 = arith.constant 0 : i32
    return %arg0, %c0_i32 : i32, i32
  }
  func.func @transform_1(%arg0: i32) -> (i32, i32) {
    %c0_i32 = arith.constant 0 : i32
    %c0_i32_0 = arith.constant 0 : i32
    %c0_i32_1 = arith.constant 0 : i32
    return %c0_i32, %c0_i32_0 : i32, i32
  }
  func.func @transform_2(%arg0: i32) -> (i32, i32) {
    %c0_i32 = arith.constant 0 : i32
    %c0_i32_0 = arith.constant 0 : i32
    %c0_i32_1 = arith.constant 0 : i32
    return %c0_i32, %c0_i32_0 : i32, i32
  }
  func.func @transform_3(%arg0: i32) -> (i32, i32) {
    %c0_i32 = arith.constant 0 : i32
    %c0_i32_0 = arith.constant 0 : i32
    %c0_i32_1 = arith.constant 0 : i32
    return %c0_i32, %c0_i32_0 : i32, i32
  }
  func.func @transform_4(%arg0: i32) -> (i32, i32) {
    %c0_i32 = arith.constant 0 : i32
    %c0_i32_0 = arith.constant 0 : i32
    %c0_i32_1 = arith.constant 0 : i32
    return %c0_i32, %c0_i32_0 : i32, i32
  }
  func.func @transform_5(%arg0: i32) -> (i32, i32) {
    %c0_i32 = arith.constant 0 : i32
    %c0_i32_0 = arith.constant 0 : i32
    %c0_i32_1 = arith.constant 0 : i32
    return %c0_i32, %c0_i32_0 : i32, i32
  }
  func.func @transform_6(%arg0: i32) -> (i32, i32) {
    %c0_i32 = arith.constant 0 : i32
    %c0_i32_0 = arith.constant 0 : i32
    %c0_i32_1 = arith.constant 0 : i32
    return %c0_i32, %c0_i32_0 : i32, i32
  }
  func.func @transform_7(%arg0: i32) -> (i32, i32) {
    %c0_i32 = arith.constant 0 : i32
    %c0_i32_0 = arith.constant 0 : i32
    return %arg0, %c0_i32 : i32, i32
  }
}

module attributes {stable_mosaic.version = 11 : i64} {
  func.func @_ln_linear_kernel(%arg0: i32, %arg1: memref<64x32xbf16, #tpu.memory_space<vmem>>, %arg2: memref<1x32xf32, #tpu.memory_space<vmem>>, %arg3: memref<1x32xf32, #tpu.memory_space<vmem>>, %arg4: memref<32x128xbf16, #tpu.memory_space<vmem>>, %arg5: memref<1x128xf32, #tpu.memory_space<vmem>>, %arg6: memref<64x128xf32, #tpu.memory_space<vmem>>) attributes {dimension_semantics = [#tpu.dimension_semantics<parallel>], iteration_bounds = array<i64: 1>, scalar_prefetch = 0 : i64, scratch_operands = 0 : i64, tpu.core_type = #tpu.core_type<tc>, window_params = [{transform_indices = @transform_0, window_bounds = array<i64: 64, 32>}, {pipeline_mode = #tpu.pipeline_mode<synchronous>, transform_indices = @transform_1, window_bounds = array<i64: 1, 32>}, {pipeline_mode = #tpu.pipeline_mode<synchronous>, transform_indices = @transform_2, window_bounds = array<i64: 1, 32>}, {pipeline_mode = #tpu.pipeline_mode<synchronous>, transform_indices = @transform_3, window_bounds = array<i64: 32, 128>}, {pipeline_mode = #tpu.pipeline_mode<synchronous>, transform_indices = @transform_4, window_bounds = array<i64: 1, 128>}, {transform_indices = @transform_5, window_bounds = array<i64: 64, 128>}]} {
    %c0 = arith.constant 0 : index
    %c0_0 = arith.constant 0 : index
    %0 = vector.load %arg1[%c0, %c0_0] : memref<64x32xbf16, #tpu.memory_space<vmem>>, vector<64x32xbf16>
    %1 = arith.extf %0 : vector<64x32xbf16> to vector<64x32xf32>
    %c0_1 = arith.constant 0 : index
    %c0_2 = arith.constant 0 : index
    %2 = vector.load %arg2[%c0_1, %c0_2] : memref<1x32xf32, #tpu.memory_space<vmem>>, vector<1x32xf32>
    %c0_3 = arith.constant 0 : index
    %c0_4 = arith.constant 0 : index
    %3 = vector.load %arg3[%c0_3, %c0_4] : memref<1x32xf32, #tpu.memory_space<vmem>>, vector<1x32xf32>
    %cst = arith.constant dense<0.000000e+00> : vector<64xf32>
    %4 = vector.multi_reduction <add>, %1, %cst [1] : vector<64x32xf32> to vector<64xf32>
    %5 = vector.shape_cast %4 : vector<64xf32> to vector<64x1xf32>
    %cst_5 = arith.constant 3.200000e+01 : f32
    %6 = vector.broadcast %cst_5 : f32 to vector<64x1xf32>
    %7 = arith.divf %5, %6 : vector<64x1xf32>
    %8 = vector.broadcast %7 : vector<64x1xf32> to vector<64x32xf32>
    %9 = arith.subf %1, %8 : vector<64x32xf32>
    %10 = arith.mulf %9, %9 : vector<64x32xf32>
    %cst_6 = arith.constant dense<0.000000e+00> : vector<64xf32>
    %11 = vector.multi_reduction <add>, %10, %cst_6 [1] : vector<64x32xf32> to vector<64xf32>
    %12 = vector.shape_cast %11 : vector<64xf32> to vector<64x1xf32>
    %cst_7 = arith.constant 3.200000e+01 : f32
    %13 = vector.broadcast %cst_7 : f32 to vector<64x1xf32>
    %14 = arith.divf %12, %13 : vector<64x1xf32>
    %cst_8 = arith.constant 9.99999974E-6 : f32
    %15 = vector.broadcast %cst_8 : f32 to vector<64x1xf32>
    %16 = arith.addf %14, %15 : vector<64x1xf32>
    %17 = math.rsqrt %16 : vector<64x1xf32>
    %18 = vector.broadcast %17 : vector<64x1xf32> to vector<64x32xf32>
    %19 = arith.mulf %9, %18 : vector<64x32xf32>
    %20 = vector.broadcast %2 : vector<1x32xf32> to vector<64x32xf32>
    %21 = arith.mulf %19, %20 : vector<64x32xf32>
    %22 = vector.broadcast %3 : vector<1x32xf32> to vector<64x32xf32>
    %23 = arith.addf %21, %22 : vector<64x32xf32>
    %24 = arith.truncf %23 : vector<64x32xf32> to vector<64x32xbf16>
    %c0_9 = arith.constant 0 : index
    %c0_10 = arith.constant 0 : index
    %25 = vector.load %arg4[%c0_9, %c0_10] : memref<32x128xbf16, #tpu.memory_space<vmem>>, vector<32x128xbf16>
    %cst_11 = arith.constant dense<0.000000e+00> : vector<64x128xf32>
    %26 = tpu.matmul %24, %25, %cst_11 {dimension_numbers = #tpu.dot_dimension_numbers<[1], [0], [0], [1], [0, 0, 1, 1], [], []>} : vector<64x32xbf16>, vector<32x128xbf16>, vector<64x128xf32> -> vector<64x128xf32>
    %c0_12 = arith.constant 0 : index
    %c0_13 = arith.constant 0 : index
    %27 = vector.load %arg5[%c0_12, %c0_13] : memref<1x128xf32, #tpu.memory_space<vmem>>, vector<1x128xf32>
    %28 = vector.broadcast %27 : vector<1x128xf32> to vector<64x128xf32>
    %29 = arith.addf %26, %28 : vector<64x128xf32>
    %c0_14 = arith.constant 0 : index
    %c0_15 = arith.constant 0 : index
    %30 = vector.load %arg6[%c0_14, %c0_15] : memref<64x128xf32, #tpu.memory_space<vmem>>, vector<64x128xf32>
    tpu.vector_store %arg6[%c0_14, %c0_15], %29 {strides = array<i32>} : memref<64x128xf32, #tpu.memory_space<vmem>>, vector<64x128xf32>,
    return
  }
  func.func @transform_0(%arg0: i32) -> (i32, i32) {
    %c0_i32 = arith.constant 0 : i32
    %c0_i32_0 = arith.constant 0 : i32
    return %arg0, %c0_i32 : i32, i32
  }
  func.func @transform_1(%arg0: i32) -> (i32, i32) {
    %c0_i32 = arith.constant 0 : i32
    %c0_i32_0 = arith.constant 0 : i32
    %c0_i32_1 = arith.constant 0 : i32
    return %c0_i32, %c0_i32_0 : i32, i32
  }
  func.func @transform_2(%arg0: i32) -> (i32, i32) {
    %c0_i32 = arith.constant 0 : i32
    %c0_i32_0 = arith.constant 0 : i32
    %c0_i32_1 = arith.constant 0 : i32
    return %c0_i32, %c0_i32_0 : i32, i32
  }
  func.func @transform_3(%arg0: i32) -> (i32, i32) {
    %c0_i32 = arith.constant 0 : i32
    %c0_i32_0 = arith.constant 0 : i32
    %c0_i32_1 = arith.constant 0 : i32
    return %c0_i32, %c0_i32_0 : i32, i32
  }
  func.func @transform_4(%arg0: i32) -> (i32, i32) {
    %c0_i32 = arith.constant 0 : i32
    %c0_i32_0 = arith.constant 0 : i32
    %c0_i32_1 = arith.constant 0 : i32
    return %c0_i32, %c0_i32_0 : i32, i32
  }
  func.func @transform_5(%arg0: i32) -> (i32, i32) {
    %c0_i32 = arith.constant 0 : i32
    %c0_i32_0 = arith.constant 0 : i32
    return %arg0, %c0_i32 : i32, i32
  }
}

</mosaic_0001>

<bundles_post_ra>
// kernel: alphafold2_forward.10
= control target key start
LH: loop header
LB: loop body
LE: loop exit
PB: predicated region body
PF: predicated region fallthrough
CT: control target
= control target key end

     0   :  { %vm33_vm0 = vcmask 261120   ;;  %v813_v15 = vmov 0.0   ;;  %vm814_vm1 = vmmov 0   ;;  %vm143_vm2 = vcmask 64512   ;;  %s817_s9 = smov 104   ;;  %s818_s10 = smov 120   ;;  %s985_s0 = inlined_call_operand.vmem [shape: bf16[2,8,32], index: 0, kind: input, shape index: {}]   ;;  %s986_s4 = inlined_call_operand.vmem [shape: bf16[32,48], index: 4, kind: input, shape index: {}]   ;;  %s987_s2 = inlined_call_operand.vmem [shape: f32[1,32], index: 2, kind: input, shape index: {}]   ;;  %s988_s3 = inlined_call_operand.vmem [shape: f32[1,32], index: 3, kind: input, shape index: {}]   ;;  %s989_s5 = inlined_call_operand.vmem [shape: bf16[16,32], index: 5, kind: input, shape index: {}]   ;;  %s990_s1 = inlined_call_operand.vmem [shape: bf16[2,8,32], index: 1, kind: input, shape index: {}]   ;;  %s991_s6 = inlined_call_operand.vmem [shape: f32[1,32], index: 6, kind: input, shape index: {}]   ;;  %s992_s7 = inlined_call_operand.vmem [shape: bf16[2,8,32], index: 7, kind: output, shape index: {}]  }
   0x1   :  { %v687_v0 = vld [vmem:[%s985_s0] sm:$0xff]   ;;  %715 = vmatprep.subr.bf16.mxu0 %v813_v15  ;;  %v790_v16 = vld [vmem:[%s986_s4 + $0x8] sm:$0xff]   ;;  %719 = vmatprep.mubr.msk.bf16.mxu0 %vm814_vm1, %v813_v15  ;;  %vm268_vm3 = vcmask 1043456   ;;  %s819_s11 = smov 88   ;;  %s820_s14 = smov 8   ;;  %vm599_vm4 = vcmask 130048  }
   0x2   :  { %v864_v1 = vunpack.c.l.bf16 %v687_v0  ;;  %v866_v2 = vunpack.c.h.bf16 %v687_v0  ;;  %723 = vmatprep.subr.bf16.mxu1 %v813_v15  ;;  %725 = vmatprep.mubr.msk.bf16.mxu1 %vm814_vm1, %v813_v15  ;;  %v791_v17 = vld [vmem:[%s986_s4] sm:$0xff]   ;;  %vm663_vm5 = vcmask 257024  }
   0x3   :  { %716 = vmatpush3.bf16.msra.mxu0 %v790_v16  ;;  %v670_v26 = vld [vmem:[%s987_s2] ss:$0 sm:$0xff]  ;;  %s815_s2 = smov 112  }
   0x4   :  { %v34_v3 = vsel %vm33_vm0, %v864_v1, 0.0  ;;  %v37_v4 = vsel %vm33_vm0, %v866_v2, 0.0  ;;  %717 = vmatprep.subr.bf16.mxu0 %v813_v15  ;;  %v671_v30 = vld [vmem:[%s988_s3] ss:$0 sm:$0xff]  ;;  %s816_s3 = smov 96  }
   0x5   :  { %35 = vadd.xlane.f32.xlu0 %v34_v3 }
   0x7   :  { %718 = vmatpush3.bf16.msra.mxu0 %v791_v17 }
   0x8   :  { %729 = vmatprep.subr.bf16.mxu0 %v813_v15 }
   0x9   :  { %38 = vadd.xlane.f32.xlu0 %v37_v4 }
  0x8e   :  { %v36_v5 = vpop.xlane.xlu0 %35 }
  0x8f   :  { %v41_v6 = vmul.f32 0.03125, %v36_v5 }
  0x91   :  { %v43_v7 = vsub.f32 %v864_v1, %v41_v6 }
  0x92   :  { %v39_v8 = vpop.xlane.xlu0 %38 }
  0x93   :  { %v42_v9 = vmul.f32 0.03125, %v39_v8  ;;  %v45_v10 = vmul.f32 %v43_v7, %v43_v7 }
  0x95   :  { %v44_v11 = vsub.f32 %v866_v2, %v42_v9  ;;  %v47_v12 = vsel %vm33_vm0, %v45_v10, 0.0 }
  0x96   :  { %48 = vadd.xlane.f32.xlu1 %v47_v12 }
  0x97   :  { %v46_v13 = vmul.f32 %v44_v11, %v44_v11 }
  0x99   :  { %v50_v14 = vsel %vm33_vm0, %v46_v13, 0.0 }
  0x9a   :  { %51 = vadd.xlane.f32.xlu1 %v50_v14 }
 0x11f   :  { %v49_v18 = vpop.xlane.xlu1 %48 }
 0x120   :  { %v53_v19 = vmul.f32 0.03125, %v49_v18 }
 0x122   :  { %v55_v20 = vadd.f32 1e-05, %v53_v19 }
 0x123   :  { %v52_v21 = vpop.xlane.xlu1 %51 }
 0x124   :  { %793 = vrsqrt.f32 %v55_v20  ;;  %v54_v22 = vmul.f32 0.03125, %v52_v21 }
 0x126   :  { %v56_v23 = vadd.f32 1e-05, %v54_v22 }
 0x128   :  { %795 = vrsqrt.f32 %v56_v23 }
 0x131   :  { %v794_v24 = vpop.eup %793 }
 0x132   :  { %v59_v25 = vmul.f32 %v794_v24, %v43_v7 }
 0x134   :  { %v67_v29 = vmul.f32 %v670_v26, %v59_v25 }
 0x135   :  { %v796_v27 = vpop.eup %795 }
 0x136   :  { %v60_v28 = vmul.f32 %v796_v27, %v44_v11  ;;  %v75_v32 = vadd.f32 %v671_v30, %v67_v29 }
 0x138   :  { %v68_v31 = vmul.f32 %v670_v26, %v60_v28 }
 0x13a   :  { %v76_v33 = vadd.f32 %v671_v30, %v68_v31 }
 0x13c   :  { %v77_v34 = vpack.c.bf16 %v76_v33, %v75_v32 }
 0x13e   :  { %720 = vmatmul.mubr.msk.bf16.vlgmr.msra.gmra.mxu0 %vm33_vm0, %v77_v34 }
 0x13f   :  { %731 = vmatprep.mubr.msk.bf16.mxu0 %vm814_vm1, %v813_v15 }
 0x1fe   :  { %v131_v35 = vpop.f32.mrf.mxu0 }
 0x1ff   :  { %v899_v36 = vpack.c.bf16 %v131_v35, %v131_v35 }
 0x200   :  { %v721_v37 = vpop.f32.mrf.mxu0 }
 0x201   :  { %141 = vrot.lane.b32.xlu0 %v899_v36, %s815_s2 }
 0x202   :  { %v134_v38 = vpop.f32.mrf.mxu0 }
 0x203   :  { %v902_v39 = vpack.c.bf16 %v134_v38, %v134_v38 }
 0x204   :  { %v722_v40 = vpop.f32.mrf.mxu0 }
 0x205   :  { %191 = vrot.lane.b32.xlu1 %v902_v39, %s815_s2 }
 0x273   :  { %v142_v41 = vpop.permute.xlu0 %141 }
 0x274   :  { %v148_v42 = vsel %vm143_vm2, %v142_v41, 0 }
 0x275   :  { %724 = vmatpush3.bf16.xpose.msra.mxu1 %v148_v42 }
 0x276   :  { %735 = vmatprep.subr.bf16.mxu1 %v813_v15 }
 0x277   :  { %v192_v43 = vpop.permute.xlu1 %191 }
 0x278   :  { %v197_v44 = vsel %vm143_vm2, %v192_v43, 0 }
 0x279   :  { %730 = vmatpush3.bf16.xpose.msra.mxu0 %v197_v44 }
 0x27a   :  { %741 = vmatprep.subr.bf16.mxu0 %v813_v15 }
 0x27c   :  { %726 = vmatmul.mubr.msk.bf16.vlgmr.msra.gmra.mxu1 %vm143_vm2, %v899_v36 }
 0x27d   :  { %737 = vmatprep.mubr.msk.bf16.mxu1 %vm814_vm1, %v813_v15 }
 0x280   :  { %732 = vmatmul.mubr.msk.bf16.vlgmr.msra.gmra.mxu0 %vm143_vm2, %v902_v39 }
 0x281   :  { %743 = vmatprep.mubr.msk.bf16.mxu0 %vm814_vm1, %v813_v15 }
 0x33c   :  { %v184_v45 = vpop.f32.mrf.mxu1 }
 0x33d   :  { %v239_v46 = vsel %vm143_vm2, %v184_v45, -inf }
 0x33e   :  { %v727_v47 = vpop.f32.mrf.mxu1  ;;  %240 = vmax.xlane.f32.xlu1 %v239_v46 }
 0x340   :  { %v187_v48 = vpop.f32.mrf.mxu1  ;;  %v233_v49 = vpop.f32.mrf.mxu0 }
 0x341   :  { %v242_v50 = vsel %vm143_vm2, %v233_v49, -inf }
 0x342   :  { %v728_v51 = vpop.f32.mrf.mxu1  ;;  %243 = vmax.xlane.f32.xlu0 %v242_v50  ;;  %v733_v52 = vpop.f32.mrf.mxu0 }
 0x344   :  { %v236_v53 = vpop.f32.mrf.mxu0 }
 0x346   :  { %v734_v54 = vpop.f32.mrf.mxu0 }
 0x34f   :  { %312 = vrot.lane.b32.xlu1 %v902_v39, %s816_s3 }
 0x353   :  { %362 = vrot.lane.b32.xlu1 %v899_v36, %s817_s9 }
 0x3c7   :  { %v241_v55 = vpop.xlane.xlu1 %240 }
 0x3c8   :  { %v245_v56 = vsub.f32 %v184_v45, %v241_v55 }
 0x3ca   :  { %v247_v57 = vmul.f32 1.442695, %v245_v56 }
 0x3cb   :  { %v313_v58 = vpop.permute.xlu1 %312  ;;  %v244_v59 = vpop.xlane.xlu0 %243 }
 0x3cc   :  { %797 = vpow2.f32 %v247_v57  ;;  %v318_v60 = vsel %vm268_vm3, %v313_v58, 0  ;;  %v246_v61 = vsub.f32 %v233_v49, %v244_v59 }
 0x3cd   :  { %742 = vmatpush3.bf16.msra.mxu0 %v318_v60 }
 0x3ce   :  { %v249_v62 = vmul.f32 1.442695, %v246_v61  ;;  %753 = vmatprep.subr.bf16.mxu0 %v813_v15 }
 0x3cf   :  { %v363_v5 = vpop.permute.xlu1 %362 }
 0x3d0   :  { %799 = vpow2.f32 %v249_v62  ;;  %v368_v14 = vsel %vm143_vm2, %v363_v5, 0  ;;  %v792_v62 = vld [vmem:[%s989_s5] sm:$0xff]  }
 0x3d9   :  { %v798_v63 = vpop.eup %797 }
 0x3da   :  { %v251_v0 = vsel %vm143_vm2, %v798_v63, 0.0 }
 0x3db   :  { %252 = vadd.xlane.f32.xlu0 %v251_v0 }
 0x3dd   :  { %v800_v3 = vpop.eup %799 }
 0x3de   :  { %v254_v4 = vsel %vm143_vm2, %v800_v3, 0.0 }
 0x3df   :  { %255 = vadd.xlane.f32.xlu1 %v254_v4 }
 0x3f0   :  { %412 = vrot.lane.b32.xlu1 %v902_v39, %s817_s9 }
 0x3f1   :  { %263 = vrot.lane.b32.xlu0 %v899_v36, %s816_s3 }
 0x3f4   :  { %410 = vrot.lane.b32.xlu1 %v902_v39, %s818_s10 }
 0x3f5   :  { %360 = vrot.lane.b32.xlu0 %v899_v36, %s818_s10 }
 0x464   :  { %v253_v6 = vpop.xlane.xlu0 %252 }
 0x465   :  { %801 = vrcp.f32 %v253_v6 }
 0x468   :  { %v256_v7 = vpop.xlane.xlu1 %255  ;;  %v264_v8 = vpop.permute.xlu0 %263 }
 0x469   :  { %803 = vrcp.f32 %v256_v7  ;;  %v270_v9 = vsel %vm268_vm3, %v264_v8, 0 }
 0x46a   :  { %736 = vmatpush3.bf16.msra.mxu1 %v270_v9 }
 0x46b   :  { %747 = vmatprep.subr.bf16.mxu1 %v813_v15 }
 0x46c   :  { %v413_v17 = vpop.permute.xlu1 %412  ;;  %v361_v20 = vpop.permute.xlu0 %360 }
 0x46d   :  { %v418_v19 = vsel %vm143_vm2, %v413_v17, 0  ;;  %v691_v17 = vld [vmem:[%s990_s1] sm:$0xff]  }
 0x470   :  { %v411_v21 = vpop.permute.xlu1 %410 }
 0x472   :  { %v802_v10 = vpop.eup %801 }
 0x473   :  { %v259_v11 = vmul.f32 %v802_v10, %v798_v63 }
 0x475   :  { %v261_v12 = vpack.c.bf16 %v259_v11, %v259_v11 }
 0x476   :  { %v804_v13 = vpop.eup %803 }
 0x477   :  { %738 = vmatmul.mubr.msk.bf16.vlgmr.msra.gmra.mxu1 %vm143_vm2, %v261_v12  ;;  %v260_v16 = vmul.f32 %v804_v13, %v800_v3 }
 0x478   :  { %748 = vmatpush3.bf16.xpose.msra.mxu1 %v368_v14  ;;  %749 = vmatprep.mubr.msk.bf16.mxu1 %vm814_vm1, %v813_v15 }
 0x479   :  { %v262_v18 = vpack.c.bf16 %v260_v16, %v260_v16  ;;  %759 = vmatprep.subr.bf16.mxu1 %v813_v15  ;;  %v685_v16 = vld [vmem:[%s991_s6] ss:$0 sm:$0xff] }
 0x47b   :  { %744 = vmatmul.mubr.msk.bf16.vlgmr.msra.gmra.mxu0 %vm143_vm2, %v262_v18 }
 0x47c   :  { %754 = vmatpush3.bf16.xpose.msra.mxu0 %v418_v19  ;;  %755 = vmatprep.mubr.msk.bf16.mxu0 %vm814_vm1, %v813_v15 }
 0x47d   :  { %765 = vmatprep.subr.bf16.mxu0 %v813_v15 }
 0x47f   :  { %750 = vmatmul.mubr.msk.bf16.vlgmr.msra.gmra.mxu1 %vm143_vm2, %v361_v20  ;;  %v692_v20 = vunpack.c.l.bf16 %v691_v17 }
 0x480   :  { %761 = vmatprep.mubr.msk.bf16.mxu1 %vm814_vm1, %v813_v15 }
 0x483   :  { %756 = vmatmul.mubr.msk.bf16.vlgmr.msra.gmra.mxu0 %vm143_vm2, %v411_v21 }
 0x484   :  { %767 = vmatprep.mubr.msk.bf16.mxu0 %vm814_vm1, %v813_v15 }
 0x537   :  { %v947_v22 = vpop.f32.mrf.mxu1 }
 0x539   :  { %v739_v23 = vpop.f32.mrf.mxu1 }
 0x53b   :  { %v309_v24 = vpop.f32.mrf.mxu1  ;;  %v949_v25 = vpop.f32.mrf.mxu0 }
 0x53d   :  { %v740_v26 = vpop.f32.mrf.mxu1  ;;  %v745_v27 = vpop.f32.mrf.mxu0 }
 0x53e   :  { %v693_v26 = vunpack.c.h.bf16 %v691_v17 }
 0x53f   :  { %v357_v28 = vpop.f32.mrf.mxu0  ;;  %v404_v29 = vpop.f32.mrf.mxu1 }
 0x540   :  { %v460_v30 = vsel %vm143_vm2, %v404_v29, -inf }
 0x541   :  { %461 = vmax.xlane.f32.xlu0 %v460_v30  ;;  %v746_v31 = vpop.f32.mrf.mxu0  ;;  %v751_v32 = vpop.f32.mrf.mxu1 }
 0x543   :  { %v407_v33 = vpop.f32.mrf.mxu1  ;;  %v454_v34 = vpop.f32.mrf.mxu0 }
 0x544   :  { %v463_v35 = vsel %vm143_vm2, %v454_v34, -inf }
 0x545   :  { %v752_v37 = vpop.f32.mrf.mxu1  ;;  %464 = vmax.xlane.f32.xlu1 %v463_v35  ;;  %v757_v38 = vpop.f32.mrf.mxu0 }
 0x547   :  { %v457_v40 = vpop.f32.mrf.mxu0 }
 0x549   :  { %v758_v41 = vpop.f32.mrf.mxu0 }
 0x556   :  { %532 = vrot.lane.b32.xlu1 %v902_v39, %s819_s11 }
 0x5ca   :  { %v462_v42 = vpop.xlane.xlu0 %461 }
 0x5cb   :  { %v466_v43 = vsub.f32 %v404_v29, %v462_v42 }
 0x5cd   :  { %v468_v44 = vmul.f32 1.442695, %v466_v43 }
 0x5ce   :  { %v465_v45 = vpop.xlane.xlu1 %464 }
 0x5cf   :  { %805 = vpow2.f32 %v468_v44  ;;  %v467_v46 = vsub.f32 %v454_v34, %v465_v45 }
 0x5d1   :  { %v470_v47 = vmul.f32 1.442695, %v467_v46 }
 0x5d2   :  { %v533_v48 = vpop.permute.xlu1 %532 }
 0x5d3   :  { %807 = vpow2.f32 %v470_v47  ;;  %v538_v49 = vsel %vm268_vm3, %v533_v48, 0 }
 0x5d4   :  { %766 = vmatpush3.bf16.msra.mxu0 %v538_v49 }
 0x5dc   :  { %v806_v50 = vpop.eup %805 }
 0x5dd   :  { %v472_v51 = vsel %vm143_vm2, %v806_v50, 0.0 }
 0x5de   :  { %473 = vadd.xlane.f32.xlu0 %v472_v51 }
 0x5e0   :  { %v808_v52 = vpop.eup %807 }
 0x5e1   :  { %v475_v53 = vsel %vm143_vm2, %v808_v52, 0.0 }
 0x5e2   :  { %476 = vadd.xlane.f32.xlu0 %v475_v53 }
 0x5f8   :  { %484 = vrot.lane.b32.xlu0 %v899_v36, %s819_s11 }
 0x667   :  { %v474_v39 = vpop.xlane.xlu0 %473 }
 0x668   :  { %809 = vrcp.f32 %v474_v39 }
 0x66b   :  { %v477_v54 = vpop.xlane.xlu0 %476 }
 0x66c   :  { %811 = vrcp.f32 %v477_v54 }
 0x66f   :  { %v485_v55 = vpop.permute.xlu0 %484 }
 0x670   :  { %v490_v56 = vsel %vm268_vm3, %v485_v55, 0 }
 0x671   :  { %760 = vmatpush3.bf16.msra.mxu1 %v490_v56 }
 0x672   :  { %771 = vmatprep.subr.bf16.mxu1 %v813_v15 }
 0x675   :  { %v810_v57 = vpop.eup %809 }
 0x676   :  { %v480_v58 = vmul.f32 %v810_v57, %v806_v50 }
 0x678   :  { %v482_v59 = vpack.c.bf16 %v480_v58, %v480_v58 }
 0x679   :  { %v812_v60 = vpop.eup %811 }
 0x67a   :  { %762 = vmatmul.mubr.msk.bf16.vlgmr.msra.gmra.mxu1 %vm143_vm2, %v482_v59  ;;  %v481_v61 = vmul.f32 %v812_v60, %v808_v52 }
 0x67b   :  { %773 = vmatprep.mubr.msk.bf16.mxu1 %vm814_vm1, %v813_v15  ;;  %772 = vmatpush3.bf16.msra.mxu1 %v792_v62 }
 0x67c   :  { %v483_v36 = vpack.c.bf16 %v481_v61, %v481_v61 }
 0x67e   :  { %768 = vmatmul.mubr.msk.bf16.vlgmr.msra.gmra.mxu0 %vm143_vm2, %v483_v36 }
 0x73a   :  { %v526_v63 = vpop.f32.mrf.mxu1 }
 0x73c   :  { %v763_v0 = vpop.f32.mrf.mxu1 }
 0x73e   :  { %v529_v3 = vpop.f32.mrf.mxu1  ;;  %v574_v4 = vpop.f32.mrf.mxu0 }
 0x73f   :  { %v785_v5 = vpack.i.bf16 %v574_v4, %v526_v63 }
 0x740   :  { %v764_v6 = vpop.f32.mrf.mxu1  ;;  %v769_v7 = vpop.f32.mrf.mxu0 }
 0x741   :  { %786 = vrot.lane.b32.xlu1 %v785_v5, %s820_s14 }
 0x742   :  { %v577_v8 = vpop.f32.mrf.mxu0 }
 0x744   :  { %v770_v9 = vpop.f32.mrf.mxu0 }
 0x7b3   :  { %v787_v15 = vpop.permute.xlu1 %786 }
 0x7b4   :  { %v789_v10 = vunpack.i.h.bf16 %v787_v15  ;;  %v788_v11 = vunpack.i.l.bf16 %v787_v15 }
 0x7b6   :  { %v589_v12 = vsel %vm143_vm2, %v949_v25, %v789_v10  ;;  %v588_v13 = vsel %vm143_vm2, %v947_v22, %v788_v11 }
 0x7b7   :  { %v590_v14 = vpack.c.bf16 %v589_v12, %v588_v13 }
 0x7b9   :  { %774 = vmatmul.mubr.msk.bf16.vlgmr.msra.gmra.mxu1 %vm599_vm4, %v590_v14 }
 0x879   :  { %v637_v18 = vpop.f32.mrf.mxu1 }
 0x87a   :  { %v651_v19 = vadd.f32 %v685_v16, %v637_v18 }
 0x87b   :  { %v775_v21 = vpop.f32.mrf.mxu1 }
 0x87c   :  { %v653_v23 = vadd.f32 %v864_v1, %v651_v19 }
 0x87d   :  { %v640_v24 = vpop.f32.mrf.mxu1 }
 0x87e   :  { %v659_v25 = vadd.f32 %v692_v20, %v653_v23  ;;  %v652_v22 = vadd.f32 %v685_v16, %v640_v24 }
 0x87f   :  { %v776_v27 = vpop.f32.mrf.mxu1 }
 0x880   :  { %v661_v28 = vpack.c.bf16 %v659_v25, %v659_v25  ;;  %v654_v29 = vadd.f32 %v866_v2, %v652_v22 }
 0x882   :  { %664 = vst.msk [vmem:[%s992_s7] sm:$0xf] %vm663_vm5, %v661_v28  ;;  %v660_v30 = vadd.f32 %v693_v26, %v654_v29 }
 0x884   :  { %v662_v31 = vpack.c.bf16 %v660_v30, %v660_v30 }
 0x886   :  { %665 = vst.msk [vmem:[%s992_s7 + $0x4] sm:$0xf] %vm663_vm5, %v662_v31 }

// kernel: alphafold2_forward.7
= control target key start
LH: loop header
LB: loop body
LE: loop exit
PB: predicated region body
PF: predicated region fallthrough
CT: control target
= control target key end

     0   :  { %vm42_vm0 = vcmask 261120   ;;  %vm2671_vm1 = vmmov 0   ;;  %vm284_vm2 = vcmask 64512   ;;  %vm775_vm3 = vcmask 1043456   ;;  %s2674_s11 = smov 104   ;;  %s2675_s12 = smov 120   ;;  %s3255_s0 = inlined_call_operand.vmem [shape: bf16[8,8,32], index: 0, kind: input, shape index: {}]   ;;  %s3256_s3 = inlined_call_operand.vmem [shape: bf16[32,48], index: 3, kind: input, shape index: {}]   ;;  %s3257_s1 = inlined_call_operand.vmem [shape: f32[1,32], index: 1, kind: input, shape index: {}]   ;;  %s3258_s2 = inlined_call_operand.vmem [shape: f32[1,32], index: 2, kind: input, shape index: {}]   ;;  %s3259_s4 = inlined_call_operand.vmem [shape: bf16[16,32], index: 4, kind: input, shape index: {}]   ;;  %s3260_s5 = inlined_call_operand.vmem [shape: f32[1,32], index: 5, kind: input, shape index: {}]   ;;  %s3261_s6 = inlined_call_operand.vmem [shape: bf16[8,8,32], index: 6, kind: output, shape index: {}]  }
   0x1   :  { %v2248_v0 = vld [vmem:[%s3255_s0] sm:$0xff]   ;;  %v2263_v1 = vld [vmem:[%s3255_s0 + $0x8] sm:$0xff]   ;;  %v2264_v6 = vld [vmem:[%s3255_s0 + $0x10] sm:$0xff]   ;;  %s2676_s13 = smov 88   ;;  %s2677_s14 = smov 8   ;;  %vm2087_vm4 = vcmask 130048  }
   0x2   :  { %v2249_v2 = vunpack.c.l.bf16 %v2248_v0  ;;  %v2253_v3 = vunpack.c.l.bf16 %v2263_v1  ;;  %v2250_v4 = vunpack.c.h.bf16 %v2248_v0  ;;  %v2254_v5 = vunpack.c.h.bf16 %v2263_v1  ;;  %v2265_v13 = vld [vmem:[%s3255_s0 + $0x18] sm:$0xff]   ;;  %v2587_v60 = vld [vmem:[%s3256_s3 + $0x8] sm:$0xff]   ;;  %v2588_v61 = vld [vmem:[%s3256_s3] sm:$0xff]  }
   0x3   :  { %v2257_v11 = vunpack.c.l.bf16 %v2264_v6  ;;  %v2258_v12 = vunpack.c.h.bf16 %v2264_v6  ;;  %v2261_v16 = vunpack.c.l.bf16 %v2265_v13  ;;  %v2262_v17 = vunpack.c.h.bf16 %v2265_v13  ;;  %2341 = vmatprep.subr.bf16.mxu0 %v2587_v60  ;;  %2555 = vmatprep.subr.bf16.mxu1 %v2587_v60 }
   0x4   :  { %v43_v7 = vsel %vm42_vm0, %v2249_v2, 0.0  ;;  %v49_v8 = vsel %vm42_vm0, %v2253_v3, 0.0  ;;  %v46_v9 = vsel %vm42_vm0, %v2250_v4, 0.0  ;;  %v52_v10 = vsel %vm42_vm0, %v2254_v5, 0.0  ;;  %2342 = vmatpush3.bf16.msra.mxu0 %v2587_v60  ;;  %2557 = vmatpush3.bf16.msra.mxu1 %v2587_v60 }
   0x5   :  { %44 = vadd.xlane.f32.xlu0 %v43_v7  ;;  %50 = vadd.xlane.f32.xlu1 %v49_v8  ;;  %v55_v14 = vsel %vm42_vm0, %v2257_v11, 0.0  ;;  %v58_v15 = vsel %vm42_vm0, %v2258_v12, 0.0  ;;  %v61_v18 = vsel %vm42_vm0, %v2261_v16, 0.0  ;;  %v64_v19 = vsel %vm42_vm0, %v2262_v17, 0.0 }
   0x6   :  { %2343 = vmatprep.subr.bf16.mxu0 %v2588_v61  ;;  %2556 = vmatprep.subr.bf16.mxu1 %v2588_v61  ;;  %vm2188_vm5 = vcmask 257024  }
   0x8   :  { %2344 = vmatpush3.bf16.msra.mxu0 %v2588_v61  ;;  %2558 = vmatpush3.bf16.msra.mxu1 %v2588_v61 }
   0x9   :  { %47 = vadd.xlane.f32.xlu0 %v46_v9  ;;  %53 = vadd.xlane.f32.xlu1 %v52_v10 }
   0xd   :  { %56 = vadd.xlane.f32.xlu0 %v55_v14  ;;  %59 = vadd.xlane.f32.xlu1 %v58_v15 }
  0x11   :  { %62 = vadd.xlane.f32.xlu0 %v61_v18  ;;  %65 = vadd.xlane.f32.xlu1 %v64_v19 }
  0x8e   :  { %v45_v20 = vpop.xlane.xlu0 %44  ;;  %v51_v21 = vpop.xlane.xlu1 %50 }
  0x8f   :  { %v68_v22 = vmul.f32 0.03125, %v45_v20  ;;  %v70_v23 = vmul.f32 0.03125, %v51_v21 }
  0x91   :  { %v2733_v24 = vsub.f32 %v2249_v2, %v68_v22  ;;  %v2735_v25 = vsub.f32 %v2253_v3, %v70_v23 }
  0x92   :  { %v48_v26 = vpop.xlane.xlu0 %47  ;;  %v54_v27 = vpop.xlane.xlu1 %53 }
  0x93   :  { %v69_v28 = vmul.f32 0.03125, %v48_v26  ;;  %v71_v29 = vmul.f32 0.03125, %v54_v27  ;;  %v84_v30 = vmul.f32 %v2733_v24, %v2733_v24  ;;  %v86_v31 = vmul.f32 %v2735_v25, %v2735_v25  ;;  %v2201_v26 = vld [vmem:[%s3257_s1] ss:$0 sm:$0xff]  ;;  %s2672_s1 = smov 112  }
  0x95   :  { %v2741_v32 = vsub.f32 %v2250_v4, %v69_v28  ;;  %v2743_v33 = vsub.f32 %v2254_v5, %v71_v29  ;;  %v92_v34 = vsel %vm42_vm0, %v84_v30, 0.0  ;;  %v98_v37 = vsel %vm42_vm0, %v86_v31, 0.0  ;;  %v2202_v31 = vld [vmem:[%s3258_s2] ss:$0 sm:$0xff]  ;;  %s2673_s2 = smov 96  }
  0x96   :  { %93 = vadd.xlane.f32.xlu0 %v92_v34  ;;  %v57_v35 = vpop.xlane.xlu0 %56  ;;  %v60_v36 = vpop.xlane.xlu1 %59 }
  0x97   :  { %v72_v38 = vmul.f32 0.03125, %v57_v35  ;;  %v73_v39 = vmul.f32 0.03125, %v60_v36  ;;  %v85_v40 = vmul.f32 %v2741_v32, %v2741_v32  ;;  %v87_v41 = vmul.f32 %v2743_v33, %v2743_v33 }
  0x99   :  { %v2751_v42 = vsub.f32 %v2257_v11, %v72_v38  ;;  %v2753_v43 = vsub.f32 %v2258_v12, %v73_v39  ;;  %v95_v44 = vsel %vm42_vm0, %v85_v40, 0.0  ;;  %v101_v47 = vsel %vm42_vm0, %v87_v41, 0.0 }
  0x9a   :  { %99 = vadd.xlane.f32.xlu0 %v98_v37  ;;  %96 = vadd.xlane.f32.xlu1 %v95_v44  ;;  %v63_v45 = vpop.xlane.xlu0 %62  ;;  %v66_v46 = vpop.xlane.xlu1 %65 }
  0x9b   :  { %v74_v48 = vmul.f32 0.03125, %v63_v45  ;;  %v75_v49 = vmul.f32 0.03125, %v66_v46  ;;  %v88_v50 = vmul.f32 %v2751_v42, %v2751_v42  ;;  %v89_v51 = vmul.f32 %v2753_v43, %v2753_v43 }
  0x9d   :  { %v2761_v52 = vsub.f32 %v2261_v16, %v74_v48  ;;  %v2763_v53 = vsub.f32 %v2262_v17, %v75_v49  ;;  %v104_v54 = vsel %vm42_vm0, %v88_v50, 0.0  ;;  %v107_v55 = vsel %vm42_vm0, %v89_v51, 0.0 }
  0x9e   :  { %102 = vadd.xlane.f32.xlu1 %v101_v47  ;;  %105 = vadd.xlane.f32.xlu0 %v104_v54 }
  0x9f   :  { %v90_v56 = vmul.f32 %v2761_v52, %v2761_v52  ;;  %v91_v57 = vmul.f32 %v2763_v53, %v2763_v53 }
  0xa1   :  { %v110_v58 = vsel %vm42_vm0, %v90_v56, 0.0  ;;  %v113_v59 = vsel %vm42_vm0, %v91_v57, 0.0 }
  0xa2   :  { %108 = vadd.xlane.f32.xlu1 %v107_v55  ;;  %111 = vadd.xlane.f32.xlu0 %v110_v58 }
  0xa6   :  { %114 = vadd.xlane.f32.xlu1 %v113_v59 }
 0x11f   :  { %v94_v62 = vpop.xlane.xlu0 %93 }
 0x120   :  { %v116_v63 = vmul.f32 0.03125, %v94_v62 }
 0x122   :  { %v124_v0 = vadd.f32 1e-05, %v116_v63 }
 0x123   :  { %v97_v1 = vpop.xlane.xlu1 %96  ;;  %v100_v2 = vpop.xlane.xlu0 %99 }
 0x124   :  { %2590 = vrsqrt.f32 %v124_v0  ;;  %v117_v3 = vmul.f32 0.03125, %v97_v1  ;;  %v118_v4 = vmul.f32 0.03125, %v100_v2 }
 0x126   :  { %v125_v5 = vadd.f32 1e-05, %v117_v3  ;;  %v126_v6 = vadd.f32 1e-05, %v118_v4 }
 0x127   :  { %v103_v7 = vpop.xlane.xlu1 %102  ;;  %v106_v8 = vpop.xlane.xlu0 %105 }
 0x128   :  { %2592 = vrsqrt.f32 %v125_v5  ;;  %v119_v9 = vmul.f32 0.03125, %v103_v7  ;;  %v120_v10 = vmul.f32 0.03125, %v106_v8 }
 0x129   :  { %2594 = vrsqrt.f32 %v126_v6 }
 0x12a   :  { %v127_v11 = vadd.f32 1e-05, %v119_v9  ;;  %v128_v12 = vadd.f32 1e-05, %v120_v10 }
 0x12b   :  { %v109_v13 = vpop.xlane.xlu1 %108  ;;  %v112_v14 = vpop.xlane.xlu0 %111 }
 0x12c   :  { %2596 = vrsqrt.f32 %v127_v11  ;;  %v121_v15 = vmul.f32 0.03125, %v109_v13  ;;  %v122_v16 = vmul.f32 0.03125, %v112_v14 }
 0x12d   :  { %2598 = vrsqrt.f32 %v128_v12 }
 0x12e   :  { %v129_v17 = vadd.f32 1e-05, %v121_v15  ;;  %v130_v18 = vadd.f32 1e-05, %v122_v16 }
 0x12f   :  { %v115_v19 = vpop.xlane.xlu1 %114 }
 0x130   :  { %2600 = vrsqrt.f32 %v129_v17  ;;  %v123_v20 = vmul.f32 0.03125, %v115_v19 }
 0x131   :  { %v2591_v21 = vpop.eup %2590  ;;  %2602 = vrsqrt.f32 %v130_v18 }
 0x132   :  { %v131_v22 = vadd.f32 1e-05, %v123_v20  ;;  %v140_v23 = vmul.f32 %v2591_v21, %v2733_v24 }
 0x134   :  { %2604 = vrsqrt.f32 %v131_v22  ;;  %v154_v30 = vmul.f32 %v2201_v26, %v140_v23 }
 0x135   :  { %v2593_v27 = vpop.eup %2592 }
 0x136   :  { %v2595_v28 = vpop.eup %2594  ;;  %v141_v29 = vmul.f32 %v2593_v27, %v2741_v32  ;;  %v168_v24 = vadd.f32 %v2202_v31, %v154_v30 }
 0x137   :  { %v142_v34 = vmul.f32 %v2595_v28, %v2735_v25 }
 0x138   :  { %v155_v35 = vmul.f32 %v2201_v26, %v141_v29 }
 0x139   :  { %v2597_v36 = vpop.eup %2596  ;;  %v156_v40 = vmul.f32 %v2201_v26, %v142_v34 }
 0x13a   :  { %v2599_v37 = vpop.eup %2598  ;;  %v169_v38 = vadd.f32 %v2202_v31, %v155_v35  ;;  %v143_v39 = vmul.f32 %v2597_v36, %v2743_v33 }
 0x13b   :  { %v144_v41 = vmul.f32 %v2599_v37, %v2751_v42  ;;  %v170_v47 = vadd.f32 %v2202_v31, %v156_v40 }
 0x13c   :  { %v176_v44 = vpack.c.bf16 %v169_v38, %v168_v24  ;;  %v157_v45 = vmul.f32 %v2201_v26, %v143_v39 }
 0x13d   :  { %v2601_v32 = vpop.eup %2600  ;;  %v158_v49 = vmul.f32 %v2201_v26, %v144_v41 }
 0x13e   :  { %v2603_v46 = vpop.eup %2602  ;;  %2345 = vmatprep.mubr.msk.bf16.mxu0 %vm42_vm0, %v176_v44  ;;  %v171_v48 = vadd.f32 %v2202_v31, %v157_v45  ;;  %v145_v25 = vmul.f32 %v2601_v32, %v2753_v43 }
 0x13f   :  { %v146_v50 = vmul.f32 %v2603_v46, %v2761_v52  ;;  %v172_v33 = vadd.f32 %v2202_v31, %v158_v49  ;;  %v2670_v52 = vmov 0.0  }
 0x140   :  { %v177_v51 = vpack.c.bf16 %v171_v48, %v170_v47  ;;  %v159_v54 = vmul.f32 %v2201_v26, %v145_v25  ;;  %2353 = vmatprep.subr.bf16.mxu1 %v2670_v52  ;;  %2365 = vmatprep.subr.bf16.mxu0 %v2670_v52 }
 0x141   :  { %v2605_v55 = vpop.eup %2604  ;;  %v160_v57 = vmul.f32 %v2201_v26, %v146_v50 }
 0x142   :  { %2346 = vmatmul.mubr.msk.bf16.vlgmr.msra.gmra.mxu0 %vm42_vm0, %v177_v51  ;;  %v173_v42 = vadd.f32 %v2202_v31, %v159_v54  ;;  %v147_v56 = vmul.f32 %v2605_v55, %v2763_v53 }
 0x143   :  { %v174_v60 = vadd.f32 %v2202_v31, %v160_v57  ;;  %2367 = vmatprep.mubr.msk.bf16.mxu0 %vm2671_vm1, %v2670_v52 }
 0x144   :  { %v178_v58 = vpack.c.bf16 %v173_v42, %v172_v33  ;;  %v161_v59 = vmul.f32 %v2201_v26, %v147_v56 }
 0x146   :  { %2349 = vmatprep.mubr.msk.bf16.mxu1 %vm42_vm0, %v178_v58  ;;  %v175_v61 = vadd.f32 %v2202_v31, %v161_v59 }
 0x148   :  { %v179_v43 = vpack.c.bf16 %v175_v61, %v174_v60 }
 0x14a   :  { %2350 = vmatmul.mubr.msk.bf16.vlgmr.msra.gmra.mxu1 %vm42_vm0, %v179_v43 }
 0x14b   :  { %2355 = vmatprep.mubr.msk.bf16.mxu1 %vm2671_vm1, %v2670_v52 }
 0x202   :  { %v2347_v62 = vpop.f32.mrf.mxu0 }
 0x203   :  { %v2809_v5 = vpack.c.bf16 %v2347_v62, %v2347_v62 }
 0x204   :  { %v242_v53 = vpop.f32.mrf.mxu0 }
 0x205   :  { %v2803_v63 = vpack.c.bf16 %v242_v53, %v242_v53 }
 0x206   :  { %v2348_v0 = vpop.f32.mrf.mxu0 }
 0x207   :  { %282 = vrot.lane.b32.xlu0 %v2803_v63, %s2672_s1  ;;  %v2815_v8 = vpack.c.bf16 %v2348_v0, %v2348_v0 }
 0x208   :  { %v245_v1 = vpop.f32.mrf.mxu0 }
 0x209   :  { %v2806_v2 = vpack.c.bf16 %v245_v1, %v245_v1 }
 0x20a   :  { %v2351_v3 = vpop.f32.mrf.mxu1 }
 0x20b   :  { %332 = vrot.lane.b32.xlu1 %v2806_v2, %s2672_s1  ;;  %v2817_v9 = vpack.c.bf16 %v2351_v3, %v2351_v3 }
 0x20c   :  { %v258_v4 = vpop.f32.mrf.mxu1 }
 0x20d   :  { %v2811_v6 = vpack.c.bf16 %v258_v4, %v258_v4 }
 0x20e   :  { %v2352_v7 = vpop.f32.mrf.mxu1 }
 0x20f   :  { %381 = vrot.lane.b32.xlu1 %v2809_v5, %s2672_s1  ;;  %479 = vrot.lane.b32.xlu0 %v2811_v6, %s2672_s1  ;;  %v2826_v12 = vpack.c.bf16 %v2352_v7, %v2352_v7 }
 0x210   :  { %v261_v10 = vpop.f32.mrf.mxu1 }
 0x211   :  { %v2821_v11 = vpack.c.bf16 %v261_v10, %v261_v10 }
 0x213   :  { %430 = vrot.lane.b32.xlu1 %v2815_v8, %s2672_s1  ;;  %577 = vrot.lane.b32.xlu0 %v2817_v9, %s2672_s1 }
 0x217   :  { %770 = vrot.lane.b32.xlu0 %v2803_v63, %s2673_s2  ;;  %528 = vrot.lane.b32.xlu1 %v2821_v11, %s2672_s1 }
 0x21b   :  { %626 = vrot.lane.b32.xlu1 %v2826_v12, %s2672_s1 }
 0x21f   :  { %867 = vrot.lane.b32.xlu1 %v2809_v5, %s2673_s2 }
 0x223   :  { %915 = vrot.lane.b32.xlu1 %v2815_v8, %s2673_s2 }
 0x227   :  { %819 = vrot.lane.b32.xlu1 %v2806_v2, %s2673_s2 }
 0x279   :  { %v283_v13 = vpop.permute.xlu0 %282 }
 0x27a   :  { %v289_v14 = vsel %vm284_vm2, %v283_v13, 0 }
 0x27b   :  { %2354 = vmatpush3.bf16.xpose.msra.mxu1 %v289_v14 }
 0x27c   :  { %2359 = vmatprep.subr.bf16.mxu1 %v2670_v52 }
 0x27d   :  { %v333_v15 = vpop.permute.xlu1 %332 }
 0x27e   :  { %v338_v17 = vsel %vm284_vm2, %v333_v15, 0 }
 0x281   :  { %v382_v16 = vpop.permute.xlu1 %381  ;;  %v480_v20 = vpop.permute.xlu0 %479 }
 0x282   :  { %v387_v18 = vsel %vm284_vm2, %v382_v16, 0  ;;  %2356 = vmatmul.mubr.msk.bf16.vlgmr.msra.gmra.mxu1 %vm284_vm2, %v2803_v63  ;;  %v485_v22 = vsel %vm284_vm2, %v480_v20, 0 }
 0x283   :  { %2360 = vmatpush3.bf16.xpose.msra.mxu1 %v338_v17  ;;  %2366 = vmatpush3.bf16.xpose.msra.mxu0 %v387_v18 }
 0x284   :  { %2361 = vmatprep.mubr.msk.bf16.mxu1 %vm2671_vm1, %v2670_v52  ;;  %2371 = vmatprep.subr.bf16.mxu1 %v2670_v52 }
 0x285   :  { %v431_v19 = vpop.permute.xlu1 %430  ;;  %2377 = vmatprep.subr.bf16.mxu0 %v2670_v52  ;;  %v578_v27 = vpop.permute.xlu0 %577 }
 0x286   :  { %v436_v23 = vsel %vm284_vm2, %v431_v19, 0  ;;  %v583_v28 = vsel %vm284_vm2, %v578_v27, 0 }
 0x289   :  { %v529_v21 = vpop.permute.xlu1 %528  ;;  %v771_v31 = vpop.permute.xlu0 %770 }
 0x28a   :  { %2362 = vmatmul.mubr.msk.bf16.vlgmr.msra.gmra.mxu1 %vm284_vm2, %v2806_v2  ;;  %2368 = vmatmul.mubr.msk.bf16.vlgmr.msra.gmra.mxu0 %vm284_vm2, %v2809_v5  ;;  %v534_v29 = vsel %vm284_vm2, %v529_v21, 0  ;;  %v777_v35 = vsel %vm775_vm3, %v771_v31, 0 }
 0x28b   :  { %2372 = vmatpush3.bf16.xpose.msra.mxu1 %v436_v23  ;;  %2378 = vmatpush3.bf16.xpose.msra.mxu0 %v485_v22 }
 0x28c   :  { %2379 = vmatprep.mubr.msk.bf16.mxu0 %vm2671_vm1, %v2670_v52  ;;  %2373 = vmatprep.mubr.msk.bf16.mxu1 %vm2671_vm1, %v2670_v52 }
 0x28d   :  { %v627_v26 = vpop.permute.xlu1 %626  ;;  %2383 = vmatprep.subr.bf16.mxu1 %v2670_v52  ;;  %2389 = vmatprep.subr.bf16.mxu0 %v2670_v52 }
 0x28e   :  { %v632_v36 = vsel %vm284_vm2, %v627_v26, 0 }
 0x291   :  { %v2863_v30 = vpop.permute.xlu1 %867 }
 0x292   :  { %2374 = vmatmul.mubr.msk.bf16.vlgmr.msra.gmra.mxu1 %vm284_vm2, %v2815_v8  ;;  %2380 = vmatmul.mubr.msk.bf16.vlgmr.msra.gmra.mxu0 %vm284_vm2, %v2811_v6 }
 0x293   :  { %2384 = vmatpush3.bf16.xpose.msra.mxu1 %v534_v29  ;;  %2390 = vmatpush3.bf16.xpose.msra.mxu0 %v583_v28 }
 0x294   :  { %2385 = vmatprep.mubr.msk.bf16.mxu1 %vm2671_vm1, %v2670_v52  ;;  %2391 = vmatprep.mubr.msk.bf16.mxu0 %vm2671_vm1, %v2670_v52 }
 0x295   :  { %2395 = vmatprep.subr.bf16.mxu1 %v2670_v52  ;;  %2401 = vmatprep.subr.bf16.mxu0 %v2670_v52  ;;  %v2871_v34 = vpop.permute.xlu1 %915 }
 0x299   :  { %v820_v37 = vpop.permute.xlu1 %819 }
 0x29a   :  { %2386 = vmatmul.mubr.msk.bf16.vlgmr.msra.gmra.mxu1 %vm284_vm2, %v2821_v11  ;;  %2392 = vmatmul.mubr.msk.bf16.vlgmr.msra.gmra.mxu0 %vm284_vm2, %v2817_v9  ;;  %v825_v24 = vsel %vm775_vm3, %v820_v37, 0 }
 0x29b   :  { %2396 = vmatpush3.bf16.xpose.msra.mxu1 %v632_v36  ;;  %2402 = vmatpush3.bf16.msra.mxu0 %v777_v35 }
 0x29c   :  { %2397 = vmatprep.mubr.msk.bf16.mxu1 %vm2671_vm1, %v2670_v52  ;;  %2407 = vmatprep.subr.bf16.mxu1 %v2670_v52 }
 0x29d   :  { %2403 = vmatprep.mubr.msk.bf16.mxu0 %vm2671_vm1, %v2670_v52  ;;  %2413 = vmatprep.subr.bf16.mxu0 %v2670_v52 }
 0x2a2   :  { %2398 = vmatmul.mubr.msk.bf16.vlgmr.msra.gmra.mxu1 %vm284_vm2, %v2826_v12 }
 0x2a3   :  { %2408 = vmatpush3.bf16.msra.mxu1 %v825_v24  ;;  %2409 = vmatprep.mubr.msk.bf16.mxu1 %vm2671_vm1, %v2670_v52 }
 0x2a4   :  { %2419 = vmatprep.subr.bf16.mxu1 %v2670_v52 }
 0x342   :  { %v325_v38 = vpop.f32.mrf.mxu1 }
 0x343   :  { %v674_v50 = vsel %vm284_vm2, %v325_v38, -inf }
 0x344   :  { %v2357_v39 = vpop.f32.mrf.mxu1 }
 0x346   :  { %v328_v40 = vpop.f32.mrf.mxu1 }
 0x348   :  { %v2358_v41 = vpop.f32.mrf.mxu1 }
 0x34a   :  { %v374_v44 = vpop.f32.mrf.mxu1  ;;  %v423_v45 = vpop.f32.mrf.mxu0 }
 0x34b   :  { %v680_v32 = vsel %vm284_vm2, %v423_v45, -inf  ;;  %v677_v46 = vsel %vm284_vm2, %v374_v44, -inf }
 0x34c   :  { %v2369_v47 = vpop.f32.mrf.mxu0  ;;  %681 = vmax.xlane.f32.xlu0 %v680_v32  ;;  %678 = vmax.xlane.f32.xlu1 %v677_v46  ;;  %v2363_v48 = vpop.f32.mrf.mxu1 }
 0x34e   :  { %v377_v25 = vpop.f32.mrf.mxu1  ;;  %v426_v49 = vpop.f32.mrf.mxu0 }
 0x350   :  { %v2370_v51 = vpop.f32.mrf.mxu0  ;;  %675 = vmax.xlane.f32.xlu0 %v674_v50  ;;  %v2364_v54 = vpop.f32.mrf.mxu1 }
 0x352   :  { %v472_v55 = vpop.f32.mrf.mxu1  ;;  %v521_v33 = vpop.f32.mrf.mxu0 }
 0x353   :  { %v686_v42 = vsel %vm284_vm2, %v521_v33, -inf  ;;  %v683_v7 = vsel %vm284_vm2, %v472_v55, -inf }
 0x354   :  { %v2375_v56 = vpop.f32.mrf.mxu1  ;;  %687 = vmax.xlane.f32.xlu0 %v686_v42  ;;  %v2381_v57 = vpop.f32.mrf.mxu0 }
 0x356   :  { %v475_v58 = vpop.f32.mrf.mxu1  ;;  %v524_v59 = vpop.f32.mrf.mxu0 }
 0x358   :  { %v2376_v60 = vpop.f32.mrf.mxu1  ;;  %v2382_v61 = vpop.f32.mrf.mxu0 }
 0x35a   :  { %v2895_v43 = vpop.f32.mrf.mxu1  ;;  %v2897_v62 = vpop.f32.mrf.mxu0 }
 0x35b   :  { %v692_v53 = vsel %vm284_vm2, %v2897_v62, -inf  ;;  %v689_v18 = vsel %vm284_vm2, %v2895_v43, -inf }
 0x35c   :  { %v2387_v0 = vpop.f32.mrf.mxu1  ;;  %693 = vmax.xlane.f32.xlu0 %v692_v53  ;;  %v2393_v1 = vpop.f32.mrf.mxu0 }
 0x35d   :  { %1011 = vrot.lane.b32.xlu1 %v2821_v11, %s2673_s2 }
 0x35e   :  { %v573_v3 = vpop.f32.mrf.mxu1  ;;  %v622_v4 = vpop.f32.mrf.mxu0 }
 0x360   :  { %v2388_v10 = vpop.f32.mrf.mxu1  ;;  %684 = vmax.xlane.f32.xlu0 %v683_v7  ;;  %v2394_v13 = vpop.f32.mrf.mxu0 }
 0x362   :  { %v2904_v14 = vpop.f32.mrf.mxu1 }
 0x363   :  { %v695_v19 = vsel %vm284_vm2, %v2904_v14, -inf }
 0x364   :  { %v2399_v15 = vpop.f32.mrf.mxu1 }
 0x366   :  { %v671_v16 = vpop.f32.mrf.mxu1 }
 0x368   :  { %v2400_v17 = vpop.f32.mrf.mxu1 }
 0x376   :  { %963 = vrot.lane.b32.xlu0 %v2811_v6, %s2673_s2 }
 0x381   :  { %690 = vmax.xlane.f32.xlu1 %v689_v18  ;;  %v921_v18 = vsel %vm775_vm3, %v2871_v34, 0 }
 0x385   :  { %696 = vmax.xlane.f32.xlu1 %v695_v19 }
 0x396   :  { %1107 = vrot.lane.b32.xlu1 %v2826_v12, %s2673_s2 }
 0x3d5   :  { %v679_v20 = vpop.xlane.xlu1 %678  ;;  %v682_v21 = vpop.xlane.xlu0 %681 }
 0x3d6   :  { %v699_v22 = vsub.f32 %v374_v44, %v679_v20  ;;  %v700_v23 = vsub.f32 %v423_v45, %v682_v21 }
 0x3d8   :  { %v708_v26 = vmul.f32 1.442695, %v699_v22  ;;  %v710_v27 = vmul.f32 1.442695, %v700_v23  ;;  %v873_v23 = vsel %vm775_vm3, %v2863_v30, 0 }
 0x3d9   :  { %v676_v28 = vpop.xlane.xlu0 %675  ;;  %v2934_v51 = vpop.permute.xlu1 %1011 }
 0x3da   :  { %2606 = vpow2.f32 %v708_v26  ;;  %v698_v29 = vsub.f32 %v325_v38, %v676_v28 }
 0x3db   :  { %2608 = vpow2.f32 %v710_v27 }
 0x3dc   :  { %v706_v31 = vmul.f32 1.442695, %v698_v29 }
 0x3dd   :  { %v688_v35 = vpop.xlane.xlu0 %687 }
 0x3de   :  { %2610 = vpow2.f32 %v706_v31  ;;  %v702_v36 = vsub.f32 %v521_v33, %v688_v35 }
 0x3e0   :  { %v714_v37 = vmul.f32 1.442695, %v702_v36 }
 0x3e2   :  { %2612 = vpow2.f32 %v714_v37 }
 0x3e5   :  { %v694_v24 = vpop.xlane.xlu0 %693 }
 0x3e6   :  { %v704_v42 = vsub.f32 %v2897_v62, %v694_v24  ;;  %v1017_v24 = vsel %vm775_vm3, %v2934_v51, 0 }
 0x3e7   :  { %v2914_v39 = vpop.eup %2606 }
 0x3e8   :  { %v2916_v40 = vpop.eup %2608  ;;  %v725_v41 = vsel %vm284_vm2, %v2914_v39, 0.0  ;;  %v718_v56 = vmul.f32 1.442695, %v704_v42 }
 0x3e9   :  { %726 = vadd.xlane.f32.xlu1 %v725_v41  ;;  %v728_v44 = vsel %vm284_vm2, %v2916_v40, 0.0  ;;  %v685_v38 = vpop.xlane.xlu0 %684 }
 0x3ea   :  { %729 = vadd.xlane.f32.xlu0 %v728_v44  ;;  %v701_v45 = vsub.f32 %v472_v55, %v685_v38 }
 0x3eb   :  { %v2922_v32 = vpop.eup %2610 }
 0x3ec   :  { %v712_v46 = vmul.f32 1.442695, %v701_v45  ;;  %v722_v47 = vsel %vm284_vm2, %v2922_v32, 0.0 }
 0x3ed   :  { %v964_v3 = vpop.permute.xlu0 %963 }
 0x3ee   :  { %2614 = vpow2.f32 %v712_v46  ;;  %723 = vadd.xlane.f32.xlu0 %v722_v47  ;;  %v969_v28 = vsel %vm775_vm3, %v964_v3, 0 }
 0x3ef   :  { %v2926_v48 = vpop.eup %2612 }
 0x3f0   :  { %v734_v25 = vsel %vm284_vm2, %v2926_v48, 0.0 }
 0x3f2   :  { %735 = vadd.xlane.f32.xlu0 %v734_v25 }
 0x3fb   :  { %v2930_v49 = vpop.eup %2614 }
 0x3fc   :  { %v731_v50 = vsel %vm284_vm2, %v2930_v49, 0.0 }
 0x3fd   :  { %732 = vadd.xlane.f32.xlu1 %v731_v50 }
 0x408   :  { %1059 = vrot.lane.b32.xlu0 %v2817_v9, %s2673_s2 }
 0x40a   :  { %v691_v54 = vpop.xlane.xlu1 %690 }
 0x40b   :  { %v703_v55 = vsub.f32 %v2895_v43, %v691_v54 }
 0x40d   :  { %v716_v33 = vmul.f32 1.442695, %v703_v55 }
 0x40e   :  { %v697_v61 = vpop.xlane.xlu1 %696 }
 0x40f   :  { %2616 = vpow2.f32 %v716_v33  ;;  %v705_v43 = vsub.f32 %v2904_v14, %v697_v61 }
 0x410   :  { %2618 = vpow2.f32 %v718_v56 }
 0x411   :  { %v720_v62 = vmul.f32 1.442695, %v705_v43 }
 0x412   :  { %v2965_v1 = vpop.permute.xlu1 %1107 }
 0x413   :  { %2620 = vpow2.f32 %v720_v62  ;;  %v1113_v46 = vsel %vm775_vm3, %v2965_v1, 0 }
 0x41c   :  { %v2940_v57 = vpop.eup %2616 }
 0x41d   :  { %v737_v58 = vsel %vm284_vm2, %v2940_v57, 0.0  ;;  %v2944_v59 = vpop.eup %2618 }
 0x41e   :  { %738 = vadd.xlane.f32.xlu1 %v737_v58  ;;  %v740_v60 = vsel %vm284_vm2, %v2944_v59, 0.0 }
 0x420   :  { %v2955_v53 = vpop.eup %2620 }
 0x421   :  { %v743_v0 = vsel %vm284_vm2, %v2955_v53, 0.0 }
 0x427   :  { %741 = vadd.xlane.f32.xlu0 %v740_v60 }
 0x42f   :  { %1207 = vrot.lane.b32.xlu1 %v2806_v2, %s2674_s11 }
 0x43d   :  { %1157 = vrot.lane.b32.xlu0 %v2803_v63, %s2674_s11 }
 0x441   :  { %1155 = vrot.lane.b32.xlu0 %v2803_v63, %s2675_s12 }
 0x445   :  { %1257 = vrot.lane.b32.xlu0 %v2809_v5, %s2674_s11 }
 0x449   :  { %1255 = vrot.lane.b32.xlu0 %v2809_v5, %s2675_s12 }
 0x44d   :  { %1357 = vrot.lane.b32.xlu0 %v2811_v6, %s2674_s11 }
 0x451   :  { %1355 = vrot.lane.b32.xlu0 %v2811_v6, %s2675_s12 }
 0x453   :  { %744 = vadd.xlane.f32.xlu1 %v743_v0 }
 0x455   :  { %1457 = vrot.lane.b32.xlu0 %v2817_v9, %s2674_s11 }
 0x459   :  { %1455 = vrot.lane.b32.xlu0 %v2817_v9, %s2675_s12 }
 0x464   :  { %1205 = vrot.lane.b32.xlu1 %v2806_v2, %s2675_s12 }
 0x468   :  { %1307 = vrot.lane.b32.xlu1 %v2815_v8, %s2674_s11 }
 0x46c   :  { %1305 = vrot.lane.b32.xlu1 %v2815_v8, %s2675_s12 }
 0x470   :  { %1407 = vrot.lane.b32.xlu1 %v2821_v11, %s2674_s11 }
 0x472   :  { %v727_v4 = vpop.xlane.xlu1 %726 }
 0x473   :  { %2622 = vrcp.f32 %v727_v4  ;;  %v730_v7 = vpop.xlane.xlu0 %729 }
 0x474   :  { %1405 = vrot.lane.b32.xlu1 %v2821_v11, %s2675_s12 }
 0x477   :  { %v724_v10 = vpop.xlane.xlu0 %723 }
 0x478   :  { %2624 = vrcp.f32 %v724_v10  ;;  %1507 = vrot.lane.b32.xlu1 %v2826_v12, %s2674_s11 }
 0x479   :  { %2626 = vrcp.f32 %v730_v7 }
 0x47b   :  { %v736_v14 = vpop.xlane.xlu0 %735 }
 0x47c   :  { %1505 = vrot.lane.b32.xlu1 %v2826_v12, %s2675_s12  ;;  %2628 = vrcp.f32 %v736_v14 }
 0x47f   :  { %v1060_v35 = vpop.permute.xlu0 %1059 }
 0x480   :  { %v2623_v13 = vpop.eup %2622 }
 0x481   :  { %v755_v15 = vmul.f32 %v2623_v13, %v2914_v39  ;;  %v1065_v39 = vsel %vm775_vm3, %v1060_v35, 0 }
 0x483   :  { %v763_v16 = vpack.c.bf16 %v755_v15, %v755_v15 }
 0x485   :  { %v2625_v17 = vpop.eup %2624  ;;  %2410 = vmatmul.mubr.msk.bf16.vlgmr.msra.gmra.mxu1 %vm284_vm2, %v763_v16 }
 0x486   :  { %2420 = vmatpush3.bf16.msra.mxu1 %v921_v18  ;;  %v733_v19 = vpop.xlane.xlu1 %732  ;;  %v754_v20 = vmul.f32 %v2625_v17, %v2922_v32  ;;  %2421 = vmatprep.mubr.msk.bf16.mxu1 %vm2671_vm1, %v2670_v52  ;;  %v2627_v22 = vpop.eup %2626 }
 0x487   :  { %2630 = vrcp.f32 %v733_v19  ;;  %2431 = vmatprep.subr.bf16.mxu1 %v2670_v52  ;;  %v756_v34 = vmul.f32 %v2627_v22, %v2916_v40 }
 0x488   :  { %v762_v21 = vpack.c.bf16 %v754_v20, %v754_v20 }
 0x489   :  { %v764_v26 = vpack.c.bf16 %v756_v34, %v756_v34  ;;  %v2629_v27 = vpop.eup %2628 }
 0x48a   :  { %2404 = vmatmul.mubr.msk.bf16.vlgmr.msra.gmra.mxu0 %vm284_vm2, %v762_v21  ;;  %v758_v29 = vmul.f32 %v2629_v27, %v2926_v48 }
 0x48b   :  { %2414 = vmatpush3.bf16.msra.mxu0 %v873_v23  ;;  %2415 = vmatprep.mubr.msk.bf16.mxu0 %vm2671_vm1, %v2670_v52 }
 0x48c   :  { %2425 = vmatprep.subr.bf16.mxu0 %v2670_v52  ;;  %v766_v37 = vpack.c.bf16 %v758_v29, %v758_v29 }
 0x492   :  { %2416 = vmatmul.mubr.msk.bf16.vlgmr.msra.gmra.mxu0 %vm284_vm2, %v764_v26 }
 0x493   :  { %2426 = vmatpush3.bf16.msra.mxu0 %v969_v28  ;;  %2427 = vmatprep.mubr.msk.bf16.mxu0 %vm2671_vm1, %v2670_v52 }
 0x494   :  { %v2631_v30 = vpop.eup %2630  ;;  %2437 = vmatprep.subr.bf16.mxu0 %v2670_v52 }
 0x495   :  { %v757_v31 = vmul.f32 %v2631_v30, %v2930_v49 }
 0x497   :  { %v765_v36 = vpack.c.bf16 %v757_v31, %v757_v31 }
 0x499   :  { %2422 = vmatmul.mubr.msk.bf16.vlgmr.msra.gmra.mxu1 %vm284_vm2, %v765_v36 }
 0x49a   :  { %2428 = vmatmul.mubr.msk.bf16.vlgmr.msra.gmra.mxu0 %vm284_vm2, %v766_v37  ;;  %2432 = vmatpush3.bf16.msra.mxu1 %v1017_v24 }
 0x49b   :  { %2438 = vmatpush3.bf16.msra.mxu0 %v1065_v39  ;;  %2433 = vmatprep.mubr.msk.bf16.mxu1 %vm2671_vm1, %v2670_v52 }
 0x49c   :  { %2443 = vmatprep.subr.bf16.mxu1 %v2670_v52  ;;  %2439 = vmatprep.mubr.msk.bf16.mxu0 %vm2671_vm1, %v2670_v52 }
 0x49d   :  { %2449 = vmatprep.subr.bf16.mxu0 %v2670_v52 }
 0x4a7   :  { %v739_v40 = vpop.xlane.xlu1 %738 }
 0x4a8   :  { %2632 = vrcp.f32 %v739_v40 }
 0x4b0   :  { %v742_v41 = vpop.xlane.xlu0 %741 }
 0x4b1   :  { %2634 = vrcp.f32 %v742_v41 }
 0x4b4   :  { %v1158_v44 = vpop.permute.xlu0 %1157 }
 0x4b5   :  { %v2633_v38 = vpop.eup %2632  ;;  %v1163_v51 = vsel %vm284_vm2, %v1158_v44, 0 }
 0x4b6   :  { %v759_v45 = vmul.f32 %v2633_v38, %v2940_v57  ;;  %v1208_v57 = vpop.permute.xlu1 %1207 }
 0x4b7   :  { %v1213_v4 = vsel %vm284_vm2, %v1208_v57, 0 }
 0x4b8   :  { %v767_v32 = vpack.c.bf16 %v759_v45, %v759_v45  ;;  %v1156_v47 = vpop.permute.xlu0 %1155 }
 0x4ba   :  { %2434 = vmatmul.mubr.msk.bf16.vlgmr.msra.gmra.mxu1 %vm284_vm2, %v767_v32 }
 0x4bb   :  { %2444 = vmatpush3.bf16.msra.mxu1 %v1113_v46  ;;  %2445 = vmatprep.mubr.msk.bf16.mxu1 %vm2671_vm1, %v2670_v52 }
 0x4bc   :  { %2455 = vmatprep.subr.bf16.mxu1 %v2670_v52  ;;  %v1258_v49 = vpop.permute.xlu0 %1257 }
 0x4bd   :  { %v1263_v55 = vsel %vm284_vm2, %v1258_v49, 0 }
 0x4be   :  { %v2635_v48 = vpop.eup %2634 }
 0x4bf   :  { %v760_v25 = vmul.f32 %v2635_v48, %v2944_v59 }
 0x4c0   :  { %v1256_v54 = vpop.permute.xlu0 %1255 }
 0x4c1   :  { %v768_v50 = vpack.c.bf16 %v760_v25, %v760_v25 }
 0x4c3   :  { %2440 = vmatmul.mubr.msk.bf16.vlgmr.msra.gmra.mxu0 %vm284_vm2, %v768_v50 }
 0x4c4   :  { %2450 = vmatpush3.bf16.xpose.msra.mxu0 %v1163_v51  ;;  %2451 = vmatprep.mubr.msk.bf16.mxu0 %vm2671_vm1, %v2670_v52  ;;  %v1358_v33 = vpop.permute.xlu0 %1357 }
 0x4c5   :  { %2461 = vmatprep.subr.bf16.mxu0 %v2670_v52  ;;  %v1363_v56 = vsel %vm284_vm2, %v1358_v33, 0 }
 0x4c8   :  { %v1356_v42 = vpop.permute.xlu0 %1355 }
 0x4cb   :  { %2452 = vmatmul.mubr.msk.bf16.vlgmr.msra.gmra.mxu0 %vm284_vm2, %v1156_v47 }
 0x4cc   :  { %2462 = vmatpush3.bf16.xpose.msra.mxu0 %v1263_v55  ;;  %2463 = vmatprep.mubr.msk.bf16.mxu0 %vm2671_vm1, %v2670_v52  ;;  %v1458_v58 = vpop.permute.xlu0 %1457 }
 0x4cd   :  { %2473 = vmatprep.subr.bf16.mxu0 %v2670_v52  ;;  %v1463_v59 = vsel %vm284_vm2, %v1458_v58, 0 }
 0x4d0   :  { %v1456_v61 = vpop.permute.xlu0 %1455 }
 0x4d3   :  { %2464 = vmatmul.mubr.msk.bf16.vlgmr.msra.gmra.mxu0 %vm284_vm2, %v1256_v54 }
 0x4d4   :  { %2474 = vmatpush3.bf16.xpose.msra.mxu0 %v1363_v56  ;;  %2475 = vmatprep.mubr.msk.bf16.mxu0 %vm2671_vm1, %v2670_v52 }
 0x4d5   :  { %2485 = vmatprep.subr.bf16.mxu0 %v2670_v52 }
 0x4db   :  { %2476 = vmatmul.mubr.msk.bf16.vlgmr.msra.gmra.mxu0 %vm284_vm2, %v1356_v42 }
 0x4dc   :  { %2486 = vmatpush3.bf16.xpose.msra.mxu0 %v1463_v59  ;;  %v745_v60 = vpop.xlane.xlu1 %744  ;;  %2487 = vmatprep.mubr.msk.bf16.mxu0 %vm2671_vm1, %v2670_v52 }
 0x4dd   :  { %2636 = vrcp.f32 %v745_v60  ;;  %2497 = vmatprep.subr.bf16.mxu0 %v2670_v52 }
 0x4e0   :  { %v1206_v43 = vpop.permute.xlu1 %1205 }
 0x4e3   :  { %2488 = vmatmul.mubr.msk.bf16.vlgmr.msra.gmra.mxu0 %vm284_vm2, %v1456_v61 }
 0x4e4   :  { %2499 = vmatprep.mubr.msk.bf16.mxu0 %vm2671_vm1, %v2670_v52  ;;  %v1308_v1 = vpop.permute.xlu1 %1307 }
 0x4e5   :  { %v1313_v10 = vsel %vm284_vm2, %v1308_v1, 0 }
 0x4e8   :  { %v1306_v7 = vpop.permute.xlu1 %1305 }
 0x4ea   :  { %v2637_v62 = vpop.eup %2636 }
 0x4eb   :  { %v761_v0 = vmul.f32 %v2637_v62, %v2955_v53 }
 0x4ec   :  { %v1408_v13 = vpop.permute.xlu1 %1407 }
 0x4ed   :  { %v769_v3 = vpack.c.bf16 %v761_v0, %v761_v0  ;;  %v1413_v14 = vsel %vm284_vm2, %v1408_v13, 0 }
 0x4ef   :  { %2446 = vmatmul.mubr.msk.bf16.vlgmr.msra.gmra.mxu1 %vm284_vm2, %v769_v3 }
 0x4f0   :  { %2456 = vmatpush3.bf16.xpose.msra.mxu1 %v1213_v4  ;;  %2457 = vmatprep.mubr.msk.bf16.mxu1 %vm2671_vm1, %v2670_v52  ;;  %v1406_v53 = vpop.permute.xlu1 %1405 }
 0x4f1   :  { %2467 = vmatprep.subr.bf16.mxu1 %v2670_v52 }
 0x4f4   :  { %v1508_v15 = vpop.permute.xlu1 %1507 }
 0x4f5   :  { %v1513_v16 = vsel %vm284_vm2, %v1508_v15, 0 }
 0x4f7   :  { %2458 = vmatmul.mubr.msk.bf16.vlgmr.msra.gmra.mxu1 %vm284_vm2, %v1206_v43 }
 0x4f8   :  { %2468 = vmatpush3.bf16.xpose.msra.mxu1 %v1313_v10  ;;  %2469 = vmatprep.mubr.msk.bf16.mxu1 %vm2671_vm1, %v2670_v52  ;;  %v1506_v17 = vpop.permute.xlu1 %1505 }
 0x4f9   :  { %2479 = vmatprep.subr.bf16.mxu1 %v2670_v52 }
 0x4ff   :  { %2470 = vmatmul.mubr.msk.bf16.vlgmr.msra.gmra.mxu1 %vm284_vm2, %v1306_v7 }
 0x500   :  { %2480 = vmatpush3.bf16.xpose.msra.mxu1 %v1413_v14  ;;  %2481 = vmatprep.mubr.msk.bf16.mxu1 %vm2671_vm1, %v2670_v52 }
 0x501   :  { %2491 = vmatprep.subr.bf16.mxu1 %v2670_v52 }
 0x507   :  { %2482 = vmatmul.mubr.msk.bf16.vlgmr.msra.gmra.mxu1 %vm284_vm2, %v1406_v53 }
 0x508   :  { %2492 = vmatpush3.bf16.xpose.msra.mxu1 %v1513_v16  ;;  %2493 = vmatprep.mubr.msk.bf16.mxu1 %vm2671_vm1, %v2670_v52 }
 0x509   :  { %2503 = vmatprep.subr.bf16.mxu1 %v2670_v52 }
 0x50f   :  { %2494 = vmatmul.mubr.msk.bf16.vlgmr.msra.gmra.mxu1 %vm284_vm2, %v1506_v17 }
 0x510   :  { %2505 = vmatprep.mubr.msk.bf16.mxu1 %vm2671_vm1, %v2670_v52 }
 0x545   :  { %v3059_v18 = vpop.f32.mrf.mxu1 }
 0x547   :  { %v2411_v19 = vpop.f32.mrf.mxu1 }
 0x549   :  { %v864_v20 = vpop.f32.mrf.mxu1 }
 0x54a   :  { %v3061_v21 = vpop.f32.mrf.mxu0 }
 0x54b   :  { %v2412_v22 = vpop.f32.mrf.mxu1 }
 0x54c   :  { %v2405_v23 = vpop.f32.mrf.mxu0 }
 0x54e   :  { %v816_v34 = vpop.f32.mrf.mxu0 }
 0x550   :  { %v2406_v26 = vpop.f32.mrf.mxu0 }
 0x552   :  { %v3063_v27 = vpop.f32.mrf.mxu0 }
 0x554   :  { %v2417_v28 = vpop.f32.mrf.mxu0 }
 0x556   :  { %v912_v30 = vpop.f32.mrf.mxu0 }
 0x558   :  { %v2418_v29 = vpop.f32.mrf.mxu0 }
 0x559   :  { %v3065_v31 = vpop.f32.mrf.mxu1 }
 0x55a   :  { %v3067_v35 = vpop.f32.mrf.mxu0 }
 0x55b   :  { %v2423_v36 = vpop.f32.mrf.mxu1 }
 0x55c   :  { %v2429_v37 = vpop.f32.mrf.mxu0 }
 0x55d   :  { %v960_v24 = vpop.f32.mrf.mxu1 }
 0x55e   :  { %v1008_v39 = vpop.f32.mrf.mxu0 }
 0x55f   :  { %v2424_v40 = vpop.f32.mrf.mxu1 }
 0x560   :  { %v2430_v41 = vpop.f32.mrf.mxu0 }
 0x57a   :  { %v3069_v44 = vpop.f32.mrf.mxu1 }
 0x57c   :  { %v2435_v38 = vpop.f32.mrf.mxu1 }
 0x57e   :  { %v1056_v45 = vpop.f32.mrf.mxu1 }
 0x580   :  { %v2436_v32 = vpop.f32.mrf.mxu1 }
 0x583   :  { %v3071_v46 = vpop.f32.mrf.mxu0 }
 0x585   :  { %v2441_v47 = vpop.f32.mrf.mxu0 }
 0x587   :  { %v1104_v48 = vpop.f32.mrf.mxu0 }
 0x589   :  { %v2442_v25 = vpop.f32.mrf.mxu0 }
 0x58b   :  { %v1199_v49 = vpop.f32.mrf.mxu0 }
 0x58c   :  { %v1555_v50 = vsel %vm284_vm2, %v1199_v49, -inf }
 0x58d   :  { %1556 = vmax.xlane.f32.xlu0 %v1555_v50  ;;  %v2453_v51 = vpop.f32.mrf.mxu0 }
 0x58f   :  { %v1202_v54 = vpop.f32.mrf.mxu0 }
 0x591   :  { %v2454_v55 = vpop.f32.mrf.mxu0 }
 0x593   :  { %v1299_v33 = vpop.f32.mrf.mxu0 }
 0x594   :  { %v1561_v42 = vsel %vm284_vm2, %v1299_v33, -inf }
 0x595   :  { %1562 = vmax.xlane.f32.xlu0 %v1561_v42  ;;  %v2465_v56 = vpop.f32.mrf.mxu0 }
 0x597   :  { %v1302_v57 = vpop.f32.mrf.mxu0 }
 0x599   :  { %v2466_v58 = vpop.f32.mrf.mxu0 }
 0x59b   :  { %v3075_v59 = vpop.f32.mrf.mxu0 }
 0x59c   :  { %v1567_v34 = vsel %vm284_vm2, %v3075_v59, -inf }
 0x59d   :  { %v2477_v60 = vpop.f32.mrf.mxu0 }
 0x59f   :  { %v1402_v61 = vpop.f32.mrf.mxu0 }
 0x5a1   :  { %v2478_v43 = vpop.f32.mrf.mxu0 }
 0x5a3   :  { %v3077_v62 = vpop.f32.mrf.mxu0 }
 0x5a4   :  { %v1573_v29 = vsel %vm284_vm2, %v3077_v62, -inf }
 0x5a5   :  { %v2489_v0 = vpop.f32.mrf.mxu0 }
 0x5a7   :  { %v1502_v1 = vpop.f32.mrf.mxu0 }
 0x5a9   :  { %v2490_v3 = vpop.f32.mrf.mxu0 }
 0x5af   :  { %v3079_v4 = vpop.f32.mrf.mxu1 }
 0x5b1   :  { %v2447_v7 = vpop.f32.mrf.mxu1 }
 0x5b3   :  { %v1152_v10 = vpop.f32.mrf.mxu1 }
 0x5b5   :  { %v2448_v13 = vpop.f32.mrf.mxu1 }
 0x5b7   :  { %v1249_v53 = vpop.f32.mrf.mxu1 }
 0x5b8   :  { %v1558_v14 = vsel %vm284_vm2, %v1249_v53, -inf }
 0x5b9   :  { %1559 = vmax.xlane.f32.xlu1 %v1558_v14  ;;  %v2459_v15 = vpop.f32.mrf.mxu1 }
 0x5bb   :  { %v1252_v16 = vpop.f32.mrf.mxu1 }
 0x5bd   :  { %v2460_v17 = vpop.f32.mrf.mxu1 }
 0x5bf   :  { %v3082_v19 = vpop.f32.mrf.mxu1 }
 0x5c0   :  { %v1564_v20 = vsel %vm284_vm2, %v3082_v19, -inf }
 0x5c1   :  { %v2471_v22 = vpop.f32.mrf.mxu1  ;;  %1565 = vmax.xlane.f32.xlu0 %v1564_v20 }
 0x5c3   :  { %v1352_v23 = vpop.f32.mrf.mxu1 }
 0x5c5   :  { %v2472_v26 = vpop.f32.mrf.mxu1  ;;  %1568 = vmax.xlane.f32.xlu0 %v1567_v34 }
 0x5c7   :  { %v3088_v28 = vpop.f32.mrf.mxu1 }
 0x5c8   :  { %v1570_v30 = vsel %vm284_vm2, %v3088_v28, -inf }
 0x5c9   :  { %1571 = vmax.xlane.f32.xlu1 %v1570_v30  ;;  %v2483_v36 = vpop.f32.mrf.mxu1  ;;  %1574 = vmax.xlane.f32.xlu0 %v1573_v29 }
 0x5cb   :  { %v1452_v37 = vpop.f32.mrf.mxu1 }
 0x5cd   :  { %v2484_v24 = vpop.f32.mrf.mxu1 }
 0x5cf   :  { %v3094_v39 = vpop.f32.mrf.mxu1 }
 0x5d0   :  { %v1576_v45 = vsel %vm284_vm2, %v3094_v39, -inf }
 0x5d1   :  { %v2495_v40 = vpop.f32.mrf.mxu1 }
 0x5d3   :  { %v1552_v41 = vpop.f32.mrf.mxu1 }
 0x5d5   :  { %v2496_v38 = vpop.f32.mrf.mxu1 }
 0x5da   :  { %1699 = vrot.lane.b32.xlu1 %v2806_v2, %s2676_s13 }
 0x5de   :  { %1747 = vrot.lane.b32.xlu1 %v2809_v5, %s2676_s13 }
 0x5df   :  { %1651 = vrot.lane.b32.xlu0 %v2803_v63, %s2676_s13 }
 0x602   :  { %1577 = vmax.xlane.f32.xlu1 %v1576_v45 }
 0x613   :  { %1795 = vrot.lane.b32.xlu1 %v2815_v8, %s2676_s13 }
 0x616   :  { %v1557_v32 = vpop.xlane.xlu0 %1556 }
 0x617   :  { %v1579_v47 = vsub.f32 %v1199_v49, %v1557_v32 }
 0x619   :  { %v1587_v48 = vmul.f32 1.442695, %v1579_v47 }
 0x61b   :  { %2638 = vpow2.f32 %v1587_v48 }
 0x61e   :  { %v1563_v25 = vpop.xlane.xlu0 %1562 }
 0x61f   :  { %v1581_v50 = vsub.f32 %v1299_v33, %v1563_v25 }
 0x621   :  { %v1591_v2 = vmul.f32 1.442695, %v1581_v50 }
 0x623   :  { %2640 = vpow2.f32 %v1591_v2 }
 0x628   :  { %v3106_v51 = vpop.eup %2638 }
 0x629   :  { %v1603_v63 = vsel %vm284_vm2, %v3106_v51, 0.0 }
 0x62a   :  { %1604 = vadd.xlane.f32.xlu0 %v1603_v63 }
 0x630   :  { %v3110_v5 = vpop.eup %2640 }
 0x631   :  { %v1609_v54 = vsel %vm284_vm2, %v3110_v5, 0.0 }
 0x632   :  { %1610 = vadd.xlane.f32.xlu0 %v1609_v54 }
 0x642   :  { %v1560_v8 = vpop.xlane.xlu1 %1559 }
 0x643   :  { %v1580_v49 = vsub.f32 %v1249_v53, %v1560_v8 }
 0x645   :  { %v1589_v55 = vmul.f32 1.442695, %v1580_v49 }
 0x647   :  { %2642 = vpow2.f32 %v1589_v55 }
 0x648   :  { %1843 = vrot.lane.b32.xlu0 %v2811_v6, %s2676_s13 }
 0x64a   :  { %v1566_v33 = vpop.xlane.xlu0 %1565 }
 0x64b   :  { %v1582_v14 = vsub.f32 %v3082_v19, %v1566_v33 }
 0x64d   :  { %v1593_v15 = vmul.f32 1.442695, %v1582_v14 }
 0x64e   :  { %v1569_v42 = vpop.xlane.xlu0 %1568 }
 0x64f   :  { %v1583_v56 = vsub.f32 %v3075_v59, %v1569_v42 }
 0x651   :  { %v1595_v57 = vmul.f32 1.442695, %v1583_v56 }
 0x652   :  { %v1572_v58 = vpop.xlane.xlu1 %1571  ;;  %v1575_v60 = vpop.xlane.xlu0 %1574 }
 0x653   :  { %v1585_v61 = vsub.f32 %v3077_v62, %v1575_v60  ;;  %2644 = vpow2.f32 %v1595_v57  ;;  %v1584_v16 = vsub.f32 %v3088_v28, %v1572_v58 }
 0x654   :  { %v3118_v43 = vpop.eup %2642 }
 0x655   :  { %v1606_v0 = vsel %vm284_vm2, %v3118_v43, 0.0  ;;  %v1599_v1 = vmul.f32 1.442695, %v1585_v61  ;;  %v1597_v17 = vmul.f32 1.442695, %v1584_v16 }
 0x656   :  { %1607 = vadd.xlane.f32.xlu1 %v1606_v0  ;;  %v1700_v3 = vpop.permute.xlu1 %1699  ;;  %v1652_v7 = vpop.permute.xlu0 %1651 }
 0x657   :  { %v1705_v6 = vsel %vm775_vm3, %v1700_v3, 0  ;;  %v1657_v10 = vsel %vm775_vm3, %v1652_v7, 0  ;;  %2646 = vpow2.f32 %v1599_v1 }
 0x658   :  { %2498 = vmatpush3.bf16.msra.mxu0 %v1657_v10  ;;  %2504 = vmatpush3.bf16.msra.mxu1 %v1705_v6  ;;  %2648 = vpow2.f32 %v1593_v15 }
 0x659   :  { %2509 = vmatprep.subr.bf16.mxu0 %v2670_v52  ;;  %2515 = vmatprep.subr.bf16.mxu1 %v2670_v52  ;;  %2650 = vpow2.f32 %v1597_v17 }
 0x65a   :  { %v1748_v22 = vpop.permute.xlu1 %1747 }
 0x65b   :  { %v1753_v40 = vsel %vm775_vm3, %v1748_v22, 0 }
 0x660   :  { %v3126_v59 = vpop.eup %2644 }
 0x661   :  { %v1615_v62 = vsel %vm284_vm2, %v3126_v59, 0.0 }
 0x664   :  { %v3130_v13 = vpop.eup %2646 }
 0x665   :  { %v1621_v53 = vsel %vm284_vm2, %v3130_v13, 0.0  ;;  %v3140_v20 = vpop.eup %2648 }
 0x666   :  { %v3144_v23 = vpop.eup %2650 }
 0x667   :  { %1616 = vadd.xlane.f32.xlu0 %v1615_v62  ;;  %1891 = vrot.lane.b32.xlu1 %v2821_v11, %s2676_s13  ;;  %v1612_v11 = vsel %vm284_vm2, %v3140_v20, 0.0  ;;  %v1618_v28 = vsel %vm284_vm2, %v3144_v23, 0.0 }
 0x66b   :  { %1622 = vadd.xlane.f32.xlu0 %v1621_v53 }
 0x681   :  { %1939 = vrot.lane.b32.xlu0 %v2817_v9, %s2676_s13 }
 0x68b   :  { %v1578_v34 = vpop.xlane.xlu1 %1577  ;;  %1613 = vadd.xlane.f32.xlu1 %v1612_v11 }
 0x68c   :  { %v1586_v19 = vsub.f32 %v3094_v39, %v1578_v34 }
 0x68e   :  { %v1601_v26 = vmul.f32 1.442695, %v1586_v19 }
 0x68f   :  { %1619 = vadd.xlane.f32.xlu1 %v1618_v28  ;;  %v1796_v47 = vpop.permute.xlu1 %1795 }
 0x690   :  { %2652 = vpow2.f32 %v1601_v26  ;;  %v1801_v63 = vsel %vm775_vm3, %v1796_v47, 0 }
 0x69d   :  { %v3149_v30 = vpop.eup %2652 }
 0x69e   :  { %v1624_v9 = vsel %vm284_vm2, %v3149_v30, 0.0 }
 0x69f   :  { %1625 = vadd.xlane.f32.xlu1 %v1624_v9 }
 0x6b0   :  { %1987 = vrot.lane.b32.xlu1 %v2826_v12, %s2676_s13 }
 0x6b3   :  { %v1605_v29 = vpop.xlane.xlu0 %1604 }
 0x6b4   :  { %2654 = vrcp.f32 %v1605_v29 }
 0x6bb   :  { %v1611_v36 = vpop.xlane.xlu0 %1610 }
 0x6bc   :  { %2656 = vrcp.f32 %v1611_v36 }
 0x6bf   :  { %v1844_v38 = vpop.permute.xlu0 %1843 }
 0x6c0   :  { %v1849_v32 = vsel %vm775_vm3, %v1844_v38, 0  ;;  %v2589_v38 = vld [vmem:[%s3259_s4] sm:$0xff]  }
 0x6c1   :  { %v2655_v37 = vpop.eup %2654 }
 0x6c2   :  { %v1635_v24 = vmul.f32 %v2655_v37, %v3106_v51 }
 0x6c4   :  { %v1643_v39 = vpack.c.bf16 %v1635_v24, %v1635_v24 }
 0x6c6   :  { %2500 = vmatmul.mubr.msk.bf16.vlgmr.msra.gmra.mxu0 %vm284_vm2, %v1643_v39 }
 0x6c7   :  { %2510 = vmatpush3.bf16.msra.mxu0 %v1753_v40  ;;  %2511 = vmatprep.mubr.msk.bf16.mxu0 %vm2671_vm1, %v2670_v52 }
 0x6c8   :  { %2521 = vmatprep.subr.bf16.mxu0 %v2670_v52 }
 0x6c9   :  { %v2657_v41 = vpop.eup %2656 }
 0x6ca   :  { %v1637_v12 = vmul.f32 %v2657_v41, %v3110_v5 }
 0x6cc   :  { %v1645_v45 = vpack.c.bf16 %v1637_v12, %v1637_v12 }
 0x6ce   :  { %2512 = vmatmul.mubr.msk.bf16.vlgmr.msra.gmra.mxu0 %vm284_vm2, %v1645_v45 }
 0x6cf   :  { %2522 = vmatpush3.bf16.msra.mxu0 %v1849_v32  ;;  %2523 = vmatprep.mubr.msk.bf16.mxu0 %vm2671_vm1, %v2670_v52 }
 0x6d0   :  { %2533 = vmatprep.subr.bf16.mxu0 %v2670_v52 }
 0x6df   :  { %v1608_v48 = vpop.xlane.xlu1 %1607 }
 0x6e0   :  { %2658 = vrcp.f32 %v1608_v48 }
 0x6e3   :  { %v1892_v58 = vpop.permute.xlu1 %1891 }
 0x6e4   :  { %v1897_v7 = vsel %vm775_vm3, %v1892_v58, 0 }
 0x6ed   :  { %v2659_v25 = vpop.eup %2658 }
 0x6ee   :  { %v1636_v50 = vmul.f32 %v2659_v25, %v3118_v43 }
 0x6f0   :  { %v1617_v2 = vpop.xlane.xlu0 %1616  ;;  %v1644_v51 = vpack.c.bf16 %v1636_v50, %v1636_v50 }
 0x6f1   :  { %2660 = vrcp.f32 %v1617_v2 }
 0x6f2   :  { %2506 = vmatmul.mubr.msk.bf16.vlgmr.msra.gmra.mxu1 %vm284_vm2, %v1644_v51 }
 0x6f3   :  { %2516 = vmatpush3.bf16.msra.mxu1 %v1801_v63  ;;  %2517 = vmatprep.mubr.msk.bf16.mxu1 %vm2671_vm1, %v2670_v52 }
 0x6f4   :  { %v1623_v5 = vpop.xlane.xlu0 %1622  ;;  %2527 = vmatprep.subr.bf16.mxu1 %v2670_v52 }
 0x6f5   :  { %2662 = vrcp.f32 %v1623_v5 }
 0x6f8   :  { %v1940_v49 = vpop.permute.xlu0 %1939 }
 0x6f9   :  { %v1945_v42 = vsel %vm775_vm3, %v1940_v49, 0 }
 0x6fe   :  { %v2661_v54 = vpop.eup %2660 }
 0x6ff   :  { %v1639_v8 = vmul.f32 %v2661_v54, %v3126_v59 }
 0x701   :  { %v1647_v55 = vpack.c.bf16 %v1639_v8, %v1639_v8 }
 0x702   :  { %v2663_v33 = vpop.eup %2662 }
 0x703   :  { %2524 = vmatmul.mubr.msk.bf16.vlgmr.msra.gmra.mxu0 %vm284_vm2, %v1647_v55  ;;  %v1641_v56 = vmul.f32 %v2663_v33, %v3130_v13 }
 0x704   :  { %2534 = vmatpush3.bf16.msra.mxu0 %v1945_v42  ;;  %2535 = vmatprep.mubr.msk.bf16.mxu0 %vm2671_vm1, %v2670_v52 }
 0x705   :  { %v1649_v57 = vpack.c.bf16 %v1641_v56, %v1641_v56  ;;  %2545 = vmatprep.subr.bf16.mxu0 %v2589_v38 }
 0x70b   :  { %2536 = vmatmul.mubr.msk.bf16.vlgmr.msra.gmra.mxu0 %vm284_vm2, %v1649_v57 }
 0x70c   :  { %2546 = vmatpush3.bf16.msra.mxu0 %v2589_v38 }
 0x714   :  { %v1614_v60 = vpop.xlane.xlu1 %1613 }
 0x715   :  { %2664 = vrcp.f32 %v1614_v60 }
 0x718   :  { %v1620_v61 = vpop.xlane.xlu1 %1619 }
 0x719   :  { %2666 = vrcp.f32 %v1620_v61 }
 0x722   :  { %v2665_v43 = vpop.eup %2664 }
 0x723   :  { %v1638_v0 = vmul.f32 %v2665_v43, %v3140_v20 }
 0x725   :  { %v1646_v1 = vpack.c.bf16 %v1638_v0, %v1638_v0 }
 0x726   :  { %v2667_v3 = vpop.eup %2666 }
 0x727   :  { %2518 = vmatmul.mubr.msk.bf16.vlgmr.msra.gmra.mxu1 %vm284_vm2, %v1646_v1  ;;  %v1640_v10 = vmul.f32 %v2667_v3, %v3144_v23 }
 0x728   :  { %2528 = vmatpush3.bf16.msra.mxu1 %v1897_v7  ;;  %v1626_v6 = vpop.xlane.xlu1 %1625  ;;  %2529 = vmatprep.mubr.msk.bf16.mxu1 %vm2671_vm1, %v2670_v52 }
 0x729   :  { %2668 = vrcp.f32 %v1626_v6  ;;  %2539 = vmatprep.subr.bf16.mxu1 %v2670_v52  ;;  %v1648_v13 = vpack.c.bf16 %v1640_v10, %v1640_v10 }
 0x72c   :  { %v1988_v59 = vpop.permute.xlu1 %1987 }
 0x72d   :  { %v1993_v62 = vsel %vm775_vm3, %v1988_v59, 0 }
 0x72f   :  { %2530 = vmatmul.mubr.msk.bf16.vlgmr.msra.gmra.mxu1 %vm284_vm2, %v1648_v13 }
 0x730   :  { %2540 = vmatpush3.bf16.msra.mxu1 %v1993_v62  ;;  %2541 = vmatprep.mubr.msk.bf16.mxu1 %vm2671_vm1, %v2670_v52 }
 0x736   :  { %v2669_v53 = vpop.eup %2668 }
 0x737   :  { %v1642_v14 = vmul.f32 %v2669_v53, %v3149_v30 }
 0x739   :  { %v1650_v15 = vpack.c.bf16 %v1642_v14, %v1642_v14 }
 0x73b   :  { %2542 = vmatmul.mubr.msk.bf16.vlgmr.msra.gmra.mxu1 %vm284_vm2, %v1650_v15 }
 0x786   :  { %v1693_v16 = vpop.f32.mrf.mxu0 }
 0x788   :  { %v2501_v17 = vpop.f32.mrf.mxu0 }
 0x78a   :  { %v1696_v20 = vpop.f32.mrf.mxu0 }
 0x78c   :  { %v2502_v22 = vpop.f32.mrf.mxu0 }
 0x78e   :  { %v1789_v11 = vpop.f32.mrf.mxu0 }
 0x790   :  { %v2513_v23 = vpop.f32.mrf.mxu0 }
 0x792   :  { %v1792_v34 = vpop.f32.mrf.mxu0 }
 0x794   :  { %v2514_v19 = vpop.f32.mrf.mxu0 }
 0x7b2   :  { %v1741_v26 = vpop.f32.mrf.mxu1 }
 0x7b3   :  { %v2567_v28 = vpack.i.bf16 %v1741_v26, %v1693_v16 }
 0x7b4   :  { %v2507_v9 = vpop.f32.mrf.mxu1 }
 0x7b5   :  { %2568 = vrot.lane.b32.xlu0 %v2567_v28, %s2677_s14 }
 0x7b6   :  { %v1744_v52 = vpop.f32.mrf.mxu1 }
 0x7b8   :  { %v2508_v29 = vpop.f32.mrf.mxu1 }
 0x7c3   :  { %v1885_v30 = vpop.f32.mrf.mxu0 }
 0x7c5   :  { %v2525_v36 = vpop.f32.mrf.mxu0 }
 0x7c7   :  { %v1888_v37 = vpop.f32.mrf.mxu0 }
 0x7c9   :  { %v2526_v24 = vpop.f32.mrf.mxu0 }
 0x7cb   :  { %v1981_v39 = vpop.f32.mrf.mxu0 }
 0x7cd   :  { %v2537_v40 = vpop.f32.mrf.mxu0 }
 0x7cf   :  { %v1984_v41 = vpop.f32.mrf.mxu0 }
 0x7d1   :  { %v2538_v12 = vpop.f32.mrf.mxu0 }
 0x7e7   :  { %v1837_v45 = vpop.f32.mrf.mxu1 }
 0x7e8   :  { %v2572_v32 = vpack.i.bf16 %v1837_v45, %v1789_v11 }
 0x7e9   :  { %v2519_v47 = vpop.f32.mrf.mxu1 }
 0x7ea   :  { %2573 = vrot.lane.b32.xlu1 %v2572_v32, %s2677_s14 }
 0x7eb   :  { %v1840_v48 = vpop.f32.mrf.mxu1 }
 0x7ed   :  { %v2520_v25 = vpop.f32.mrf.mxu1 }
 0x7ef   :  { %v1933_v50 = vpop.f32.mrf.mxu1 }
 0x7f0   :  { %v2577_v2 = vpack.i.bf16 %v1933_v50, %v1885_v30 }
 0x7f1   :  { %v2531_v51 = vpop.f32.mrf.mxu1 }
 0x7f2   :  { %2578 = vrot.lane.b32.xlu0 %v2577_v2, %s2677_s14 }
 0x7f3   :  { %v1936_v63 = vpop.f32.mrf.mxu1 }
 0x7f5   :  { %v2532_v5 = vpop.f32.mrf.mxu1 }
 0x7fb   :  { %v2029_v54 = vpop.f32.mrf.mxu1 }
 0x7fc   :  { %v2582_v8 = vpack.i.bf16 %v2029_v54, %v1981_v39 }
 0x7fd   :  { %v2543_v49 = vpop.f32.mrf.mxu1 }
 0x7fe   :  { %2583 = vrot.lane.b32.xlu1 %v2582_v8, %s2677_s14 }
 0x7ff   :  { %v2032_v55 = vpop.f32.mrf.mxu1 }
 0x801   :  { %v2544_v33 = vpop.f32.mrf.mxu1 }
 0x827   :  { %v2569_v42 = vpop.permute.xlu0 %2568 }
 0x828   :  { %v2571_v56 = vunpack.i.h.bf16 %v2569_v42  ;;  %v2570_v57 = vunpack.i.l.bf16 %v2569_v42 }
 0x82a   :  { %v2068_v58 = vsel %vm284_vm2, %v3059_v18, %v2571_v56  ;;  %v2067_v60 = vsel %vm284_vm2, %v3061_v21, %v2570_v57 }
 0x82b   :  { %v2075_v61 = vpack.c.bf16 %v2068_v58, %v2067_v60 }
 0x82d   :  { %2547 = vmatprep.mubr.msk.bf16.mxu0 %vm2087_vm4, %v2075_v61 }
 0x85c   :  { %v2574_v43 = vpop.permute.xlu1 %2573 }
 0x85d   :  { %v2576_v0 = vunpack.i.h.bf16 %v2574_v43  ;;  %v2575_v1 = vunpack.i.l.bf16 %v2574_v43 }
 0x85f   :  { %v2070_v3 = vsel %vm284_vm2, %v3065_v31, %v2576_v0  ;;  %v2069_v7 = vsel %vm284_vm2, %v3063_v27, %v2575_v1 }
 0x860   :  { %v2076_v6 = vpack.c.bf16 %v2070_v3, %v2069_v7 }
 0x862   :  { %2548 = vmatmul.mubr.msk.bf16.vlgmr.msra.gmra.mxu0 %vm2087_vm4, %v2076_v6 }
 0x864   :  { %v2579_v18 = vpop.permute.xlu0 %2578 }
 0x865   :  { %v2581_v10 = vunpack.i.h.bf16 %v2579_v18  ;;  %v2580_v59 = vunpack.i.l.bf16 %v2579_v18 }
 0x867   :  { %v2072_v21 = vsel %vm284_vm2, %v3069_v44, %v2581_v10  ;;  %v2071_v62 = vsel %vm284_vm2, %v3067_v35, %v2580_v59  ;;  %v2246_v44 = vld [vmem:[%s3260_s5] ss:$0 sm:$0xff] }
 0x868   :  { %v2077_v13 = vpack.c.bf16 %v2072_v21, %v2071_v62 }
 0x86a   :  { %2551 = vmatprep.mubr.msk.bf16.mxu0 %vm2087_vm4, %v2077_v13 }
 0x870   :  { %v2584_v53 = vpop.permute.xlu1 %2583 }
 0x871   :  { %v2586_v31 = vunpack.i.h.bf16 %v2584_v53  ;;  %v2585_v14 = vunpack.i.l.bf16 %v2584_v53 }
 0x873   :  { %v2074_v27 = vsel %vm284_vm2, %v3079_v4, %v2586_v31  ;;  %v2073_v15 = vsel %vm284_vm2, %v3071_v46, %v2585_v14 }
 0x874   :  { %v2078_v16 = vpack.c.bf16 %v2074_v27, %v2073_v15 }
 0x876   :  { %2552 = vmatmul.mubr.msk.bf16.gmra.mxu0 %vm2087_vm4, %v2078_v16 }
 0x922   :  { %v2549_v35 = vpop.f32.mrf.mxu0 }
 0x923   :  { %v2174_v17 = vadd.f32 %v2549_v35, %v2246_v44 }
 0x924   :  { %v2134_v20 = vpop.f32.mrf.mxu0 }
 0x925   :  { %v2182_v22 = vpack.c.bf16 %v2174_v17, %v2174_v17  ;;  %v2172_v11 = vadd.f32 %v2246_v44, %v2134_v20 }
 0x926   :  { %v2550_v23 = vpop.f32.mrf.mxu0 }
 0x927   :  { %2191 = vst.msk [vmem:[%s3261_s6 + $0x8] sm:$0xf] %vm2188_vm5, %v2182_v22  ;;  %v2180_v46 = vpack.c.bf16 %v2172_v11, %v2172_v11  ;;  %v2175_v4 = vadd.f32 %v2550_v23, %v2246_v44 }
 0x928   :  { %v2137_v34 = vpop.f32.mrf.mxu0 }
 0x929   :  { %2189 = vst.msk [vmem:[%s3261_s6] sm:$0xf] %vm2188_vm5, %v2180_v46  ;;  %v2183_v19 = vpack.c.bf16 %v2175_v4, %v2175_v4  ;;  %v2173_v26 = vadd.f32 %v2246_v44, %v2137_v34 }
 0x92b   :  { %2192 = vst.msk [vmem:[%s3261_s6 + $0xc] sm:$0xf] %vm2188_vm5, %v2183_v19  ;;  %v2181_v28 = vpack.c.bf16 %v2173_v26, %v2173_v26 }
 0x92d   :  { %2190 = vst.msk [vmem:[%s3261_s6 + $0x4] sm:$0xf] %vm2188_vm5, %v2181_v28 }
 0x936   :  { %v2553_v9 = vpop.f32.mrf.mxu0 }
 0x937   :  { %v2178_v52 = vadd.f32 %v2553_v9, %v2246_v44 }
 0x938   :  { %v2150_v29 = vpop.f32.mrf.mxu0 }
 0x939   :  { %v2186_v30 = vpack.c.bf16 %v2178_v52, %v2178_v52  ;;  %v2176_v36 = vadd.f32 %v2246_v44, %v2150_v29 }
 0x93a   :  { %v2554_v37 = vpop.f32.mrf.mxu0 }
 0x93b   :  { %2195 = vst.msk [vmem:[%s3261_s6 + $0x18] sm:$0xf] %vm2188_vm5, %v2186_v30  ;;  %v2184_v24 = vpack.c.bf16 %v2176_v36, %v2176_v36  ;;  %v2179_v39 = vadd.f32 %v2554_v37, %v2246_v44 }
 0x93c   :  { %v2153_v40 = vpop.f32.mrf.mxu0 }
 0x93d   :  { %2193 = vst.msk [vmem:[%s3261_s6 + $0x10] sm:$0xf] %vm2188_vm5, %v2184_v24  ;;  %v2187_v41 = vpack.c.bf16 %v2179_v39, %v2179_v39  ;;  %v2177_v12 = vadd.f32 %v2246_v44, %v2153_v40 }
 0x93f   :  { %2196 = vst.msk [vmem:[%s3261_s6 + $0x1c] sm:$0xf] %vm2188_vm5, %v2187_v41  ;;  %v2185_v38 = vpack.c.bf16 %v2177_v12, %v2177_v12 }
 0x941   :  { %2194 = vst.msk [vmem:[%s3261_s6 + $0x14] sm:$0xf] %vm2188_vm5, %v2185_v38 }

// kernel: alphafold2_forward.8
= control target key start
LH: loop header
LB: loop body
LE: loop exit
PB: predicated region body
PF: predicated region fallthrough
CT: control target
= control target key end

     0   :  { %vm45_vm0 = vcmask 261120   ;;  %vm2725_vm1 = vmmov 0   ;;  %vm287_vm2 = vcmask 64512   ;;  %vm778_vm3 = vcmask 1043456   ;;  %s2728_s15 = smov 104   ;;  %s2729_s16 = smov 120   ;;  %s3366_s0 = inlined_call_operand.vmem [shape: bf16[8,8,32], index: 0, kind: input, shape index: {}]   ;;  %s3367_s4 = inlined_call_operand.vmem [shape: bf16[32,48], index: 4, kind: input, shape index: {}]   ;;  %s3368_s2 = inlined_call_operand.vmem [shape: f32[1,32], index: 2, kind: input, shape index: {}]   ;;  %s3369_s3 = inlined_call_operand.vmem [shape: f32[1,32], index: 3, kind: input, shape index: {}]   ;;  %s3370_s5 = inlined_call_operand.vmem [shape: bf16[16,32], index: 5, kind: input, shape index: {}]   ;;  %s3371_s1 = inlined_call_operand.vmem [shape: bf16[8,8,32], index: 1, kind: input, shape index: {}]   ;;  %s3372_s6 = inlined_call_operand.vmem [shape: f32[1,32], index: 6, kind: input, shape index: {}]   ;;  %s3373_s7 = inlined_call_operand.vmem [shape: bf16[8,8,32], index: 7, kind: output, shape index: {}]  }
   0x1   :  { %v2283_v0 = vld [vmem:[%s3366_s0] sm:$0xff]   ;;  %v2314_v1 = vld [vmem:[%s3366_s0 + $0x8] sm:$0xff]   ;;  %v2315_v6 = vld [vmem:[%s3366_s0 + $0x10] sm:$0xff]   ;;  %s2730_s17 = smov 88   ;;  %s2731_s18 = smov 8   ;;  %vm2090_vm4 = vcmask 130048  }
   0x2   :  { %v2778_v2 = vunpack.c.l.bf16 %v2283_v0  ;;  %v2780_v3 = vunpack.c.l.bf16 %v2314_v1  ;;  %v2782_v4 = vunpack.c.h.bf16 %v2283_v0  ;;  %v2784_v5 = vunpack.c.h.bf16 %v2314_v1  ;;  %v2316_v13 = vld [vmem:[%s3366_s0 + $0x18] sm:$0xff]   ;;  %v2641_v60 = vld [vmem:[%s3367_s4 + $0x8] sm:$0xff]   ;;  %v2642_v61 = vld [vmem:[%s3367_s4] sm:$0xff]  }
   0x3   :  { %v2797_v11 = vunpack.c.l.bf16 %v2315_v6  ;;  %v2799_v12 = vunpack.c.h.bf16 %v2315_v6  ;;  %v2808_v16 = vunpack.c.l.bf16 %v2316_v13  ;;  %v2810_v17 = vunpack.c.h.bf16 %v2316_v13  ;;  %2395 = vmatprep.subr.bf16.mxu0 %v2641_v60  ;;  %2609 = vmatprep.subr.bf16.mxu1 %v2641_v60 }
   0x4   :  { %v46_v7 = vsel %vm45_vm0, %v2778_v2, 0.0  ;;  %v52_v8 = vsel %vm45_vm0, %v2780_v3, 0.0  ;;  %v49_v9 = vsel %vm45_vm0, %v2782_v4, 0.0  ;;  %v55_v10 = vsel %vm45_vm0, %v2784_v5, 0.0  ;;  %2396 = vmatpush3.bf16.msra.mxu0 %v2641_v60  ;;  %2611 = vmatpush3.bf16.msra.mxu1 %v2641_v60 }
   0x5   :  { %47 = vadd.xlane.f32.xlu0 %v46_v7  ;;  %53 = vadd.xlane.f32.xlu1 %v52_v8  ;;  %v58_v14 = vsel %vm45_vm0, %v2797_v11, 0.0  ;;  %v61_v15 = vsel %vm45_vm0, %v2799_v12, 0.0  ;;  %v64_v18 = vsel %vm45_vm0, %v2808_v16, 0.0  ;;  %v67_v19 = vsel %vm45_vm0, %v2810_v17, 0.0 }
   0x6   :  { %2397 = vmatprep.subr.bf16.mxu0 %v2642_v61  ;;  %2610 = vmatprep.subr.bf16.mxu1 %v2642_v61  ;;  %vm2223_vm5 = vcmask 257024  }
   0x8   :  { %2398 = vmatpush3.bf16.msra.mxu0 %v2642_v61  ;;  %2612 = vmatpush3.bf16.msra.mxu1 %v2642_v61 }
   0x9   :  { %50 = vadd.xlane.f32.xlu0 %v49_v9  ;;  %56 = vadd.xlane.f32.xlu1 %v55_v10 }
   0xd   :  { %59 = vadd.xlane.f32.xlu0 %v58_v14  ;;  %62 = vadd.xlane.f32.xlu1 %v61_v15 }
  0x11   :  { %65 = vadd.xlane.f32.xlu0 %v64_v18  ;;  %68 = vadd.xlane.f32.xlu1 %v67_v19 }
  0x8e   :  { %v48_v20 = vpop.xlane.xlu0 %47  ;;  %v54_v21 = vpop.xlane.xlu1 %53 }
  0x8f   :  { %v71_v22 = vmul.f32 0.03125, %v48_v20  ;;  %v73_v23 = vmul.f32 0.03125, %v54_v21 }
  0x91   :  { %v2817_v24 = vsub.f32 %v2778_v2, %v71_v22  ;;  %v2820_v25 = vsub.f32 %v2780_v3, %v73_v23 }
  0x92   :  { %v51_v26 = vpop.xlane.xlu0 %50  ;;  %v57_v27 = vpop.xlane.xlu1 %56 }
  0x93   :  { %v72_v28 = vmul.f32 0.03125, %v51_v26  ;;  %v74_v29 = vmul.f32 0.03125, %v57_v27  ;;  %v87_v30 = vmul.f32 %v2817_v24, %v2817_v24  ;;  %v89_v31 = vmul.f32 %v2820_v25, %v2820_v25 }
  0x95   :  { %v2827_v32 = vsub.f32 %v2782_v4, %v72_v28  ;;  %v2830_v33 = vsub.f32 %v2784_v5, %v74_v29  ;;  %v95_v34 = vsel %vm45_vm0, %v87_v30, 0.0  ;;  %v101_v37 = vsel %vm45_vm0, %v89_v31, 0.0 }
  0x96   :  { %96 = vadd.xlane.f32.xlu0 %v95_v34  ;;  %v60_v35 = vpop.xlane.xlu0 %59  ;;  %v63_v36 = vpop.xlane.xlu1 %62 }
  0x97   :  { %v75_v38 = vmul.f32 0.03125, %v60_v35  ;;  %v76_v39 = vmul.f32 0.03125, %v63_v36  ;;  %v88_v40 = vmul.f32 %v2827_v32, %v2827_v32  ;;  %v90_v41 = vmul.f32 %v2830_v33, %v2830_v33  ;;  %v2236_v36 = vld [vmem:[%s3368_s2] ss:$0 sm:$0xff]  ;;  %s2726_s2 = smov 112  }
  0x99   :  { %v2839_v42 = vsub.f32 %v2797_v11, %v75_v38  ;;  %v2842_v43 = vsub.f32 %v2799_v12, %v76_v39  ;;  %v98_v44 = vsel %vm45_vm0, %v88_v40, 0.0  ;;  %v104_v47 = vsel %vm45_vm0, %v90_v41, 0.0  ;;  %v2237_v41 = vld [vmem:[%s3369_s3] ss:$0 sm:$0xff]  ;;  %s2727_s3 = smov 96  }
  0x9a   :  { %102 = vadd.xlane.f32.xlu0 %v101_v37  ;;  %99 = vadd.xlane.f32.xlu1 %v98_v44  ;;  %v66_v45 = vpop.xlane.xlu0 %65  ;;  %v69_v46 = vpop.xlane.xlu1 %68 }
  0x9b   :  { %v77_v48 = vmul.f32 0.03125, %v66_v45  ;;  %v78_v49 = vmul.f32 0.03125, %v69_v46  ;;  %v91_v50 = vmul.f32 %v2839_v42, %v2839_v42  ;;  %v92_v51 = vmul.f32 %v2842_v43, %v2842_v43 }
  0x9d   :  { %v2851_v52 = vsub.f32 %v2808_v16, %v77_v48  ;;  %v2854_v53 = vsub.f32 %v2810_v17, %v78_v49  ;;  %v107_v54 = vsel %vm45_vm0, %v91_v50, 0.0  ;;  %v110_v55 = vsel %vm45_vm0, %v92_v51, 0.0 }
  0x9e   :  { %105 = vadd.xlane.f32.xlu1 %v104_v47  ;;  %108 = vadd.xlane.f32.xlu0 %v107_v54 }
  0x9f   :  { %v93_v56 = vmul.f32 %v2851_v52, %v2851_v52  ;;  %v94_v57 = vmul.f32 %v2854_v53, %v2854_v53 }
  0xa1   :  { %v113_v58 = vsel %vm45_vm0, %v93_v56, 0.0  ;;  %v116_v59 = vsel %vm45_vm0, %v94_v57, 0.0 }
  0xa2   :  { %111 = vadd.xlane.f32.xlu1 %v110_v55  ;;  %114 = vadd.xlane.f32.xlu0 %v113_v58 }
  0xa6   :  { %117 = vadd.xlane.f32.xlu1 %v116_v59 }
 0x11f   :  { %v97_v62 = vpop.xlane.xlu0 %96 }
 0x120   :  { %v119_v63 = vmul.f32 0.03125, %v97_v62 }
 0x122   :  { %v127_v0 = vadd.f32 1e-05, %v119_v63 }
 0x123   :  { %v100_v1 = vpop.xlane.xlu1 %99  ;;  %v103_v6 = vpop.xlane.xlu0 %102 }
 0x124   :  { %2644 = vrsqrt.f32 %v127_v0  ;;  %v120_v7 = vmul.f32 0.03125, %v100_v1  ;;  %v121_v8 = vmul.f32 0.03125, %v103_v6 }
 0x126   :  { %v128_v9 = vadd.f32 1e-05, %v120_v7  ;;  %v129_v10 = vadd.f32 1e-05, %v121_v8 }
 0x127   :  { %v106_v13 = vpop.xlane.xlu1 %105  ;;  %v109_v14 = vpop.xlane.xlu0 %108 }
 0x128   :  { %2646 = vrsqrt.f32 %v128_v9  ;;  %v122_v15 = vmul.f32 0.03125, %v106_v13  ;;  %v123_v18 = vmul.f32 0.03125, %v109_v14 }
 0x129   :  { %2648 = vrsqrt.f32 %v129_v10 }
 0x12a   :  { %v130_v19 = vadd.f32 1e-05, %v122_v15  ;;  %v131_v20 = vadd.f32 1e-05, %v123_v18 }
 0x12b   :  { %v112_v21 = vpop.xlane.xlu1 %111  ;;  %v115_v22 = vpop.xlane.xlu0 %114 }
 0x12c   :  { %2650 = vrsqrt.f32 %v130_v19  ;;  %v124_v23 = vmul.f32 0.03125, %v112_v21  ;;  %v125_v26 = vmul.f32 0.03125, %v115_v22 }
 0x12d   :  { %2652 = vrsqrt.f32 %v131_v20 }
 0x12e   :  { %v132_v27 = vadd.f32 1e-05, %v124_v23  ;;  %v133_v28 = vadd.f32 1e-05, %v125_v26 }
 0x12f   :  { %v118_v29 = vpop.xlane.xlu1 %117 }
 0x130   :  { %2654 = vrsqrt.f32 %v132_v27  ;;  %v126_v30 = vmul.f32 0.03125, %v118_v29 }
 0x131   :  { %v2645_v31 = vpop.eup %2644  ;;  %2656 = vrsqrt.f32 %v133_v28 }
 0x132   :  { %v134_v34 = vadd.f32 1e-05, %v126_v30  ;;  %v143_v35 = vmul.f32 %v2645_v31, %v2817_v24 }
 0x134   :  { %2658 = vrsqrt.f32 %v134_v34  ;;  %v157_v40 = vmul.f32 %v2236_v36, %v143_v35 }
 0x135   :  { %v2647_v37 = vpop.eup %2646 }
 0x136   :  { %v2649_v38 = vpop.eup %2648  ;;  %v144_v39 = vmul.f32 %v2647_v37, %v2827_v32  ;;  %v171_v24 = vadd.f32 %v2237_v41, %v157_v40 }
 0x137   :  { %v145_v44 = vmul.f32 %v2649_v38, %v2820_v25 }
 0x138   :  { %v158_v45 = vmul.f32 %v2236_v36, %v144_v39 }
 0x139   :  { %v2651_v46 = vpop.eup %2650  ;;  %v159_v50 = vmul.f32 %v2236_v36, %v145_v44 }
 0x13a   :  { %v2653_v47 = vpop.eup %2652  ;;  %v172_v48 = vadd.f32 %v2237_v41, %v158_v45  ;;  %v146_v49 = vmul.f32 %v2651_v46, %v2830_v33 }
 0x13b   :  { %v147_v51 = vmul.f32 %v2653_v47, %v2839_v42  ;;  %v173_v57 = vadd.f32 %v2237_v41, %v159_v50 }
 0x13c   :  { %v179_v54 = vpack.c.bf16 %v172_v48, %v171_v24  ;;  %v160_v55 = vmul.f32 %v2236_v36, %v146_v49 }
 0x13d   :  { %v2655_v32 = vpop.eup %2654  ;;  %v161_v59 = vmul.f32 %v2236_v36, %v147_v51 }
 0x13e   :  { %v2657_v56 = vpop.eup %2656  ;;  %2399 = vmatprep.mubr.msk.bf16.mxu0 %vm45_vm0, %v179_v54  ;;  %v174_v58 = vadd.f32 %v2237_v41, %v160_v55  ;;  %v148_v25 = vmul.f32 %v2655_v32, %v2842_v43 }
 0x13f   :  { %v149_v60 = vmul.f32 %v2657_v56, %v2851_v52  ;;  %v175_v33 = vadd.f32 %v2237_v41, %v161_v59  ;;  %v2724_v52 = vmov 0.0  }
 0x140   :  { %v180_v61 = vpack.c.bf16 %v174_v58, %v173_v57  ;;  %v162_v62 = vmul.f32 %v2236_v36, %v148_v25  ;;  %2407 = vmatprep.subr.bf16.mxu1 %v2724_v52  ;;  %2419 = vmatprep.subr.bf16.mxu0 %v2724_v52 }
 0x141   :  { %v2659_v63 = vpop.eup %2658  ;;  %v163_v1 = vmul.f32 %v2236_v36, %v149_v60 }
 0x142   :  { %2400 = vmatmul.mubr.msk.bf16.vlgmr.msra.gmra.mxu0 %vm45_vm0, %v180_v61  ;;  %v176_v42 = vadd.f32 %v2237_v41, %v162_v62  ;;  %v150_v0 = vmul.f32 %v2659_v63, %v2854_v53 }
 0x143   :  { %v177_v8 = vadd.f32 %v2237_v41, %v163_v1  ;;  %2421 = vmatprep.mubr.msk.bf16.mxu0 %vm2725_vm1, %v2724_v52 }
 0x144   :  { %v181_v6 = vpack.c.bf16 %v176_v42, %v175_v33  ;;  %v164_v7 = vmul.f32 %v2236_v36, %v150_v0 }
 0x146   :  { %2403 = vmatprep.mubr.msk.bf16.mxu1 %vm45_vm0, %v181_v6  ;;  %v178_v9 = vadd.f32 %v2237_v41, %v164_v7 }
 0x148   :  { %v182_v43 = vpack.c.bf16 %v178_v9, %v177_v8 }
 0x14a   :  { %2404 = vmatmul.mubr.msk.bf16.vlgmr.msra.gmra.mxu1 %vm45_vm0, %v182_v43 }
 0x14b   :  { %2409 = vmatprep.mubr.msk.bf16.mxu1 %vm2725_vm1, %v2724_v52 }
 0x202   :  { %v2401_v10 = vpop.f32.mrf.mxu0 }
 0x203   :  { %v2900_v21 = vpack.c.bf16 %v2401_v10, %v2401_v10 }
 0x204   :  { %v245_v53 = vpop.f32.mrf.mxu0 }
 0x205   :  { %v2894_v13 = vpack.c.bf16 %v245_v53, %v245_v53 }
 0x206   :  { %v2402_v14 = vpop.f32.mrf.mxu0 }
 0x207   :  { %285 = vrot.lane.b32.xlu0 %v2894_v13, %s2726_s2  ;;  %v2906_v26 = vpack.c.bf16 %v2402_v14, %v2402_v14 }
 0x208   :  { %v248_v15 = vpop.f32.mrf.mxu0 }
 0x209   :  { %v2897_v18 = vpack.c.bf16 %v248_v15, %v248_v15 }
 0x20a   :  { %v2405_v19 = vpop.f32.mrf.mxu1 }
 0x20b   :  { %335 = vrot.lane.b32.xlu1 %v2897_v18, %s2726_s2  ;;  %v2908_v27 = vpack.c.bf16 %v2405_v19, %v2405_v19 }
 0x20c   :  { %v261_v20 = vpop.f32.mrf.mxu1 }
 0x20d   :  { %v2902_v22 = vpack.c.bf16 %v261_v20, %v261_v20 }
 0x20e   :  { %v2406_v23 = vpop.f32.mrf.mxu1 }
 0x20f   :  { %384 = vrot.lane.b32.xlu1 %v2900_v21, %s2726_s2  ;;  %482 = vrot.lane.b32.xlu0 %v2902_v22, %s2726_s2  ;;  %v2917_v30 = vpack.c.bf16 %v2406_v23, %v2406_v23 }
 0x210   :  { %v264_v28 = vpop.f32.mrf.mxu1 }
 0x211   :  { %v2912_v29 = vpack.c.bf16 %v264_v28, %v264_v28 }
 0x213   :  { %433 = vrot.lane.b32.xlu1 %v2906_v26, %s2726_s2  ;;  %580 = vrot.lane.b32.xlu0 %v2908_v27, %s2726_s2 }
 0x217   :  { %773 = vrot.lane.b32.xlu0 %v2894_v13, %s2727_s3  ;;  %531 = vrot.lane.b32.xlu1 %v2912_v29, %s2726_s2 }
 0x21b   :  { %629 = vrot.lane.b32.xlu1 %v2917_v30, %s2726_s2 }
 0x21f   :  { %870 = vrot.lane.b32.xlu1 %v2900_v21, %s2727_s3 }
 0x223   :  { %918 = vrot.lane.b32.xlu1 %v2906_v26, %s2727_s3 }
 0x227   :  { %822 = vrot.lane.b32.xlu1 %v2897_v18, %s2727_s3 }
 0x279   :  { %v286_v31 = vpop.permute.xlu0 %285 }
 0x27a   :  { %v292_v34 = vsel %vm287_vm2, %v286_v31, 0 }
 0x27b   :  { %2408 = vmatpush3.bf16.xpose.msra.mxu1 %v292_v34 }
 0x27c   :  { %2413 = vmatprep.subr.bf16.mxu1 %v2724_v52 }
 0x27d   :  { %v336_v35 = vpop.permute.xlu1 %335 }
 0x27e   :  { %v341_v37 = vsel %vm287_vm2, %v336_v35, 0 }
 0x281   :  { %v385_v36 = vpop.permute.xlu1 %384  ;;  %v483_v40 = vpop.permute.xlu0 %482 }
 0x282   :  { %v390_v38 = vsel %vm287_vm2, %v385_v36, 0  ;;  %2410 = vmatmul.mubr.msk.bf16.vlgmr.msra.gmra.mxu1 %vm287_vm2, %v2894_v13  ;;  %v488_v44 = vsel %vm287_vm2, %v483_v40, 0 }
 0x283   :  { %2414 = vmatpush3.bf16.xpose.msra.mxu1 %v341_v37  ;;  %2420 = vmatpush3.bf16.xpose.msra.mxu0 %v390_v38 }
 0x284   :  { %2415 = vmatprep.mubr.msk.bf16.mxu1 %vm2725_vm1, %v2724_v52  ;;  %2425 = vmatprep.subr.bf16.mxu1 %v2724_v52 }
 0x285   :  { %v434_v39 = vpop.permute.xlu1 %433  ;;  %2431 = vmatprep.subr.bf16.mxu0 %v2724_v52  ;;  %v581_v47 = vpop.permute.xlu0 %580 }
 0x286   :  { %v439_v45 = vsel %vm287_vm2, %v434_v39, 0  ;;  %v586_v24 = vsel %vm287_vm2, %v581_v47, 0 }
 0x289   :  { %v532_v41 = vpop.permute.xlu1 %531  ;;  %v774_v50 = vpop.permute.xlu0 %773 }
 0x28a   :  { %2416 = vmatmul.mubr.msk.bf16.vlgmr.msra.gmra.mxu1 %vm287_vm2, %v2897_v18  ;;  %2422 = vmatmul.mubr.msk.bf16.vlgmr.msra.gmra.mxu0 %vm287_vm2, %v2900_v21  ;;  %v537_v48 = vsel %vm287_vm2, %v532_v41, 0  ;;  %v780_v54 = vsel %vm778_vm3, %v774_v50, 0 }
 0x28b   :  { %2426 = vmatpush3.bf16.xpose.msra.mxu1 %v439_v45  ;;  %2432 = vmatpush3.bf16.xpose.msra.mxu0 %v488_v44 }
 0x28c   :  { %2433 = vmatprep.mubr.msk.bf16.mxu0 %vm2725_vm1, %v2724_v52  ;;  %2427 = vmatprep.mubr.msk.bf16.mxu1 %vm2725_vm1, %v2724_v52 }
 0x28d   :  { %v630_v46 = vpop.permute.xlu1 %629  ;;  %2437 = vmatprep.subr.bf16.mxu1 %v2724_v52  ;;  %2443 = vmatprep.subr.bf16.mxu0 %v2724_v52 }
 0x28e   :  { %v635_v55 = vsel %vm287_vm2, %v630_v46, 0 }
 0x291   :  { %v2954_v49 = vpop.permute.xlu1 %870 }
 0x292   :  { %2428 = vmatmul.mubr.msk.bf16.vlgmr.msra.gmra.mxu1 %vm287_vm2, %v2906_v26  ;;  %2434 = vmatmul.mubr.msk.bf16.vlgmr.msra.gmra.mxu0 %vm287_vm2, %v2902_v22 }
 0x293   :  { %2438 = vmatpush3.bf16.xpose.msra.mxu1 %v537_v48  ;;  %2444 = vmatpush3.bf16.xpose.msra.mxu0 %v586_v24 }
 0x294   :  { %2439 = vmatprep.mubr.msk.bf16.mxu1 %vm2725_vm1, %v2724_v52  ;;  %2445 = vmatprep.mubr.msk.bf16.mxu0 %vm2725_vm1, %v2724_v52 }
 0x295   :  { %2449 = vmatprep.subr.bf16.mxu1 %v2724_v52  ;;  %2455 = vmatprep.subr.bf16.mxu0 %v2724_v52  ;;  %v2962_v51 = vpop.permute.xlu1 %918 }
 0x299   :  { %v823_v32 = vpop.permute.xlu1 %822 }
 0x29a   :  { %2440 = vmatmul.mubr.msk.bf16.vlgmr.msra.gmra.mxu1 %vm287_vm2, %v2912_v29  ;;  %2446 = vmatmul.mubr.msk.bf16.vlgmr.msra.gmra.mxu0 %vm287_vm2, %v2908_v27  ;;  %v828_v56 = vsel %vm778_vm3, %v823_v32, 0 }
 0x29b   :  { %2450 = vmatpush3.bf16.xpose.msra.mxu1 %v635_v55  ;;  %2456 = vmatpush3.bf16.msra.mxu0 %v780_v54 }
 0x29c   :  { %2451 = vmatprep.mubr.msk.bf16.mxu1 %vm2725_vm1, %v2724_v52  ;;  %2461 = vmatprep.subr.bf16.mxu1 %v2724_v52 }
 0x29d   :  { %2457 = vmatprep.mubr.msk.bf16.mxu0 %vm2725_vm1, %v2724_v52  ;;  %2467 = vmatprep.subr.bf16.mxu0 %v2724_v52 }
 0x2a2   :  { %2452 = vmatmul.mubr.msk.bf16.vlgmr.msra.gmra.mxu1 %vm287_vm2, %v2917_v30 }
 0x2a3   :  { %2462 = vmatpush3.bf16.msra.mxu1 %v828_v56  ;;  %2463 = vmatprep.mubr.msk.bf16.mxu1 %vm2725_vm1, %v2724_v52 }
 0x2a4   :  { %2473 = vmatprep.subr.bf16.mxu1 %v2724_v52 }
 0x342   :  { %v328_v57 = vpop.f32.mrf.mxu1 }
 0x343   :  { %v677_v6 = vsel %vm287_vm2, %v328_v57, -inf }
 0x344   :  { %v2411_v58 = vpop.f32.mrf.mxu1 }
 0x346   :  { %v331_v25 = vpop.f32.mrf.mxu1 }
 0x348   :  { %v2412_v59 = vpop.f32.mrf.mxu1 }
 0x34a   :  { %v377_v60 = vpop.f32.mrf.mxu1  ;;  %v426_v61 = vpop.f32.mrf.mxu0 }
 0x34b   :  { %v683_v62 = vsel %vm287_vm2, %v426_v61, -inf  ;;  %v680_v63 = vsel %vm287_vm2, %v377_v60, -inf }
 0x34c   :  { %v2423_v33 = vpop.f32.mrf.mxu0  ;;  %684 = vmax.xlane.f32.xlu0 %v683_v62  ;;  %681 = vmax.xlane.f32.xlu1 %v680_v63  ;;  %v2417_v42 = vpop.f32.mrf.mxu1 }
 0x34e   :  { %v380_v0 = vpop.f32.mrf.mxu1  ;;  %v429_v1 = vpop.f32.mrf.mxu0 }
 0x350   :  { %v2424_v7 = vpop.f32.mrf.mxu0  ;;  %678 = vmax.xlane.f32.xlu0 %v677_v6  ;;  %v2418_v8 = vpop.f32.mrf.mxu1 }
 0x352   :  { %v475_v9 = vpop.f32.mrf.mxu1  ;;  %v524_v43 = vpop.f32.mrf.mxu0 }
 0x353   :  { %v689_v10 = vsel %vm287_vm2, %v524_v43, -inf  ;;  %v686_v39 = vsel %vm287_vm2, %v475_v9, -inf }
 0x354   :  { %v2429_v53 = vpop.f32.mrf.mxu1  ;;  %690 = vmax.xlane.f32.xlu0 %v689_v10  ;;  %v2435_v14 = vpop.f32.mrf.mxu0 }
 0x356   :  { %v478_v15 = vpop.f32.mrf.mxu1  ;;  %v527_v19 = vpop.f32.mrf.mxu0 }
 0x358   :  { %v2430_v20 = vpop.f32.mrf.mxu1  ;;  %v2436_v23 = vpop.f32.mrf.mxu0 }
 0x35a   :  { %v2986_v28 = vpop.f32.mrf.mxu1  ;;  %v2988_v31 = vpop.f32.mrf.mxu0 }
 0x35b   :  { %v695_v34 = vsel %vm287_vm2, %v2988_v31, -inf  ;;  %v692_v24 = vsel %vm287_vm2, %v2986_v28, -inf }
 0x35c   :  { %v2441_v35 = vpop.f32.mrf.mxu1  ;;  %696 = vmax.xlane.f32.xlu0 %v695_v34  ;;  %v2447_v36 = vpop.f32.mrf.mxu0 }
 0x35d   :  { %1014 = vrot.lane.b32.xlu1 %v2912_v29, %s2727_s3 }
 0x35e   :  { %v576_v37 = vpop.f32.mrf.mxu1  ;;  %v625_v38 = vpop.f32.mrf.mxu0 }
 0x360   :  { %v2442_v40 = vpop.f32.mrf.mxu1  ;;  %687 = vmax.xlane.f32.xlu0 %v686_v39  ;;  %v2448_v41 = vpop.f32.mrf.mxu0 }
 0x362   :  { %v2995_v44 = vpop.f32.mrf.mxu1 }
 0x363   :  { %v698_v48 = vsel %vm287_vm2, %v2995_v44, -inf }
 0x364   :  { %v2453_v45 = vpop.f32.mrf.mxu1 }
 0x366   :  { %v674_v46 = vpop.f32.mrf.mxu1 }
 0x368   :  { %v2454_v47 = vpop.f32.mrf.mxu1 }
 0x376   :  { %966 = vrot.lane.b32.xlu0 %v2902_v22, %s2727_s3 }
 0x381   :  { %693 = vmax.xlane.f32.xlu1 %v692_v24 }
 0x385   :  { %699 = vmax.xlane.f32.xlu1 %v698_v48 }
 0x396   :  { %1110 = vrot.lane.b32.xlu1 %v2917_v30, %s2727_s3 }
 0x3d5   :  { %v682_v50 = vpop.xlane.xlu1 %681  ;;  %v685_v54 = vpop.xlane.xlu0 %684 }
 0x3d6   :  { %v702_v55 = vsub.f32 %v377_v60, %v682_v50  ;;  %v703_v32 = vsub.f32 %v426_v61, %v685_v54 }
 0x3d8   :  { %v711_v56 = vmul.f32 1.442695, %v702_v55  ;;  %v713_v58 = vmul.f32 1.442695, %v703_v32 }
 0x3d9   :  { %v679_v25 = vpop.xlane.xlu0 %678 }
 0x3da   :  { %2660 = vpow2.f32 %v711_v56  ;;  %v701_v59 = vsub.f32 %v328_v57, %v679_v25  ;;  %v924_v25 = vsel %vm778_vm3, %v2962_v51, 0 }
 0x3db   :  { %2662 = vpow2.f32 %v713_v58 }
 0x3dc   :  { %v709_v62 = vmul.f32 1.442695, %v701_v59 }
 0x3dd   :  { %v691_v63 = vpop.xlane.xlu0 %690 }
 0x3de   :  { %2664 = vpow2.f32 %v709_v62  ;;  %v705_v33 = vsub.f32 %v524_v43, %v691_v63 }
 0x3e0   :  { %v717_v42 = vmul.f32 1.442695, %v705_v33 }
 0x3e2   :  { %2666 = vpow2.f32 %v717_v42  ;;  %v876_v42 = vsel %vm778_vm3, %v2954_v49, 0 }
 0x3e5   :  { %v697_v0 = vpop.xlane.xlu0 %696 }
 0x3e6   :  { %v707_v35 = vsub.f32 %v2988_v31, %v697_v0 }
 0x3e7   :  { %v3005_v1 = vpop.eup %2660 }
 0x3e8   :  { %v3007_v6 = vpop.eup %2662  ;;  %v728_v60 = vsel %vm287_vm2, %v3005_v1, 0.0  ;;  %v721_v36 = vmul.f32 1.442695, %v707_v35 }
 0x3e9   :  { %729 = vadd.xlane.f32.xlu1 %v728_v60  ;;  %v731_v61 = vsel %vm287_vm2, %v3007_v6, 0.0  ;;  %v688_v57 = vpop.xlane.xlu0 %687 }
 0x3ea   :  { %732 = vadd.xlane.f32.xlu0 %v731_v61  ;;  %v704_v7 = vsub.f32 %v475_v9, %v688_v57  ;;  %v3025_v9 = vpop.permute.xlu1 %1014 }
 0x3eb   :  { %v3013_v8 = vpop.eup %2664 }
 0x3ec   :  { %v715_v43 = vmul.f32 1.442695, %v704_v7  ;;  %v725_v10 = vsel %vm287_vm2, %v3013_v8, 0.0 }
 0x3ed   :  { %v967_v47 = vpop.permute.xlu0 %966 }
 0x3ee   :  { %2668 = vpow2.f32 %v715_v43  ;;  %726 = vadd.xlane.f32.xlu0 %v725_v10  ;;  %v972_v60 = vsel %vm778_vm3, %v967_v47, 0  ;;  %v1020_v43 = vsel %vm778_vm3, %v3025_v9, 0 }
 0x3ef   :  { %v3017_v53 = vpop.eup %2666 }
 0x3f0   :  { %v737_v14 = vsel %vm287_vm2, %v3017_v53, 0.0 }
 0x3f2   :  { %738 = vadd.xlane.f32.xlu0 %v737_v14 }
 0x3fb   :  { %v3021_v15 = vpop.eup %2668 }
 0x3fc   :  { %v734_v19 = vsel %vm287_vm2, %v3021_v15, 0.0 }
 0x3fd   :  { %735 = vadd.xlane.f32.xlu1 %v734_v19 }
 0x408   :  { %1062 = vrot.lane.b32.xlu0 %v2908_v27, %s2727_s3 }
 0x40a   :  { %v694_v20 = vpop.xlane.xlu1 %693 }
 0x40b   :  { %v706_v23 = vsub.f32 %v2986_v28, %v694_v20 }
 0x40d   :  { %v719_v34 = vmul.f32 1.442695, %v706_v23 }
 0x40e   :  { %v700_v28 = vpop.xlane.xlu1 %699 }
 0x40f   :  { %2670 = vpow2.f32 %v719_v34  ;;  %v708_v31 = vsub.f32 %v2995_v44, %v700_v28 }
 0x410   :  { %2672 = vpow2.f32 %v721_v36 }
 0x411   :  { %v723_v41 = vmul.f32 1.442695, %v708_v31 }
 0x412   :  { %v3056_v46 = vpop.permute.xlu1 %1110 }
 0x413   :  { %2674 = vpow2.f32 %v723_v41  ;;  %v1116_v23 = vsel %vm778_vm3, %v3056_v46, 0 }
 0x41c   :  { %v3031_v37 = vpop.eup %2670 }
 0x41d   :  { %v740_v38 = vsel %vm287_vm2, %v3031_v37, 0.0  ;;  %v3035_v39 = vpop.eup %2672 }
 0x41e   :  { %741 = vadd.xlane.f32.xlu1 %v740_v38  ;;  %v743_v40 = vsel %vm287_vm2, %v3035_v39, 0.0 }
 0x420   :  { %v3046_v45 = vpop.eup %2674 }
 0x421   :  { %v746_v44 = vsel %vm287_vm2, %v3046_v45, 0.0 }
 0x427   :  { %744 = vadd.xlane.f32.xlu0 %v743_v40 }
 0x42f   :  { %1210 = vrot.lane.b32.xlu1 %v2897_v18, %s2728_s15 }
 0x43d   :  { %1160 = vrot.lane.b32.xlu0 %v2894_v13, %s2728_s15 }
 0x441   :  { %1158 = vrot.lane.b32.xlu0 %v2894_v13, %s2729_s16 }
 0x445   :  { %1260 = vrot.lane.b32.xlu0 %v2900_v21, %s2728_s15 }
 0x449   :  { %1258 = vrot.lane.b32.xlu0 %v2900_v21, %s2729_s16 }
 0x44d   :  { %1360 = vrot.lane.b32.xlu0 %v2902_v22, %s2728_s15 }
 0x451   :  { %1358 = vrot.lane.b32.xlu0 %v2902_v22, %s2729_s16 }
 0x453   :  { %747 = vadd.xlane.f32.xlu1 %v746_v44 }
 0x455   :  { %1460 = vrot.lane.b32.xlu0 %v2908_v27, %s2728_s15 }
 0x459   :  { %1458 = vrot.lane.b32.xlu0 %v2908_v27, %s2729_s16 }
 0x464   :  { %1208 = vrot.lane.b32.xlu1 %v2897_v18, %s2729_s16 }
 0x468   :  { %1310 = vrot.lane.b32.xlu1 %v2906_v26, %s2728_s15 }
 0x46c   :  { %1308 = vrot.lane.b32.xlu1 %v2906_v26, %s2729_s16 }
 0x470   :  { %1410 = vrot.lane.b32.xlu1 %v2912_v29, %s2728_s15 }
 0x472   :  { %v730_v24 = vpop.xlane.xlu1 %729 }
 0x473   :  { %2676 = vrcp.f32 %v730_v24  ;;  %v733_v48 = vpop.xlane.xlu0 %732 }
 0x474   :  { %1408 = vrot.lane.b32.xlu1 %v2912_v29, %s2729_s16 }
 0x477   :  { %v727_v50 = vpop.xlane.xlu0 %726 }
 0x478   :  { %2678 = vrcp.f32 %v727_v50  ;;  %1510 = vrot.lane.b32.xlu1 %v2917_v30, %s2728_s15 }
 0x479   :  { %2680 = vrcp.f32 %v733_v48 }
 0x47b   :  { %v739_v55 = vpop.xlane.xlu0 %738 }
 0x47c   :  { %1508 = vrot.lane.b32.xlu1 %v2917_v30, %s2729_s16  ;;  %2682 = vrcp.f32 %v739_v55 }
 0x47f   :  { %v1063_v7 = vpop.permute.xlu0 %1062 }
 0x480   :  { %v2677_v54 = vpop.eup %2676  ;;  %v1068_v10 = vsel %vm778_vm3, %v1063_v7, 0 }
 0x481   :  { %v758_v32 = vmul.f32 %v2677_v54, %v3005_v1 }
 0x483   :  { %v766_v56 = vpack.c.bf16 %v758_v32, %v758_v32 }
 0x485   :  { %v2679_v58 = vpop.eup %2678  ;;  %2464 = vmatmul.mubr.msk.bf16.vlgmr.msra.gmra.mxu1 %vm287_vm2, %v766_v56 }
 0x486   :  { %2474 = vmatpush3.bf16.msra.mxu1 %v924_v25  ;;  %v736_v59 = vpop.xlane.xlu1 %735  ;;  %v757_v62 = vmul.f32 %v2679_v58, %v3013_v8  ;;  %2475 = vmatprep.mubr.msk.bf16.mxu1 %vm2725_vm1, %v2724_v52  ;;  %v2681_v33 = vpop.eup %2680 }
 0x487   :  { %2684 = vrcp.f32 %v736_v59  ;;  %2485 = vmatprep.subr.bf16.mxu1 %v2724_v52  ;;  %v759_v51 = vmul.f32 %v2681_v33, %v3007_v6 }
 0x488   :  { %v765_v63 = vpack.c.bf16 %v757_v62, %v757_v62 }
 0x489   :  { %v767_v0 = vpack.c.bf16 %v759_v51, %v759_v51  ;;  %v2683_v1 = vpop.eup %2682 }
 0x48a   :  { %2458 = vmatmul.mubr.msk.bf16.vlgmr.msra.gmra.mxu0 %vm287_vm2, %v765_v63  ;;  %v761_v61 = vmul.f32 %v2683_v1, %v3017_v53 }
 0x48b   :  { %2468 = vmatpush3.bf16.msra.mxu0 %v876_v42  ;;  %2469 = vmatprep.mubr.msk.bf16.mxu0 %vm2725_vm1, %v2724_v52 }
 0x48c   :  { %2479 = vmatprep.subr.bf16.mxu0 %v2724_v52  ;;  %v769_v6 = vpack.c.bf16 %v761_v61, %v761_v61 }
 0x492   :  { %2470 = vmatmul.mubr.msk.bf16.vlgmr.msra.gmra.mxu0 %vm287_vm2, %v767_v0 }
 0x493   :  { %2480 = vmatpush3.bf16.msra.mxu0 %v972_v60  ;;  %2481 = vmatprep.mubr.msk.bf16.mxu0 %vm2725_vm1, %v2724_v52 }
 0x494   :  { %v2685_v49 = vpop.eup %2684  ;;  %2491 = vmatprep.subr.bf16.mxu0 %v2724_v52 }
 0x495   :  { %v760_v57 = vmul.f32 %v2685_v49, %v3021_v15 }
 0x497   :  { %v768_v8 = vpack.c.bf16 %v760_v57, %v760_v57 }
 0x499   :  { %2476 = vmatmul.mubr.msk.bf16.vlgmr.msra.gmra.mxu1 %vm287_vm2, %v768_v8 }
 0x49a   :  { %2482 = vmatmul.mubr.msk.bf16.vlgmr.msra.gmra.mxu0 %vm287_vm2, %v769_v6  ;;  %2486 = vmatpush3.bf16.msra.mxu1 %v1020_v43 }
 0x49b   :  { %2492 = vmatpush3.bf16.msra.mxu0 %v1068_v10  ;;  %2487 = vmatprep.mubr.msk.bf16.mxu1 %vm2725_vm1, %v2724_v52 }
 0x49c   :  { %2497 = vmatprep.subr.bf16.mxu1 %v2724_v52  ;;  %2493 = vmatprep.mubr.msk.bf16.mxu0 %vm2725_vm1, %v2724_v52 }
 0x49d   :  { %2503 = vmatprep.subr.bf16.mxu0 %v2724_v52 }
 0x4a7   :  { %v742_v53 = vpop.xlane.xlu1 %741 }
 0x4a8   :  { %2686 = vrcp.f32 %v742_v53 }
 0x4ab   :  { %v1211_v46 = vpop.permute.xlu1 %1210 }
 0x4ac   :  { %v1216_v25 = vsel %vm287_vm2, %v1211_v46, 0 }
 0x4b0   :  { %v745_v14 = vpop.xlane.xlu0 %744 }
 0x4b1   :  { %2688 = vrcp.f32 %v745_v14 }
 0x4b4   :  { %v1161_v15 = vpop.permute.xlu0 %1160 }
 0x4b5   :  { %v2687_v19 = vpop.eup %2686 }
 0x4b6   :  { %v762_v9 = vmul.f32 %v2687_v19, %v3031_v37  ;;  %v1166_v37 = vsel %vm287_vm2, %v1161_v15, 0 }
 0x4b8   :  { %v770_v20 = vpack.c.bf16 %v762_v9, %v762_v9  ;;  %v1159_v34 = vpop.permute.xlu0 %1158 }
 0x4ba   :  { %2488 = vmatmul.mubr.msk.bf16.vlgmr.msra.gmra.mxu1 %vm287_vm2, %v770_v20 }
 0x4bb   :  { %2498 = vmatpush3.bf16.msra.mxu1 %v1116_v23  ;;  %2499 = vmatprep.mubr.msk.bf16.mxu1 %vm2725_vm1, %v2724_v52 }
 0x4bc   :  { %2509 = vmatprep.subr.bf16.mxu1 %v2724_v52  ;;  %v1261_v38 = vpop.permute.xlu0 %1260 }
 0x4bd   :  { %v1266_v31 = vsel %vm287_vm2, %v1261_v38, 0 }
 0x4be   :  { %v2689_v35 = vpop.eup %2688 }
 0x4bf   :  { %v763_v36 = vmul.f32 %v2689_v35, %v3035_v39 }
 0x4c0   :  { %v1259_v28 = vpop.permute.xlu0 %1258 }
 0x4c1   :  { %v771_v40 = vpack.c.bf16 %v763_v36, %v763_v36 }
 0x4c3   :  { %2494 = vmatmul.mubr.msk.bf16.vlgmr.msra.gmra.mxu0 %vm287_vm2, %v771_v40 }
 0x4c4   :  { %2504 = vmatpush3.bf16.xpose.msra.mxu0 %v1166_v37  ;;  %2505 = vmatprep.mubr.msk.bf16.mxu0 %vm2725_vm1, %v2724_v52  ;;  %v1361_v41 = vpop.permute.xlu0 %1360 }
 0x4c5   :  { %2515 = vmatprep.subr.bf16.mxu0 %v2724_v52  ;;  %v1366_v44 = vsel %vm287_vm2, %v1361_v41, 0 }
 0x4c8   :  { %v1359_v39 = vpop.permute.xlu0 %1358 }
 0x4cb   :  { %2506 = vmatmul.mubr.msk.bf16.vlgmr.msra.gmra.mxu0 %vm287_vm2, %v1159_v34 }
 0x4cc   :  { %2516 = vmatpush3.bf16.xpose.msra.mxu0 %v1266_v31  ;;  %2517 = vmatprep.mubr.msk.bf16.mxu0 %vm2725_vm1, %v2724_v52  ;;  %v1461_v47 = vpop.permute.xlu0 %1460 }
 0x4cd   :  { %2527 = vmatprep.subr.bf16.mxu0 %v2724_v52  ;;  %v1466_v24 = vsel %vm287_vm2, %v1461_v47, 0 }
 0x4d0   :  { %v1459_v50 = vpop.permute.xlu0 %1458 }
 0x4d3   :  { %2518 = vmatmul.mubr.msk.bf16.vlgmr.msra.gmra.mxu0 %vm287_vm2, %v1259_v28 }
 0x4d4   :  { %2528 = vmatpush3.bf16.xpose.msra.mxu0 %v1366_v44  ;;  %2529 = vmatprep.mubr.msk.bf16.mxu0 %vm2725_vm1, %v2724_v52 }
 0x4d5   :  { %2539 = vmatprep.subr.bf16.mxu0 %v2724_v52 }
 0x4db   :  { %2530 = vmatmul.mubr.msk.bf16.vlgmr.msra.gmra.mxu0 %vm287_vm2, %v1359_v39 }
 0x4dc   :  { %2540 = vmatpush3.bf16.xpose.msra.mxu0 %v1466_v24  ;;  %v748_v48 = vpop.xlane.xlu1 %747  ;;  %2541 = vmatprep.mubr.msk.bf16.mxu0 %vm2725_vm1, %v2724_v52 }
 0x4dd   :  { %2690 = vrcp.f32 %v748_v48  ;;  %2551 = vmatprep.subr.bf16.mxu0 %v2724_v52 }
 0x4e0   :  { %v1209_v54 = vpop.permute.xlu1 %1208 }
 0x4e3   :  { %2542 = vmatmul.mubr.msk.bf16.vlgmr.msra.gmra.mxu0 %vm287_vm2, %v1459_v50 }
 0x4e4   :  { %2553 = vmatprep.mubr.msk.bf16.mxu0 %vm2725_vm1, %v2724_v52  ;;  %v1311_v56 = vpop.permute.xlu1 %1310 }
 0x4e5   :  { %v1316_v62 = vsel %vm287_vm2, %v1311_v56, 0 }
 0x4e8   :  { %v1309_v59 = vpop.permute.xlu1 %1308 }
 0x4ea   :  { %v2691_v55 = vpop.eup %2690 }
 0x4eb   :  { %v764_v32 = vmul.f32 %v2691_v55, %v3046_v45 }
 0x4ec   :  { %v1411_v63 = vpop.permute.xlu1 %1410 }
 0x4ed   :  { %v772_v58 = vpack.c.bf16 %v764_v32, %v764_v32  ;;  %v1416_v33 = vsel %vm287_vm2, %v1411_v63, 0 }
 0x4ef   :  { %2500 = vmatmul.mubr.msk.bf16.vlgmr.msra.gmra.mxu1 %vm287_vm2, %v772_v58 }
 0x4f0   :  { %2510 = vmatpush3.bf16.xpose.msra.mxu1 %v1216_v25  ;;  %2511 = vmatprep.mubr.msk.bf16.mxu1 %vm2725_vm1, %v2724_v52  ;;  %v1409_v45 = vpop.permute.xlu1 %1408 }
 0x4f1   :  { %2521 = vmatprep.subr.bf16.mxu1 %v2724_v52 }
 0x4f4   :  { %v1511_v42 = vpop.permute.xlu1 %1510 }
 0x4f5   :  { %v1516_v51 = vsel %vm287_vm2, %v1511_v42, 0 }
 0x4f7   :  { %2512 = vmatmul.mubr.msk.bf16.vlgmr.msra.gmra.mxu1 %vm287_vm2, %v1209_v54 }
 0x4f8   :  { %2522 = vmatpush3.bf16.xpose.msra.mxu1 %v1316_v62  ;;  %2523 = vmatprep.mubr.msk.bf16.mxu1 %vm2725_vm1, %v2724_v52  ;;  %v1509_v0 = vpop.permute.xlu1 %1508 }
 0x4f9   :  { %2533 = vmatprep.subr.bf16.mxu1 %v2724_v52 }
 0x4ff   :  { %2524 = vmatmul.mubr.msk.bf16.vlgmr.msra.gmra.mxu1 %vm287_vm2, %v1309_v59 }
 0x500   :  { %2534 = vmatpush3.bf16.xpose.msra.mxu1 %v1416_v33  ;;  %2535 = vmatprep.mubr.msk.bf16.mxu1 %vm2725_vm1, %v2724_v52 }
 0x501   :  { %2545 = vmatprep.subr.bf16.mxu1 %v2724_v52 }
 0x507   :  { %2536 = vmatmul.mubr.msk.bf16.vlgmr.msra.gmra.mxu1 %vm287_vm2, %v1409_v45 }
 0x508   :  { %2546 = vmatpush3.bf16.xpose.msra.mxu1 %v1516_v51  ;;  %2547 = vmatprep.mubr.msk.bf16.mxu1 %vm2725_vm1, %v2724_v52 }
 0x509   :  { %2557 = vmatprep.subr.bf16.mxu1 %v2724_v52 }
 0x50f   :  { %2548 = vmatmul.mubr.msk.bf16.vlgmr.msra.gmra.mxu1 %vm287_vm2, %v1509_v0 }
 0x510   :  { %2559 = vmatprep.mubr.msk.bf16.mxu1 %vm2725_vm1, %v2724_v52 }
 0x545   :  { %v3150_v1 = vpop.f32.mrf.mxu1 }
 0x547   :  { %v2465_v60 = vpop.f32.mrf.mxu1 }
 0x549   :  { %v867_v49 = vpop.f32.mrf.mxu1 }
 0x54a   :  { %v3152_v61 = vpop.f32.mrf.mxu0 }
 0x54b   :  { %v2466_v57 = vpop.f32.mrf.mxu1 }
 0x54c   :  { %v2459_v7 = vpop.f32.mrf.mxu0 }
 0x54e   :  { %v819_v8 = vpop.f32.mrf.mxu0 }
 0x550   :  { %v2460_v6 = vpop.f32.mrf.mxu0 }
 0x552   :  { %v3154_v43 = vpop.f32.mrf.mxu0 }
 0x554   :  { %v2471_v10 = vpop.f32.mrf.mxu0 }
 0x556   :  { %v915_v53 = vpop.f32.mrf.mxu0 }
 0x558   :  { %v2472_v14 = vpop.f32.mrf.mxu0 }
 0x559   :  { %v3156_v15 = vpop.f32.mrf.mxu1 }
 0x55a   :  { %v3158_v19 = vpop.f32.mrf.mxu0 }
 0x55b   :  { %v2477_v9 = vpop.f32.mrf.mxu1 }
 0x55c   :  { %v2483_v20 = vpop.f32.mrf.mxu0 }
 0x55d   :  { %v963_v23 = vpop.f32.mrf.mxu1 }
 0x55e   :  { %v1011_v34 = vpop.f32.mrf.mxu0 }
 0x55f   :  { %v2478_v35 = vpop.f32.mrf.mxu1 }
 0x560   :  { %v2484_v36 = vpop.f32.mrf.mxu0 }
 0x57a   :  { %v3160_v38 = vpop.f32.mrf.mxu1 }
 0x57c   :  { %v2489_v40 = vpop.f32.mrf.mxu1 }
 0x57e   :  { %v1059_v37 = vpop.f32.mrf.mxu1 }
 0x580   :  { %v2490_v28 = vpop.f32.mrf.mxu1 }
 0x583   :  { %v3162_v31 = vpop.f32.mrf.mxu0 }
 0x585   :  { %v2495_v41 = vpop.f32.mrf.mxu0 }
 0x587   :  { %v1107_v39 = vpop.f32.mrf.mxu0 }
 0x589   :  { %v2496_v44 = vpop.f32.mrf.mxu0 }
 0x58b   :  { %v1202_v46 = vpop.f32.mrf.mxu0 }
 0x58c   :  { %v1558_v47 = vsel %vm287_vm2, %v1202_v46, -inf }
 0x58d   :  { %1559 = vmax.xlane.f32.xlu0 %v1558_v47  ;;  %v2507_v24 = vpop.f32.mrf.mxu0 }
 0x58f   :  { %v1205_v48 = vpop.f32.mrf.mxu0 }
 0x591   :  { %v2508_v50 = vpop.f32.mrf.mxu0 }
 0x593   :  { %v1302_v54 = vpop.f32.mrf.mxu0 }
 0x594   :  { %v1564_v55 = vsel %vm287_vm2, %v1302_v54, -inf }
 0x595   :  { %1565 = vmax.xlane.f32.xlu0 %v1564_v55  ;;  %v2519_v32 = vpop.f32.mrf.mxu0 }
 0x597   :  { %v1305_v56 = vpop.f32.mrf.mxu0 }
 0x599   :  { %v2520_v58 = vpop.f32.mrf.mxu0 }
 0x59b   :  { %v3166_v25 = vpop.f32.mrf.mxu0 }
 0x59c   :  { %v1570_v34 = vsel %vm287_vm2, %v3166_v25, -inf }
 0x59d   :  { %v2531_v59 = vpop.f32.mrf.mxu0 }
 0x59f   :  { %v1405_v62 = vpop.f32.mrf.mxu0 }
 0x5a1   :  { %v2532_v63 = vpop.f32.mrf.mxu0 }
 0x5a3   :  { %v3168_v45 = vpop.f32.mrf.mxu0 }
 0x5a4   :  { %v1576_v37 = vsel %vm287_vm2, %v3168_v45, -inf }
 0x5a5   :  { %v2543_v33 = vpop.f32.mrf.mxu0 }
 0x5a7   :  { %v1505_v42 = vpop.f32.mrf.mxu0 }
 0x5a9   :  { %v2544_v51 = vpop.f32.mrf.mxu0 }
 0x5af   :  { %v3170_v0 = vpop.f32.mrf.mxu1 }
 0x5b1   :  { %v2501_v60 = vpop.f32.mrf.mxu1 }
 0x5b3   :  { %v1155_v49 = vpop.f32.mrf.mxu1 }
 0x5b5   :  { %v2502_v57 = vpop.f32.mrf.mxu1 }
 0x5b7   :  { %v1252_v7 = vpop.f32.mrf.mxu1 }
 0x5b8   :  { %v1561_v8 = vsel %vm287_vm2, %v1252_v7, -inf }
 0x5b9   :  { %1562 = vmax.xlane.f32.xlu1 %v1561_v8  ;;  %v2513_v6 = vpop.f32.mrf.mxu1 }
 0x5bb   :  { %v1255_v10 = vpop.f32.mrf.mxu1 }
 0x5bd   :  { %v2514_v53 = vpop.f32.mrf.mxu1 }
 0x5bf   :  { %v3173_v14 = vpop.f32.mrf.mxu1 }
 0x5c0   :  { %v1567_v9 = vsel %vm287_vm2, %v3173_v14, -inf }
 0x5c1   :  { %v2525_v20 = vpop.f32.mrf.mxu1  ;;  %1568 = vmax.xlane.f32.xlu0 %v1567_v9 }
 0x5c3   :  { %v1355_v23 = vpop.f32.mrf.mxu1 }
 0x5c5   :  { %v2526_v35 = vpop.f32.mrf.mxu1  ;;  %1571 = vmax.xlane.f32.xlu0 %v1570_v34 }
 0x5c7   :  { %v3179_v36 = vpop.f32.mrf.mxu1 }
 0x5c8   :  { %v1573_v40 = vsel %vm287_vm2, %v3179_v36, -inf }
 0x5c9   :  { %1574 = vmax.xlane.f32.xlu1 %v1573_v40  ;;  %v2537_v28 = vpop.f32.mrf.mxu1  ;;  %1577 = vmax.xlane.f32.xlu0 %v1576_v37 }
 0x5cb   :  { %v1455_v41 = vpop.f32.mrf.mxu1 }
 0x5cd   :  { %v2538_v39 = vpop.f32.mrf.mxu1 }
 0x5cf   :  { %v3185_v44 = vpop.f32.mrf.mxu1 }
 0x5d0   :  { %v1579_v50 = vsel %vm287_vm2, %v3185_v44, -inf }
 0x5d1   :  { %v2549_v47 = vpop.f32.mrf.mxu1 }
 0x5d3   :  { %v1555_v24 = vpop.f32.mrf.mxu1 }
 0x5d5   :  { %v2550_v48 = vpop.f32.mrf.mxu1 }
 0x5da   :  { %1702 = vrot.lane.b32.xlu1 %v2897_v18, %s2730_s17 }
 0x5de   :  { %1750 = vrot.lane.b32.xlu1 %v2900_v21, %s2730_s17 }
 0x5df   :  { %1654 = vrot.lane.b32.xlu0 %v2894_v13, %s2730_s17 }
 0x602   :  { %1580 = vmax.xlane.f32.xlu1 %v1579_v50 }
 0x613   :  { %1798 = vrot.lane.b32.xlu1 %v2906_v26, %s2730_s17 }
 0x616   :  { %v1560_v55 = vpop.xlane.xlu0 %1559 }
 0x617   :  { %v1582_v32 = vsub.f32 %v1202_v46, %v1560_v55 }
 0x619   :  { %v1590_v56 = vmul.f32 1.442695, %v1582_v32 }
 0x61b   :  { %2692 = vpow2.f32 %v1590_v56 }
 0x61e   :  { %v1566_v58 = vpop.xlane.xlu0 %1565 }
 0x61f   :  { %v1584_v59 = vsub.f32 %v1302_v54, %v1566_v58 }
 0x621   :  { %v1594_v18 = vmul.f32 1.442695, %v1584_v59 }
 0x623   :  { %2694 = vpow2.f32 %v1594_v18 }
 0x628   :  { %v3197_v62 = vpop.eup %2692 }
 0x629   :  { %v1606_v13 = vsel %vm287_vm2, %v3197_v62, 0.0 }
 0x62a   :  { %1607 = vadd.xlane.f32.xlu0 %v1606_v13 }
 0x630   :  { %v3201_v21 = vpop.eup %2694 }
 0x631   :  { %v1612_v63 = vsel %vm287_vm2, %v3201_v21, 0.0 }
 0x632   :  { %1613 = vadd.xlane.f32.xlu0 %v1612_v63 }
 0x642   :  { %v1563_v26 = vpop.xlane.xlu1 %1562 }
 0x643   :  { %v1583_v46 = vsub.f32 %v1252_v7, %v1563_v26 }
 0x645   :  { %v1592_v33 = vmul.f32 1.442695, %v1583_v46 }
 0x647   :  { %2696 = vpow2.f32 %v1592_v33 }
 0x648   :  { %1846 = vrot.lane.b32.xlu0 %v2902_v22, %s2730_s17 }
 0x64a   :  { %v1569_v54 = vpop.xlane.xlu0 %1568 }
 0x64b   :  { %v1585_v35 = vsub.f32 %v3173_v14, %v1569_v54 }
 0x64d   :  { %v1596_v40 = vmul.f32 1.442695, %v1585_v35 }
 0x64e   :  { %v1572_v42 = vpop.xlane.xlu0 %1571 }
 0x64f   :  { %v1586_v51 = vsub.f32 %v3166_v25, %v1572_v42 }
 0x651   :  { %v1598_v60 = vmul.f32 1.442695, %v1586_v51 }
 0x652   :  { %v1575_v49 = vpop.xlane.xlu1 %1574  ;;  %v1578_v57 = vpop.xlane.xlu0 %1577 }
 0x653   :  { %v1588_v8 = vsub.f32 %v3168_v45, %v1578_v57  ;;  %2698 = vpow2.f32 %v1598_v60  ;;  %v1587_v37 = vsub.f32 %v3179_v36, %v1575_v49 }
 0x654   :  { %v3209_v6 = vpop.eup %2696 }
 0x655   :  { %v1609_v10 = vsel %vm287_vm2, %v3209_v6, 0.0  ;;  %v1602_v7 = vmul.f32 1.442695, %v1588_v8  ;;  %v1600_v28 = vmul.f32 1.442695, %v1587_v37 }
 0x656   :  { %1610 = vadd.xlane.f32.xlu1 %v1609_v10  ;;  %v1703_v53 = vpop.permute.xlu1 %1702  ;;  %v1655_v9 = vpop.permute.xlu0 %1654 }
 0x657   :  { %v1708_v22 = vsel %vm778_vm3, %v1703_v53, 0  ;;  %v1660_v20 = vsel %vm778_vm3, %v1655_v9, 0  ;;  %2700 = vpow2.f32 %v1602_v7 }
 0x658   :  { %2552 = vmatpush3.bf16.msra.mxu0 %v1660_v20  ;;  %2558 = vmatpush3.bf16.msra.mxu1 %v1708_v22  ;;  %2702 = vpow2.f32 %v1596_v40 }
 0x659   :  { %2563 = vmatprep.subr.bf16.mxu0 %v2724_v52  ;;  %2569 = vmatprep.subr.bf16.mxu1 %v2724_v52  ;;  %2704 = vpow2.f32 %v1600_v28 }
 0x65a   :  { %v1751_v39 = vpop.permute.xlu1 %1750 }
 0x65b   :  { %v1756_v59 = vsel %vm778_vm3, %v1751_v39, 0 }
 0x660   :  { %v3217_v25 = vpop.eup %2698 }
 0x661   :  { %v1618_v45 = vsel %vm287_vm2, %v3217_v25, 0.0 }
 0x664   :  { %v3221_v23 = vpop.eup %2700 }
 0x665   :  { %v1624_v34 = vsel %vm287_vm2, %v3221_v23, 0.0  ;;  %v3231_v41 = vpop.eup %2702 }
 0x666   :  { %v3235_v47 = vpop.eup %2704 }
 0x667   :  { %1619 = vadd.xlane.f32.xlu0 %v1618_v45  ;;  %1894 = vrot.lane.b32.xlu1 %v2912_v29, %s2730_s17  ;;  %v1615_v29 = vsel %vm287_vm2, %v3231_v41, 0.0  ;;  %v1621_v36 = vsel %vm287_vm2, %v3235_v47, 0.0 }
 0x66b   :  { %1625 = vadd.xlane.f32.xlu0 %v1624_v34 }
 0x681   :  { %1942 = vrot.lane.b32.xlu0 %v2908_v27, %s2730_s17 }
 0x68b   :  { %v1581_v24 = vpop.xlane.xlu1 %1580  ;;  %1616 = vadd.xlane.f32.xlu1 %v1615_v29 }
 0x68c   :  { %v1589_v14 = vsub.f32 %v3185_v44, %v1581_v24 }
 0x68e   :  { %v1604_v48 = vmul.f32 1.442695, %v1589_v14 }
 0x68f   :  { %1622 = vadd.xlane.f32.xlu1 %v1621_v36 }
 0x690   :  { %2706 = vpow2.f32 %v1604_v48 }
 0x69d   :  { %v3240_v50 = vpop.eup %2706 }
 0x69e   :  { %v1627_v27 = vsel %vm287_vm2, %v3240_v50, 0.0 }
 0x69f   :  { %1628 = vadd.xlane.f32.xlu1 %v1627_v27 }
 0x6b0   :  { %1990 = vrot.lane.b32.xlu1 %v2917_v30, %s2730_s17 }
 0x6b3   :  { %v1608_v55 = vpop.xlane.xlu0 %1607 }
 0x6b4   :  { %2708 = vrcp.f32 %v1608_v55 }
 0x6bb   :  { %v1614_v32 = vpop.xlane.xlu0 %1613 }
 0x6bc   :  { %2710 = vrcp.f32 %v1614_v32 }
 0x6bf   :  { %v1847_v13 = vpop.permute.xlu0 %1846 }
 0x6c0   :  { %v1852_v26 = vsel %vm778_vm3, %v1847_v13, 0 }
 0x6c1   :  { %v2709_v44 = vpop.eup %2708 }
 0x6c2   :  { %v1638_v56 = vmul.f32 %v2709_v44, %v3197_v62  ;;  %v1799_v62 = vpop.permute.xlu1 %1798 }
 0x6c3   :  { %v1804_v51 = vsel %vm778_vm3, %v1799_v62, 0 }
 0x6c4   :  { %v1646_v58 = vpack.c.bf16 %v1638_v56, %v1638_v56 }
 0x6c6   :  { %2554 = vmatmul.mubr.msk.bf16.vlgmr.msra.gmra.mxu0 %vm287_vm2, %v1646_v58 }
 0x6c7   :  { %2564 = vmatpush3.bf16.msra.mxu0 %v1756_v59  ;;  %2565 = vmatprep.mubr.msk.bf16.mxu0 %vm2725_vm1, %v2724_v52 }
 0x6c8   :  { %2575 = vmatprep.subr.bf16.mxu0 %v2724_v52 }
 0x6c9   :  { %v2711_v18 = vpop.eup %2710 }
 0x6ca   :  { %v1640_v30 = vmul.f32 %v2711_v18, %v3201_v21 }
 0x6cc   :  { %v1648_v63 = vpack.c.bf16 %v1640_v30, %v1640_v30 }
 0x6ce   :  { %2566 = vmatmul.mubr.msk.bf16.vlgmr.msra.gmra.mxu0 %vm287_vm2, %v1648_v63 }
 0x6cf   :  { %2576 = vmatpush3.bf16.msra.mxu0 %v1852_v26  ;;  %2577 = vmatprep.mubr.msk.bf16.mxu0 %vm2725_vm1, %v2724_v52 }
 0x6d0   :  { %2587 = vmatprep.subr.bf16.mxu0 %v2724_v52 }
 0x6df   :  { %v1611_v46 = vpop.xlane.xlu1 %1610 }
 0x6e0   :  { %2712 = vrcp.f32 %v1611_v46 }
 0x6e3   :  { %v1895_v22 = vpop.permute.xlu1 %1894 }
 0x6e4   :  { %v1900_v37 = vsel %vm778_vm3, %v1895_v22, 0 }
 0x6ed   :  { %v2713_v33 = vpop.eup %2712 }
 0x6ee   :  { %v1639_v54 = vmul.f32 %v2713_v33, %v3209_v6 }
 0x6f0   :  { %v1620_v42 = vpop.xlane.xlu0 %1619  ;;  %v1647_v21 = vpack.c.bf16 %v1639_v54, %v1639_v54 }
 0x6f1   :  { %2714 = vrcp.f32 %v1620_v42 }
 0x6f2   :  { %2560 = vmatmul.mubr.msk.bf16.vlgmr.msra.gmra.mxu1 %vm287_vm2, %v1647_v21  ;;  %v2643_v21 = vld [vmem:[%s3370_s5] sm:$0xff]  }
 0x6f3   :  { %2570 = vmatpush3.bf16.msra.mxu1 %v1804_v51  ;;  %2571 = vmatprep.mubr.msk.bf16.mxu1 %vm2725_vm1, %v2724_v52 }
 0x6f4   :  { %v1626_v60 = vpop.xlane.xlu0 %1625  ;;  %2581 = vmatprep.subr.bf16.mxu1 %v2724_v52 }
 0x6f5   :  { %2716 = vrcp.f32 %v1626_v60 }
 0x6f8   :  { %v1943_v8 = vpop.permute.xlu0 %1942 }
 0x6f9   :  { %v1948_v7 = vsel %vm778_vm3, %v1943_v8, 0 }
 0x6fe   :  { %v2715_v49 = vpop.eup %2714 }
 0x6ff   :  { %v1642_v57 = vmul.f32 %v2715_v49, %v3217_v25 }
 0x701   :  { %v1650_v6 = vpack.c.bf16 %v1642_v57, %v1642_v57 }
 0x702   :  { %v2717_v10 = vpop.eup %2716 }
 0x703   :  { %2578 = vmatmul.mubr.msk.bf16.vlgmr.msra.gmra.mxu0 %vm287_vm2, %v1650_v6  ;;  %v1644_v53 = vmul.f32 %v2717_v10, %v3221_v23 }
 0x704   :  { %2588 = vmatpush3.bf16.msra.mxu0 %v1948_v7  ;;  %2589 = vmatprep.mubr.msk.bf16.mxu0 %vm2725_vm1, %v2724_v52 }
 0x705   :  { %v1652_v9 = vpack.c.bf16 %v1644_v53, %v1644_v53  ;;  %2599 = vmatprep.subr.bf16.mxu0 %v2643_v21 }
 0x70b   :  { %2590 = vmatmul.mubr.msk.bf16.vlgmr.msra.gmra.mxu0 %vm287_vm2, %v1652_v9 }
 0x70c   :  { %2600 = vmatpush3.bf16.msra.mxu0 %v2643_v21 }
 0x714   :  { %v1617_v20 = vpop.xlane.xlu1 %1616 }
 0x715   :  { %2718 = vrcp.f32 %v1617_v20 }
 0x718   :  { %v1623_v25 = vpop.xlane.xlu1 %1622 }
 0x719   :  { %2720 = vrcp.f32 %v1623_v25 }
 0x722   :  { %v2719_v45 = vpop.eup %2718 }
 0x723   :  { %v1641_v34 = vmul.f32 %v2719_v45, %v3231_v41 }
 0x725   :  { %v1649_v35 = vpack.c.bf16 %v1641_v34, %v1641_v34 }
 0x726   :  { %v2721_v40 = vpop.eup %2720 }
 0x727   :  { %2572 = vmatmul.mubr.msk.bf16.vlgmr.msra.gmra.mxu1 %vm287_vm2, %v1649_v35  ;;  %v1643_v23 = vmul.f32 %v2721_v40, %v3235_v47 }
 0x728   :  { %2582 = vmatpush3.bf16.msra.mxu1 %v1900_v37  ;;  %v1629_v28 = vpop.xlane.xlu1 %1628  ;;  %2583 = vmatprep.mubr.msk.bf16.mxu1 %vm2725_vm1, %v2724_v52 }
 0x729   :  { %2722 = vrcp.f32 %v1629_v28  ;;  %2593 = vmatprep.subr.bf16.mxu1 %v2724_v52  ;;  %v1651_v41 = vpack.c.bf16 %v1643_v23, %v1643_v23 }
 0x72c   :  { %v1991_v39 = vpop.permute.xlu1 %1990 }
 0x72d   :  { %v1996_v29 = vsel %vm778_vm3, %v1991_v39, 0 }
 0x72f   :  { %2584 = vmatmul.mubr.msk.bf16.vlgmr.msra.gmra.mxu1 %vm287_vm2, %v1651_v41 }
 0x730   :  { %2594 = vmatpush3.bf16.msra.mxu1 %v1996_v29  ;;  %2595 = vmatprep.mubr.msk.bf16.mxu1 %vm2725_vm1, %v2724_v52 }
 0x736   :  { %v2723_v24 = vpop.eup %2722 }
 0x737   :  { %v1645_v14 = vmul.f32 %v2723_v24, %v3240_v50 }
 0x739   :  { %v1653_v48 = vpack.c.bf16 %v1645_v14, %v1645_v14 }
 0x73b   :  { %2596 = vmatmul.mubr.msk.bf16.vlgmr.msra.gmra.mxu1 %vm287_vm2, %v1653_v48 }
 0x786   :  { %v1696_v36 = vpop.f32.mrf.mxu0 }
 0x788   :  { %v2555_v27 = vpop.f32.mrf.mxu0 }
 0x78a   :  { %v1699_v55 = vpop.f32.mrf.mxu0 }
 0x78c   :  { %v2556_v47 = vpop.f32.mrf.mxu0 }
 0x78e   :  { %v1792_v32 = vpop.f32.mrf.mxu0 }
 0x790   :  { %v2567_v44 = vpop.f32.mrf.mxu0 }
 0x792   :  { %v1795_v56 = vpop.f32.mrf.mxu0 }
 0x794   :  { %v2568_v58 = vpop.f32.mrf.mxu0 }
 0x7b2   :  { %v1744_v59 = vpop.f32.mrf.mxu1 }
 0x7b3   :  { %v2621_v18 = vpack.i.bf16 %v1744_v59, %v1696_v36 }
 0x7b4   :  { %v2561_v30 = vpop.f32.mrf.mxu1 }
 0x7b5   :  { %2622 = vrot.lane.b32.xlu0 %v2621_v18, %s2731_s18  ;;  %v2299_v30 = vld [vmem:[%s3371_s1] sm:$0xff]  }
 0x7b6   :  { %v1747_v52 = vpop.f32.mrf.mxu1  ;;  %v2301_v21 = vunpack.c.h.bf16 %v2299_v30 }
 0x7b8   :  { %v2562_v13 = vpop.f32.mrf.mxu1 }
 0x7c3   :  { %v1888_v50 = vpop.f32.mrf.mxu0 }
 0x7c5   :  { %v2579_v63 = vpop.f32.mrf.mxu0 }
 0x7c6   :  { %v2300_v63 = vunpack.c.l.bf16 %v2299_v30 }
 0x7c7   :  { %v1891_v26 = vpop.f32.mrf.mxu0 }
 0x7c9   :  { %v2580_v62 = vpop.f32.mrf.mxu0 }
 0x7cb   :  { %v1984_v46 = vpop.f32.mrf.mxu0 }
 0x7cd   :  { %v2591_v33 = vpop.f32.mrf.mxu0 }
 0x7cf   :  { %v1987_v54 = vpop.f32.mrf.mxu0 }
 0x7d1   :  { %v2592_v42 = vpop.f32.mrf.mxu0 }
 0x7e7   :  { %v1840_v51 = vpop.f32.mrf.mxu1 }
 0x7e8   :  { %v2626_v60 = vpack.i.bf16 %v1840_v51, %v1792_v32 }
 0x7e9   :  { %v2573_v49 = vpop.f32.mrf.mxu1 }
 0x7ea   :  { %2627 = vrot.lane.b32.xlu1 %v2626_v60, %s2731_s18 }
 0x7eb   :  { %v1843_v57 = vpop.f32.mrf.mxu1 }
 0x7ed   :  { %v2574_v8 = vpop.f32.mrf.mxu1 }
 0x7ef   :  { %v1936_v6 = vpop.f32.mrf.mxu1 }
 0x7f0   :  { %v2631_v10 = vpack.i.bf16 %v1936_v6, %v1888_v50 }
 0x7f1   :  { %v2585_v7 = vpop.f32.mrf.mxu1 }
 0x7f2   :  { %2632 = vrot.lane.b32.xlu0 %v2631_v10, %s2731_s18 }
 0x7f3   :  { %v1939_v53 = vpop.f32.mrf.mxu1 }
 0x7f4   :  { %v2318_v53 = vld [vmem:[%s3371_s1 + $0x10] sm:$0xff]  }
 0x7f5   :  { %v2586_v9 = vpop.f32.mrf.mxu1 }
 0x7fb   :  { %v2032_v22 = vpop.f32.mrf.mxu1 }
 0x7fc   :  { %v2636_v20 = vpack.i.bf16 %v2032_v22, %v1984_v46 }
 0x7fd   :  { %v2597_v25 = vpop.f32.mrf.mxu1 }
 0x7fe   :  { %2637 = vrot.lane.b32.xlu1 %v2636_v20, %s2731_s18 }
 0x7ff   :  { %v2035_v45 = vpop.f32.mrf.mxu1 }
 0x801   :  { %v2598_v34 = vpop.f32.mrf.mxu1 }
 0x802   :  { %v2308_v34 = vunpack.c.l.bf16 %v2318_v53 }
 0x827   :  { %v2623_v35 = vpop.permute.xlu0 %2622 }
 0x828   :  { %v2625_v40 = vunpack.i.h.bf16 %v2623_v35  ;;  %v2624_v37 = vunpack.i.l.bf16 %v2623_v35 }
 0x82a   :  { %v2071_v28 = vsel %vm287_vm2, %v3150_v1, %v2625_v40  ;;  %v2070_v23 = vsel %vm287_vm2, %v3152_v61, %v2624_v37 }
 0x82b   :  { %v2078_v39 = vpack.c.bf16 %v2071_v28, %v2070_v23 }
 0x82d   :  { %2601 = vmatprep.mubr.msk.bf16.mxu0 %vm2090_vm4, %v2078_v39 }
 0x85c   :  { %v2628_v29 = vpop.permute.xlu1 %2627 }
 0x85d   :  { %v2630_v41 = vunpack.i.h.bf16 %v2628_v29  ;;  %v2629_v24 = vunpack.i.l.bf16 %v2628_v29  ;;  %v2309_v29 = vunpack.c.h.bf16 %v2318_v53 }
 0x85f   :  { %v2073_v14 = vsel %vm287_vm2, %v3156_v15, %v2630_v41  ;;  %v2072_v48 = vsel %vm287_vm2, %v3154_v43, %v2629_v24 }
 0x860   :  { %v2079_v36 = vpack.c.bf16 %v2073_v14, %v2072_v48 }
 0x862   :  { %2602 = vmatmul.mubr.msk.bf16.vlgmr.msra.gmra.mxu0 %vm2090_vm4, %v2079_v36 }
 0x864   :  { %v2633_v1 = vpop.permute.xlu0 %2632 }
 0x865   :  { %v2635_v27 = vunpack.i.h.bf16 %v2633_v1  ;;  %v2634_v55 = vunpack.i.l.bf16 %v2633_v1 }
 0x867   :  { %v2075_v61 = vsel %vm287_vm2, %v3160_v38, %v2635_v27  ;;  %v2074_v47 = vsel %vm287_vm2, %v3158_v19, %v2634_v55  ;;  %v2281_v38 = vld [vmem:[%s3372_s6] ss:$0 sm:$0xff]  ;;  %v2317_v19 = vld [vmem:[%s3371_s1 + $0x8] sm:$0xff]  }
 0x868   :  { %v2080_v32 = vpack.c.bf16 %v2075_v61, %v2074_v47  ;;  %v2304_v52 = vunpack.c.l.bf16 %v2317_v19  ;;  %v2305_v54 = vunpack.c.h.bf16 %v2317_v19 }
 0x86a   :  { %2605 = vmatprep.mubr.msk.bf16.mxu0 %vm2090_vm4, %v2080_v32 }
 0x870   :  { %v2638_v44 = vpop.permute.xlu1 %2637 }
 0x871   :  { %v2640_v15 = vunpack.i.h.bf16 %v2638_v44  ;;  %v2639_v56 = vunpack.i.l.bf16 %v2638_v44 }
 0x873   :  { %v2077_v43 = vsel %vm287_vm2, %v3170_v0, %v2640_v15  ;;  %v2076_v58 = vsel %vm287_vm2, %v3162_v31, %v2639_v56 }
 0x874   :  { %v2081_v59 = vpack.c.bf16 %v2077_v43, %v2076_v58 }
 0x876   :  { %2606 = vmatmul.mubr.msk.bf16.gmra.mxu0 %vm2090_vm4, %v2081_v59 }
 0x922   :  { %v2603_v18 = vpop.f32.mrf.mxu0 }
 0x923   :  { %v2177_v0 = vadd.f32 %v2603_v18, %v2281_v38 }
 0x924   :  { %v2137_v13 = vpop.f32.mrf.mxu0 }
 0x925   :  { %v2185_v31 = vadd.f32 %v2780_v3, %v2177_v0  ;;  %v2175_v50 = vadd.f32 %v2281_v38, %v2137_v13 }
 0x926   :  { %v2604_v26 = vpop.f32.mrf.mxu0 }
 0x927   :  { %v2209_v62 = vadd.f32 %v2304_v52, %v2185_v31  ;;  %v2183_v46 = vadd.f32 %v2778_v2, %v2175_v50  ;;  %v2178_v33 = vadd.f32 %v2604_v26, %v2281_v38 }
 0x928   :  { %v2140_v42 = vpop.f32.mrf.mxu0 }
 0x929   :  { %v2217_v51 = vpack.c.bf16 %v2209_v62, %v2209_v62  ;;  %v2207_v60 = vadd.f32 %v2300_v63, %v2183_v46  ;;  %v2186_v49 = vadd.f32 %v2784_v5, %v2178_v33  ;;  %v2176_v57 = vadd.f32 %v2281_v38, %v2140_v42 }
 0x92b   :  { %2226 = vst.msk [vmem:[%s3373_s7 + $0x8] sm:$0xf] %vm2223_vm5, %v2217_v51  ;;  %v2215_v3 = vpack.c.bf16 %v2207_v60, %v2207_v60  ;;  %v2210_v8 = vadd.f32 %v2305_v54, %v2186_v49  ;;  %v2184_v6 = vadd.f32 %v2782_v4, %v2176_v57  ;;  %v2319_v4 = vld [vmem:[%s3371_s1 + $0x18] sm:$0xff]  }
 0x92c   :  { %v2312_v22 = vunpack.c.l.bf16 %v2319_v4  ;;  %v2313_v23 = vunpack.c.h.bf16 %v2319_v4 }
 0x92d   :  { %2224 = vst.msk [vmem:[%s3373_s7] sm:$0xf] %vm2223_vm5, %v2215_v3  ;;  %v2218_v2 = vpack.c.bf16 %v2210_v8, %v2210_v8  ;;  %v2208_v10 = vadd.f32 %v2301_v21, %v2184_v6 }
 0x92f   :  { %2227 = vst.msk [vmem:[%s3373_s7 + $0xc] sm:$0xf] %vm2223_vm5, %v2218_v2  ;;  %v2216_v5 = vpack.c.bf16 %v2208_v10, %v2208_v10 }
 0x931   :  { %2225 = vst.msk [vmem:[%s3373_s7 + $0x4] sm:$0xf] %vm2223_vm5, %v2216_v5 }
 0x936   :  { %v2607_v7 = vpop.f32.mrf.mxu0 }
 0x937   :  { %v2181_v9 = vadd.f32 %v2607_v7, %v2281_v38 }
 0x938   :  { %v2153_v20 = vpop.f32.mrf.mxu0 }
 0x939   :  { %v2189_v25 = vadd.f32 %v2808_v16, %v2181_v9  ;;  %v2179_v45 = vadd.f32 %v2281_v38, %v2153_v20 }
 0x93a   :  { %v2608_v35 = vpop.f32.mrf.mxu0 }
 0x93b   :  { %v2213_v40 = vadd.f32 %v2312_v22, %v2189_v25  ;;  %v2187_v37 = vadd.f32 %v2797_v11, %v2179_v45  ;;  %v2182_v28 = vadd.f32 %v2608_v35, %v2281_v38 }
 0x93c   :  { %v2156_v39 = vpop.f32.mrf.mxu0 }
 0x93d   :  { %v2221_v41 = vpack.c.bf16 %v2213_v40, %v2213_v40  ;;  %v2211_v24 = vadd.f32 %v2308_v34, %v2187_v37  ;;  %v2190_v14 = vadd.f32 %v2810_v17, %v2182_v28  ;;  %v2180_v48 = vadd.f32 %v2281_v38, %v2156_v39 }
 0x93f   :  { %2230 = vst.msk [vmem:[%s3373_s7 + $0x18] sm:$0xf] %vm2223_vm5, %v2221_v41  ;;  %v2219_v16 = vpack.c.bf16 %v2211_v24, %v2211_v24  ;;  %v2214_v36 = vadd.f32 %v2313_v23, %v2190_v14  ;;  %v2188_v1 = vadd.f32 %v2799_v12, %v2180_v48 }
 0x941   :  { %2228 = vst.msk [vmem:[%s3373_s7 + $0x10] sm:$0xf] %vm2223_vm5, %v2219_v16  ;;  %v2222_v11 = vpack.c.bf16 %v2214_v36, %v2214_v36  ;;  %v2212_v27 = vadd.f32 %v2309_v29, %v2188_v1 }
 0x943   :  { %2231 = vst.msk [vmem:[%s3373_s7 + $0x1c] sm:$0xf] %vm2223_vm5, %v2222_v11  ;;  %v2220_v17 = vpack.c.bf16 %v2212_v27, %v2212_v27 }
 0x945   :  { %2229 = vst.msk [vmem:[%s3373_s7 + $0x14] sm:$0xf] %vm2223_vm5, %v2220_v17 }

// kernel: alphafold2_forward.9
= control target key start
LH: loop header
LB: loop body
LE: loop exit
PB: predicated region body
PF: predicated region fallthrough
CT: control target
= control target key end

     0   :  { %vm42_vm0 = vcmask 254976   ;;  %vm2716_vm1 = vmmov 0   ;;  %vm237_vm2 = vcmask 261120   ;;  %vm337_vm3 = vcmask 64512   ;;  %s2720_s19 = smov 104   ;;  %s2721_s20 = smov 120   ;;  %s3343_s0 = inlined_call_operand.vmem [shape: bf16[8,2,32], index: 0, kind: input, shape index: {}]   ;;  %s3344_s3 = inlined_call_operand.vmem [shape: bf16[32,48], index: 3, kind: input, shape index: {}]   ;;  %s3345_s1 = inlined_call_operand.vmem [shape: f32[1,32], index: 1, kind: input, shape index: {}]   ;;  %s3346_s2 = inlined_call_operand.vmem [shape: f32[1,32], index: 2, kind: input, shape index: {}]   ;;  %s3347_s4 = inlined_call_operand.vmem [shape: bf16[16,32], index: 4, kind: input, shape index: {}]   ;;  %s3348_s5 = inlined_call_operand.vmem [shape: f32[1,32], index: 5, kind: input, shape index: {}]   ;;  %s3349_s6 = inlined_call_operand.vmem [shape: bf16[8,2,32], index: 6, kind: output, shape index: {}]  }
   0x1   :  { %v24_v0 = vld [vmem:[%s3343_s0] sm:$0x1]  ;;  %v26_v1 = vld [vmem:[%s3343_s0 + $0x2] sm:$0x1]  ;;  %v25_v2 = vld [vmem:[%s3343_s0 + $0x1] sm:$0x1] }
   0x2   :  { %v32_v3 = vunpack.c.l.bf16 %v24_v0  ;;  %v34_v4 = vunpack.c.l.bf16 %v26_v1  ;;  %v33_v5 = vunpack.c.l.bf16 %v25_v2  ;;  %v27_v6 = vld [vmem:[%s3343_s0 + $0x3] sm:$0x1]  ;;  %v28_v8 = vld [vmem:[%s3343_s0 + $0x4] sm:$0x1]  ;;  %v29_v9 = vld [vmem:[%s3343_s0 + $0x5] sm:$0x1] }
   0x3   :  { %v35_v7 = vunpack.c.l.bf16 %v27_v6  ;;  %v36_v14 = vunpack.c.l.bf16 %v28_v8  ;;  %v37_v15 = vunpack.c.l.bf16 %v29_v9  ;;  %v30_v16 = vld [vmem:[%s3343_s0 + $0x6] sm:$0x1]  ;;  %v31_v17 = vld [vmem:[%s3343_s0 + $0x7] sm:$0x1]  ;;  %v2715_v0 = vmov 0.0   ;;  %v2632_v1 = vld [vmem:[%s3344_s3 + $0x8] sm:$0xff]  }
   0x4   :  { %v43_v10 = vsel %vm42_vm0, %v32_v3, 0.0  ;;  %v49_v11 = vsel %vm42_vm0, %v34_v4, 0.0  ;;  %v46_v12 = vsel %vm42_vm0, %v33_v5, 0.0  ;;  %v38_v20 = vunpack.c.l.bf16 %v30_v16  ;;  %2417 = vmatprep.subr.bf16.mxu0 %v2715_v0  ;;  %2421 = vmatprep.mubr.msk.bf16.mxu0 %vm2716_vm1, %v2715_v0  ;;  %v2633_v2 = vld [vmem:[%s3344_s3] sm:$0xff]   ;;  %s2722_s21 = smov 88   ;;  %s2723_s22 = smov 8  }
   0x5   :  { %44 = vadd.xlane.f32.xlu0 %v43_v10  ;;  %50 = vadd.xlane.f32.xlu1 %v49_v11  ;;  %v52_v13 = vsel %vm42_vm0, %v35_v7, 0.0  ;;  %v55_v18 = vsel %vm42_vm0, %v36_v14, 0.0  ;;  %v58_v19 = vsel %vm42_vm0, %v37_v15, 0.0  ;;  %v39_v21 = vunpack.c.l.bf16 %v31_v17 }
   0x6   :  { %v61_v22 = vsel %vm42_vm0, %v38_v20, 0.0  ;;  %2425 = vmatprep.subr.bf16.mxu1 %v2715_v0  ;;  %2427 = vmatprep.mubr.msk.bf16.mxu1 %vm2716_vm1, %v2715_v0  ;;  %vm830_vm4 = vcmask 1040384   ;;  %vm727_vm5 = vcmask 9216   ;;  %vm826_vm6 = vcmask 15360  }
   0x7   :  { %v64_v23 = vsel %vm42_vm0, %v39_v21, 0.0  ;;  %2418 = vmatpush3.bf16.msra.mxu0 %v2632_v1  ;;  %vm2183_vm7 = vcmask 130048   ;;  %vm2295_vm8 = vcmask 253952  }
   0x8   :  { %2419 = vmatprep.subr.bf16.mxu0 %v2715_v0 }
   0x9   :  { %47 = vadd.xlane.f32.xlu0 %v46_v12  ;;  %53 = vadd.xlane.f32.xlu1 %v52_v13 }
   0xb   :  { %2420 = vmatpush3.bf16.msra.mxu0 %v2633_v2 }
   0xc   :  { %2431 = vmatprep.subr.bf16.mxu0 %v2715_v0 }
   0xd   :  { %56 = vadd.xlane.f32.xlu0 %v55_v18  ;;  %59 = vadd.xlane.f32.xlu1 %v58_v19 }
  0x11   :  { %62 = vadd.xlane.f32.xlu0 %v61_v22  ;;  %65 = vadd.xlane.f32.xlu1 %v64_v23 }
  0x8e   :  { %v45_v24 = vpop.xlane.xlu0 %44  ;;  %v51_v25 = vpop.xlane.xlu1 %50 }
  0x8f   :  { %v68_v26 = vmul.f32 0.03125, %v45_v24  ;;  %v70_v27 = vmul.f32 0.03125, %v51_v25 }
  0x91   :  { %v2791_v28 = vsub.f32 %v32_v3, %v68_v26  ;;  %v2793_v29 = vsub.f32 %v34_v4, %v70_v27 }
  0x92   :  { %v48_v30 = vpop.xlane.xlu0 %47  ;;  %v54_v31 = vpop.xlane.xlu1 %53 }
  0x93   :  { %v69_v32 = vmul.f32 0.03125, %v48_v30  ;;  %v71_v33 = vmul.f32 0.03125, %v54_v31  ;;  %v84_v34 = vmul.f32 %v2791_v28, %v2791_v28  ;;  %v86_v35 = vmul.f32 %v2793_v29, %v2793_v29 }
  0x95   :  { %v2799_v36 = vsub.f32 %v33_v5, %v69_v32  ;;  %v2801_v37 = vsub.f32 %v35_v7, %v71_v33  ;;  %v92_v38 = vsel %vm42_vm0, %v84_v34, 0.0  ;;  %v98_v41 = vsel %vm42_vm0, %v86_v35, 0.0 }
  0x96   :  { %93 = vadd.xlane.f32.xlu0 %v92_v38  ;;  %v57_v39 = vpop.xlane.xlu0 %56  ;;  %v60_v40 = vpop.xlane.xlu1 %59 }
  0x97   :  { %v72_v42 = vmul.f32 0.03125, %v57_v39  ;;  %v73_v43 = vmul.f32 0.03125, %v60_v40  ;;  %v85_v44 = vmul.f32 %v2799_v36, %v2799_v36  ;;  %v87_v45 = vmul.f32 %v2801_v37, %v2801_v37  ;;  %v2308_v39 = vld [vmem:[%s3345_s1] ss:$0 sm:$0xff]  ;;  %s2718_s1 = smov 112  }
  0x99   :  { %v2809_v46 = vsub.f32 %v36_v14, %v72_v42  ;;  %v2811_v47 = vsub.f32 %v37_v15, %v73_v43  ;;  %v95_v48 = vsel %vm42_vm0, %v85_v44, 0.0  ;;  %v101_v51 = vsel %vm42_vm0, %v87_v45, 0.0 }
  0x9a   :  { %99 = vadd.xlane.f32.xlu0 %v98_v41  ;;  %96 = vadd.xlane.f32.xlu1 %v95_v48  ;;  %v63_v49 = vpop.xlane.xlu0 %62  ;;  %v66_v50 = vpop.xlane.xlu1 %65  ;;  %v2717_v45 = vmov 1983009808  }
  0x9b   :  { %v74_v52 = vmul.f32 0.03125, %v63_v49  ;;  %v75_v53 = vmul.f32 0.03125, %v66_v50  ;;  %v88_v54 = vmul.f32 %v2809_v46, %v2809_v46  ;;  %v89_v55 = vmul.f32 %v2811_v47, %v2811_v47 }
  0x9c   :  { %v187_v48 = vunpack.c.l.s4 %v2717_v45  ;;  %v189_v49 = vlaneseq }
  0x9d   :  { %v2819_v56 = vsub.f32 %v38_v20, %v74_v52  ;;  %v2821_v57 = vsub.f32 %v39_v21, %v75_v53  ;;  %v104_v58 = vsel %vm42_vm0, %v88_v54, 0.0  ;;  %v107_v59 = vsel %vm42_vm0, %v89_v55, 0.0 }
  0x9e   :  { %102 = vadd.xlane.f32.xlu1 %v101_v51  ;;  %105 = vadd.xlane.f32.xlu0 %v104_v58  ;;  %v2309_v51 = vld [vmem:[%s3346_s2] ss:$0 sm:$0xff]  ;;  %v188_v58 = vunpack.c.0.s8 %v187_v48  ;;  %s2719_s2 = smov 96  }
  0x9f   :  { %v90_v60 = vmul.f32 %v2819_v56, %v2819_v56  ;;  %v91_v61 = vmul.f32 %v2821_v57, %v2821_v57 }
  0xa1   :  { %v110_v62 = vsel %vm42_vm0, %v90_v60, 0.0  ;;  %v113_v63 = vsel %vm42_vm0, %v91_v61, 0.0 }
  0xa2   :  { %108 = vadd.xlane.f32.xlu1 %v107_v59  ;;  %111 = vadd.xlane.f32.xlu0 %v110_v62  ;;  %v190_v59 = vshrl.u32 %v189_v49, 7 }
  0xa6   :  { %114 = vadd.xlane.f32.xlu1 %v113_v63 }
 0x11f   :  { %v94_v3 = vpop.xlane.xlu0 %93 }
 0x120   :  { %v116_v4 = vmul.f32 0.03125, %v94_v3  ;;  %v2859_v3 = vsub.s32 %v188_v58, %v190_v59 }
 0x122   :  { %v124_v11 = vadd.f32 1e-05, %v116_v4 }
 0x123   :  { %v97_v5 = vpop.xlane.xlu1 %96  ;;  %v100_v6 = vpop.xlane.xlu0 %99 }
 0x124   :  { %v117_v7 = vmul.f32 0.03125, %v97_v5  ;;  %v118_v8 = vmul.f32 0.03125, %v100_v6 }
 0x126   :  { %v125_v9 = vadd.f32 1e-05, %v117_v7  ;;  %v126_v10 = vadd.f32 1e-05, %v118_v8 }
 0x127   :  { %v103_v12 = vpop.xlane.xlu1 %102  ;;  %v106_v13 = vpop.xlane.xlu0 %105 }
 0x128   :  { %v119_v14 = vmul.f32 0.03125, %v103_v12  ;;  %v120_v15 = vmul.f32 0.03125, %v106_v13  ;;  %2635 = vrsqrt.f32 %v125_v9 }
 0x129   :  { %2637 = vrsqrt.f32 %v126_v10 }
 0x12a   :  { %v127_v16 = vadd.f32 1e-05, %v119_v14  ;;  %v128_v17 = vadd.f32 1e-05, %v120_v15  ;;  %2639 = vrsqrt.f32 %v124_v11 }
 0x12b   :  { %v109_v18 = vpop.xlane.xlu1 %108  ;;  %v112_v19 = vpop.xlane.xlu0 %111 }
 0x12c   :  { %2641 = vrsqrt.f32 %v127_v16  ;;  %v121_v20 = vmul.f32 0.03125, %v109_v18  ;;  %v122_v21 = vmul.f32 0.03125, %v112_v19 }
 0x12d   :  { %2643 = vrsqrt.f32 %v128_v17 }
 0x12e   :  { %v129_v22 = vadd.f32 1e-05, %v121_v20  ;;  %v130_v23 = vadd.f32 1e-05, %v122_v21 }
 0x12f   :  { %v115_v24 = vpop.xlane.xlu1 %114 }
 0x130   :  { %2645 = vrsqrt.f32 %v129_v22  ;;  %v123_v25 = vmul.f32 0.03125, %v115_v24 }
 0x131   :  { %2647 = vrsqrt.f32 %v130_v23 }
 0x132   :  { %v131_v26 = vadd.f32 1e-05, %v123_v25 }
 0x134   :  { %2649 = vrsqrt.f32 %v131_v26 }
 0x135   :  { %v2636_v27 = vpop.eup %2635 }
 0x136   :  { %v2638_v30 = vpop.eup %2637  ;;  %v141_v33 = vmul.f32 %v2636_v27, %v2799_v36 }
 0x137   :  { %v2640_v31 = vpop.eup %2639  ;;  %v142_v35 = vmul.f32 %v2638_v30, %v2793_v29 }
 0x138   :  { %v140_v40 = vmul.f32 %v2640_v31, %v2791_v28  ;;  %v155_v44 = vmul.f32 %v2308_v39, %v141_v33 }
 0x139   :  { %v2642_v32 = vpop.eup %2641  ;;  %v156_v29 = vmul.f32 %v2308_v39, %v142_v35 }
 0x13a   :  { %v2644_v34 = vpop.eup %2643  ;;  %v143_v38 = vmul.f32 %v2642_v32, %v2801_v37  ;;  %v154_v52 = vmul.f32 %v2308_v39, %v140_v40  ;;  %v169_v55 = vadd.f32 %v2309_v51, %v155_v44 }
 0x13b   :  { %v144_v41 = vmul.f32 %v2644_v34, %v2809_v46  ;;  %v170_v62 = vadd.f32 %v2309_v51, %v156_v29 }
 0x13c   :  { %v157_v42 = vmul.f32 %v2308_v39, %v143_v38  ;;  %v168_v1 = vadd.f32 %v2309_v51, %v154_v52 }
 0x13d   :  { %v2646_v43 = vpop.eup %2645  ;;  %v158_v28 = vmul.f32 %v2308_v39, %v144_v41 }
 0x13e   :  { %v2648_v36 = vpop.eup %2647  ;;  %v145_v50 = vmul.f32 %v2646_v43, %v2811_v47  ;;  %v171_v46 = vadd.f32 %v2309_v51, %v157_v42  ;;  %v184_v6 = vcombine.low %v168_v1, %v169_v55 }
 0x13f   :  { %v146_v37 = vmul.f32 %v2648_v36, %v2819_v56  ;;  %v172_v56 = vadd.f32 %v2309_v51, %v158_v28 }
 0x140   :  { %v159_v53 = vmul.f32 %v2308_v39, %v145_v50  ;;  %v185_v2 = vcombine.low %v170_v62, %v171_v46  ;;  %v192_v10 = vrot.slane %v184_v6, %v2859_v3 }
 0x141   :  { %v2650_v54 = vpop.eup %2649  ;;  %v160_v61 = vmul.f32 %v2308_v39, %v146_v37 }
 0x142   :  { %v147_v60 = vmul.f32 %v2650_v54, %v2821_v57  ;;  %v173_v47 = vadd.f32 %v2309_v51, %v159_v53  ;;  %v199_v8 = vrot.slane %v185_v2, %v2859_v3 }
 0x143   :  { %v174_v4 = vadd.f32 %v2309_v51, %v160_v61 }
 0x144   :  { %v161_v63 = vmul.f32 %v2308_v39, %v147_v60  ;;  %v201_v7 = vcombine.low %v172_v56, %v173_v47  ;;  %v200_v12 = vcombine.low %v192_v10, %v199_v8 }
 0x146   :  { %v175_v5 = vadd.f32 %v2309_v51, %v161_v63  ;;  %v209_v57 = vrot.slane %v201_v7, %v2859_v3 }
 0x148   :  { %v202_v9 = vcombine.low %v174_v4, %v175_v5 }
 0x14a   :  { %v216_v11 = vrot.slane %v202_v9, %v2859_v3 }
 0x14c   :  { %v217_v13 = vcombine.low %v209_v57, %v216_v11 }
 0x14e   :  { %v220_v14 = vpack.c.bf16 %v217_v13, %v200_v12 }
 0x150   :  { %2422 = vmatmul.mubr.msk.bf16.vlgmr.msra.gmra.mxu0 %vm237_vm2, %v220_v14 }
 0x151   :  { %2433 = vmatprep.mubr.msk.bf16.mxu0 %vm2716_vm1, %v2715_v0 }
 0x210   :  { %v275_v15 = vpop.f32.mrf.mxu0 }
 0x211   :  { %v284_v16 = vcombine.high %v275_v15, %v275_v15  ;;  %v291_v17 = vrot.slane %v275_v15, %v2859_v3 }
 0x212   :  { %v2423_v18 = vpop.f32.mrf.mxu0 }
 0x213   :  { %v299_v19 = vcombine.high %v291_v17, %v291_v17  ;;  %v2868_v20 = vpack.c.bf16 %v291_v17, %v291_v17  ;;  %v298_v22 = vrot.slane %v284_v16, %v2859_v3 }
 0x214   :  { %v278_v21 = vpop.f32.mrf.mxu0 }
 0x215   :  { %v2871_v23 = vpack.c.bf16 %v299_v19, %v299_v19  ;;  %v301_v24 = vcombine.high %v278_v21, %v278_v21  ;;  %335 = vrot.lane.b32.xlu0 %v2868_v20, %s2718_s1  ;;  %v308_v25 = vrot.slane %v278_v21, %v2859_v3  ;;  %v300_v31 = vcombine.high %v298_v22, %v298_v22 }
 0x216   :  { %v2424_v26 = vpop.f32.mrf.mxu0  ;;  %v2879_v32 = vpack.c.bf16 %v298_v22, %v298_v22 }
 0x217   :  { %385 = vrot.lane.b32.xlu1 %v2871_v23, %s2718_s1  ;;  %v315_v27 = vrot.slane %v301_v24, %v2859_v3  ;;  %v2877_v30 = vpack.c.bf16 %v308_v25, %v308_v25  ;;  %v2885_v34 = vpack.c.bf16 %v300_v31, %v300_v31  ;;  %v316_v35 = vcombine.high %v308_v25, %v308_v25 }
 0x219   :  { %532 = vrot.lane.b32.xlu0 %v2877_v30, %s2718_s1  ;;  %v2883_v33 = vpack.c.bf16 %v315_v27, %v315_v27  ;;  %v317_v38 = vcombine.high %v315_v27, %v315_v27  ;;  %v2889_v39 = vpack.c.bf16 %v316_v35, %v316_v35 }
 0x21b   :  { %434 = vrot.lane.b32.xlu1 %v2879_v32, %s2718_s1  ;;  %v2894_v40 = vpack.c.bf16 %v317_v38, %v317_v38 }
 0x21d   :  { %630 = vrot.lane.b32.xlu0 %v2883_v33, %s2718_s1 }
 0x21f   :  { %483 = vrot.lane.b32.xlu1 %v2885_v34, %s2718_s1 }
 0x221   :  { %824 = vrot.lane.b32.xlu0 %v2868_v20, %s2719_s2 }
 0x223   :  { %581 = vrot.lane.b32.xlu1 %v2889_v39, %s2718_s1 }
 0x227   :  { %679 = vrot.lane.b32.xlu1 %v2894_v40, %s2718_s1 }
 0x22b   :  { %874 = vrot.lane.b32.xlu1 %v2871_v23, %s2719_s2 }
 0x22f   :  { %922 = vrot.lane.b32.xlu1 %v2879_v32, %s2719_s2 }
 0x233   :  { %970 = vrot.lane.b32.xlu1 %v2885_v34, %s2719_s2 }
 0x287   :  { %v336_v41 = vpop.permute.xlu0 %335 }
 0x288   :  { %v342_v42 = vsel %vm337_vm3, %v336_v41, 0 }
 0x289   :  { %2426 = vmatpush3.bf16.xpose.msra.mxu1 %v342_v42  ;;  %v386_v43 = vpop.permute.xlu1 %385 }
 0x28a   :  { %v391_v44 = vsel %vm337_vm3, %v386_v43, 0  ;;  %2437 = vmatprep.subr.bf16.mxu1 %v2715_v0 }
 0x28b   :  { %2432 = vmatpush3.bf16.xpose.msra.mxu0 %v391_v44  ;;  %v533_v50 = vpop.permute.xlu0 %532 }
 0x28c   :  { %2443 = vmatprep.subr.bf16.mxu0 %v2715_v0  ;;  %v538_v37 = vsel %vm337_vm3, %v533_v50, 0 }
 0x28d   :  { %v435_v45 = vpop.permute.xlu1 %434 }
 0x28e   :  { %v440_v48 = vsel %vm337_vm3, %v435_v45, 0 }
 0x28f   :  { %v631_v52 = vpop.permute.xlu0 %630 }
 0x290   :  { %2428 = vmatmul.mubr.msk.bf16.vlgmr.msra.gmra.mxu1 %vm337_vm3, %v2868_v20  ;;  %v636_v53 = vsel %vm337_vm3, %v631_v52, 0 }
 0x291   :  { %2438 = vmatpush3.bf16.xpose.msra.mxu1 %v440_v48  ;;  %v484_v49 = vpop.permute.xlu1 %483  ;;  %2439 = vmatprep.mubr.msk.bf16.mxu1 %vm2716_vm1, %v2715_v0 }
 0x292   :  { %v489_v36 = vsel %vm337_vm3, %v484_v49, 0  ;;  %2434 = vmatmul.mubr.msk.bf16.vlgmr.msra.gmra.mxu0 %vm337_vm3, %v2871_v23  ;;  %2449 = vmatprep.subr.bf16.mxu1 %v2715_v0 }
 0x293   :  { %2444 = vmatpush3.bf16.xpose.msra.mxu0 %v489_v36  ;;  %2445 = vmatprep.mubr.msk.bf16.mxu0 %vm2716_vm1, %v2715_v0  ;;  %v825_v54 = vpop.permute.xlu0 %824 }
 0x294   :  { %2455 = vmatprep.subr.bf16.mxu0 %v2715_v0  ;;  %v832_v58 = vsel %vm830_vm4, %v825_v54, 0 }
 0x295   :  { %v582_v29 = vpop.permute.xlu1 %581 }
 0x296   :  { %v587_v51 = vsel %vm337_vm3, %v582_v29, 0 }
 0x298   :  { %2440 = vmatmul.mubr.msk.bf16.vlgmr.msra.gmra.mxu1 %vm337_vm3, %v2879_v32 }
 0x299   :  { %2450 = vmatpush3.bf16.xpose.msra.mxu1 %v538_v37  ;;  %2451 = vmatprep.mubr.msk.bf16.mxu1 %vm2716_vm1, %v2715_v0  ;;  %v680_v28 = vpop.permute.xlu1 %679 }
 0x29a   :  { %2446 = vmatmul.mubr.msk.bf16.vlgmr.msra.gmra.mxu0 %vm337_vm3, %v2885_v34  ;;  %2461 = vmatprep.subr.bf16.mxu1 %v2715_v0  ;;  %v685_v46 = vsel %vm337_vm3, %v680_v28, 0 }
 0x29b   :  { %2456 = vmatpush3.bf16.xpose.msra.mxu0 %v587_v51  ;;  %2457 = vmatprep.mubr.msk.bf16.mxu0 %vm2716_vm1, %v2715_v0 }
 0x29c   :  { %2467 = vmatprep.subr.bf16.mxu0 %v2715_v0 }
 0x29d   :  { %v875_v55 = vpop.permute.xlu1 %874 }
 0x29e   :  { %v880_v59 = vsel %vm830_vm4, %v875_v55, 0 }
 0x2a0   :  { %2452 = vmatmul.mubr.msk.bf16.vlgmr.msra.gmra.mxu1 %vm337_vm3, %v2877_v30 }
 0x2a1   :  { %2462 = vmatpush3.bf16.xpose.msra.mxu1 %v636_v53  ;;  %2463 = vmatprep.mubr.msk.bf16.mxu1 %vm2716_vm1, %v2715_v0  ;;  %v2973_v49 = vpop.permute.xlu1 %922 }
 0x2a2   :  { %2458 = vmatmul.mubr.msk.bf16.vlgmr.msra.gmra.mxu0 %vm337_vm3, %v2889_v39  ;;  %2473 = vmatprep.subr.bf16.mxu1 %v2715_v0 }
 0x2a3   :  { %2468 = vmatpush3.bf16.xpose.msra.mxu0 %v685_v46  ;;  %2469 = vmatprep.mubr.msk.bf16.mxu0 %vm2716_vm1, %v2715_v0 }
 0x2a4   :  { %2479 = vmatprep.subr.bf16.mxu0 %v2715_v0 }
 0x2a5   :  { %v2975_v36 = vpop.permute.xlu1 %970 }
 0x2a8   :  { %2464 = vmatmul.mubr.msk.bf16.vlgmr.msra.gmra.mxu1 %vm337_vm3, %v2883_v33 }
 0x2a9   :  { %2474 = vmatpush3.bf16.msra.mxu1 %v832_v58  ;;  %2475 = vmatprep.mubr.msk.bf16.mxu1 %vm2716_vm1, %v2715_v0 }
 0x2aa   :  { %2470 = vmatmul.mubr.msk.bf16.vlgmr.msra.gmra.mxu0 %vm337_vm3, %v2894_v40  ;;  %2485 = vmatprep.subr.bf16.mxu1 %v2715_v0 }
 0x2ab   :  { %2480 = vmatpush3.bf16.msra.mxu0 %v880_v59  ;;  %2481 = vmatprep.mubr.msk.bf16.mxu0 %vm2716_vm1, %v2715_v0 }
 0x2ac   :  { %2491 = vmatprep.subr.bf16.mxu0 %v2715_v0 }
 0x350   :  { %v378_v60 = vpop.f32.mrf.mxu1 }
 0x351   :  { %v728_v61 = vsel %vm727_vm5, %v378_v60, -inf }
 0x352   :  { %v2429_v62 = vpop.f32.mrf.mxu1  ;;  %729 = vmax.xlane.f32.xlu0 %v728_v61  ;;  %v427_v47 = vpop.f32.mrf.mxu0 }
 0x353   :  { %v731_v63 = vsel %vm727_vm5, %v427_v47, -inf }
 0x354   :  { %v381_v1 = vpop.f32.mrf.mxu1  ;;  %732 = vmax.xlane.f32.xlu1 %v731_v63  ;;  %v2435_v56 = vpop.f32.mrf.mxu0 }
 0x356   :  { %v2430_v2 = vpop.f32.mrf.mxu1  ;;  %v430_v4 = vpop.f32.mrf.mxu0 }
 0x358   :  { %v2436_v5 = vpop.f32.mrf.mxu0  ;;  %v476_v6 = vpop.f32.mrf.mxu1 }
 0x359   :  { %v734_v7 = vsel %vm727_vm5, %v476_v6, -inf }
 0x35a   :  { %v2441_v8 = vpop.f32.mrf.mxu1  ;;  %735 = vmax.xlane.f32.xlu0 %v734_v7  ;;  %v525_v9 = vpop.f32.mrf.mxu0 }
 0x35b   :  { %v737_v11 = vsel %vm727_vm5, %v525_v9, -inf }
 0x35c   :  { %v479_v10 = vpop.f32.mrf.mxu1  ;;  %v2447_v57 = vpop.f32.mrf.mxu0 }
 0x35e   :  { %v2442_v12 = vpop.f32.mrf.mxu1  ;;  %738 = vmax.xlane.f32.xlu0 %v737_v11  ;;  %v528_v13 = vpop.f32.mrf.mxu0 }
 0x360   :  { %v2448_v14 = vpop.f32.mrf.mxu0  ;;  %v574_v15 = vpop.f32.mrf.mxu1 }
 0x361   :  { %v740_v16 = vsel %vm727_vm5, %v574_v15, -inf }
 0x362   :  { %v2453_v17 = vpop.f32.mrf.mxu1  ;;  %741 = vmax.xlane.f32.xlu0 %v740_v16  ;;  %v2960_v18 = vpop.f32.mrf.mxu0 }
 0x363   :  { %v743_v19 = vsel %vm727_vm5, %v2960_v18, -inf }
 0x364   :  { %v577_v21 = vpop.f32.mrf.mxu1  ;;  %744 = vmax.xlane.f32.xlu1 %v743_v19  ;;  %v2459_v22 = vpop.f32.mrf.mxu0 }
 0x366   :  { %v2454_v24 = vpop.f32.mrf.mxu1  ;;  %v626_v25 = vpop.f32.mrf.mxu0 }
 0x368   :  { %v2460_v26 = vpop.f32.mrf.mxu0  ;;  %v672_v27 = vpop.f32.mrf.mxu1 }
 0x369   :  { %v746_v31 = vsel %vm727_vm5, %v672_v27, -inf }
 0x36a   :  { %v2465_v35 = vpop.f32.mrf.mxu1  ;;  %747 = vmax.xlane.f32.xlu0 %v746_v31  ;;  %v2965_v38 = vpop.f32.mrf.mxu0 }
 0x36b   :  { %v749_v48 = vsel %vm727_vm5, %v2965_v38, -inf }
 0x36c   :  { %v675_v41 = vpop.f32.mrf.mxu1  ;;  %v2471_v42 = vpop.f32.mrf.mxu0 }
 0x36e   :  { %v2466_v43 = vpop.f32.mrf.mxu1  ;;  %v724_v44 = vpop.f32.mrf.mxu0 }
 0x370   :  { %v2472_v45 = vpop.f32.mrf.mxu0 }
 0x375   :  { %1066 = vrot.lane.b32.xlu1 %v2889_v39, %s2719_s2 }
 0x380   :  { %1018 = vrot.lane.b32.xlu0 %v2877_v30, %s2719_s2 }
 0x399   :  { %750 = vmax.xlane.f32.xlu1 %v749_v48 }
 0x3db   :  { %v730_v50 = vpop.xlane.xlu0 %729 }
 0x3dc   :  { %v752_v29 = vsub.f32 %v378_v60, %v730_v50  ;;  %v928_v50 = vsel %vm830_vm4, %v2973_v49, 0 }
 0x3dd   :  { %v733_v37 = vpop.xlane.xlu1 %732 }
 0x3de   :  { %v760_v51 = vmul.f32 1.442695, %v752_v29  ;;  %v753_v52 = vsub.f32 %v427_v47, %v733_v37  ;;  %v976_v37 = vsel %vm830_vm4, %v2975_v36, 0 }
 0x3e0   :  { %2651 = vpow2.f32 %v760_v51  ;;  %v762_v28 = vmul.f32 1.442695, %v753_v52 }
 0x3e2   :  { %2653 = vpow2.f32 %v762_v28 }
 0x3e3   :  { %v736_v53 = vpop.xlane.xlu0 %735 }
 0x3e4   :  { %v754_v46 = vsub.f32 %v476_v6, %v736_v53 }
 0x3e6   :  { %v764_v54 = vmul.f32 1.442695, %v754_v46 }
 0x3e7   :  { %v739_v55 = vpop.xlane.xlu0 %738 }
 0x3e8   :  { %2655 = vpow2.f32 %v764_v54  ;;  %v755_v58 = vsub.f32 %v525_v9, %v739_v55 }
 0x3ea   :  { %v766_v59 = vmul.f32 1.442695, %v755_v58 }
 0x3eb   :  { %v742_v61 = vpop.xlane.xlu0 %741 }
 0x3ec   :  { %2657 = vpow2.f32 %v766_v59  ;;  %v756_v62 = vsub.f32 %v574_v15, %v742_v61 }
 0x3ed   :  { %v2977_v63 = vpop.eup %2651  ;;  %v745_v9 = vpop.xlane.xlu1 %744 }
 0x3ee   :  { %v768_v1 = vmul.f32 1.442695, %v756_v62  ;;  %v776_v60 = vsel %vm727_vm5, %v2977_v63, 0.0  ;;  %v757_v10 = vsub.f32 %v2960_v18, %v745_v9 }
 0x3ef   :  { %v2981_v47 = vpop.eup %2653  ;;  %777 = vadd.xlane.f32.xlu0 %v776_v60 }
 0x3f0   :  { %2659 = vpow2.f32 %v768_v1  ;;  %v779_v56 = vsel %vm727_vm5, %v2981_v47, 0.0  ;;  %v770_v11 = vmul.f32 1.442695, %v757_v10 }
 0x3f1   :  { %780 = vadd.xlane.f32.xlu1 %v779_v56  ;;  %v3012_v18 = vpop.permute.xlu1 %1066 }
 0x3f2   :  { %2661 = vpow2.f32 %v770_v11  ;;  %v1072_v55 = vsel %vm830_vm4, %v3012_v18, 0 }
 0x3f3   :  { %v748_v57 = vpop.xlane.xlu0 %747 }
 0x3f4   :  { %v758_v12 = vsub.f32 %v672_v27, %v748_v57 }
 0x3f5   :  { %v2985_v2 = vpop.eup %2655 }
 0x3f6   :  { %v782_v4 = vsel %vm727_vm5, %v2985_v2, 0.0  ;;  %v772_v13 = vmul.f32 1.442695, %v758_v12 }
 0x3f7   :  { %783 = vadd.xlane.f32.xlu0 %v782_v4  ;;  %v1019_v26 = vpop.permute.xlu0 %1018 }
 0x3f8   :  { %2663 = vpow2.f32 %v772_v13  ;;  %v1024_v36 = vsel %vm830_vm4, %v1019_v26, 0 }
 0x3f9   :  { %v2989_v5 = vpop.eup %2657 }
 0x3fa   :  { %v785_v6 = vsel %vm727_vm5, %v2989_v5, 0.0 }
 0x3fb   :  { %786 = vadd.xlane.f32.xlu1 %v785_v6 }
 0x3fd   :  { %v2993_v7 = vpop.eup %2659 }
 0x3fe   :  { %v788_v8 = vsel %vm727_vm5, %v2993_v7, 0.0 }
 0x3ff   :  { %789 = vadd.xlane.f32.xlu0 %v788_v8  ;;  %v3002_v14 = vpop.eup %2661 }
 0x400   :  { %v791_v15 = vsel %vm727_vm5, %v3002_v14, 0.0 }
 0x405   :  { %v3006_v16 = vpop.eup %2663 }
 0x406   :  { %v794_v17 = vsel %vm727_vm5, %v3006_v16, 0.0 }
 0x40c   :  { %1162 = vrot.lane.b32.xlu1 %v2894_v40, %s2719_s2 }
 0x415   :  { %1114 = vrot.lane.b32.xlu0 %v2883_v33, %s2719_s2 }
 0x422   :  { %v751_v19 = vpop.xlane.xlu1 %750 }
 0x423   :  { %v759_v21 = vsub.f32 %v2965_v38, %v751_v19 }
 0x425   :  { %v774_v22 = vmul.f32 1.442695, %v759_v21 }
 0x427   :  { %2665 = vpow2.f32 %v774_v22 }
 0x430   :  { %792 = vadd.xlane.f32.xlu1 %v791_v15 }
 0x434   :  { %795 = vadd.xlane.f32.xlu0 %v794_v17  ;;  %v3027_v24 = vpop.eup %2665 }
 0x435   :  { %v797_v25 = vsel %vm727_vm5, %v3027_v24, 0.0 }
 0x441   :  { %1262 = vrot.lane.b32.xlu1 %v2871_v23, %s2720_s19 }
 0x44a   :  { %1212 = vrot.lane.b32.xlu0 %v2868_v20, %s2720_s19 }
 0x44e   :  { %1210 = vrot.lane.b32.xlu0 %v2868_v20, %s2721_s20 }
 0x452   :  { %1312 = vrot.lane.b32.xlu0 %v2879_v32, %s2720_s19 }
 0x456   :  { %1310 = vrot.lane.b32.xlu0 %v2879_v32, %s2721_s20 }
 0x45a   :  { %1412 = vrot.lane.b32.xlu0 %v2877_v30, %s2720_s19 }
 0x45e   :  { %1410 = vrot.lane.b32.xlu0 %v2877_v30, %s2721_s20 }
 0x462   :  { %1512 = vrot.lane.b32.xlu0 %v2883_v33, %s2720_s19 }
 0x465   :  { %798 = vadd.xlane.f32.xlu1 %v797_v25 }
 0x466   :  { %1510 = vrot.lane.b32.xlu0 %v2883_v33, %s2721_s20 }
 0x476   :  { %1260 = vrot.lane.b32.xlu1 %v2871_v23, %s2721_s20 }
 0x478   :  { %v778_v27 = vpop.xlane.xlu0 %777 }
 0x479   :  { %2667 = vrcp.f32 %v778_v27 }
 0x47a   :  { %1362 = vrot.lane.b32.xlu1 %v2885_v34, %s2720_s19  ;;  %v781_v31 = vpop.xlane.xlu1 %780 }
 0x47b   :  { %2669 = vrcp.f32 %v781_v31 }
 0x47e   :  { %1360 = vrot.lane.b32.xlu1 %v2885_v34, %s2721_s20 }
 0x480   :  { %v784_v35 = vpop.xlane.xlu0 %783 }
 0x481   :  { %2671 = vrcp.f32 %v784_v35 }
 0x482   :  { %1462 = vrot.lane.b32.xlu1 %v2889_v39, %s2720_s19 }
 0x484   :  { %v787_v38 = vpop.xlane.xlu1 %786 }
 0x485   :  { %2673 = vrcp.f32 %v787_v38 }
 0x486   :  { %v2668_v41 = vpop.eup %2667  ;;  %1460 = vrot.lane.b32.xlu1 %v2889_v39, %s2721_s20 }
 0x487   :  { %v808_v42 = vmul.f32 %v2668_v41, %v2977_v63 }
 0x488   :  { %v2670_v43 = vpop.eup %2669  ;;  %v790_v44 = vpop.xlane.xlu0 %789 }
 0x489   :  { %2675 = vrcp.f32 %v790_v44  ;;  %v816_v45 = vpack.c.bf16 %v808_v42, %v808_v42  ;;  %v809_v48 = vmul.f32 %v2670_v43, %v2981_v47  ;;  %v1163_v63 = vpop.permute.xlu1 %1162 }
 0x48a   :  { %1562 = vrot.lane.b32.xlu1 %v2894_v40, %s2720_s19 }
 0x48b   :  { %2476 = vmatmul.mubr.msk.bf16.vlgmr.msra.gmra.mxu1 %vm826_vm6, %v816_v45  ;;  %v817_v29 = vpack.c.bf16 %v809_v48, %v809_v48 }
 0x48c   :  { %2486 = vmatpush3.bf16.msra.mxu1 %v928_v50  ;;  %2487 = vmatprep.mubr.msk.bf16.mxu1 %vm2716_vm1, %v2715_v0  ;;  %v1115_v59 = vpop.permute.xlu0 %1114 }
 0x48d   :  { %2482 = vmatmul.mubr.msk.bf16.vlgmr.msra.gmra.mxu0 %vm826_vm6, %v817_v29  ;;  %2497 = vmatprep.subr.bf16.mxu1 %v2715_v0  ;;  %v1120_v62 = vsel %vm830_vm4, %v1115_v59, 0 }
 0x48e   :  { %v2672_v51 = vpop.eup %2671  ;;  %2492 = vmatpush3.bf16.msra.mxu0 %v976_v37  ;;  %1560 = vrot.lane.b32.xlu1 %v2894_v40, %s2721_s20 }
 0x48f   :  { %v810_v49 = vmul.f32 %v2672_v51, %v2985_v2  ;;  %2493 = vmatprep.mubr.msk.bf16.mxu0 %vm2716_vm1, %v2715_v0  ;;  %2503 = vmatprep.subr.bf16.mxu0 %v2715_v0 }
 0x491   :  { %v818_v52 = vpack.c.bf16 %v810_v49, %v810_v49 }
 0x492   :  { %v2674_v28 = vpop.eup %2673 }
 0x493   :  { %2488 = vmatmul.mubr.msk.bf16.vlgmr.msra.gmra.mxu1 %vm826_vm6, %v818_v52  ;;  %v811_v53 = vmul.f32 %v2674_v28, %v2989_v5 }
 0x494   :  { %2498 = vmatpush3.bf16.msra.mxu1 %v1024_v36  ;;  %2499 = vmatprep.mubr.msk.bf16.mxu1 %vm2716_vm1, %v2715_v0 }
 0x495   :  { %v819_v46 = vpack.c.bf16 %v811_v53, %v811_v53  ;;  %2509 = vmatprep.subr.bf16.mxu1 %v2715_v0 }
 0x496   :  { %v2676_v54 = vpop.eup %2675 }
 0x497   :  { %2494 = vmatmul.mubr.msk.bf16.vlgmr.msra.gmra.mxu0 %vm826_vm6, %v819_v46  ;;  %v812_v58 = vmul.f32 %v2676_v54, %v2993_v7  ;;  %v1168_v7 = vsel %vm830_vm4, %v1163_v63, 0 }
 0x498   :  { %2504 = vmatpush3.bf16.msra.mxu0 %v1072_v55  ;;  %2505 = vmatprep.mubr.msk.bf16.mxu0 %vm2716_vm1, %v2715_v0 }
 0x499   :  { %v820_v61 = vpack.c.bf16 %v812_v58, %v812_v58  ;;  %2515 = vmatprep.subr.bf16.mxu0 %v2715_v0 }
 0x49b   :  { %2500 = vmatmul.mubr.msk.bf16.vlgmr.msra.gmra.mxu1 %vm826_vm6, %v820_v61 }
 0x49c   :  { %2510 = vmatpush3.bf16.msra.mxu1 %v1120_v62  ;;  %2511 = vmatprep.mubr.msk.bf16.mxu1 %vm2716_vm1, %v2715_v0 }
 0x49d   :  { %2521 = vmatprep.subr.bf16.mxu1 %v2715_v0 }
 0x4b9   :  { %v793_v1 = vpop.xlane.xlu1 %792 }
 0x4ba   :  { %2677 = vrcp.f32 %v793_v1 }
 0x4bd   :  { %v796_v60 = vpop.xlane.xlu0 %795  ;;  %v1263_v18 = vpop.permute.xlu1 %1262 }
 0x4be   :  { %2679 = vrcp.f32 %v796_v60  ;;  %v1268_v35 = vsel %vm337_vm3, %v1263_v18, 0 }
 0x4c1   :  { %v1213_v47 = vpop.permute.xlu0 %1212 }
 0x4c2   :  { %v1218_v57 = vsel %vm337_vm3, %v1213_v47, 0 }
 0x4c5   :  { %v1211_v2 = vpop.permute.xlu0 %1210 }
 0x4c7   :  { %v2678_v56 = vpop.eup %2677 }
 0x4c8   :  { %v813_v4 = vmul.f32 %v2678_v56, %v3002_v14 }
 0x4c9   :  { %v1313_v9 = vpop.permute.xlu0 %1312 }
 0x4ca   :  { %v821_v5 = vpack.c.bf16 %v813_v4, %v813_v4  ;;  %v1318_v12 = vsel %vm337_vm3, %v1313_v9, 0 }
 0x4cb   :  { %v2680_v6 = vpop.eup %2679 }
 0x4cc   :  { %2506 = vmatmul.mubr.msk.bf16.vlgmr.msra.gmra.mxu0 %vm826_vm6, %v821_v5  ;;  %v814_v8 = vmul.f32 %v2680_v6, %v3006_v16 }
 0x4cd   :  { %2516 = vmatpush3.bf16.msra.mxu0 %v1168_v7  ;;  %2517 = vmatprep.mubr.msk.bf16.mxu0 %vm2716_vm1, %v2715_v0  ;;  %v1311_v11 = vpop.permute.xlu0 %1310 }
 0x4ce   :  { %v822_v10 = vpack.c.bf16 %v814_v8, %v814_v8  ;;  %2527 = vmatprep.subr.bf16.mxu0 %v2715_v0 }
 0x4d0   :  { %2512 = vmatmul.mubr.msk.bf16.vlgmr.msra.gmra.mxu1 %vm826_vm6, %v822_v10 }
 0x4d1   :  { %2522 = vmatpush3.bf16.xpose.msra.mxu1 %v1218_v57  ;;  %2523 = vmatprep.mubr.msk.bf16.mxu1 %vm2716_vm1, %v2715_v0  ;;  %v1413_v13 = vpop.permute.xlu0 %1412 }
 0x4d2   :  { %2533 = vmatprep.subr.bf16.mxu1 %v2715_v0  ;;  %v1418_v15 = vsel %vm337_vm3, %v1413_v13, 0 }
 0x4d5   :  { %v1411_v14 = vpop.permute.xlu0 %1410 }
 0x4d8   :  { %2524 = vmatmul.mubr.msk.bf16.vlgmr.msra.gmra.mxu1 %vm337_vm3, %v1211_v2 }
 0x4d9   :  { %2534 = vmatpush3.bf16.xpose.msra.mxu1 %v1318_v12  ;;  %2535 = vmatprep.mubr.msk.bf16.mxu1 %vm2716_vm1, %v2715_v0  ;;  %v1513_v16 = vpop.permute.xlu0 %1512 }
 0x4da   :  { %2545 = vmatprep.subr.bf16.mxu1 %v2715_v0  ;;  %v1518_v17 = vsel %vm337_vm3, %v1513_v16, 0 }
 0x4dd   :  { %v1511_v21 = vpop.permute.xlu0 %1510 }
 0x4e0   :  { %2536 = vmatmul.mubr.msk.bf16.vlgmr.msra.gmra.mxu1 %vm337_vm3, %v1311_v11 }
 0x4e1   :  { %2546 = vmatpush3.bf16.xpose.msra.mxu1 %v1418_v15  ;;  %2547 = vmatprep.mubr.msk.bf16.mxu1 %vm2716_vm1, %v2715_v0 }
 0x4e2   :  { %2557 = vmatprep.subr.bf16.mxu1 %v2715_v0 }
 0x4e8   :  { %2548 = vmatmul.mubr.msk.bf16.vlgmr.msra.gmra.mxu1 %vm337_vm3, %v1411_v14 }
 0x4e9   :  { %2558 = vmatpush3.bf16.xpose.msra.mxu1 %v1518_v17  ;;  %2559 = vmatprep.mubr.msk.bf16.mxu1 %vm2716_vm1, %v2715_v0 }
 0x4ea   :  { %2569 = vmatprep.subr.bf16.mxu1 %v2715_v0 }
 0x4ee   :  { %v799_v19 = vpop.xlane.xlu1 %798 }
 0x4ef   :  { %2681 = vrcp.f32 %v799_v19 }
 0x4f0   :  { %2560 = vmatmul.mubr.msk.bf16.vlgmr.msra.gmra.mxu1 %vm337_vm3, %v1511_v21 }
 0x4f1   :  { %2571 = vmatprep.mubr.msk.bf16.mxu1 %vm2716_vm1, %v2715_v0 }
 0x4f2   :  { %v1261_v22 = vpop.permute.xlu1 %1260 }
 0x4f6   :  { %v1363_v27 = vpop.permute.xlu1 %1362 }
 0x4f7   :  { %v1368_v41 = vsel %vm337_vm3, %v1363_v27, 0 }
 0x4fa   :  { %v1361_v38 = vpop.permute.xlu1 %1360 }
 0x4fc   :  { %v2682_v25 = vpop.eup %2681 }
 0x4fd   :  { %v815_v26 = vmul.f32 %v2682_v25, %v3027_v24 }
 0x4fe   :  { %v1463_v42 = vpop.permute.xlu1 %1462 }
 0x4ff   :  { %v823_v31 = vpack.c.bf16 %v815_v26, %v815_v26  ;;  %v1468_v43 = vsel %vm337_vm3, %v1463_v42, 0 }
 0x501   :  { %2518 = vmatmul.mubr.msk.bf16.vlgmr.msra.gmra.mxu0 %vm826_vm6, %v823_v31 }
 0x502   :  { %2528 = vmatpush3.bf16.xpose.msra.mxu0 %v1268_v35  ;;  %2529 = vmatprep.mubr.msk.bf16.mxu0 %vm2716_vm1, %v2715_v0  ;;  %v1461_v24 = vpop.permute.xlu1 %1460 }
 0x503   :  { %2539 = vmatprep.subr.bf16.mxu0 %v2715_v0 }
 0x506   :  { %v1563_v44 = vpop.permute.xlu1 %1562 }
 0x507   :  { %v1568_v45 = vsel %vm337_vm3, %v1563_v44, 0 }
 0x509   :  { %2530 = vmatmul.mubr.msk.bf16.vlgmr.msra.gmra.mxu0 %vm337_vm3, %v1261_v22 }
 0x50a   :  { %2540 = vmatpush3.bf16.xpose.msra.mxu0 %v1368_v41  ;;  %2541 = vmatprep.mubr.msk.bf16.mxu0 %vm2716_vm1, %v2715_v0  ;;  %v1561_v48 = vpop.permute.xlu1 %1560 }
 0x50b   :  { %2551 = vmatprep.subr.bf16.mxu0 %v2715_v0 }
 0x511   :  { %2542 = vmatmul.mubr.msk.bf16.vlgmr.msra.gmra.mxu0 %vm337_vm3, %v1361_v38 }
 0x512   :  { %2552 = vmatpush3.bf16.xpose.msra.mxu0 %v1468_v43  ;;  %2553 = vmatprep.mubr.msk.bf16.mxu0 %vm2716_vm1, %v2715_v0 }
 0x513   :  { %2563 = vmatprep.subr.bf16.mxu0 %v2715_v0 }
 0x519   :  { %2554 = vmatmul.mubr.msk.bf16.vlgmr.msra.gmra.mxu0 %vm337_vm3, %v1461_v24 }
 0x51a   :  { %2564 = vmatpush3.bf16.xpose.msra.mxu0 %v1568_v45  ;;  %2565 = vmatprep.mubr.msk.bf16.mxu0 %vm2716_vm1, %v2715_v0 }
 0x51b   :  { %2575 = vmatprep.subr.bf16.mxu0 %v2715_v0 }
 0x521   :  { %2566 = vmatmul.mubr.msk.bf16.vlgmr.msra.gmra.mxu0 %vm337_vm3, %v1561_v48 }
 0x522   :  { %2577 = vmatprep.mubr.msk.bf16.mxu0 %vm2716_vm1, %v2715_v0 }
 0x54b   :  { %v3136_v50 = vpop.f32.mrf.mxu1 }
 0x54d   :  { %v2477_v29 = vpop.f32.mrf.mxu1  ;;  %v3138_v37 = vpop.f32.mrf.mxu0 }
 0x54f   :  { %v871_v51 = vpop.f32.mrf.mxu1  ;;  %v2483_v49 = vpop.f32.mrf.mxu0 }
 0x551   :  { %v2478_v52 = vpop.f32.mrf.mxu1  ;;  %v919_v28 = vpop.f32.mrf.mxu0 }
 0x553   :  { %v2484_v36 = vpop.f32.mrf.mxu0  ;;  %v3140_v53 = vpop.f32.mrf.mxu1 }
 0x555   :  { %v2489_v46 = vpop.f32.mrf.mxu1 }
 0x557   :  { %v967_v54 = vpop.f32.mrf.mxu1  ;;  %v3142_v55 = vpop.f32.mrf.mxu0 }
 0x559   :  { %v2490_v58 = vpop.f32.mrf.mxu1  ;;  %v2495_v59 = vpop.f32.mrf.mxu0 }
 0x55b   :  { %v1015_v61 = vpop.f32.mrf.mxu0  ;;  %v3144_v62 = vpop.f32.mrf.mxu1 }
 0x55d   :  { %v2496_v63 = vpop.f32.mrf.mxu0  ;;  %v2501_v1 = vpop.f32.mrf.mxu1 }
 0x55f   :  { %v1063_v60 = vpop.f32.mrf.mxu1 }
 0x561   :  { %v2502_v47 = vpop.f32.mrf.mxu1 }
 0x58c   :  { %v3146_v56 = vpop.f32.mrf.mxu0 }
 0x58e   :  { %v2507_v2 = vpop.f32.mrf.mxu0 }
 0x590   :  { %v1111_v4 = vpop.f32.mrf.mxu0  ;;  %v3148_v5 = vpop.f32.mrf.mxu1 }
 0x592   :  { %v2508_v6 = vpop.f32.mrf.mxu0  ;;  %v2513_v7 = vpop.f32.mrf.mxu1 }
 0x594   :  { %v1159_v8 = vpop.f32.mrf.mxu1 }
 0x596   :  { %v2514_v9 = vpop.f32.mrf.mxu1 }
 0x598   :  { %v1254_v10 = vpop.f32.mrf.mxu1 }
 0x599   :  { %v1610_v57 = vsel %vm727_vm5, %v1254_v10, -inf }
 0x59a   :  { %1611 = vmax.xlane.f32.xlu0 %v1610_v57  ;;  %v2525_v11 = vpop.f32.mrf.mxu1 }
 0x59c   :  { %v1257_v12 = vpop.f32.mrf.mxu1 }
 0x59e   :  { %v2526_v13 = vpop.f32.mrf.mxu1 }
 0x5a0   :  { %v1354_v14 = vpop.f32.mrf.mxu1 }
 0x5a1   :  { %v1616_v15 = vsel %vm727_vm5, %v1354_v14, -inf }
 0x5a2   :  { %1617 = vmax.xlane.f32.xlu0 %v1616_v15  ;;  %v2537_v16 = vpop.f32.mrf.mxu1 }
 0x5a4   :  { %v1357_v17 = vpop.f32.mrf.mxu1 }
 0x5a6   :  { %v2538_v18 = vpop.f32.mrf.mxu1 }
 0x5a8   :  { %v3152_v19 = vpop.f32.mrf.mxu1 }
 0x5a9   :  { %v1622_v36 = vsel %vm727_vm5, %v3152_v19, -inf }
 0x5aa   :  { %v2549_v21 = vpop.f32.mrf.mxu1 }
 0x5ac   :  { %v1457_v22 = vpop.f32.mrf.mxu1 }
 0x5ae   :  { %v2550_v25 = vpop.f32.mrf.mxu1 }
 0x5b0   :  { %v3154_v26 = vpop.f32.mrf.mxu1 }
 0x5b1   :  { %v1628_v58 = vsel %vm727_vm5, %v3154_v26, -inf }
 0x5b2   :  { %v2561_v27 = vpop.f32.mrf.mxu1 }
 0x5b4   :  { %v1557_v31 = vpop.f32.mrf.mxu1 }
 0x5b6   :  { %v2562_v35 = vpop.f32.mrf.mxu1 }
 0x5c1   :  { %v3156_v38 = vpop.f32.mrf.mxu0 }
 0x5c3   :  { %v2519_v41 = vpop.f32.mrf.mxu0 }
 0x5c5   :  { %v1207_v42 = vpop.f32.mrf.mxu0 }
 0x5c7   :  { %v2520_v24 = vpop.f32.mrf.mxu0 }
 0x5c9   :  { %v1304_v43 = vpop.f32.mrf.mxu0 }
 0x5ca   :  { %v1613_v44 = vsel %vm727_vm5, %v1304_v43, -inf }
 0x5cb   :  { %1614 = vmax.xlane.f32.xlu1 %v1613_v44  ;;  %v2531_v45 = vpop.f32.mrf.mxu0 }
 0x5cd   :  { %v1307_v48 = vpop.f32.mrf.mxu0 }
 0x5cf   :  { %v2532_v29 = vpop.f32.mrf.mxu0 }
 0x5d1   :  { %v3159_v51 = vpop.f32.mrf.mxu0 }
 0x5d2   :  { %v1619_v49 = vsel %vm727_vm5, %v3159_v51, -inf }
 0x5d3   :  { %1620 = vmax.xlane.f32.xlu0 %v1619_v49  ;;  %v2543_v52 = vpop.f32.mrf.mxu0 }
 0x5d5   :  { %v1407_v28 = vpop.f32.mrf.mxu0 }
 0x5d7   :  { %1623 = vmax.xlane.f32.xlu0 %v1622_v36  ;;  %v2544_v46 = vpop.f32.mrf.mxu0 }
 0x5d9   :  { %v3165_v54 = vpop.f32.mrf.mxu0 }
 0x5da   :  { %v1625_v59 = vsel %vm727_vm5, %v3165_v54, -inf }
 0x5db   :  { %1629 = vmax.xlane.f32.xlu0 %v1628_v58  ;;  %1626 = vmax.xlane.f32.xlu1 %v1625_v59  ;;  %v2555_v61 = vpop.f32.mrf.mxu0 }
 0x5dd   :  { %v1507_v63 = vpop.f32.mrf.mxu0 }
 0x5df   :  { %v2556_v1 = vpop.f32.mrf.mxu0 }
 0x5e1   :  { %v3171_v60 = vpop.f32.mrf.mxu0 }
 0x5e2   :  { %v1631_v6 = vsel %vm727_vm5, %v3171_v60, -inf }
 0x5e3   :  { %v2567_v47 = vpop.f32.mrf.mxu0 }
 0x5e5   :  { %v1607_v2 = vpop.f32.mrf.mxu0 }
 0x5e7   :  { %v2568_v4 = vpop.f32.mrf.mxu0 }
 0x5ec   :  { %1754 = vrot.lane.b32.xlu1 %v2871_v23, %s2722_s21 }
 0x5f0   :  { %1802 = vrot.lane.b32.xlu1 %v2879_v32, %s2722_s21 }
 0x5f1   :  { %1706 = vrot.lane.b32.xlu0 %v2868_v20, %s2722_s21 }
 0x614   :  { %1632 = vmax.xlane.f32.xlu1 %v1631_v6 }
 0x623   :  { %v1612_v7 = vpop.xlane.xlu0 %1611 }
 0x624   :  { %v1634_v8 = vsub.f32 %v1254_v10, %v1612_v7 }
 0x625   :  { %1850 = vrot.lane.b32.xlu1 %v2885_v34, %s2722_s21 }
 0x626   :  { %v1642_v9 = vmul.f32 1.442695, %v1634_v8 }
 0x628   :  { %2683 = vpow2.f32 %v1642_v9 }
 0x62b   :  { %v1618_v57 = vpop.xlane.xlu0 %1617 }
 0x62c   :  { %v1636_v11 = vsub.f32 %v1354_v14, %v1618_v57 }
 0x62e   :  { %v1646_v23 = vmul.f32 1.442695, %v1636_v11 }
 0x630   :  { %2685 = vpow2.f32 %v1646_v23 }
 0x635   :  { %v3183_v12 = vpop.eup %2683 }
 0x636   :  { %v1658_v20 = vsel %vm727_vm5, %v3183_v12, 0.0 }
 0x637   :  { %1659 = vadd.xlane.f32.xlu0 %v1658_v20 }
 0x63d   :  { %v3187_v32 = vpop.eup %2685 }
 0x63e   :  { %v1664_v10 = vsel %vm727_vm5, %v3187_v32, 0.0 }
 0x63f   :  { %1665 = vadd.xlane.f32.xlu0 %v1664_v10 }
 0x654   :  { %v1615_v13 = vpop.xlane.xlu1 %1614 }
 0x655   :  { %v1635_v34 = vsub.f32 %v1304_v43, %v1615_v13  ;;  %1898 = vrot.lane.b32.xlu0 %v2877_v30, %s2722_s21 }
 0x657   :  { %v1644_v14 = vmul.f32 1.442695, %v1635_v34 }
 0x659   :  { %2687 = vpow2.f32 %v1644_v14 }
 0x65c   :  { %v1621_v15 = vpop.xlane.xlu0 %1620 }
 0x65d   :  { %v1637_v45 = vsub.f32 %v3159_v51, %v1621_v15 }
 0x65f   :  { %v1648_v48 = vmul.f32 1.442695, %v1637_v45 }
 0x660   :  { %v1624_v16 = vpop.xlane.xlu0 %1623 }
 0x661   :  { %v1638_v17 = vsub.f32 %v3152_v19, %v1624_v16 }
 0x663   :  { %v1650_v18 = vmul.f32 1.442695, %v1638_v17 }
 0x664   :  { %v1630_v21 = vpop.xlane.xlu0 %1629  ;;  %v1627_v22 = vpop.xlane.xlu1 %1626 }
 0x665   :  { %2689 = vpow2.f32 %v1650_v18  ;;  %v1640_v25 = vsub.f32 %v3154_v26, %v1630_v21  ;;  %v1639_v29 = vsub.f32 %v3165_v54, %v1627_v22 }
 0x666   :  { %v3195_v27 = vpop.eup %2687 }
 0x667   :  { %v1654_v31 = vmul.f32 1.442695, %v1640_v25  ;;  %v1661_v35 = vsel %vm727_vm5, %v3195_v27, 0.0  ;;  %v1652_v49 = vmul.f32 1.442695, %v1639_v29 }
 0x668   :  { %v1707_v41 = vpop.permute.xlu0 %1706  ;;  %v1755_v30 = vpop.permute.xlu1 %1754  ;;  %1662 = vadd.xlane.f32.xlu1 %v1661_v35 }
 0x669   :  { %2691 = vpow2.f32 %v1654_v31  ;;  %v1712_v42 = vsel %vm830_vm4, %v1707_v41, 0  ;;  %v1760_v19 = vsel %vm830_vm4, %v1755_v30, 0 }
 0x66a   :  { %2570 = vmatpush3.bf16.msra.mxu1 %v1712_v42  ;;  %2576 = vmatpush3.bf16.msra.mxu0 %v1760_v19  ;;  %2693 = vpow2.f32 %v1648_v48 }
 0x66b   :  { %2581 = vmatprep.subr.bf16.mxu1 %v2715_v0  ;;  %2587 = vmatprep.subr.bf16.mxu0 %v2715_v0  ;;  %2695 = vpow2.f32 %v1652_v49 }
 0x66c   :  { %v1803_v28 = vpop.permute.xlu1 %1802 }
 0x66d   :  { %v1808_v2 = vsel %vm830_vm4, %v1803_v28, 0 }
 0x672   :  { %v3203_v26 = vpop.eup %2689 }
 0x673   :  { %v1670_v24 = vsel %vm727_vm5, %v3203_v26, 0.0 }
 0x674   :  { %1671 = vadd.xlane.f32.xlu0 %v1670_v24 }
 0x676   :  { %v3207_v43 = vpop.eup %2691 }
 0x677   :  { %v1676_v44 = vsel %vm727_vm5, %v3207_v43, 0.0  ;;  %v3217_v52 = vpop.eup %2693 }
 0x678   :  { %1677 = vadd.xlane.f32.xlu0 %v1676_v44  ;;  %v1667_v36 = vsel %vm727_vm5, %v3217_v52, 0.0  ;;  %v3221_v46 = vpop.eup %2695 }
 0x679   :  { %1946 = vrot.lane.b32.xlu1 %v2889_v39, %s2722_s21  ;;  %v1673_v54 = vsel %vm727_vm5, %v3221_v46, 0.0 }
 0x68e   :  { %1994 = vrot.lane.b32.xlu0 %v2883_v33, %s2722_s21 }
 0x69d   :  { %1668 = vadd.xlane.f32.xlu1 %v1667_v36  ;;  %v1633_v39 = vpop.xlane.xlu1 %1632 }
 0x69e   :  { %v1641_v51 = vsub.f32 %v3171_v60, %v1633_v39 }
 0x6a0   :  { %v1656_v58 = vmul.f32 1.442695, %v1641_v51 }
 0x6a1   :  { %1674 = vadd.xlane.f32.xlu1 %v1673_v54  ;;  %v1851_v9 = vpop.permute.xlu1 %1850 }
 0x6a2   :  { %2697 = vpow2.f32 %v1656_v58  ;;  %v1856_v10 = vsel %vm830_vm4, %v1851_v9, 0 }
 0x6af   :  { %v3226_v33 = vpop.eup %2697 }
 0x6b0   :  { %v1679_v59 = vsel %vm727_vm5, %v3226_v33, 0.0 }
 0x6b1   :  { %1680 = vadd.xlane.f32.xlu1 %v1679_v59 }
 0x6c0   :  { %v1660_v61 = vpop.xlane.xlu0 %1659 }
 0x6c1   :  { %2699 = vrcp.f32 %v1660_v61 }
 0x6c2   :  { %2042 = vrot.lane.b32.xlu1 %v2894_v40, %s2722_s21 }
 0x6c8   :  { %v1666_v63 = vpop.xlane.xlu0 %1665 }
 0x6c9   :  { %2701 = vrcp.f32 %v1666_v63 }
 0x6cc   :  { %v1899_v40 = vpop.permute.xlu0 %1898 }
 0x6cd   :  { %v1904_v8 = vsel %vm830_vm4, %v1899_v40, 0 }
 0x6ce   :  { %v2700_v1 = vpop.eup %2699 }
 0x6cf   :  { %v1690_v60 = vmul.f32 %v2700_v1, %v3183_v12 }
 0x6d1   :  { %v1698_v47 = vpack.c.bf16 %v1690_v60, %v1690_v60 }
 0x6d3   :  { %2572 = vmatmul.mubr.msk.bf16.vlgmr.msra.gmra.mxu1 %vm826_vm6, %v1698_v47 }
 0x6d4   :  { %2582 = vmatpush3.bf16.msra.mxu1 %v1808_v2  ;;  %2583 = vmatprep.mubr.msk.bf16.mxu1 %vm2716_vm1, %v2715_v0 }
 0x6d5   :  { %2593 = vmatprep.subr.bf16.mxu1 %v2715_v0 }
 0x6d6   :  { %v2702_v4 = vpop.eup %2701 }
 0x6d7   :  { %v1692_v6 = vmul.f32 %v2702_v4, %v3187_v32 }
 0x6d9   :  { %v1700_v7 = vpack.c.bf16 %v1692_v6, %v1692_v6 }
 0x6db   :  { %2584 = vmatmul.mubr.msk.bf16.vlgmr.msra.gmra.mxu1 %vm826_vm6, %v1700_v7 }
 0x6dc   :  { %2594 = vmatpush3.bf16.msra.mxu1 %v1904_v8  ;;  %2595 = vmatprep.mubr.msk.bf16.mxu1 %vm2716_vm1, %v2715_v0 }
 0x6dd   :  { %2605 = vmatprep.subr.bf16.mxu1 %v2715_v0 }
 0x6f1   :  { %v1663_v57 = vpop.xlane.xlu1 %1662 }
 0x6f2   :  { %2703 = vrcp.f32 %v1663_v57 }
 0x6f5   :  { %v1947_v22 = vpop.permute.xlu1 %1946 }
 0x6f6   :  { %v1952_v42 = vsel %vm830_vm4, %v1947_v22, 0 }
 0x6fd   :  { %v1672_v11 = vpop.xlane.xlu0 %1671 }
 0x6fe   :  { %2705 = vrcp.f32 %v1672_v11 }
 0x6ff   :  { %v2704_v23 = vpop.eup %2703 }
 0x700   :  { %v1691_v12 = vmul.f32 %v2704_v23, %v3195_v27 }
 0x701   :  { %v1678_v20 = vpop.xlane.xlu0 %1677 }
 0x702   :  { %2707 = vrcp.f32 %v1678_v20  ;;  %v1699_v32 = vpack.c.bf16 %v1691_v12, %v1691_v12  ;;  %v2634_v12 = vld [vmem:[%s3347_s4] sm:$0xff]  }
 0x704   :  { %2578 = vmatmul.mubr.msk.bf16.vlgmr.msra.gmra.mxu0 %vm826_vm6, %v1699_v32 }
 0x705   :  { %2588 = vmatpush3.bf16.msra.mxu0 %v1856_v10  ;;  %2589 = vmatprep.mubr.msk.bf16.mxu0 %vm2716_vm1, %v2715_v0  ;;  %v1995_v14 = vpop.permute.xlu0 %1994 }
 0x706   :  { %2599 = vmatprep.subr.bf16.mxu0 %v2715_v0  ;;  %v2000_v17 = vsel %vm830_vm4, %v1995_v14, 0 }
 0x70b   :  { %v2706_v13 = vpop.eup %2705 }
 0x70c   :  { %v1694_v34 = vmul.f32 %v2706_v13, %v3203_v26 }
 0x70e   :  { %v1702_v15 = vpack.c.bf16 %v1694_v34, %v1694_v34 }
 0x70f   :  { %v2708_v16 = vpop.eup %2707 }
 0x710   :  { %2596 = vmatmul.mubr.msk.bf16.vlgmr.msra.gmra.mxu1 %vm826_vm6, %v1702_v15  ;;  %v1696_v18 = vmul.f32 %v2708_v16, %v3207_v43 }
 0x711   :  { %2606 = vmatpush3.bf16.msra.mxu1 %v2000_v17  ;;  %2607 = vmatprep.mubr.msk.bf16.mxu1 %vm2716_vm1, %v2715_v0 }
 0x712   :  { %2617 = vmatprep.subr.bf16.mxu1 %v2715_v0  ;;  %v1704_v21 = vpack.c.bf16 %v1696_v18, %v1696_v18 }
 0x718   :  { %2608 = vmatmul.mubr.msk.bf16.vlgmr.msra.gmra.mxu1 %vm826_vm6, %v1704_v21 }
 0x719   :  { %2619 = vmatprep.mubr.msk.bf16.mxu1 %vm2716_vm1, %v2715_v0  ;;  %2618 = vmatpush3.bf16.msra.mxu1 %v2634_v12 }
 0x726   :  { %v1669_v25 = vpop.xlane.xlu1 %1668 }
 0x727   :  { %2709 = vrcp.f32 %v1669_v25 }
 0x72a   :  { %v1675_v27 = vpop.xlane.xlu1 %1674 }
 0x72b   :  { %2711 = vrcp.f32 %v1675_v27 }
 0x734   :  { %v2710_v31 = vpop.eup %2709 }
 0x735   :  { %v1693_v35 = vmul.f32 %v2710_v31, %v3217_v52 }
 0x737   :  { %v1701_v41 = vpack.c.bf16 %v1693_v35, %v1693_v35 }
 0x738   :  { %v2712_v30 = vpop.eup %2711 }
 0x739   :  { %2590 = vmatmul.mubr.msk.bf16.vlgmr.msra.gmra.mxu0 %vm826_vm6, %v1701_v41  ;;  %v1695_v26 = vmul.f32 %v2712_v30, %v3221_v46 }
 0x73a   :  { %2600 = vmatpush3.bf16.msra.mxu0 %v1952_v42  ;;  %v1681_v19 = vpop.xlane.xlu1 %1680  ;;  %2601 = vmatprep.mubr.msk.bf16.mxu0 %vm2716_vm1, %v2715_v0 }
 0x73b   :  { %2713 = vrcp.f32 %v1681_v19  ;;  %2611 = vmatprep.subr.bf16.mxu0 %v2715_v0  ;;  %v1703_v44 = vpack.c.bf16 %v1695_v26, %v1695_v26 }
 0x73e   :  { %v2043_v24 = vpop.permute.xlu1 %2042 }
 0x73f   :  { %v2048_v43 = vsel %vm830_vm4, %v2043_v24, 0 }
 0x741   :  { %2602 = vmatmul.mubr.msk.bf16.vlgmr.msra.gmra.mxu0 %vm826_vm6, %v1703_v44 }
 0x742   :  { %2612 = vmatpush3.bf16.msra.mxu0 %v2048_v43  ;;  %2613 = vmatprep.mubr.msk.bf16.mxu0 %vm2716_vm1, %v2715_v0 }
 0x748   :  { %v2714_v45 = vpop.eup %2713 }
 0x749   :  { %v1697_v48 = vmul.f32 %v2714_v45, %v3226_v33 }
 0x74b   :  { %v1705_v29 = vpack.c.bf16 %v1697_v48, %v1697_v48 }
 0x74d   :  { %2614 = vmatmul.mubr.msk.bf16.vlgmr.msra.gmra.mxu0 %vm826_vm6, %v1705_v29 }
 0x793   :  { %v1748_v49 = vpop.f32.mrf.mxu1 }
 0x794   :  { %2098 = vrot.lane.b32.xlu0 %v1748_v49, %s2723_s22 }
 0x795   :  { %v2573_v52 = vpop.f32.mrf.mxu1 }
 0x797   :  { %v1751_v28 = vpop.f32.mrf.mxu1 }
 0x799   :  { %v2574_v36 = vpop.f32.mrf.mxu1 }
 0x79b   :  { %v1844_v46 = vpop.f32.mrf.mxu1 }
 0x79c   :  { %2102 = vrot.lane.b32.xlu0 %v1844_v46, %s2723_s22 }
 0x79d   :  { %v2585_v39 = vpop.f32.mrf.mxu1 }
 0x79f   :  { %v1847_v51 = vpop.f32.mrf.mxu1 }
 0x7a1   :  { %v2586_v58 = vpop.f32.mrf.mxu1 }
 0x7c4   :  { %v1796_v0 = vpop.f32.mrf.mxu0 }
 0x7c5   :  { %2100 = vrot.lane.b32.xlu1 %v1796_v0, %s2723_s22 }
 0x7c6   :  { %v2579_v54 = vpop.f32.mrf.mxu0 }
 0x7c8   :  { %v1799_v33 = vpop.f32.mrf.mxu0 }
 0x7ca   :  { %v2580_v59 = vpop.f32.mrf.mxu0 }
 0x7d0   :  { %v1940_v61 = vpop.f32.mrf.mxu1 }
 0x7d1   :  { %2106 = vrot.lane.b32.xlu0 %v1940_v61, %s2723_s22 }
 0x7d2   :  { %v2597_v63 = vpop.f32.mrf.mxu1 }
 0x7d4   :  { %v1943_v1 = vpop.f32.mrf.mxu1 }
 0x7d6   :  { %v2598_v60 = vpop.f32.mrf.mxu1 }
 0x7d8   :  { %v2036_v47 = vpop.f32.mrf.mxu1 }
 0x7d9   :  { %2110 = vrot.lane.b32.xlu0 %v2036_v47, %s2723_s22 }
 0x7da   :  { %v2609_v2 = vpop.f32.mrf.mxu1 }
 0x7dc   :  { %v2039_v4 = vpop.f32.mrf.mxu1 }
 0x7de   :  { %v2610_v6 = vpop.f32.mrf.mxu1 }
 0x7f9   :  { %v1892_v40 = vpop.f32.mrf.mxu0 }
 0x7fa   :  { %2104 = vrot.lane.b32.xlu1 %v1892_v40, %s2723_s22 }
 0x7fb   :  { %v2591_v7 = vpop.f32.mrf.mxu0 }
 0x7fd   :  { %v1895_v8 = vpop.f32.mrf.mxu0 }
 0x7ff   :  { %v2592_v9 = vpop.f32.mrf.mxu0 }
 0x801   :  { %v1988_v57 = vpop.f32.mrf.mxu0 }
 0x802   :  { %2108 = vrot.lane.b32.xlu1 %v1988_v57, %s2723_s22 }
 0x803   :  { %v2603_v11 = vpop.f32.mrf.mxu0 }
 0x805   :  { %v1991_v23 = vpop.f32.mrf.mxu0 }
 0x806   :  { %v2099_v14 = vpop.permute.xlu0 %2098 }
 0x807   :  { %v2604_v20 = vpop.f32.mrf.mxu0  ;;  %v2122_v30 = vsel %vm337_vm3, %v3136_v50, %v2099_v14 }
 0x80d   :  { %v2084_v32 = vpop.f32.mrf.mxu0 }
 0x80e   :  { %2112 = vrot.lane.b32.xlu1 %v2084_v32, %s2723_s22  ;;  %v2103_v16 = vpop.permute.xlu0 %2102 }
 0x80f   :  { %v2615_v10 = vpop.f32.mrf.mxu0  ;;  %v2124_v25 = vsel %vm337_vm3, %v3140_v53, %v2103_v16 }
 0x811   :  { %v2087_v13 = vpop.f32.mrf.mxu0 }
 0x813   :  { %v2616_v34 = vpop.f32.mrf.mxu0 }
 0x837   :  { %v2101_v15 = vpop.permute.xlu1 %2100 }
 0x838   :  { %v2123_v27 = vsel %vm337_vm3, %v3138_v37, %v2101_v15 }
 0x839   :  { %v2138_v19 = vcombine.low %v2122_v30, %v2123_v27 }
 0x83b   :  { %v2146_v43 = vrot.slane %v2138_v19, %v2859_v3 }
 0x843   :  { %v2107_v18 = vpop.permute.xlu0 %2106 }
 0x844   :  { %v2126_v42 = vsel %vm337_vm3, %v3144_v62, %v2107_v18 }
 0x84b   :  { %v2111_v35 = vpop.permute.xlu0 %2110 }
 0x84c   :  { %v2128_v53 = vsel %vm337_vm3, %v3148_v5, %v2111_v35  ;;  %v2347_v5 = vld [vmem:[%s3348_s5] ss:$0 sm:$0xff] }
 0x86c   :  { %v2105_v17 = vpop.permute.xlu1 %2104 }
 0x86d   :  { %v2125_v22 = vsel %vm337_vm3, %v3142_v55, %v2105_v17 }
 0x86e   :  { %v2139_v41 = vcombine.low %v2124_v25, %v2125_v22 }
 0x870   :  { %v2153_v24 = vrot.slane %v2139_v41, %v2859_v3 }
 0x872   :  { %v2154_v45 = vcombine.low %v2146_v43, %v2153_v24 }
 0x874   :  { %v2109_v21 = vpop.permute.xlu1 %2108 }
 0x875   :  { %v2127_v31 = vsel %vm337_vm3, %v3146_v56, %v2109_v21 }
 0x876   :  { %v2155_v26 = vcombine.low %v2126_v42, %v2127_v31 }
 0x878   :  { %v2163_v44 = vrot.slane %v2155_v26, %v2859_v3 }
 0x880   :  { %v2113_v55 = vpop.permute.xlu1 %2112 }
 0x881   :  { %v2129_v37 = vsel %vm337_vm3, %v3156_v38, %v2113_v55 }
 0x882   :  { %v2156_v56 = vcombine.low %v2128_v53, %v2129_v37 }
 0x884   :  { %v2170_v50 = vrot.slane %v2156_v56, %v2859_v3 }
 0x886   :  { %v2171_v62 = vcombine.low %v2163_v44, %v2170_v50 }
 0x888   :  { %v2174_v48 = vpack.c.bf16 %v2171_v62, %v2154_v45 }
 0x88a   :  { %2620 = vmatmul.mubr.msk.bf16.vlgmr.msra.gmra.mxu1 %vm2183_vm7, %v2174_v48 }
 0x94a   :  { %v2221_v29 = vpop.f32.mrf.mxu1 }
 0x94b   :  { %v2230_v38 = vcombine.high %v2221_v29, %v2221_v29  ;;  %v2237_v49 = vrot.slane %v2221_v29, %v2859_v3 }
 0x94c   :  { %v2621_v52 = vpop.f32.mrf.mxu1 }
 0x94d   :  { %v2244_v28 = vrot.slane %v2230_v38, %v2859_v3  ;;  %v2245_v36 = vcombine.high %v2237_v49, %v2237_v49  ;;  %v2279_v46 = vadd.f32 %v2347_v5, %v2237_v49 }
 0x94e   :  { %v2224_v39 = vpop.f32.mrf.mxu1 }
 0x94f   :  { %v2246_v51 = vcombine.high %v2244_v28, %v2244_v28  ;;  %v2280_v58 = vadd.f32 %v2347_v5, %v2245_v36  ;;  %v2281_v0 = vadd.f32 %v2347_v5, %v2244_v28  ;;  %v2287_v54 = vpack.c.bf16 %v2279_v46, %v2279_v46 }
 0x950   :  { %v2247_v33 = vcombine.high %v2224_v39, %v2224_v39  ;;  %v2254_v59 = vrot.slane %v2224_v39, %v2859_v3  ;;  %v2622_v61 = vpop.f32.mrf.mxu1 }
 0x951   :  { %v2282_v63 = vadd.f32 %v2347_v5, %v2246_v51  ;;  %v2288_v1 = vpack.c.bf16 %v2280_v58, %v2280_v58  ;;  %v2289_v60 = vpack.c.bf16 %v2281_v0, %v2281_v0  ;;  %2296 = vst.msk [vmem:[%s3349_s6] sm:$0x1] %vm2295_vm8, %v2287_v54 }
 0x952   :  { %v2261_v47 = vrot.slane %v2247_v33, %v2859_v3  ;;  %v2262_v2 = vcombine.high %v2254_v59, %v2254_v59  ;;  %v2283_v4 = vadd.f32 %v2347_v5, %v2254_v59 }
 0x953   :  { %v2290_v6 = vpack.c.bf16 %v2282_v63, %v2282_v63  ;;  %2297 = vst.msk [vmem:[%s3349_s6 + $0x1] sm:$0x1] %vm2295_vm8, %v2288_v1  ;;  %2298 = vst.msk [vmem:[%s3349_s6 + $0x2] sm:$0x1] %vm2295_vm8, %v2289_v60 }
 0x954   :  { %v2263_v40 = vcombine.high %v2261_v47, %v2261_v47  ;;  %v2284_v7 = vadd.f32 %v2347_v5, %v2262_v2  ;;  %v2285_v8 = vadd.f32 %v2347_v5, %v2261_v47  ;;  %v2291_v9 = vpack.c.bf16 %v2283_v4, %v2283_v4 }
 0x955   :  { %2299 = vst.msk [vmem:[%s3349_s6 + $0x3] sm:$0x1] %vm2295_vm8, %v2290_v6 }
 0x956   :  { %v2286_v3 = vadd.f32 %v2347_v5, %v2263_v40  ;;  %v2292_v57 = vpack.c.bf16 %v2284_v7, %v2284_v7  ;;  %v2293_v11 = vpack.c.bf16 %v2285_v8, %v2285_v8  ;;  %2300 = vst.msk [vmem:[%s3349_s6 + $0x4] sm:$0x1] %vm2295_vm8, %v2291_v9 }
 0x958   :  { %v2294_v23 = vpack.c.bf16 %v2286_v3, %v2286_v3  ;;  %2301 = vst.msk [vmem:[%s3349_s6 + $0x5] sm:$0x1] %vm2295_vm8, %v2292_v57  ;;  %2302 = vst.msk [vmem:[%s3349_s6 + $0x6] sm:$0x1] %vm2295_vm8, %v2293_v11 }
 0x95a   :  { %2303 = vst.msk [vmem:[%s3349_s6 + $0x7] sm:$0x1] %vm2295_vm8, %v2294_v23 }

// kernel: alphafold2_forward.11
= control target key start
LH: loop header
LB: loop body
LE: loop exit
PB: predicated region body
PF: predicated region fallthrough
CT: control target
= control target key end

     0   :  { %vm46_vm0 = vcmask 261120   ;;  %vm1433_vm1 = vmmov 0   ;;  %vm159_vm2 = vcmask 257024   ;;  %vm422_vm3 = vcmask 64512   ;;  %s1437_s16 = smov 8   ;;  %s1858_s1 = inlined_call_operand.vmem [shape: bf16[1,16,32], index: 1, kind: input, shape index: {}]   ;;  %s1859_s0 = inlined_call_operand.vmem [shape: bf16[1,64,32], index: 0, kind: input, shape index: {}]   ;;  %s1860_s7 = inlined_call_operand.vmem [shape: bf16[32,32], index: 7, kind: input, shape index: {}]   ;;  %s1861_s6 = inlined_call_operand.vmem [shape: bf16[32,16], index: 6, kind: input, shape index: {}]   ;;  %s1862_s4 = inlined_call_operand.vmem [shape: f32[1,32], index: 4, kind: input, shape index: {}]   ;;  %s1863_s2 = inlined_call_operand.vmem [shape: f32[1,32], index: 2, kind: input, shape index: {}]   ;;  %s1864_s5 = inlined_call_operand.vmem [shape: f32[1,32], index: 5, kind: input, shape index: {}]   ;;  %s1865_s3 = inlined_call_operand.vmem [shape: f32[1,32], index: 3, kind: input, shape index: {}]   ;;  %s1866_s8 = inlined_call_operand.vmem [shape: bf16[16,32], index: 8, kind: input, shape index: {}]   ;;  %s1867_s9 = inlined_call_operand.vmem [shape: f32[1,32], index: 9, kind: input, shape index: {}]   ;;  %s1868_s10 = inlined_call_operand.vmem [shape: bf16[1,64,32], index: 10, kind: output, shape index: {}]  }
   0x1   :  { %v1188_v0 = vld [vmem:[%s1858_s1] sm:$0xff]   ;;  %v1207_v5 = vld [vmem:[%s1859_s0 + $0x8] sm:$0xff]   ;;  %v1208_v13 = vld [vmem:[%s1859_s0 + $0x10] sm:$0xff]   ;;  %vm503_vm4 = vcmask 130048  }
   0x2   :  { %v1192_v1 = vld [vmem:[%s1859_s0] sm:$0xff]   ;;  %v1189_v2 = vunpack.c.l.bf16 %v1188_v0  ;;  %v1190_v3 = vunpack.c.h.bf16 %v1188_v0  ;;  %v1510_v10 = vunpack.c.l.bf16 %v1207_v5  ;;  %v1514_v12 = vunpack.c.h.bf16 %v1207_v5  ;;  %v1209_v18 = vld [vmem:[%s1859_s0 + $0x18] sm:$0xff]  }
   0x3   :  { %v1499_v4 = vunpack.c.l.bf16 %v1192_v1  ;;  %v1504_v6 = vunpack.c.h.bf16 %v1192_v1  ;;  %v1521_v15 = vunpack.c.l.bf16 %v1208_v13  ;;  %v1525_v17 = vunpack.c.h.bf16 %v1208_v13 }
   0x4   :  { %v47_v7 = vsel %vm46_vm0, %v1189_v2, 0.0  ;;  %v50_v9 = vsel %vm46_vm0, %v1190_v3, 0.0  ;;  %v187_v14 = vsel %vm46_vm0, %v1510_v10, 0.0  ;;  %v190_v16 = vsel %vm46_vm0, %v1514_v12, 0.0 }
   0x5   :  { %v181_v8 = vsel %vm46_vm0, %v1499_v4, 0.0  ;;  %48 = vadd.xlane.f32.xlu0 %v47_v7  ;;  %v184_v11 = vsel %vm46_vm0, %v1504_v6, 0.0  ;;  %v193_v19 = vsel %vm46_vm0, %v1521_v15, 0.0  ;;  %v1532_v20 = vunpack.c.l.bf16 %v1209_v18 }
   0x6   :  { %182 = vadd.xlane.f32.xlu1 %v181_v8  ;;  %v196_v21 = vsel %vm46_vm0, %v1525_v17, 0.0  ;;  %v1536_v22 = vunpack.c.h.bf16 %v1209_v18  ;;  %v1432_v18 = vmov 0.0  }
   0x7   :  { %v199_v23 = vsel %vm46_vm0, %v1532_v20, 0.0  ;;  %1244 = vmatprep.subr.bf16.mxu0 %v1432_v18  ;;  %1248 = vmatprep.mubr.msk.bf16.mxu0 %vm1433_vm1, %v1432_v18 }
   0x8   :  { %v202_v24 = vsel %vm46_vm0, %v1536_v22, 0.0 }
   0x9   :  { %51 = vadd.xlane.f32.xlu0 %v50_v9 }
   0xa   :  { %185 = vadd.xlane.f32.xlu1 %v184_v11 }
   0xd   :  { %188 = vadd.xlane.f32.xlu0 %v187_v14 }
   0xe   :  { %191 = vadd.xlane.f32.xlu1 %v190_v16  ;;  %v1342_v16 = vld [vmem:[%s1860_s7 + $0x8] sm:$0xff]  }
   0xf   :  { %1245 = vmatpush3.bf16.msra.mxu0 %v1342_v16 }
  0x10   :  { %1246 = vmatprep.subr.bf16.mxu0 %v1432_v18 }
  0x11   :  { %194 = vadd.xlane.f32.xlu0 %v193_v19  ;;  %v1343_v19 = vld [vmem:[%s1860_s7] sm:$0xff]  }
  0x12   :  { %197 = vadd.xlane.f32.xlu1 %v196_v21  ;;  %v1344_v21 = vld [vmem:[%s1861_s6 + $0x8] sm:$0xff]  }
  0x13   :  { %1247 = vmatpush3.bf16.msra.mxu0 %v1343_v19  ;;  %1252 = vmatprep.subr.bf16.mxu1 %v1344_v21 }
  0x14   :  { %1253 = vmatpush3.bf16.msra.mxu1 %v1344_v21 }
  0x15   :  { %200 = vadd.xlane.f32.xlu0 %v199_v23  ;;  %v1345_v23 = vld [vmem:[%s1861_s6] sm:$0xff]  }
  0x16   :  { %203 = vadd.xlane.f32.xlu1 %v202_v24  ;;  %1254 = vmatprep.subr.bf16.mxu1 %v1345_v23 }
  0x18   :  { %1255 = vmatpush3.bf16.msra.mxu1 %v1345_v23 }
  0x8e   :  { %v49_v25 = vpop.xlane.xlu0 %48 }
  0x8f   :  { %v183_v26 = vpop.xlane.xlu1 %182  ;;  %v54_v27 = vmul.f32 0.03125, %v49_v25 }
  0x90   :  { %v206_v28 = vmul.f32 0.03125, %v183_v26 }
  0x91   :  { %v1542_v29 = vsub.f32 %v1189_v2, %v54_v27 }
  0x92   :  { %v1545_v30 = vsub.f32 %v1499_v4, %v206_v28  ;;  %v52_v31 = vpop.xlane.xlu0 %51 }
  0x93   :  { %v186_v32 = vpop.xlane.xlu1 %185  ;;  %v55_v33 = vmul.f32 0.03125, %v52_v31  ;;  %v58_v34 = vmul.f32 %v1542_v29, %v1542_v29 }
  0x94   :  { %v207_v35 = vmul.f32 0.03125, %v186_v32  ;;  %v222_v36 = vmul.f32 %v1545_v30, %v1545_v30 }
  0x95   :  { %v1551_v37 = vsub.f32 %v1190_v3, %v55_v33  ;;  %v60_v38 = vsel %vm46_vm0, %v58_v34, 0.0 }
  0x96   :  { %v1555_v39 = vsub.f32 %v1504_v6, %v207_v35  ;;  %61 = vadd.xlane.f32.xlu0 %v60_v38  ;;  %v189_v40 = vpop.xlane.xlu0 %188  ;;  %v230_v41 = vsel %vm46_vm0, %v222_v36, 0.0 }
  0x97   :  { %v192_v42 = vpop.xlane.xlu1 %191  ;;  %v208_v43 = vmul.f32 0.03125, %v189_v40  ;;  %v59_v44 = vmul.f32 %v1551_v37, %v1551_v37 }
  0x98   :  { %v209_v45 = vmul.f32 0.03125, %v192_v42  ;;  %v223_v46 = vmul.f32 %v1555_v39, %v1555_v39 }
  0x99   :  { %v1563_v47 = vsub.f32 %v1510_v10, %v208_v43  ;;  %v63_v48 = vsel %vm46_vm0, %v59_v44, 0.0 }
  0x9a   :  { %v1567_v49 = vsub.f32 %v1514_v12, %v209_v45  ;;  %v195_v50 = vpop.xlane.xlu0 %194  ;;  %64 = vadd.xlane.f32.xlu1 %v63_v48  ;;  %231 = vadd.xlane.f32.xlu0 %v230_v41  ;;  %v233_v51 = vsel %vm46_vm0, %v223_v46, 0.0 }
  0x9b   :  { %v198_v52 = vpop.xlane.xlu1 %197  ;;  %v210_v53 = vmul.f32 0.03125, %v195_v50  ;;  %v224_v54 = vmul.f32 %v1563_v47, %v1563_v47 }
  0x9c   :  { %v211_v55 = vmul.f32 0.03125, %v198_v52  ;;  %v225_v56 = vmul.f32 %v1567_v49, %v1567_v49 }
  0x9d   :  { %v1575_v57 = vsub.f32 %v1521_v15, %v210_v53  ;;  %v236_v58 = vsel %vm46_vm0, %v224_v54, 0.0 }
  0x9e   :  { %v1579_v59 = vsub.f32 %v1525_v17, %v211_v55  ;;  %v201_v60 = vpop.xlane.xlu0 %200  ;;  %237 = vadd.xlane.f32.xlu0 %v236_v58  ;;  %234 = vadd.xlane.f32.xlu1 %v233_v51  ;;  %v239_v61 = vsel %vm46_vm0, %v225_v56, 0.0 }
  0x9f   :  { %v204_v62 = vpop.xlane.xlu1 %203  ;;  %v212_v63 = vmul.f32 0.03125, %v201_v60  ;;  %v226_v0 = vmul.f32 %v1575_v57, %v1575_v57 }
  0xa0   :  { %v213_v1 = vmul.f32 0.03125, %v204_v62  ;;  %v227_v2 = vmul.f32 %v1579_v59, %v1579_v59 }
  0xa1   :  { %v1587_v3 = vsub.f32 %v1532_v20, %v212_v63  ;;  %v242_v5 = vsel %vm46_vm0, %v226_v0, 0.0  ;;  %v1131_v63 = vld [vmem:[%s1862_s4] ss:$0 sm:$0xff] }
  0xa2   :  { %v1591_v7 = vsub.f32 %v1536_v22, %v213_v1  ;;  %243 = vadd.xlane.f32.xlu0 %v242_v5  ;;  %240 = vadd.xlane.f32.xlu1 %v239_v61  ;;  %v245_v9 = vsel %vm46_vm0, %v227_v2, 0.0 }
  0xa3   :  { %v228_v8 = vmul.f32 %v1587_v3, %v1587_v3 }
  0xa4   :  { %v229_v11 = vmul.f32 %v1591_v7, %v1591_v7 }
  0xa5   :  { %v248_v13 = vsel %vm46_vm0, %v228_v8, 0.0 }
  0xa6   :  { %249 = vadd.xlane.f32.xlu0 %v248_v13  ;;  %246 = vadd.xlane.f32.xlu1 %v245_v9  ;;  %v251_v14 = vsel %vm46_vm0, %v229_v11, 0.0  ;;  %v1138_v11 = vld [vmem:[%s1863_s2] ss:$0 sm:$0xff]  ;;  %s1434_s2 = smov 120  }
  0xaa   :  { %252 = vadd.xlane.f32.xlu1 %v251_v14 }
 0x11f   :  { %v62_v24 = vpop.xlane.xlu0 %61 }
 0x120   :  { %v66_v25 = vmul.f32 0.03125, %v62_v24 }
 0x122   :  { %v68_v26 = vadd.f32 1e-05, %v66_v25 }
 0x123   :  { %v232_v27 = vpop.xlane.xlu0 %231  ;;  %v65_v28 = vpop.xlane.xlu1 %64 }
 0x124   :  { %1348 = vrsqrt.f32 %v68_v26  ;;  %v254_v31 = vmul.f32 0.03125, %v232_v27  ;;  %v67_v32 = vmul.f32 0.03125, %v65_v28 }
 0x126   :  { %v262_v33 = vadd.f32 1e-05, %v254_v31  ;;  %v69_v34 = vadd.f32 1e-05, %v67_v32 }
 0x127   :  { %v238_v35 = vpop.xlane.xlu0 %237  ;;  %v235_v36 = vpop.xlane.xlu1 %234 }
 0x128   :  { %1350 = vrsqrt.f32 %v262_v33  ;;  %v256_v38 = vmul.f32 0.03125, %v238_v35  ;;  %v255_v40 = vmul.f32 0.03125, %v235_v36 }
 0x129   :  { %1352 = vrsqrt.f32 %v69_v34 }
 0x12a   :  { %v264_v41 = vadd.f32 1e-05, %v256_v38  ;;  %v263_v42 = vadd.f32 1e-05, %v255_v40 }
 0x12b   :  { %v244_v43 = vpop.xlane.xlu0 %243  ;;  %v241_v44 = vpop.xlane.xlu1 %240 }
 0x12c   :  { %1354 = vrsqrt.f32 %v264_v41  ;;  %v258_v45 = vmul.f32 0.03125, %v244_v43  ;;  %v257_v46 = vmul.f32 0.03125, %v241_v44 }
 0x12d   :  { %1356 = vrsqrt.f32 %v263_v42 }
 0x12e   :  { %v266_v48 = vadd.f32 1e-05, %v258_v45  ;;  %v265_v50 = vadd.f32 1e-05, %v257_v46 }
 0x12f   :  { %v250_v51 = vpop.xlane.xlu0 %249  ;;  %v247_v52 = vpop.xlane.xlu1 %246 }
 0x130   :  { %1358 = vrsqrt.f32 %v266_v48  ;;  %v260_v53 = vmul.f32 0.03125, %v250_v51  ;;  %v259_v54 = vmul.f32 0.03125, %v247_v52 }
 0x131   :  { %v1349_v55 = vpop.eup %1348  ;;  %1360 = vrsqrt.f32 %v265_v50 }
 0x132   :  { %v268_v56 = vadd.f32 1e-05, %v260_v53  ;;  %v267_v58 = vadd.f32 1e-05, %v259_v54  ;;  %v72_v61 = vmul.f32 %v1349_v55, %v1542_v29  ;;  %v1132_v29 = vld [vmem:[%s1864_s5] ss:$0 sm:$0xff] }
 0x133   :  { %v253_v60 = vpop.xlane.xlu1 %252  ;;  %s1436_s5 = smov 104  }
 0x134   :  { %1362 = vrsqrt.f32 %v268_v56  ;;  %v261_v62 = vmul.f32 0.03125, %v253_v60  ;;  %v80_v9 = vmul.f32 %v1131_v63, %v72_v61 }
 0x135   :  { %v1351_v0 = vpop.eup %1350  ;;  %1364 = vrsqrt.f32 %v267_v58 }
 0x136   :  { %v1353_v1 = vpop.eup %1352  ;;  %v269_v2 = vadd.f32 1e-05, %v261_v62  ;;  %v278_v5 = vmul.f32 %v1351_v0, %v1545_v30  ;;  %v88_v19 = vadd.f32 %v1132_v29, %v80_v9  ;;  %v1139_v30 = vld [vmem:[%s1865_s3] ss:$0 sm:$0xff]  ;;  %s1435_s3 = smov 112  }
 0x137   :  { %v73_v8 = vmul.f32 %v1353_v1, %v1551_v37 }
 0x138   :  { %1366 = vrsqrt.f32 %v269_v2  ;;  %v292_v18 = vmul.f32 %v1138_v11, %v278_v5 }
 0x139   :  { %v1355_v13 = vpop.eup %1354  ;;  %v81_v14 = vmul.f32 %v1131_v63, %v73_v8 }
 0x13a   :  { %v1357_v16 = vpop.eup %1356  ;;  %v280_v23 = vmul.f32 %v1355_v13, %v1563_v47  ;;  %v306_v28 = vadd.f32 %v1139_v30, %v292_v18 }
 0x13b   :  { %v89_v21 = vadd.f32 %v1132_v29, %v81_v14  ;;  %v279_v37 = vmul.f32 %v1357_v16, %v1555_v39 }
 0x13c   :  { %v294_v33 = vmul.f32 %v1138_v11, %v280_v23 }
 0x13d   :  { %v1359_v24 = vpop.eup %1358  ;;  %v90_v25 = vpack.c.bf16 %v89_v21, %v88_v19  ;;  %v293_v26 = vmul.f32 %v1138_v11, %v279_v37 }
 0x13e   :  { %v1361_v27 = vpop.eup %1360  ;;  %v282_v34 = vmul.f32 %v1359_v24, %v1575_v57  ;;  %v308_v47 = vadd.f32 %v1139_v30, %v294_v33 }
 0x13f   :  { %1249 = vmatmul.mubr.msk.bf16.vlgmr.msra.gmra.mxu0 %vm46_vm0, %v90_v25  ;;  %v307_v31 = vadd.f32 %v1139_v30, %v293_v26  ;;  %v281_v32 = vmul.f32 %v1361_v27, %v1567_v49 }
 0x140   :  { %v296_v43 = vmul.f32 %v1138_v11, %v282_v34 }
 0x141   :  { %v1363_v35 = vpop.eup %1362  ;;  %v314_v36 = vpack.c.bf16 %v307_v31, %v306_v28  ;;  %v295_v38 = vmul.f32 %v1138_v11, %v281_v32 }
 0x142   :  { %v1365_v40 = vpop.eup %1364  ;;  %v284_v39 = vmul.f32 %v1363_v35, %v1587_v3  ;;  %v310_v57 = vadd.f32 %v1139_v30, %v296_v43 }
 0x143   :  { %1256 = vmatprep.mubr.msk.bf16.mxu1 %vm46_vm0, %v314_v36  ;;  %v309_v41 = vadd.f32 %v1139_v30, %v295_v38  ;;  %v283_v42 = vmul.f32 %v1365_v40, %v1579_v59 }
 0x144   :  { %v298_v48 = vmul.f32 %v1138_v11, %v284_v39 }
 0x145   :  { %v1367_v44 = vpop.eup %1366  ;;  %v315_v45 = vpack.c.bf16 %v309_v41, %v308_v47  ;;  %v297_v46 = vmul.f32 %v1138_v11, %v283_v42 }
 0x146   :  { %v285_v49 = vmul.f32 %v1367_v44, %v1591_v7  ;;  %v312_v3 = vadd.f32 %v1139_v30, %v298_v48 }
 0x147   :  { %1257 = vmatmul.mubr.msk.bf16.vlgmr.msra.gmra.mxu1 %vm46_vm0, %v315_v45  ;;  %v311_v50 = vadd.f32 %v1139_v30, %v297_v46 }
 0x148   :  { %v299_v51 = vmul.f32 %v1138_v11, %v285_v49 }
 0x149   :  { %v316_v52 = vpack.c.bf16 %v311_v50, %v310_v57 }
 0x14a   :  { %v313_v53 = vadd.f32 %v1139_v30, %v299_v51 }
 0x14b   :  { %1260 = vmatprep.mubr.msk.bf16.mxu1 %vm46_vm0, %v316_v52 }
 0x14c   :  { %v317_v54 = vpack.c.bf16 %v313_v53, %v312_v3 }
 0x14f   :  { %1261 = vmatmul.mubr.msk.bf16.gmra.mxu1 %vm46_vm0, %v317_v54 }
 0x1ff   :  { %v144_v59 = vpop.f32.mrf.mxu0 }
 0x200   :  { %v1177_v55 = vpack.c.bf16 %v144_v59, %v144_v59 }
 0x201   :  { %v1250_v56 = vpop.f32.mrf.mxu0 }
 0x202   :  { %160 = vst.msk [vmem:[#allocation2] sm:$0xf] %vm159_vm2, %v1177_v55 }
 0x203   :  { %v147_v7 = vpop.f32.mrf.mxu0 }
 0x204   :  { %v1178_v58 = vpack.c.bf16 %v147_v7, %v147_v7 }
 0x205   :  { %v1251_v60 = vpop.f32.mrf.mxu0 }
 0x206   :  { %161 = vst.msk [vmem:[#allocation2 + $0x4] sm:$0xf] %vm159_vm2, %v1178_v58 }
 0x207   :  { %v1258_v61 = vpop.f32.mrf.mxu1 }
 0x209   :  { %v380_v62 = vpop.f32.mrf.mxu1 }
 0x20b   :  { %v1259_v63 = vpop.f32.mrf.mxu1 }
 0x20c   :  { %v414_v11 = vpack.c.bf16 %v1259_v63, %v1258_v61 }
 0x20d   :  { %v383_v0 = vpop.f32.mrf.mxu1  ;;  %v1641_v1 = vld [vmem:[#allocation2] sm:$0xff]  }
 0x20e   :  { %v413_v2 = vpack.c.bf16 %v383_v0, %v380_v62  ;;  %688 = vrot.lane.b32.xlu0 %v1641_v1, %s1434_s2  ;;  %1314 = vmatprep.subr.msk.bf16.mxu0 %vm422_vm3, %v1641_v1  ;;  %v436_v8 = vsel %vm422_vm3, %v1641_v1, 0 }
 0x20f   :  { %v1262_v5 = vpop.f32.mrf.mxu1  ;;  %1265 = vmatpush3.bf16.xpose.msra.mxu0 %v436_v8 }
 0x210   :  { %680 = vrot.lane.b32.xlu1 %v413_v2, %s1434_s2  ;;  %1266 = vmatprep.mubr.msk.bf16.mxu0 %vm422_vm3, %v413_v2 }
 0x211   :  { %v396_v9 = vpop.f32.mrf.mxu1 }
 0x213   :  { %v1263_v29 = vpop.f32.mrf.mxu1 }
 0x214   :  { %v416_v13 = vpack.c.bf16 %v1263_v29, %v1262_v5  ;;  %682 = vrot.lane.b32.xlu1 %v414_v11, %s1434_s2 }
 0x215   :  { %v399_v14 = vpop.f32.mrf.mxu1 }
 0x216   :  { %v415_v16 = vpack.c.bf16 %v399_v14, %v396_v9  ;;  %686 = vrot.lane.b32.xlu0 %v416_v13, %s1434_s2  ;;  %1267 = vmatmul.mubr.msk.bf16.vlgmr.msra.gmra.mxu0 %vm422_vm3, %v414_v11 }
 0x218   :  { %684 = vrot.lane.b32.xlu1 %v415_v16, %s1434_s2  ;;  %1270 = vmatprep.mubr.msk.bf16.mxu0 %vm422_vm3, %v415_v16 }
 0x21e   :  { %1271 = vmatmul.mubr.msk.bf16.gmra.mxu0 %vm422_vm3, %v416_v13 }
 0x280   :  { %v689_v18 = vpop.permute.xlu0 %688 }
 0x281   :  { %v703_v19 = vsel %vm422_vm3, %v689_v18, 0  ;;  %1315 = vmatprep.subr.msk.bf16.mxu0 %vm422_vm3, %v689_v18 }
 0x282   :  { %v681_v21 = vpop.permute.xlu1 %680  ;;  %1285 = vmatpush3.bf16.xpose.msra.mxu0 %v703_v19 }
 0x283   :  { %1286 = vmatprep.mubr.msk.bf16.mxu0 %vm422_vm3, %v681_v21 }
 0x286   :  { %v683_v30 = vpop.permute.xlu1 %682 }
 0x288   :  { %v687_v23 = vpop.permute.xlu0 %686 }
 0x289   :  { %1287 = vmatmul.mubr.msk.bf16.vlgmr.msra.gmra.mxu0 %vm422_vm3, %v683_v30 }
 0x28a   :  { %v685_v37 = vpop.permute.xlu1 %684 }
 0x28b   :  { %1290 = vmatprep.mubr.msk.bf16.mxu0 %vm422_vm3, %v685_v37 }
 0x291   :  { %1291 = vmatmul.mubr.msk.bf16.gmra.mxu0 %vm422_vm3, %v687_v23 }
 0x2d6   :  { %v1268_v24 = vpop.f32.mrf.mxu0 }
 0x2d7   :  { %v510_v25 = vsel %vm503_vm4, %v1268_v24, -inf }
 0x2d8   :  { %v472_v26 = vpop.f32.mrf.mxu0  ;;  %511 = vmax.xlane.f32.xlu0 %v510_v25 }
 0x2d9   :  { %v504_v27 = vsel %vm503_vm4, %v472_v26, -inf }
 0x2da   :  { %v1269_v28 = vpop.f32.mrf.mxu0  ;;  %505 = vmax.xlane.f32.xlu1 %v504_v27 }
 0x2db   :  { %v513_v35 = vsel %vm503_vm4, %v1269_v28, -inf }
 0x2dc   :  { %v475_v31 = vpop.f32.mrf.mxu0 }
 0x2dd   :  { %v507_v32 = vsel %vm503_vm4, %v475_v31, -inf }
 0x2de   :  { %508 = vmax.xlane.f32.xlu0 %v507_v32  ;;  %v1272_v33 = vpop.f32.mrf.mxu0 }
 0x2df   :  { %v522_v39 = vsel %vm503_vm4, %v1272_v33, -inf }
 0x2e0   :  { %v488_v34 = vpop.f32.mrf.mxu0 }
 0x2e1   :  { %v516_v36 = vsel %vm503_vm4, %v488_v34, -inf }
 0x2e2   :  { %514 = vmax.xlane.f32.xlu0 %v513_v35  ;;  %517 = vmax.xlane.f32.xlu1 %v516_v36  ;;  %v1663_v38 = vpop.f32.mrf.mxu0 }
 0x2e3   :  { %v525_v41 = vsel %vm503_vm4, %v1663_v38, -inf }
 0x2e4   :  { %v491_v40 = vpop.f32.mrf.mxu0 }
 0x2e5   :  { %v519_v47 = vsel %vm503_vm4, %v491_v40, -inf }
 0x2e6   :  { %523 = vmax.xlane.f32.xlu1 %v522_v39  ;;  %520 = vmax.xlane.f32.xlu0 %v519_v47 }
 0x2ea   :  { %526 = vmax.xlane.f32.xlu0 %v525_v41 }
 0x349   :  { %v1669_v42 = vpop.f32.mrf.mxu0 }
 0x34a   :  { %v776_v49 = vsel %vm503_vm4, %v1669_v42, -inf }
 0x34b   :  { %v1671_v43 = vpop.f32.mrf.mxu0 }
 0x34c   :  { %v770_v44 = vsel %vm503_vm4, %v1671_v43, -inf }
 0x34d   :  { %771 = vmax.xlane.f32.xlu1 %v770_v44  ;;  %v1675_v45 = vpop.f32.mrf.mxu0 }
 0x34e   :  { %v779_v51 = vsel %vm503_vm4, %v1675_v45, -inf }
 0x34f   :  { %v1677_v46 = vpop.f32.mrf.mxu0 }
 0x350   :  { %v773_v48 = vsel %vm503_vm4, %v1677_v46, -inf }
 0x351   :  { %777 = vmax.xlane.f32.xlu1 %v776_v49  ;;  %774 = vmax.xlane.f32.xlu0 %v773_v48  ;;  %v1683_v57 = vpop.f32.mrf.mxu0 }
 0x352   :  { %v788_v54 = vsel %vm503_vm4, %v1683_v57, -inf }
 0x353   :  { %v1685_v50 = vpop.f32.mrf.mxu0 }
 0x354   :  { %v782_v52 = vsel %vm503_vm4, %v1685_v50, -inf }
 0x355   :  { %780 = vmax.xlane.f32.xlu0 %v779_v51  ;;  %783 = vmax.xlane.f32.xlu1 %v782_v52  ;;  %v1691_v3 = vpop.f32.mrf.mxu0 }
 0x356   :  { %v791_v55 = vsel %vm503_vm4, %v1691_v3, -inf }
 0x357   :  { %v1693_v53 = vpop.f32.mrf.mxu0 }
 0x358   :  { %v785_v59 = vsel %vm503_vm4, %v1693_v53, -inf }
 0x359   :  { %789 = vmax.xlane.f32.xlu1 %v788_v54  ;;  %786 = vmax.xlane.f32.xlu0 %v785_v59 }
 0x35d   :  { %792 = vmax.xlane.f32.xlu0 %v791_v55 }
 0x361   :  { %v512_v56 = vpop.xlane.xlu0 %511 }
 0x362   :  { %v530_v7 = vsub.f32 %v1268_v24, %v512_v56 }
 0x363   :  { %v506_v58 = vpop.xlane.xlu1 %505 }
 0x364   :  { %v540_v60 = vmul.f32 1.442695, %v530_v7  ;;  %v528_v61 = vsub.f32 %v472_v26, %v506_v58 }
 0x366   :  { %1368 = vpow2.f32 %v540_v60  ;;  %v536_v62 = vmul.f32 1.442695, %v528_v61 }
 0x367   :  { %v509_v63 = vpop.xlane.xlu0 %508 }
 0x368   :  { %1370 = vpow2.f32 %v536_v62  ;;  %v529_v0 = vsub.f32 %v475_v31, %v509_v63 }
 0x36a   :  { %v538_v9 = vmul.f32 1.442695, %v529_v0 }
 0x36b   :  { %v515_v2 = vpop.xlane.xlu0 %514  ;;  %v518_v5 = vpop.xlane.xlu1 %517 }
 0x36c   :  { %v531_v8 = vsub.f32 %v1269_v28, %v515_v2  ;;  %v532_v29 = vsub.f32 %v488_v34, %v518_v5 }
 0x36e   :  { %v542_v11 = vmul.f32 1.442695, %v531_v8  ;;  %v544_v30 = vmul.f32 1.442695, %v532_v29 }
 0x36f   :  { %v521_v13 = vpop.xlane.xlu0 %520  ;;  %v524_v14 = vpop.xlane.xlu1 %523 }
 0x370   :  { %1372 = vpow2.f32 %v542_v11  ;;  %v534_v16 = vsub.f32 %v1272_v33, %v524_v14  ;;  %v533_v18 = vsub.f32 %v491_v40, %v521_v13 }
 0x371   :  { %1374 = vpow2.f32 %v538_v9 }
 0x372   :  { %v548_v19 = vmul.f32 1.442695, %v534_v16  ;;  %v546_v26 = vmul.f32 1.442695, %v533_v18 }
 0x373   :  { %v1701_v21 = vpop.eup %1368  ;;  %v527_v37 = vpop.xlane.xlu0 %526 }
 0x374   :  { %v535_v23 = vsub.f32 %v1663_v38, %v527_v37  ;;  %v558_v24 = vsel %vm503_vm4, %v1701_v21, 0.0  ;;  %1376 = vpow2.f32 %v548_v19 }
 0x375   :  { %v1706_v25 = vpop.eup %1370  ;;  %559 = vadd.xlane.f32.xlu1 %v558_v24  ;;  %1378 = vpow2.f32 %v544_v30 }
 0x376   :  { %v550_v27 = vmul.f32 1.442695, %v535_v23  ;;  %v552_v28 = vsel %vm503_vm4, %v1706_v25, 0.0 }
 0x378   :  { %1380 = vpow2.f32 %v550_v27 }
 0x379   :  { %553 = vadd.xlane.f32.xlu1 %v552_v28  ;;  %1382 = vpow2.f32 %v546_v26 }
 0x37d   :  { %v1710_v31 = vpop.eup %1372 }
 0x37e   :  { %v561_v32 = vsel %vm503_vm4, %v1710_v31, 0.0  ;;  %v1714_v33 = vpop.eup %1374 }
 0x37f   :  { %562 = vadd.xlane.f32.xlu0 %v561_v32  ;;  %v555_v35 = vsel %vm503_vm4, %v1714_v33, 0.0 }
 0x381   :  { %v1716_v34 = vpop.eup %1376 }
 0x382   :  { %v570_v36 = vsel %vm503_vm4, %v1716_v34, 0.0  ;;  %v1722_v38 = vpop.eup %1378 }
 0x383   :  { %556 = vadd.xlane.f32.xlu0 %v555_v35  ;;  %571 = vadd.xlane.f32.xlu1 %v570_v36  ;;  %v564_v41 = vsel %vm503_vm4, %v1722_v38, 0.0 }
 0x385   :  { %v1724_v40 = vpop.eup %1380 }
 0x386   :  { %v573_v39 = vsel %vm503_vm4, %v1724_v40, 0.0  ;;  %v1728_v47 = vpop.eup %1382 }
 0x387   :  { %574 = vadd.xlane.f32.xlu0 %v573_v39  ;;  %565 = vadd.xlane.f32.xlu1 %v564_v41  ;;  %v567_v44 = vsel %vm503_vm4, %v1728_v47, 0.0 }
 0x38b   :  { %568 = vadd.xlane.f32.xlu0 %v567_v44 }
 0x3d6   :  { %v772_v49 = vpop.xlane.xlu1 %771 }
 0x3d7   :  { %v794_v48 = vsub.f32 %v1671_v43, %v772_v49 }
 0x3d9   :  { %v802_v56 = vmul.f32 1.442695, %v794_v48 }
 0x3da   :  { %v775_v51 = vpop.xlane.xlu0 %774  ;;  %v778_v52 = vpop.xlane.xlu1 %777 }
 0x3db   :  { %v796_v54 = vsub.f32 %v1669_v42, %v778_v52  ;;  %v795_v59 = vsub.f32 %v1677_v46, %v775_v51 }
 0x3dd   :  { %v806_v55 = vmul.f32 1.442695, %v796_v54  ;;  %v804_v61 = vmul.f32 1.442695, %v795_v59 }
 0x3de   :  { %v781_v7 = vpop.xlane.xlu0 %780  ;;  %v784_v58 = vpop.xlane.xlu1 %783 }
 0x3df   :  { %v797_v60 = vsub.f32 %v1675_v45, %v781_v7  ;;  %1384 = vpow2.f32 %v806_v55  ;;  %v798_v63 = vsub.f32 %v1685_v50, %v784_v58 }
 0x3e0   :  { %1386 = vpow2.f32 %v802_v56 }
 0x3e1   :  { %v808_v62 = vmul.f32 1.442695, %v797_v60  ;;  %v810_v5 = vmul.f32 1.442695, %v798_v63 }
 0x3e2   :  { %v787_v0 = vpop.xlane.xlu0 %786  ;;  %v790_v43 = vpop.xlane.xlu1 %789 }
 0x3e3   :  { %1388 = vpow2.f32 %v808_v62  ;;  %v800_v2 = vsub.f32 %v1683_v57, %v790_v43  ;;  %v799_v42 = vsub.f32 %v1693_v53, %v787_v0 }
 0x3e4   :  { %1390 = vpow2.f32 %v804_v61 }
 0x3e5   :  { %v814_v46 = vmul.f32 1.442695, %v800_v2  ;;  %v812_v45 = vmul.f32 1.442695, %v799_v42 }
 0x3e6   :  { %v793_v8 = vpop.xlane.xlu0 %792 }
 0x3e7   :  { %v801_v9 = vsub.f32 %v1691_v3, %v793_v8  ;;  %1392 = vpow2.f32 %v814_v46 }
 0x3e8   :  { %1394 = vpow2.f32 %v810_v5 }
 0x3e9   :  { %v816_v11 = vmul.f32 1.442695, %v801_v9 }
 0x3eb   :  { %1396 = vpow2.f32 %v816_v11 }
 0x3ec   :  { %v1742_v29 = vpop.eup %1384  ;;  %1398 = vpow2.f32 %v812_v45 }
 0x3ed   :  { %v824_v50 = vsel %vm503_vm4, %v1742_v29, 0.0  ;;  %v1746_v57 = vpop.eup %1386 }
 0x3ee   :  { %825 = vadd.xlane.f32.xlu1 %v824_v50  ;;  %v818_v14 = vsel %vm503_vm4, %v1746_v57, 0.0 }
 0x3f0   :  { %v1748_v53 = vpop.eup %1388 }
 0x3f1   :  { %v827_v13 = vsel %vm503_vm4, %v1748_v53, 0.0  ;;  %v1752_v3 = vpop.eup %1390 }
 0x3f2   :  { %828 = vadd.xlane.f32.xlu0 %v827_v13  ;;  %819 = vadd.xlane.f32.xlu1 %v818_v14  ;;  %v821_v18 = vsel %vm503_vm4, %v1752_v3, 0.0 }
 0x3f4   :  { %v1756_v16 = vpop.eup %1392 }
 0x3f5   :  { %v836_v19 = vsel %vm503_vm4, %v1756_v16, 0.0  ;;  %v1762_v30 = vpop.eup %1394 }
 0x3f6   :  { %822 = vadd.xlane.f32.xlu0 %v821_v18  ;;  %837 = vadd.xlane.f32.xlu1 %v836_v19  ;;  %v830_v26 = vsel %vm503_vm4, %v1762_v30, 0.0 }
 0x3f8   :  { %v1764_v37 = vpop.eup %1396 }
 0x3f9   :  { %v839_v23 = vsel %vm503_vm4, %v1764_v37, 0.0  ;;  %v1768_v24 = vpop.eup %1398 }
 0x3fa   :  { %840 = vadd.xlane.f32.xlu0 %v839_v23  ;;  %831 = vadd.xlane.f32.xlu1 %v830_v26  ;;  %v833_v27 = vsel %vm503_vm4, %v1768_v24, 0.0 }
 0x3fe   :  { %834 = vadd.xlane.f32.xlu0 %v833_v27  ;;  %v560_v28 = vpop.xlane.xlu1 %559 }
 0x3ff   :  { %1400 = vrcp.f32 %v560_v28 }
 0x402   :  { %v554_v32 = vpop.xlane.xlu1 %553 }
 0x408   :  { %v563_v35 = vpop.xlane.xlu0 %562 }
 0x409   :  { %1402 = vrcp.f32 %v563_v35 }
 0x40a   :  { %1404 = vrcp.f32 %v554_v32 }
 0x40b   :  { %596 = vrot.lane.b32.xlu1 %v1641_v1, %s1435_s3 }
 0x40c   :  { %v557_v36 = vpop.xlane.xlu0 %556  ;;  %v1401_v39 = vpop.eup %1400 }
 0x40d   :  { %1406 = vrcp.f32 %v557_v36  ;;  %v586_v44 = vmul.f32 %v1401_v39, %v1701_v21  ;;  %v572_v56 = vpop.xlane.xlu1 %571 }
 0x410   :  { %v575_v7 = vpop.xlane.xlu0 %574 }
 0x411   :  { %v566_v58 = vpop.xlane.xlu1 %565 }
 0x414   :  { %862 = vrot.lane.b32.xlu0 %v1641_v1, %s1436_s5  ;;  %v569_v1 = vpop.xlane.xlu0 %568 }
 0x415   :  { %1408 = vrcp.f32 %v569_v1 }
 0x416   :  { %v1403_v41 = vpop.eup %1402  ;;  %1410 = vrcp.f32 %v566_v58 }
 0x417   :  { %v587_v49 = vmul.f32 %v1403_v41, %v1710_v31  ;;  %v1405_v48 = vpop.eup %1404  ;;  %1412 = vrcp.f32 %v575_v7 }
 0x418   :  { %v584_v54 = vmul.f32 %v1405_v48, %v1706_v25 }
 0x419   :  { %v593_v51 = vpack.c.bf16 %v587_v49, %v586_v44 }
 0x41a   :  { %v1407_v52 = vpop.eup %1406 }
 0x41b   :  { %v585_v59 = vmul.f32 %v1407_v52, %v1714_v33 }
 0x41d   :  { %v592_v55 = vpack.c.bf16 %v585_v59, %v584_v54 }
 0x41f   :  { %1276 = vmatprep.mubr.msk.bf16.mxu1 %vm503_vm4, %v592_v55  ;;  %v1347_v55 = vld [vmem:[%s1866_s8] sm:$0xff]  }
 0x420   :  { %1304 = vmatprep.subr.bf16.mxu0 %v1347_v55 }
 0x421   :  { %1305 = vmatpush3.bf16.msra.mxu0 %v1347_v55 }
 0x422   :  { %v1409_v63 = vpop.eup %1408 }
 0x423   :  { %v1411_v0 = vpop.eup %1410  ;;  %v589_v42 = vmul.f32 %v1409_v63, %v1728_v47 }
 0x424   :  { %v588_v46 = vmul.f32 %v1411_v0, %v1722_v38  ;;  %v1413_v8 = vpop.eup %1412 }
 0x425   :  { %v591_v47 = vmul.f32 %v1413_v8, %v1724_v40 }
 0x426   :  { %v594_v9 = vpack.c.bf16 %v589_v42, %v588_v46 }
 0x477   :  { %v826_v60 = vpop.xlane.xlu1 %825 }
 0x47b   :  { %v829_v21 = vpop.xlane.xlu0 %828  ;;  %v820_v61 = vpop.xlane.xlu1 %819 }
 0x47f   :  { %v823_v31 = vpop.xlane.xlu0 %822  ;;  %v838_v62 = vpop.xlane.xlu1 %837 }
 0x480   :  { %1414 = vrcp.f32 %v823_v31 }
 0x481   :  { %1416 = vrcp.f32 %v572_v56 }
 0x482   :  { %1418 = vrcp.f32 %v820_v61 }
 0x483   :  { %v841_v25 = vpop.xlane.xlu0 %840  ;;  %v832_v33 = vpop.xlane.xlu1 %831  ;;  %1420 = vrcp.f32 %v829_v21 }
 0x487   :  { %v835_v43 = vpop.xlane.xlu0 %834  ;;  %v597_v2 = vpop.permute.xlu1 %596 }
 0x488   :  { %1422 = vrcp.f32 %v835_v43  ;;  %1274 = vmatprep.subr.bf16.mxu1 %v597_v2 }
 0x489   :  { %1424 = vrcp.f32 %v826_v60  ;;  %1275 = vmatpush3.bf16.msra.mxu1 %v597_v2 }
 0x48a   :  { %1426 = vrcp.f32 %v832_v33 }
 0x48b   :  { %v863_v5 = vpop.permute.xlu0 %862  ;;  %1428 = vrcp.f32 %v841_v25 }
 0x48c   :  { %1294 = vmatprep.subr.bf16.mxu1 %v863_v5  ;;  %1277 = vmatmul.mubr.msk.bf16.vlgmr.msra.gmra.mxu1 %vm503_vm4, %v593_v51  ;;  %1430 = vrcp.f32 %v838_v62 }
 0x48d   :  { %v1415_v45 = vpop.eup %1414  ;;  %1280 = vmatprep.mubr.msk.bf16.mxu1 %vm503_vm4, %v594_v9  ;;  %1295 = vmatpush3.bf16.msra.mxu1 %v863_v5 }
 0x48e   :  { %v1417_v11 = vpop.eup %1416  ;;  %v851_v13 = vmul.f32 %v1415_v45, %v1752_v3 }
 0x48f   :  { %v1419_v50 = vpop.eup %1418  ;;  %v590_v38 = vmul.f32 %v1417_v11, %v1716_v34 }
 0x490   :  { %v850_v14 = vmul.f32 %v1419_v50, %v1746_v57  ;;  %v1421_v19 = vpop.eup %1420 }
 0x491   :  { %v595_v18 = vpack.c.bf16 %v591_v47, %v590_v38  ;;  %v853_v32 = vmul.f32 %v1421_v19, %v1748_v53 }
 0x492   :  { %v858_v23 = vpack.c.bf16 %v851_v13, %v850_v14 }
 0x494   :  { %1281 = vmatmul.mubr.msk.bf16.gmra.mxu1 %vm503_vm4, %v595_v18 }
 0x495   :  { %v1423_v26 = vpop.eup %1422  ;;  %1296 = vmatprep.mubr.msk.bf16.mxu1 %vm503_vm4, %v858_v23 }
 0x496   :  { %v1425_v27 = vpop.eup %1424  ;;  %v855_v40 = vmul.f32 %v1423_v26, %v1768_v24 }
 0x497   :  { %v1427_v28 = vpop.eup %1426  ;;  %v852_v3 = vmul.f32 %v1425_v27, %v1742_v29 }
 0x498   :  { %v854_v34 = vmul.f32 %v1427_v28, %v1762_v30  ;;  %v1429_v57 = vpop.eup %1428 }
 0x499   :  { %v859_v35 = vpack.c.bf16 %v853_v32, %v852_v3  ;;  %v1431_v39 = vpop.eup %1430  ;;  %v857_v41 = vmul.f32 %v1429_v57, %v1764_v37  ;;  %v1163_v32 = vld [vmem:[%s1867_s9] ss:$0 sm:$0xff] }
 0x49a   :  { %v860_v36 = vpack.c.bf16 %v855_v40, %v854_v34  ;;  %v856_v44 = vmul.f32 %v1431_v39, %v1756_v16 }
 0x49c   :  { %1297 = vmatmul.mubr.msk.bf16.vlgmr.msra.gmra.mxu1 %vm503_vm4, %v859_v35  ;;  %v861_v49 = vpack.c.bf16 %v857_v41, %v856_v44 }
 0x49d   :  { %1300 = vmatprep.mubr.msk.bf16.mxu1 %vm503_vm4, %v860_v36 }
 0x4a4   :  { %1301 = vmatmul.mubr.msk.bf16.gmra.mxu1 %vm503_vm4, %v861_v49 }
 0x54c   :  { %v1278_v53 = vpop.f32.mrf.mxu1 }
 0x54e   :  { %v645_v24 = vpop.f32.mrf.mxu1 }
 0x550   :  { %v1279_v29 = vpop.f32.mrf.mxu1 }
 0x552   :  { %v648_v48 = vpop.f32.mrf.mxu1 }
 0x554   :  { %v1282_v30 = vpop.f32.mrf.mxu1 }
 0x556   :  { %v661_v51 = vpop.f32.mrf.mxu1 }
 0x558   :  { %v1283_v52 = vpop.f32.mrf.mxu1 }
 0x55a   :  { %v664_v54 = vpop.f32.mrf.mxu1 }
 0x55c   :  { %v1298_v59 = vpop.f32.mrf.mxu1 }
 0x55e   :  { %v911_v56 = vpop.f32.mrf.mxu1 }
 0x560   :  { %v1299_v16 = vpop.f32.mrf.mxu1 }
 0x561   :  { %v1327_v60 = vpack.i.bf16 %v1299_v16, %v1298_v59 }
 0x562   :  { %v914_v37 = vpop.f32.mrf.mxu1 }
 0x563   :  { %v1322_v7 = vpack.i.bf16 %v914_v37, %v911_v56 }
 0x564   :  { %v1302_v58 = vpop.f32.mrf.mxu1 }
 0x565   :  { %1323 = vrot.lane.b32.xlu1 %v1322_v7, %s1437_s16 }
 0x566   :  { %v927_v1 = vpop.f32.mrf.mxu1 }
 0x568   :  { %v1303_v21 = vpop.f32.mrf.mxu1 }
 0x569   :  { %v1337_v61 = vpack.i.bf16 %v1303_v21, %v1302_v58  ;;  %1328 = vrot.lane.b32.xlu1 %v1327_v60, %s1437_s16 }
 0x56a   :  { %v930_v31 = vpop.f32.mrf.mxu1 }
 0x56b   :  { %v1332_v62 = vpack.i.bf16 %v930_v31, %v927_v1  ;;  %1338 = vrot.lane.b32.xlu0 %v1337_v61, %s1437_s16 }
 0x56d   :  { %1333 = vrot.lane.b32.xlu1 %v1332_v62, %s1437_s16 }
 0x5d7   :  { %v1324_v25 = vpop.permute.xlu1 %1323 }
 0x5d8   :  { %v1326_v33 = vunpack.i.h.bf16 %v1324_v25  ;;  %v1325_v63 = vunpack.i.l.bf16 %v1324_v25 }
 0x5da   :  { %v975_v0 = vsel %vm422_vm3, %v648_v48, %v1326_v33  ;;  %v974_v43 = vsel %vm422_vm3, %v645_v24, %v1325_v63 }
 0x5db   :  { %v982_v2 = vpack.c.bf16 %v975_v0, %v974_v43  ;;  %v1329_v42 = vpop.permute.xlu1 %1328 }
 0x5dc   :  { %v1331_v46 = vunpack.i.h.bf16 %v1329_v42  ;;  %v1330_v5 = vunpack.i.l.bf16 %v1329_v42 }
 0x5dd   :  { %1306 = vmatprep.mubr.msk.bf16.mxu0 %vm503_vm4, %v982_v2  ;;  %v1339_v8 = vpop.permute.xlu0 %1338 }
 0x5de   :  { %v977_v9 = vsel %vm422_vm3, %v1279_v29, %v1331_v46  ;;  %v976_v45 = vsel %vm422_vm3, %v1278_v53, %v1330_v5  ;;  %v1341_v47 = vunpack.i.h.bf16 %v1339_v8  ;;  %v1340_v13 = vunpack.i.l.bf16 %v1339_v8 }
 0x5df   :  { %v983_v11 = vpack.c.bf16 %v977_v9, %v976_v45  ;;  %v1334_v50 = vpop.permute.xlu1 %1333 }
 0x5e0   :  { %v1336_v38 = vunpack.i.h.bf16 %v1334_v50  ;;  %v1335_v14 = vunpack.i.l.bf16 %v1334_v50  ;;  %v981_v26 = vsel %vm422_vm3, %v1283_v52, %v1341_v47  ;;  %v980_v27 = vsel %vm422_vm3, %v1282_v30, %v1340_v13 }
 0x5e1   :  { %1307 = vmatmul.mubr.msk.bf16.vlgmr.msra.gmra.mxu0 %vm503_vm4, %v983_v11  ;;  %v985_v28 = vpack.c.bf16 %v981_v26, %v980_v27 }
 0x5e2   :  { %v979_v18 = vsel %vm422_vm3, %v664_v54, %v1336_v38  ;;  %v978_v19 = vsel %vm422_vm3, %v661_v51, %v1335_v14 }
 0x5e3   :  { %v984_v23 = vpack.c.bf16 %v979_v18, %v978_v19 }
 0x5e5   :  { %1310 = vmatprep.mubr.msk.bf16.mxu0 %vm503_vm4, %v984_v23 }
 0x5e9   :  { %1311 = vmatmul.mubr.msk.bf16.gmra.mxu0 %vm503_vm4, %v985_v28 }
 0x6a1   :  { %v1308_v40 = vpop.f32.mrf.mxu0 }
 0x6a2   :  { %v1056_v3 = vadd.f32 %v1308_v40, %v1163_v32 }
 0x6a3   :  { %v1047_v34 = vpop.f32.mrf.mxu0 }
 0x6a4   :  { %v1080_v35 = vadd.f32 %v1510_v10, %v1056_v3  ;;  %v1048_v57 = vadd.f32 %v1163_v32, %v1047_v34 }
 0x6a5   :  { %v1309_v36 = vpop.f32.mrf.mxu0 }
 0x6a6   :  { %v1181_v39 = vpack.c.bf16 %v1080_v35, %v1080_v35  ;;  %v1078_v41 = vadd.f32 %v1499_v4, %v1048_v57  ;;  %v1059_v44 = vadd.f32 %v1309_v36, %v1163_v32 }
 0x6a7   :  { %v1050_v49 = vpop.f32.mrf.mxu0 }
 0x6a8   :  { %1121 = vst.msk [vmem:[%s1868_s10 + $0x8] sm:$0xf] %vm159_vm2, %v1181_v39  ;;  %v1179_v53 = vpack.c.bf16 %v1078_v41, %v1078_v41  ;;  %v1081_v24 = vadd.f32 %v1514_v12, %v1059_v44  ;;  %v1051_v29 = vadd.f32 %v1163_v32, %v1050_v49 }
 0x6a9   :  { %v1312_v48 = vpop.f32.mrf.mxu0 }
 0x6aa   :  { %1119 = vst.msk [vmem:[%s1868_s10] sm:$0xf] %vm159_vm2, %v1179_v53  ;;  %v1182_v10 = vpack.c.bf16 %v1081_v24, %v1081_v24  ;;  %v1079_v4 = vadd.f32 %v1504_v6, %v1051_v29  ;;  %v1072_v30 = vadd.f32 %v1312_v48, %v1163_v32 }
 0x6ab   :  { %v1063_v51 = vpop.f32.mrf.mxu0 }
 0x6ac   :  { %1122 = vst.msk [vmem:[%s1868_s10 + $0xc] sm:$0xf] %vm159_vm2, %v1182_v10  ;;  %v1180_v52 = vpack.c.bf16 %v1079_v4, %v1079_v4  ;;  %v1084_v12 = vadd.f32 %v1532_v20, %v1072_v30  ;;  %v1064_v54 = vadd.f32 %v1163_v32, %v1063_v51 }
 0x6ad   :  { %v1313_v59 = vpop.f32.mrf.mxu0 }
 0x6ae   :  { %1120 = vst.msk [vmem:[%s1868_s10 + $0x4] sm:$0xf] %vm159_vm2, %v1180_v52  ;;  %v1185_v55 = vpack.c.bf16 %v1084_v12, %v1084_v12  ;;  %v1082_v6 = vadd.f32 %v1521_v15, %v1064_v54  ;;  %v1075_v56 = vadd.f32 %v1313_v59, %v1163_v32 }
 0x6af   :  { %v1066_v16 = vpop.f32.mrf.mxu0 }
 0x6b0   :  { %1125 = vst.msk [vmem:[%s1868_s10 + $0x18] sm:$0xf] %vm159_vm2, %v1185_v55  ;;  %v1183_v37 = vpack.c.bf16 %v1082_v6, %v1082_v6  ;;  %v1085_v20 = vadd.f32 %v1536_v22, %v1075_v56  ;;  %v1067_v7 = vadd.f32 %v1163_v32, %v1066_v16 }
 0x6b2   :  { %1123 = vst.msk [vmem:[%s1868_s10 + $0x10] sm:$0xf] %vm159_vm2, %v1183_v37  ;;  %v1186_v58 = vpack.c.bf16 %v1085_v20, %v1085_v20  ;;  %v1083_v1 = vadd.f32 %v1525_v17, %v1067_v7 }
 0x6b4   :  { %1126 = vst.msk [vmem:[%s1868_s10 + $0x1c] sm:$0xf] %vm159_vm2, %v1186_v58  ;;  %v1184_v15 = vpack.c.bf16 %v1083_v1, %v1083_v1 }
 0x6b6   :  { %1124 = vst.msk [vmem:[%s1868_s10 + $0x14] sm:$0xf] %vm159_vm2, %v1184_v15 }

// kernel: alphafold2_forward.12
= control target key start
LH: loop header
LB: loop body
LE: loop exit
PB: predicated region body
PF: predicated region fallthrough
CT: control target
= control target key end

     0   :  { %vm45_vm0 = vcmask 261120   ;;  %v875_v61 = vmov 0   ;;  %vm708_vm9 = vcmask 257024   ;;  %s1327_s0 = inlined_call_operand.vmem [shape: bf16[64,32], index: 0, kind: input, shape index: {}]   ;;  %s1328_s3 = inlined_call_operand.vmem [shape: bf16[32,256], index: 3, kind: input, shape index: {}]   ;;  %s1329_s1 = inlined_call_operand.vmem [shape: f32[1,32], index: 1, kind: input, shape index: {}]   ;;  %s1330_s2 = inlined_call_operand.vmem [shape: f32[1,32], index: 2, kind: input, shape index: {}]   ;;  %s1331_s5 = inlined_call_operand.vmem [shape: bf16[128,32], index: 5, kind: input, shape index: {}]   ;;  %s1332_s4 = inlined_call_operand.vmem [shape: f32[1,256], index: 4, kind: input, shape index: {}]   ;;  %s1333_s6 = inlined_call_operand.vmem [shape: f32[1,32], index: 6, kind: input, shape index: {}]   ;;  %s1334_s7 = inlined_call_operand.vmem [shape: bf16[64,32], index: 7, kind: output, shape index: {}]  }
   0x1   :  { %v757_v0 = vld [vmem:[%s1327_s0] sm:$0xff]   ;;  %v772_v1 = vld [vmem:[%s1327_s0 + $0x8] sm:$0xff]   ;;  %v773_v6 = vld [vmem:[%s1327_s0 + $0x10] sm:$0xff]   ;;  %263 = vmatprep.mubr.bf16.mxu0 %v875_v61 }
   0x2   :  { %v923_v2 = vunpack.c.l.bf16 %v757_v0  ;;  %v925_v3 = vunpack.c.l.bf16 %v772_v1  ;;  %v927_v4 = vunpack.c.h.bf16 %v757_v0  ;;  %v929_v5 = vunpack.c.h.bf16 %v772_v1  ;;  %v774_v13 = vld [vmem:[%s1327_s0 + $0x18] sm:$0xff]   ;;  %v816_v63 = vld [vmem:[%s1328_s3 + $0x4] ss:$8 sps:$4 sm:$0xff]   ;;  %v818_v0 = vld [vmem:[%s1328_s3] ss:$8 sps:$4 sm:$0xff]  }
   0x3   :  { %v942_v11 = vunpack.c.l.bf16 %v773_v6  ;;  %v944_v12 = vunpack.c.h.bf16 %v773_v6  ;;  %v953_v16 = vunpack.c.l.bf16 %v774_v13  ;;  %v955_v17 = vunpack.c.h.bf16 %v774_v13  ;;  %v813_v60 = vld [vmem:[%s1328_s3 + $0x14] ss:$8 sps:$4 sm:$0xff]   ;;  %v815_v62 = vld [vmem:[%s1328_s3 + $0x10] ss:$8 sps:$4 sm:$0xff]  }
   0x4   :  { %v46_v7 = vsel %vm45_vm0, %v923_v2, 0.0  ;;  %v52_v8 = vsel %vm45_vm0, %v925_v3, 0.0  ;;  %v49_v9 = vsel %vm45_vm0, %v927_v4, 0.0  ;;  %v55_v10 = vsel %vm45_vm0, %v929_v5, 0.0  ;;  %243 = vmatprep.subr.bf16.mxu0 %v813_v60 }
   0x5   :  { %47 = vadd.xlane.f32.xlu0 %v46_v7  ;;  %53 = vadd.xlane.f32.xlu1 %v52_v8  ;;  %v58_v14 = vsel %vm45_vm0, %v942_v11, 0.0  ;;  %v61_v15 = vsel %vm45_vm0, %v944_v12, 0.0  ;;  %v64_v18 = vsel %vm45_vm0, %v953_v16, 0.0  ;;  %v67_v19 = vsel %vm45_vm0, %v955_v17, 0.0 }
   0x6   :  { %244 = vmatpush1.bf16.msra.mxu0 %v815_v62 }
   0x7   :  { %245 = vmatprep.subr.bf16.mxu0 %v816_v63 }
   0x9   :  { %50 = vadd.xlane.f32.xlu0 %v49_v9  ;;  %56 = vadd.xlane.f32.xlu1 %v55_v10 }
   0xa   :  { %246 = vmatpush1.bf16.msra.mxu0 %v818_v0 }
   0xd   :  { %59 = vadd.xlane.f32.xlu0 %v58_v14  ;;  %62 = vadd.xlane.f32.xlu1 %v61_v15 }
  0x11   :  { %65 = vadd.xlane.f32.xlu0 %v64_v18  ;;  %68 = vadd.xlane.f32.xlu1 %v67_v19 }
  0x8e   :  { %v48_v20 = vpop.xlane.xlu0 %47  ;;  %v54_v21 = vpop.xlane.xlu1 %53 }
  0x8f   :  { %v71_v22 = vmul.f32 0.03125, %v48_v20  ;;  %v73_v23 = vmul.f32 0.03125, %v54_v21 }
  0x91   :  { %v962_v24 = vsub.f32 %v923_v2, %v71_v22  ;;  %v965_v25 = vsub.f32 %v925_v3, %v73_v23 }
  0x92   :  { %v51_v26 = vpop.xlane.xlu0 %50  ;;  %v57_v27 = vpop.xlane.xlu1 %56 }
  0x93   :  { %v72_v28 = vmul.f32 0.03125, %v51_v26  ;;  %v74_v29 = vmul.f32 0.03125, %v57_v27  ;;  %v87_v30 = vmul.f32 %v962_v24, %v962_v24  ;;  %v89_v31 = vmul.f32 %v965_v25, %v965_v25 }
  0x95   :  { %v972_v32 = vsub.f32 %v927_v4, %v72_v28  ;;  %v975_v33 = vsub.f32 %v929_v5, %v74_v29  ;;  %v95_v34 = vsel %vm45_vm0, %v87_v30, 0.0  ;;  %v101_v37 = vsel %vm45_vm0, %v89_v31, 0.0 }
  0x96   :  { %96 = vadd.xlane.f32.xlu0 %v95_v34  ;;  %v60_v35 = vpop.xlane.xlu0 %59  ;;  %v63_v36 = vpop.xlane.xlu1 %62 }
  0x97   :  { %v75_v38 = vmul.f32 0.03125, %v60_v35  ;;  %v76_v39 = vmul.f32 0.03125, %v63_v36  ;;  %v88_v40 = vmul.f32 %v972_v32, %v972_v32  ;;  %v90_v41 = vmul.f32 %v975_v33, %v975_v33 }
  0x99   :  { %v984_v42 = vsub.f32 %v942_v11, %v75_v38  ;;  %v987_v43 = vsub.f32 %v944_v12, %v76_v39  ;;  %v98_v44 = vsel %vm45_vm0, %v88_v40, 0.0  ;;  %v104_v47 = vsel %vm45_vm0, %v90_v41, 0.0 }
  0x9a   :  { %102 = vadd.xlane.f32.xlu0 %v101_v37  ;;  %99 = vadd.xlane.f32.xlu1 %v98_v44  ;;  %v66_v45 = vpop.xlane.xlu0 %65  ;;  %v69_v46 = vpop.xlane.xlu1 %68  ;;  %v721_v37 = vld [vmem:[%s1329_s1] ss:$0 sm:$0xff] }
  0x9b   :  { %v77_v48 = vmul.f32 0.03125, %v66_v45  ;;  %v78_v49 = vmul.f32 0.03125, %v69_v46  ;;  %v91_v50 = vmul.f32 %v984_v42, %v984_v42  ;;  %v92_v51 = vmul.f32 %v987_v43, %v987_v43  ;;  %v722_v46 = vld [vmem:[%s1330_s2] ss:$0 sm:$0xff] }
  0x9d   :  { %v996_v52 = vsub.f32 %v953_v16, %v77_v48  ;;  %v999_v53 = vsub.f32 %v955_v17, %v78_v49  ;;  %v107_v54 = vsel %vm45_vm0, %v91_v50, 0.0  ;;  %v110_v55 = vsel %vm45_vm0, %v92_v51, 0.0 }
  0x9e   :  { %105 = vadd.xlane.f32.xlu1 %v104_v47  ;;  %108 = vadd.xlane.f32.xlu0 %v107_v54 }
  0x9f   :  { %v93_v56 = vmul.f32 %v996_v52, %v996_v52  ;;  %v94_v57 = vmul.f32 %v999_v53, %v999_v53 }
  0xa1   :  { %v113_v58 = vsel %vm45_vm0, %v93_v56, 0.0  ;;  %v116_v59 = vsel %vm45_vm0, %v94_v57, 0.0 }
  0xa2   :  { %111 = vadd.xlane.f32.xlu1 %v110_v55  ;;  %114 = vadd.xlane.f32.xlu0 %v113_v58 }
  0xa6   :  { %117 = vadd.xlane.f32.xlu1 %v116_v59 }
 0x11f   :  { %v97_v1 = vpop.xlane.xlu0 %96 }
 0x120   :  { %v119_v6 = vmul.f32 0.03125, %v97_v1 }
 0x122   :  { %v127_v7 = vadd.f32 1e-05, %v119_v6 }
 0x123   :  { %v100_v8 = vpop.xlane.xlu1 %99  ;;  %v103_v9 = vpop.xlane.xlu0 %102 }
 0x124   :  { %827 = vrsqrt.f32 %v127_v7  ;;  %v120_v10 = vmul.f32 0.03125, %v100_v8  ;;  %v121_v13 = vmul.f32 0.03125, %v103_v9 }
 0x126   :  { %v128_v14 = vadd.f32 1e-05, %v120_v10  ;;  %v129_v15 = vadd.f32 1e-05, %v121_v13 }
 0x127   :  { %v106_v18 = vpop.xlane.xlu1 %105  ;;  %v109_v19 = vpop.xlane.xlu0 %108 }
 0x128   :  { %829 = vrsqrt.f32 %v128_v14  ;;  %v122_v20 = vmul.f32 0.03125, %v106_v18  ;;  %v123_v22 = vmul.f32 0.03125, %v109_v19  ;;  %v819_v18 = vld [vmem:[%s1331_s5 + $0x38] sm:$0xff]  }
 0x129   :  { %831 = vrsqrt.f32 %v129_v15  ;;  %787 = vmatprep.subr.bf16.mxu1 %v819_v18  ;;  %v823_v19 = vld [vmem:[%s1331_s5 + $0x18] sm:$0xff]  }
 0x12a   :  { %v130_v21 = vadd.f32 1e-05, %v122_v20  ;;  %v131_v27 = vadd.f32 1e-05, %v123_v22  ;;  %788 = vmatpush3.bf16.msra.mxu1 %v819_v18  ;;  %v824_v20 = vld [vmem:[%s1331_s5 + $0x10] sm:$0xff]   ;;  %v826_v22 = vld [vmem:[%s1331_s5] sm:$0xff]  }
 0x12b   :  { %v112_v23 = vpop.xlane.xlu1 %111  ;;  %v115_v29 = vpop.xlane.xlu0 %114 }
 0x12c   :  { %833 = vrsqrt.f32 %v130_v21  ;;  %v124_v26 = vmul.f32 0.03125, %v112_v23  ;;  %v125_v35 = vmul.f32 0.03125, %v115_v29  ;;  %v825_v21 = vld [vmem:[%s1331_s5 + $0x8] sm:$0xff]   ;;  %v189_v23 = vlaneseq }
 0x12e   :  { %v132_v28 = vadd.f32 1e-05, %v124_v26  ;;  %v133_v40 = vadd.f32 1e-05, %v125_v35  ;;  %v190_v26 = vshrl.u32 %v189_v23, 7 }
 0x12f   :  { %v118_v30 = vpop.xlane.xlu1 %117 }
 0x130   :  { %835 = vrsqrt.f32 %v132_v28  ;;  %v126_v31 = vmul.f32 0.03125, %v118_v30  ;;  %v187_v28 = vld [vmem:[%s1332_s4] sm:$0x3] }
 0x131   :  { %v828_v34 = vpop.eup %827  ;;  %837 = vrsqrt.f32 %v131_v27  ;;  %v195_v27 = vsub.s32 1, %v190_v26 }
 0x132   :  { %v143_v36 = vmul.f32 %v828_v34, %v962_v24  ;;  %v134_v38 = vadd.f32 1e-05, %v126_v31 }
 0x133   :  { %v1070_v29 = vrot.slane %v187_v28, %v195_v27 }
 0x134   :  { %v157_v44 = vmul.f32 %v721_v37, %v143_v36  ;;  %839 = vrsqrt.f32 %v134_v38 }
 0x135   :  { %v830_v39 = vpop.eup %829  ;;  %841 = vrsqrt.f32 %v133_v40 }
 0x136   :  { %v144_v41 = vmul.f32 %v830_v39, %v972_v32  ;;  %v832_v45 = vpop.eup %831  ;;  %v171_v24 = vadd.f32 %v722_v46, %v157_v44 }
 0x137   :  { %v145_v50 = vmul.f32 %v832_v45, %v965_v25 }
 0x138   :  { %v158_v47 = vmul.f32 %v721_v37, %v144_v41 }
 0x139   :  { %v834_v48 = vpop.eup %833  ;;  %v159_v32 = vmul.f32 %v721_v37, %v145_v50 }
 0x13a   :  { %v172_v49 = vadd.f32 %v722_v46, %v158_v47  ;;  %v146_v51 = vmul.f32 %v834_v48, %v975_v33 }
 0x13b   :  { %v173_v60 = vadd.f32 %v722_v46, %v159_v32 }
 0x13c   :  { %v179_v54 = vpack.c.bf16 %v172_v49, %v171_v24  ;;  %v160_v55 = vmul.f32 %v721_v37, %v146_v51 }
 0x13d   :  { %v836_v56 = vpop.eup %835 }
 0x13e   :  { %727 = vmatmul.mubr.msk.bf16.vlgmr.msra.gmra.mxu0 %vm45_vm0, %v179_v54  ;;  %v838_v57 = vpop.eup %837  ;;  %v174_v58 = vadd.f32 %v722_v46, %v160_v55  ;;  %v148_v59 = vmul.f32 %v836_v56, %v987_v43 }
 0x13f   :  { %273 = vmatprep.mubr.bf16.mxu0 %v875_v61  ;;  %v147_v62 = vmul.f32 %v838_v57, %v984_v42 }
 0x140   :  { %v180_v63 = vpack.c.bf16 %v174_v58, %v173_v60  ;;  %v162_v0 = vmul.f32 %v721_v37, %v148_v59 }
 0x141   :  { %v840_v25 = vpop.eup %839  ;;  %v161_v33 = vmul.f32 %v721_v37, %v147_v62 }
 0x142   :  { %v842_v1 = vpop.eup %841  ;;  %v176_v6 = vadd.f32 %v722_v46, %v162_v0  ;;  %v150_v7 = vmul.f32 %v840_v25, %v999_v53  ;;  %v821_v53 = vld [vmem:[%s1331_s5 + $0x28] sm:$0xff]   ;;  %v191_v25 = vsub.s32 0, %v190_v26 }
 0x143   :  { %v175_v8 = vadd.f32 %v722_v46, %v161_v33  ;;  %v149_v9 = vmul.f32 %v842_v1, %v996_v52  ;;  %v820_v52 = vld [vmem:[%s1331_s5 + $0x30] sm:$0xff]  }
 0x144   :  { %v164_v43 = vmul.f32 %v721_v37, %v150_v7  ;;  %789 = vmatprep.subr.bf16.mxu1 %v820_v52 }
 0x145   :  { %v181_v10 = vpack.c.bf16 %v176_v6, %v175_v8  ;;  %v163_v42 = vmul.f32 %v721_v37, %v149_v9  ;;  %790 = vmatpush3.bf16.msra.mxu1 %v820_v52 }
 0x146   :  { %728 = vmatmul.mubr.msk.bf16.gmra.mxu0 %vm45_vm0, %v180_v63  ;;  %v178_v13 = vadd.f32 %v722_v46, %v164_v43  ;;  %791 = vmatprep.subr.bf16.mxu1 %v821_v53 }
 0x147   :  { %283 = vmatprep.mubr.bf16.mxu0 %v875_v61  ;;  %v177_v14 = vadd.f32 %v722_v46, %v163_v42 }
 0x149   :  { %v182_v15 = vpack.c.bf16 %v178_v13, %v177_v14  ;;  %792 = vmatpush3.bf16.msra.mxu1 %v821_v53  ;;  %v1121_v13 = vrot.slane %v187_v28, %v191_v25  ;;  %v876_v28 = vmov -1.0  }
 0x14e   :  { %729 = vmatmul.mubr.msk.bf16.gmra.mxu0 %vm45_vm0, %v181_v10 }
 0x14f   :  { %293 = vmatprep.mubr.bf16.mxu0 %v875_v61  ;;  %v822_v61 = vld [vmem:[%s1331_s5 + $0x20] sm:$0xff]  }
 0x150   :  { %793 = vmatprep.subr.bf16.mxu1 %v822_v61 }
 0x151   :  { %794 = vmatpush3.bf16.msra.mxu1 %v822_v61 }
 0x152   :  { %795 = vmatprep.subr.bf16.mxu1 %v823_v19 }
 0x155   :  { %796 = vmatpush3.bf16.msra.mxu1 %v823_v19 }
 0x156   :  { %730 = vmatmul.mubr.msk.bf16.gmra.mxu0 %vm45_vm0, %v182_v15  ;;  %797 = vmatprep.subr.bf16.mxu1 %v824_v20 }
 0x159   :  { %798 = vmatpush3.bf16.msra.mxu1 %v824_v20 }
 0x15a   :  { %799 = vmatprep.subr.bf16.mxu1 %v825_v21 }
 0x15d   :  { %800 = vmatpush3.bf16.msra.mxu1 %v825_v21 }
 0x15e   :  { %801 = vmatprep.subr.bf16.mxu1 %v826_v22 }
 0x161   :  { %802 = vmatpush3.bf16.msra.mxu1 %v826_v22 }
 0x1fe   :  { %v1072_v30 = vpop.f32.mrf.mxu0 }
 0x200   :  { %v267_v31 = vpop.f32.mrf.mxu0 }
 0x201   :  { %v268_v34 = vadd.f32 %v267_v31, %v1070_v29 }
 0x202   :  { %v1075_v35 = vpop.f32.mrf.mxu0 }
 0x203   :  { %v312_v36 = vmul.f32 0.70710677, %v268_v34  ;;  %v1131_v22 = vmul.f32 0.5, %v268_v34  ;;  %v1148_v34 = vadd.f32 %v1072_v30, %v1121_v13 }
 0x204   :  { %v271_v37 = vpop.f32.mrf.mxu0 }
 0x205   :  { %v336_v38 = vand.u32 2147483647, %v312_v36  ;;  %v1078_v39 = vadd.f32 %v271_v37, %v1070_v29  ;;  %vm320_vm1 = vcmp.ge.f32.partialorder %v312_v36, 0.0 }
 0x206   :  { %v1080_v40 = vpop.f32.mrf.mxu0  ;;  %v1140_v31 = vsel %vm320_vm1, 1.0, %v876_v28 }
 0x207   :  { %v344_v41 = vmul.f32 0.3275911, %v336_v38  ;;  %v1083_v44 = vmul.f32 0.70710677, %v1078_v39  ;;  %v448_v33 = vsub.f32 0.0, %v336_v38  ;;  %v1161_v25 = vmul.f32 0.5, %v1078_v39 }
 0x208   :  { %v277_v45 = vpop.f32.mrf.mxu0  ;;  %v1176_v39 = vadd.f32 %v1075_v35, %v1121_v13 }
 0x209   :  { %v352_v46 = vadd.f32 1.0, %v344_v41  ;;  %v337_v47 = vand.u32 2147483647, %v1083_v44  ;;  %v1087_v48 = vadd.f32 %v277_v45, %v1070_v29  ;;  %v456_v52 = vmul.f32 %v448_v33, %v336_v38 }
 0x20a   :  { %v1089_v24 = vpop.f32.mrf.mxu0  ;;  %vm321_vm2 = vcmp.ge.f32.partialorder %v1083_v44, 0.0 }
 0x20b   :  { %843 = vrcp.f32 %v352_v46  ;;  %v345_v49 = vmul.f32 0.3275911, %v337_v47  ;;  %v1092_v50 = vmul.f32 0.70710677, %v1087_v48  ;;  %v449_v8 = vsub.f32 0.0, %v337_v47 }
 0x20c   :  { %v281_v51 = vpop.f32.mrf.mxu0  ;;  %v464_v38 = vmul.f32 1.442695, %v456_v52  ;;  %v1166_v33 = vsel %vm321_vm2, 1.0, %v876_v28  ;;  %v1186_v35 = vmul.f32 0.5, %v1087_v48 }
 0x20d   :  { %v353_v54 = vadd.f32 1.0, %v345_v49  ;;  %v1095_v55 = vadd.f32 %v281_v51, %v1070_v29  ;;  %v338_v56 = vand.u32 2147483647, %v1092_v50  ;;  %v457_v61 = vmul.f32 %v449_v8, %v337_v47 }
 0x20e   :  { %v1098_v32 = vpop.f32.mrf.mxu0  ;;  %vm322_vm3 = vcmp.ge.f32.partialorder %v1092_v50, 0.0 }
 0x20f   :  { %845 = vrcp.f32 %v353_v54  ;;  %v346_v57 = vmul.f32 0.3275911, %v338_v56  ;;  %v1101_v58 = vmul.f32 0.70710677, %v1095_v55  ;;  %v450_v19 = vsub.f32 0.0, %v338_v56 }
 0x210   :  { %v287_v59 = vpop.f32.mrf.mxu0  ;;  %v466_v47 = vmul.f32 1.442695, %v457_v61 }
 0x211   :  { %v1104_v60 = vadd.f32 %v287_v59, %v1070_v29  ;;  %v354_v62 = vadd.f32 1.0, %v346_v57  ;;  %v1107_v63 = vand.u32 2147483647, %v1101_v58  ;;  %v458_v49 = vmul.f32 %v450_v19, %v338_v56 }
 0x212   :  { %v1109_v0 = vpop.f32.mrf.mxu0  ;;  %vm323_vm4 = vcmp.ge.f32.partialorder %v1101_v58, 0.0 }
 0x213   :  { %v1112_v1 = vmul.f32 0.70710677, %v1104_v60  ;;  %847 = vrcp.f32 %v354_v62  ;;  %v347_v6 = vmul.f32 0.3275911, %v1107_v63  ;;  %v451_v57 = vsub.f32 0.0, %v1107_v63 }
 0x214   :  { %v291_v7 = vpop.f32.mrf.mxu0  ;;  %v468_v8 = vmul.f32 1.442695, %v458_v49 }
 0x215   :  { %v340_v9 = vand.u32 2147483647, %v1112_v1  ;;  %v1117_v10 = vadd.f32 %v291_v7, %v1070_v29  ;;  %v355_v43 = vadd.f32 1.0, %v347_v6  ;;  %v459_v52 = vmul.f32 %v451_v57, %v1107_v63 }
 0x216   :  { %v1119_v42 = vpop.f32.mrf.mxu0  ;;  %v1194_v63 = vsel %vm322_vm3, 1.0, %v876_v28  ;;  %vm324_vm5 = vcmp.ge.f32.partialorder %v1112_v1, 0.0  ;;  %v276_v1 = vadd.f32 %v1080_v40, %v1121_v13 }
 0x217   :  { %v348_v14 = vmul.f32 0.3275911, %v340_v9  ;;  %v1124_v15 = vmul.f32 0.70710677, %v1117_v10  ;;  %849 = vrcp.f32 %v355_v43  ;;  %v452_v56 = vsub.f32 0.0, %v340_v9 }
 0x218   :  { %v1126_v18 = vpop.eup %843  ;;  %v297_v53 = vpop.f32.mrf.mxu0  ;;  %v470_v49 = vmul.f32 1.442695, %v459_v52 }
 0x219   :  { %v356_v20 = vadd.f32 1.0, %v348_v14  ;;  %v1129_v21 = vand.u32 2147483647, %v1124_v15  ;;  %v1134_v23 = vadd.f32 %v297_v53, %v1070_v29  ;;  %v376_v27 = vmul.f32 1.0614054, %v1126_v18 }
 0x21a   :  { %v1136_v26 = vpop.f32.mrf.mxu0  ;;  %v460_v61 = vmul.f32 %v452_v56, %v340_v9  ;;  %vm325_vm6 = vcmp.ge.f32.partialorder %v1124_v15, 0.0 }
 0x21b   :  { %851 = vrcp.f32 %v356_v20  ;;  %v349_v36 = vmul.f32 0.3275911, %v1129_v21  ;;  %v1151_v41 = vmul.f32 0.70710677, %v1134_v23  ;;  %v384_v46 = vadd.f32 -1.4531521, %v376_v27 }
 0x21c   :  { %v1144_v37 = vpop.eup %845  ;;  %v301_v45 = vpop.f32.mrf.mxu0  ;;  %v472_v57 = vmul.f32 1.442695, %v460_v61 }
 0x21d   :  { %v357_v51 = vadd.f32 1.0, %v349_v36  ;;  %v1154_v54 = vadd.f32 %v301_v45, %v1070_v29  ;;  %v342_v59 = vand.u32 2147483647, %v1151_v41  ;;  %v377_v62 = vmul.f32 1.0614054, %v1144_v37 }
 0x21e   :  { %v392_v30 = vmul.f32 %v1126_v18, %v384_v46  ;;  %vm326_vm7 = vcmp.ge.f32.partialorder %v1151_v41, 0.0 }
 0x21f   :  { %853 = vrcp.f32 %v357_v51  ;;  %v350_v29 = vmul.f32 0.3275911, %v342_v59  ;;  %v1170_v6 = vmul.f32 0.70710677, %v1154_v54  ;;  %v385_v43 = vadd.f32 -1.4531521, %v377_v62 }
 0x220   :  { %855 = vpow2.f32 %v464_v38  ;;  %v1172_v7 = vpop.eup %847  ;;  %v400_v44 = vadd.f32 1.4214138, %v392_v30  ;;  %v453_v38 = vsub.f32 0.0, %v1129_v21  ;;  %v454_v62 = vsub.f32 0.0, %v342_v59 }
 0x221   :  { %857 = vpow2.f32 %v466_v47  ;;  %v378_v14 = vmul.f32 1.0614054, %v1172_v7  ;;  %v358_v53 = vadd.f32 1.0, %v350_v29  ;;  %v1181_v19 = vand.u32 2147483647, %v1170_v6 }
 0x222   :  { %v393_v20 = vmul.f32 %v1144_v37, %v385_v43  ;;  %v408_v27 = vmul.f32 %v1126_v18, %v400_v44  ;;  %vm327_vm8 = vcmp.ge.f32.partialorder %v1170_v6, 0.0  ;;  %v300_v6 = vadd.f32 %v1136_v26, %v1121_v13 }
 0x223   :  { %v386_v36 = vadd.f32 -1.4531521, %v378_v14  ;;  %859 = vrcp.f32 %v358_v53  ;;  %v351_v9 = vmul.f32 0.3275911, %v1181_v19  ;;  %v1205_v14 = vmul.f32 0.5, %v1095_v55 }
 0x224   :  { %v1189_v45 = vpop.eup %849  ;;  %861 = vpow2.f32 %v468_v8  ;;  %v401_v46 = vadd.f32 1.4214138, %v393_v20  ;;  %v416_v51 = vadd.f32 -0.28449672, %v408_v27  ;;  %v461_v8 = vmul.f32 %v453_v38, %v1129_v21 }
 0x225   :  { %v394_v47 = vmul.f32 %v1172_v7, %v386_v36  ;;  %v379_v48 = vmul.f32 1.0614054, %v1189_v45  ;;  %v359_v30 = vadd.f32 1.0, %v351_v9  ;;  %v462_v9 = vmul.f32 %v454_v62, %v342_v59 }
 0x226   :  { %v409_v56 = vmul.f32 %v1144_v37, %v401_v46  ;;  %v424_v44 = vmul.f32 %v1126_v18, %v416_v51 }
 0x227   :  { %v402_v50 = vadd.f32 1.4214138, %v394_v47  ;;  %v387_v43 = vadd.f32 -1.4531521, %v379_v48  ;;  %863 = vrcp.f32 %v359_v30  ;;  %v474_v47 = vmul.f32 1.442695, %v461_v8 }
 0x228   :  { %v1200_v29 = vpop.eup %851  ;;  %v417_v52 = vadd.f32 -0.28449672, %v409_v56  ;;  %865 = vpow2.f32 %v470_v49  ;;  %v432_v27 = vadd.f32 0.2548296, %v424_v44  ;;  %v455_v49 = vsub.f32 0.0, %v1181_v19 }
 0x229   :  { %v380_v53 = vmul.f32 1.0614054, %v1200_v29  ;;  %v410_v61 = vmul.f32 %v1172_v7, %v402_v50  ;;  %v395_v20 = vmul.f32 %v1189_v45, %v387_v43  ;;  %867 = vpow2.f32 %v472_v57 }
 0x22a   :  { %v425_v21 = vmul.f32 %v1144_v37, %v417_v52  ;;  %v440_v48 = vmul.f32 %v1126_v18, %v432_v27  ;;  %869 = vpow2.f32 %v474_v47  ;;  %v331_v47 = vsel %vm323_vm4, 1.0, %v876_v28 }
 0x22b   :  { %v388_v36 = vadd.f32 -1.4531521, %v380_v53  ;;  %v418_v46 = vadd.f32 -0.28449672, %v410_v61  ;;  %v403_v55 = vadd.f32 1.4214138, %v395_v20 }
 0x22c   :  { %v1211_v38 = vpop.eup %853  ;;  %v433_v50 = vadd.f32 0.2548296, %v425_v21  ;;  %v476_v53 = vmul.f32 1.442695, %v462_v9 }
 0x22d   :  { %v856_v51 = vpop.eup %855  ;;  %v396_v30 = vmul.f32 %v1200_v29, %v388_v36  ;;  %v381_v56 = vmul.f32 1.0614054, %v1211_v38  ;;  %v426_v57 = vmul.f32 %v1172_v7, %v418_v46  ;;  %v411_v59 = vmul.f32 %v1189_v45, %v403_v55 }
 0x22e   :  { %v480_v62 = vmul.f32 %v856_v51, %v440_v48  ;;  %v858_v43 = vpop.eup %857  ;;  %v441_v18 = vmul.f32 %v1144_v37, %v433_v50  ;;  %v463_v46 = vmul.f32 %v455_v49, %v1181_v19  ;;  %871 = vpow2.f32 %v476_v53 }
 0x22f   :  { %v404_v44 = vadd.f32 1.4214138, %v396_v30  ;;  %v389_v8 = vadd.f32 -1.4531521, %v381_v56  ;;  %v434_v52 = vadd.f32 0.2548296, %v426_v57 }
 0x230   :  { %v419_v61 = vadd.f32 -0.28449672, %v411_v59  ;;  %v488_v20 = vsub.f32 1.0, %v480_v62  ;;  %v1221_v27 = vpop.eup %859  ;;  %v481_v55 = vmul.f32 %v858_v43, %v441_v18 }
 0x231   :  { %v412_v36 = vmul.f32 %v1200_v29, %v404_v44  ;;  %v397_v21 = vmul.f32 %v1211_v38, %v389_v8  ;;  %v862_v48 = vpop.eup %861  ;;  %v442_v51 = vmul.f32 %v1172_v7, %v434_v52  ;;  %v382_v37 = vmul.f32 1.0614054, %v1221_v27 }
 0x232   :  { %v427_v9 = vmul.f32 %v1189_v45, %v419_v61  ;;  %v496_v30 = vmul.f32 %v488_v20, %v1140_v31  ;;  %v489_v57 = vsub.f32 1.0, %v481_v55  ;;  %v478_v52 = vmul.f32 1.442695, %v463_v46 }
 0x233   :  { %v420_v56 = vadd.f32 -0.28449672, %v412_v36  ;;  %v405_v50 = vadd.f32 1.4214138, %v397_v21  ;;  %v482_v59 = vmul.f32 %v862_v48, %v442_v51  ;;  %v390_v19 = vadd.f32 -1.4531521, %v382_v37 }
 0x234   :  { %v435_v62 = vadd.f32 0.2548296, %v427_v9  ;;  %v504_v49 = vadd.f32 1.0, %v496_v30  ;;  %v497_v44 = vmul.f32 %v489_v57, %v1166_v33  ;;  %v1236_v8 = vpop.eup %863  ;;  %873 = vpow2.f32 %v478_v52 }
 0x235   :  { %v428_v43 = vmul.f32 %v1200_v29, %v420_v56  ;;  %v413_v7 = vmul.f32 %v1211_v38, %v405_v50  ;;  %v490_v31 = vsub.f32 1.0, %v482_v59  ;;  %v398_v18 = vmul.f32 %v1221_v27, %v390_v19  ;;  %v866_v61 = vpop.eup %865 }
 0x236   :  { %v443_v58 = vmul.f32 %v1189_v45, %v435_v62  ;;  %v383_v21 = vmul.f32 1.0614054, %v1236_v8  ;;  %v512_v55 = vmul.f32 %v504_v49, %v1131_v22  ;;  %v868_v48 = vpop.eup %867  ;;  %v505_v9 = vadd.f32 1.0, %v497_v44 }
 0x237   :  { %v436_v20 = vadd.f32 0.2548296, %v428_v43  ;;  %v421_v36 = vadd.f32 -0.28449672, %v413_v7  ;;  %v498_v53 = vmul.f32 %v490_v31, %v1194_v63  ;;  %v406_v33 = vadd.f32 1.4214138, %v398_v18  ;;  %v870_v43 = vpop.eup %869 }
 0x238   :  { %v483_v51 = vmul.f32 %v866_v61, %v443_v58  ;;  %v391_v46 = vadd.f32 -1.4531521, %v383_v21  ;;  %v513_v57 = vmul.f32 %v505_v9, %v1161_v25  ;;  %v520_v49 = vmul.f32 %v512_v55, %v1148_v34 }
 0x239   :  { %v444_v45 = vmul.f32 %v1200_v29, %v436_v20  ;;  %v429_v37 = vmul.f32 %v1211_v38, %v421_v36  ;;  %v506_v30 = vadd.f32 1.0, %v498_v53  ;;  %v414_v50 = vmul.f32 %v1221_v27, %v406_v33 }
 0x23a   :  { %v491_v56 = vsub.f32 1.0, %v483_v51  ;;  %v399_v63 = vmul.f32 %v1236_v8, %v391_v46  ;;  %v521_v29 = vmul.f32 %v513_v57, %v1176_v39  ;;  %v332_v7 = vsel %vm324_vm5, 1.0, %v876_v28 }
 0x23b   :  { %v484_v22 = vmul.f32 %v868_v48, %v444_v45  ;;  %v437_v59 = vadd.f32 0.2548296, %v429_v37  ;;  %v422_v19 = vadd.f32 -0.28449672, %v414_v50  ;;  %v514_v58 = vmul.f32 %v506_v30, %v1186_v35  ;;  %v872_v48 = vpop.eup %871 }
 0x23c   :  { %v499_v62 = vmul.f32 %v491_v56, %v331_v47  ;;  %v407_v25 = vadd.f32 1.4214138, %v399_v63  ;;  %v528_v47 = vpack.c.bf16 %v521_v29, %v520_v49  ;;  %v280_v20 = vadd.f32 %v1089_v24, %v1121_v13 }
 0x23d   :  { %v492_v44 = vsub.f32 1.0, %v484_v22  ;;  %v445_v31 = vmul.f32 %v1211_v38, %v437_v59  ;;  %v430_v52 = vmul.f32 %v1221_v27, %v422_v19  ;;  %v333_v53 = vsel %vm325_vm6, 1.0, %v876_v28 }
 0x23e   :  { %v507_v18 = vadd.f32 1.0, %v499_v62  ;;  %v415_v39 = vmul.f32 %v1236_v8, %v407_v25  ;;  %803 = vmatprep.mubr.bf16.mxu1 %v528_v47  ;;  %v522_v51 = vmul.f32 %v514_v58, %v276_v1  ;;  %v308_v9 = vmul.f32 0.5, %v1104_v60 }
 0x23f   :  { %v500_v61 = vmul.f32 %v492_v44, %v332_v7  ;;  %v485_v34 = vmul.f32 %v870_v43, %v445_v31  ;;  %v438_v36 = vadd.f32 0.2548296, %v430_v52  ;;  %v309_v46 = vmul.f32 0.5, %v1117_v10 }
 0x240   :  { %v515_v38 = vmul.f32 %v507_v18, %v1205_v14  ;;  %v423_v55 = vadd.f32 -0.28449672, %v415_v39  ;;  %v286_v50 = vadd.f32 %v1098_v32, %v1121_v13  ;;  %v290_v60 = vadd.f32 %v1109_v0, %v1121_v13 }
 0x241   :  { %v508_v35 = vadd.f32 1.0, %v500_v61  ;;  %v493_v21 = vsub.f32 1.0, %v485_v34  ;;  %v446_v15 = vmul.f32 %v1221_v27, %v438_v36  ;;  %v334_v22 = vsel %vm326_vm7, 1.0, %v876_v28  ;;  %v874_v59 = vpop.eup %873 }
 0x242   :  { %v523_v33 = vmul.f32 %v515_v38, %v280_v20  ;;  %v431_v45 = vmul.f32 %v1236_v8, %v423_v55  ;;  %v335_v43 = vsel %vm327_vm8, 1.0, %v876_v28  ;;  %v310_v7 = vmul.f32 0.5, %v1134_v23  ;;  %v731_v23 = vld [vmem:[%s1333_s6] ss:$0 sm:$0xff] }
 0x243   :  { %v501_v40 = vmul.f32 %v493_v21, %v333_v53  ;;  %v486_v24 = vmul.f32 %v872_v48, %v446_v15  ;;  %v516_v37 = vmul.f32 %v508_v35, %v308_v9  ;;  %v311_v31 = vmul.f32 0.5, %v1154_v54 }
 0x244   :  { %v529_v14 = vpack.c.bf16 %v523_v33, %v522_v51  ;;  %v439_v56 = vadd.f32 0.2548296, %v431_v45  ;;  %v296_v25 = vadd.f32 %v1119_v42, %v1121_v13 }
 0x245   :  { %v509_v30 = vadd.f32 1.0, %v501_v40  ;;  %v494_v27 = vsub.f32 1.0, %v486_v24  ;;  %v524_v62 = vmul.f32 %v516_v37, %v286_v50 }
 0x246   :  { %804 = vmatmul.mubr.bf16.vlgmr.msra.gmra.mxu1 %v529_v14  ;;  %v447_v41 = vmul.f32 %v1236_v8, %v439_v56 }
 0x247   :  { %v517_v57 = vmul.f32 %v509_v30, %v309_v46  ;;  %v502_v63 = vmul.f32 %v494_v27, %v334_v22 }
 0x248   :  { %v487_v10 = vmul.f32 %v874_v59, %v447_v41 }
 0x249   :  { %v525_v19 = vmul.f32 %v517_v57, %v290_v60  ;;  %v510_v49 = vadd.f32 1.0, %v502_v63 }
 0x24a   :  { %v495_v29 = vsub.f32 1.0, %v487_v10 }
 0x24b   :  { %v530_v32 = vpack.c.bf16 %v525_v19, %v524_v62  ;;  %v518_v44 = vmul.f32 %v510_v49, %v310_v7 }
 0x24c   :  { %v503_v0 = vmul.f32 %v495_v29, %v335_v43 }
 0x24d   :  { %807 = vmatprep.mubr.bf16.mxu1 %v530_v32  ;;  %v526_v18 = vmul.f32 %v518_v44, %v296_v25 }
 0x24e   :  { %v511_v8 = vadd.f32 1.0, %v503_v0 }
 0x250   :  { %v519_v58 = vmul.f32 %v511_v8, %v311_v31 }
 0x252   :  { %v527_v52 = vmul.f32 %v519_v58, %v300_v6 }
 0x254   :  { %v531_v47 = vpack.c.bf16 %v527_v52, %v526_v18 }
 0x256   :  { %808 = vmatmul.mubr.bf16.gmra.mxu1 %v531_v47 }
 0x306   :  { %v805_v28 = vpop.f32.mrf.mxu1 }
 0x307   :  { %v646_v61 = vadd.f32 %v805_v28, %v731_v23 }
 0x308   :  { %v637_v34 = vpop.f32.mrf.mxu1 }
 0x309   :  { %v670_v54 = vadd.f32 %v925_v3, %v646_v61  ;;  %v638_v39 = vadd.f32 %v731_v23, %v637_v34 }
 0x30a   :  { %v806_v42 = vpop.f32.mrf.mxu1 }
 0x30b   :  { %v750_v1 = vpack.c.bf16 %v670_v54, %v670_v54  ;;  %v668_v13 = vadd.f32 %v923_v2, %v638_v39  ;;  %v649_v26 = vadd.f32 %v806_v42, %v731_v23 }
 0x30c   :  { %v640_v20 = vpop.f32.mrf.mxu1 }
 0x30d   :  { %711 = vst.msk [vmem:[%s1334_s7 + $0x8] sm:$0xf] %vm708_vm9, %v750_v1  ;;  %v748_v38 = vpack.c.bf16 %v668_v13, %v668_v13  ;;  %v671_v36 = vadd.f32 %v929_v5, %v649_v26  ;;  %v641_v35 = vadd.f32 %v731_v23, %v640_v20 }
 0x30f   :  { %709 = vst.msk [vmem:[%s1334_s7] sm:$0xf] %vm708_vm9, %v748_v38  ;;  %v751_v3 = vpack.c.bf16 %v671_v36, %v671_v36  ;;  %v669_v21 = vadd.f32 %v927_v4, %v641_v35 }
 0x311   :  { %712 = vst.msk [vmem:[%s1334_s7 + $0xc] sm:$0xf] %vm708_vm9, %v751_v3  ;;  %v749_v2 = vpack.c.bf16 %v669_v21, %v669_v21 }
 0x313   :  { %710 = vst.msk [vmem:[%s1334_s7 + $0x4] sm:$0xf] %vm708_vm9, %v749_v2 }
 0x316   :  { %v809_v5 = vpop.f32.mrf.mxu1 }
 0x317   :  { %v662_v55 = vadd.f32 %v809_v5, %v731_v23 }
 0x318   :  { %v653_v48 = vpop.f32.mrf.mxu1 }
 0x319   :  { %v674_v53 = vadd.f32 %v953_v16, %v662_v55  ;;  %v654_v15 = vadd.f32 %v731_v23, %v653_v48 }
 0x31a   :  { %v810_v51 = vpop.f32.mrf.mxu1 }
 0x31b   :  { %v754_v33 = vpack.c.bf16 %v674_v53, %v674_v53  ;;  %v672_v4 = vadd.f32 %v942_v11, %v654_v15  ;;  %v665_v9 = vadd.f32 %v810_v51, %v731_v23 }
 0x31c   :  { %v656_v40 = vpop.f32.mrf.mxu1 }
 0x31d   :  { %715 = vst.msk [vmem:[%s1334_s7 + $0x18] sm:$0xf] %vm708_vm9, %v754_v33  ;;  %v752_v45 = vpack.c.bf16 %v672_v4, %v672_v4  ;;  %v675_v24 = vadd.f32 %v955_v17, %v665_v9  ;;  %v657_v14 = vadd.f32 %v731_v23, %v656_v40 }
 0x31f   :  { %713 = vst.msk [vmem:[%s1334_s7 + $0x10] sm:$0xf] %vm708_vm9, %v752_v45  ;;  %v755_v16 = vpack.c.bf16 %v675_v24, %v675_v24  ;;  %v673_v37 = vadd.f32 %v944_v12, %v657_v14 }
 0x321   :  { %716 = vst.msk [vmem:[%s1334_s7 + $0x1c] sm:$0xf] %vm708_vm9, %v755_v16  ;;  %v753_v11 = vpack.c.bf16 %v673_v37, %v673_v37 }
 0x323   :  { %714 = vst.msk [vmem:[%s1334_s7 + $0x14] sm:$0xf] %vm708_vm9, %v753_v11 }

// kernel: alphafold2_forward.13
= control target key start
LH: loop header
LB: loop body
LE: loop exit
PB: predicated region body
PF: predicated region fallthrough
CT: control target
= control target key end

     0   :  { %vm39_vm0 = vcmask 261120   ;;  %s498_s0 = inlined_call_operand.vmem [shape: bf16[64,32], index: 0, kind: input, shape index: {}]   ;;  %s499_s3 = inlined_call_operand.vmem [shape: bf16[32,128], index: 3, kind: input, shape index: {}]   ;;  %s500_s1 = inlined_call_operand.vmem [shape: f32[1,32], index: 1, kind: input, shape index: {}]   ;;  %s501_s2 = inlined_call_operand.vmem [shape: f32[1,32], index: 2, kind: input, shape index: {}]   ;;  %s502_s4 = inlined_call_operand.vmem [shape: f32[1,128], index: 4, kind: input, shape index: {}]   ;;  %s503_s5 = inlined_call_operand.vmem [shape: f32[64,128], index: 5, kind: output, shape index: {}]  }
   0x1   :  { %v299_v0 = vld [vmem:[%s498_s0] sm:$0xff]   ;;  %v315_v1 = vld [vmem:[%s498_s0 + $0x10] sm:$0xff]   ;;  %v314_v6 = vld [vmem:[%s498_s0 + $0x8] sm:$0xff]  }
   0x2   :  { %v300_v2 = vunpack.c.l.bf16 %v299_v0  ;;  %v308_v3 = vunpack.c.l.bf16 %v315_v1  ;;  %v301_v4 = vunpack.c.h.bf16 %v299_v0  ;;  %v309_v5 = vunpack.c.h.bf16 %v315_v1  ;;  %v316_v13 = vld [vmem:[%s498_s0 + $0x18] sm:$0xff]   ;;  %v339_v60 = vld [vmem:[%s499_s3 + $0x8] sm:$0xff]   ;;  %v340_v61 = vld [vmem:[%s499_s3] sm:$0xff]  }
   0x3   :  { %v304_v11 = vunpack.c.l.bf16 %v314_v6  ;;  %v305_v12 = vunpack.c.h.bf16 %v314_v6  ;;  %v312_v16 = vunpack.c.l.bf16 %v316_v13  ;;  %v313_v17 = vunpack.c.h.bf16 %v316_v13  ;;  %323 = vmatprep.subr.bf16.mxu0 %v339_v60  ;;  %335 = vmatprep.subr.bf16.mxu1 %v339_v60 }
   0x4   :  { %v40_v7 = vsel %vm39_vm0, %v300_v2, 0.0  ;;  %v52_v8 = vsel %vm39_vm0, %v308_v3, 0.0  ;;  %v43_v9 = vsel %vm39_vm0, %v301_v4, 0.0  ;;  %v55_v10 = vsel %vm39_vm0, %v309_v5, 0.0  ;;  %324 = vmatpush3.bf16.msra.mxu0 %v339_v60  ;;  %337 = vmatpush3.bf16.msra.mxu1 %v339_v60 }
   0x5   :  { %41 = vadd.xlane.f32.xlu0 %v40_v7  ;;  %53 = vadd.xlane.f32.xlu1 %v52_v8  ;;  %v46_v14 = vsel %vm39_vm0, %v304_v11, 0.0  ;;  %v49_v15 = vsel %vm39_vm0, %v305_v12, 0.0  ;;  %v58_v18 = vsel %vm39_vm0, %v312_v16, 0.0  ;;  %v61_v19 = vsel %vm39_vm0, %v313_v17, 0.0 }
   0x6   :  { %325 = vmatprep.subr.bf16.mxu0 %v340_v61  ;;  %336 = vmatprep.subr.bf16.mxu1 %v340_v61 }
   0x8   :  { %326 = vmatpush3.bf16.msra.mxu0 %v340_v61  ;;  %338 = vmatpush3.bf16.msra.mxu1 %v340_v61 }
   0x9   :  { %44 = vadd.xlane.f32.xlu0 %v43_v9  ;;  %56 = vadd.xlane.f32.xlu1 %v55_v10 }
   0xd   :  { %47 = vadd.xlane.f32.xlu0 %v46_v14  ;;  %50 = vadd.xlane.f32.xlu1 %v49_v15 }
  0x11   :  { %59 = vadd.xlane.f32.xlu0 %v58_v18  ;;  %62 = vadd.xlane.f32.xlu1 %v61_v19 }
  0x8e   :  { %v42_v20 = vpop.xlane.xlu0 %41  ;;  %v54_v21 = vpop.xlane.xlu1 %53 }
  0x8f   :  { %v65_v22 = vmul.f32 0.03125, %v42_v20  ;;  %v69_v23 = vmul.f32 0.03125, %v54_v21 }
  0x91   :  { %v407_v24 = vsub.f32 %v300_v2, %v65_v22  ;;  %v409_v25 = vsub.f32 %v308_v3, %v69_v23 }
  0x92   :  { %v45_v26 = vpop.xlane.xlu0 %44  ;;  %v57_v27 = vpop.xlane.xlu1 %56 }
  0x93   :  { %v66_v28 = vmul.f32 0.03125, %v45_v26  ;;  %v70_v29 = vmul.f32 0.03125, %v57_v27  ;;  %v81_v30 = vmul.f32 %v407_v24, %v407_v24  ;;  %v85_v31 = vmul.f32 %v409_v25, %v409_v25  ;;  %v289_v26 = vld [vmem:[%s500_s1] ss:$0 sm:$0xff] }
  0x95   :  { %v415_v32 = vsub.f32 %v301_v4, %v66_v28  ;;  %v417_v33 = vsub.f32 %v309_v5, %v70_v29  ;;  %v89_v34 = vsel %vm39_vm0, %v81_v30, 0.0  ;;  %v101_v37 = vsel %vm39_vm0, %v85_v31, 0.0  ;;  %v290_v31 = vld [vmem:[%s501_s2] ss:$0 sm:$0xff] }
  0x96   :  { %90 = vadd.xlane.f32.xlu0 %v89_v34  ;;  %v48_v35 = vpop.xlane.xlu0 %47  ;;  %v51_v36 = vpop.xlane.xlu1 %50 }
  0x97   :  { %v67_v38 = vmul.f32 0.03125, %v48_v35  ;;  %v68_v39 = vmul.f32 0.03125, %v51_v36  ;;  %v82_v40 = vmul.f32 %v415_v32, %v415_v32  ;;  %v86_v41 = vmul.f32 %v417_v33, %v417_v33 }
  0x99   :  { %v425_v42 = vsub.f32 %v304_v11, %v67_v38  ;;  %v427_v43 = vsub.f32 %v305_v12, %v68_v39  ;;  %v92_v44 = vsel %vm39_vm0, %v82_v40, 0.0  ;;  %v104_v47 = vsel %vm39_vm0, %v86_v41, 0.0 }
  0x9a   :  { %102 = vadd.xlane.f32.xlu0 %v101_v37  ;;  %93 = vadd.xlane.f32.xlu1 %v92_v44  ;;  %v60_v45 = vpop.xlane.xlu0 %59  ;;  %v63_v46 = vpop.xlane.xlu1 %62 }
  0x9b   :  { %v71_v48 = vmul.f32 0.03125, %v60_v45  ;;  %v72_v49 = vmul.f32 0.03125, %v63_v46  ;;  %v83_v50 = vmul.f32 %v425_v42, %v425_v42  ;;  %v84_v51 = vmul.f32 %v427_v43, %v427_v43 }
  0x9d   :  { %v435_v52 = vsub.f32 %v312_v16, %v71_v48  ;;  %v437_v53 = vsub.f32 %v313_v17, %v72_v49  ;;  %v95_v54 = vsel %vm39_vm0, %v83_v50, 0.0  ;;  %v98_v55 = vsel %vm39_vm0, %v84_v51, 0.0 }
  0x9e   :  { %105 = vadd.xlane.f32.xlu1 %v104_v47  ;;  %96 = vadd.xlane.f32.xlu0 %v95_v54 }
  0x9f   :  { %v87_v56 = vmul.f32 %v435_v52, %v435_v52  ;;  %v88_v57 = vmul.f32 %v437_v53, %v437_v53 }
  0xa1   :  { %v107_v58 = vsel %vm39_vm0, %v87_v56, 0.0  ;;  %v110_v59 = vsel %vm39_vm0, %v88_v57, 0.0 }
  0xa2   :  { %99 = vadd.xlane.f32.xlu1 %v98_v55  ;;  %108 = vadd.xlane.f32.xlu0 %v107_v58 }
  0xa6   :  { %111 = vadd.xlane.f32.xlu1 %v110_v59 }
 0x11f   :  { %v91_v62 = vpop.xlane.xlu0 %90 }
 0x120   :  { %v113_v63 = vmul.f32 0.03125, %v91_v62 }
 0x122   :  { %v121_v0 = vadd.f32 1e-05, %v113_v63 }
 0x123   :  { %v94_v1 = vpop.xlane.xlu1 %93  ;;  %v103_v2 = vpop.xlane.xlu0 %102 }
 0x124   :  { %341 = vrsqrt.f32 %v121_v0  ;;  %v114_v3 = vmul.f32 0.03125, %v94_v1  ;;  %v117_v4 = vmul.f32 0.03125, %v103_v2 }
 0x126   :  { %v122_v5 = vadd.f32 1e-05, %v114_v3  ;;  %v125_v6 = vadd.f32 1e-05, %v117_v4 }
 0x127   :  { %v106_v7 = vpop.xlane.xlu1 %105  ;;  %v97_v8 = vpop.xlane.xlu0 %96 }
 0x128   :  { %343 = vrsqrt.f32 %v122_v5  ;;  %v118_v9 = vmul.f32 0.03125, %v106_v7  ;;  %v115_v10 = vmul.f32 0.03125, %v97_v8 }
 0x129   :  { %345 = vrsqrt.f32 %v125_v6 }
 0x12a   :  { %v126_v11 = vadd.f32 1e-05, %v118_v9  ;;  %v123_v12 = vadd.f32 1e-05, %v115_v10 }
 0x12b   :  { %v100_v13 = vpop.xlane.xlu1 %99  ;;  %v109_v14 = vpop.xlane.xlu0 %108 }
 0x12c   :  { %347 = vrsqrt.f32 %v126_v11  ;;  %v116_v15 = vmul.f32 0.03125, %v100_v13  ;;  %v119_v16 = vmul.f32 0.03125, %v109_v14 }
 0x12d   :  { %349 = vrsqrt.f32 %v123_v12 }
 0x12e   :  { %v124_v17 = vadd.f32 1e-05, %v116_v15  ;;  %v127_v18 = vadd.f32 1e-05, %v119_v16 }
 0x12f   :  { %v112_v19 = vpop.xlane.xlu1 %111 }
 0x130   :  { %351 = vrsqrt.f32 %v124_v17  ;;  %v120_v20 = vmul.f32 0.03125, %v112_v19 }
 0x131   :  { %v342_v21 = vpop.eup %341  ;;  %353 = vrsqrt.f32 %v127_v18 }
 0x132   :  { %v128_v22 = vadd.f32 1e-05, %v120_v20  ;;  %v137_v23 = vmul.f32 %v342_v21, %v407_v24 }
 0x134   :  { %355 = vrsqrt.f32 %v128_v22  ;;  %v151_v30 = vmul.f32 %v289_v26, %v137_v23 }
 0x135   :  { %v344_v27 = vpop.eup %343 }
 0x136   :  { %v346_v28 = vpop.eup %345  ;;  %v138_v29 = vmul.f32 %v344_v27, %v415_v32  ;;  %v165_v24 = vadd.f32 %v290_v31, %v151_v30 }
 0x137   :  { %v141_v34 = vmul.f32 %v346_v28, %v409_v25 }
 0x138   :  { %v152_v35 = vmul.f32 %v289_v26, %v138_v29 }
 0x139   :  { %v348_v36 = vpop.eup %347  ;;  %v155_v40 = vmul.f32 %v289_v26, %v141_v34 }
 0x13a   :  { %v350_v37 = vpop.eup %349  ;;  %v166_v38 = vadd.f32 %v290_v31, %v152_v35  ;;  %v142_v39 = vmul.f32 %v348_v36, %v417_v33 }
 0x13b   :  { %v139_v41 = vmul.f32 %v350_v37, %v425_v42  ;;  %v169_v47 = vadd.f32 %v290_v31, %v155_v40 }
 0x13c   :  { %v173_v44 = vpack.c.bf16 %v166_v38, %v165_v24  ;;  %v156_v45 = vmul.f32 %v289_v26, %v142_v39 }
 0x13d   :  { %v352_v32 = vpop.eup %351  ;;  %v153_v49 = vmul.f32 %v289_v26, %v139_v41 }
 0x13e   :  { %v354_v46 = vpop.eup %353  ;;  %327 = vmatprep.mubr.msk.bf16.mxu0 %vm39_vm0, %v173_v44  ;;  %v170_v48 = vadd.f32 %v290_v31, %v156_v45  ;;  %v140_v25 = vmul.f32 %v352_v32, %v427_v43 }
 0x13f   :  { %v143_v50 = vmul.f32 %v354_v46, %v435_v52  ;;  %v167_v33 = vadd.f32 %v290_v31, %v153_v49  ;;  %v291_v52 = vld [vmem:[%s502_s4] ss:$0 sm:$0xff] }
 0x140   :  { %v175_v51 = vpack.c.bf16 %v170_v48, %v169_v47  ;;  %v154_v54 = vmul.f32 %v289_v26, %v140_v25 }
 0x141   :  { %v356_v55 = vpop.eup %355  ;;  %v157_v57 = vmul.f32 %v289_v26, %v143_v50 }
 0x142   :  { %331 = vmatprep.mubr.msk.bf16.mxu1 %vm39_vm0, %v175_v51  ;;  %v168_v42 = vadd.f32 %v290_v31, %v154_v54  ;;  %v144_v56 = vmul.f32 %v356_v55, %v437_v53 }
 0x143   :  { %v171_v60 = vadd.f32 %v290_v31, %v157_v57 }
 0x144   :  { %v174_v58 = vpack.c.bf16 %v168_v42, %v167_v33  ;;  %v158_v59 = vmul.f32 %v289_v26, %v144_v56 }
 0x146   :  { %328 = vmatmul.mubr.msk.bf16.vlgmr.msra.gmra.mxu0 %vm39_vm0, %v174_v58  ;;  %v172_v61 = vadd.f32 %v290_v31, %v158_v59 }
 0x148   :  { %v176_v43 = vpack.c.bf16 %v172_v61, %v171_v60 }
 0x14a   :  { %332 = vmatmul.mubr.msk.bf16.vlgmr.msra.gmra.mxu1 %vm39_vm0, %v176_v43 }
 0x206   :  { %v329_v62 = vpop.f32.mrf.mxu0 }
 0x207   :  { %v255_v63 = vadd.f32 %v329_v62, %v291_v52 }
 0x208   :  { %v246_v0 = vpop.f32.mrf.mxu0 }
 0x209   :  { %279 = vst [vmem:[%s503_s5 + $0x10] sm:$0xff] %v255_v63  ;;  %v247_v53 = vadd.f32 %v291_v52, %v246_v0 }
 0x20a   :  { %v330_v1 = vpop.f32.mrf.mxu0  ;;  %v333_v2 = vpop.f32.mrf.mxu1 }
 0x20b   :  { %277 = vst [vmem:[%s503_s5] sm:$0xff] %v247_v53  ;;  %v258_v3 = vadd.f32 %v330_v1, %v291_v52  ;;  %v271_v4 = vadd.f32 %v333_v2, %v291_v52 }
 0x20c   :  { %v249_v5 = vpop.f32.mrf.mxu0  ;;  %v262_v6 = vpop.f32.mrf.mxu1 }
 0x20d   :  { %280 = vst [vmem:[%s503_s5 + $0x18] sm:$0xff] %v258_v3  ;;  %283 = vst [vmem:[%s503_s5 + $0x30] sm:$0xff] %v271_v4  ;;  %v250_v7 = vadd.f32 %v291_v52, %v249_v5  ;;  %v263_v8 = vadd.f32 %v291_v52, %v262_v6 }
 0x20e   :  { %v334_v9 = vpop.f32.mrf.mxu1 }
 0x20f   :  { %278 = vst [vmem:[%s503_s5 + $0x8] sm:$0xff] %v250_v7  ;;  %281 = vst [vmem:[%s503_s5 + $0x20] sm:$0xff] %v263_v8  ;;  %v274_v10 = vadd.f32 %v334_v9, %v291_v52 }
 0x210   :  { %v265_v11 = vpop.f32.mrf.mxu1 }
 0x211   :  { %284 = vst [vmem:[%s503_s5 + $0x38] sm:$0xff] %v274_v10  ;;  %v266_v12 = vadd.f32 %v291_v52, %v265_v11 }
 0x213   :  { %282 = vst [vmem:[%s503_s5 + $0x28] sm:$0xff] %v266_v12 }

</bundles_post_ra>
